<compile_context>
chip_gen: v7x
topology: tpu7x:2x2x1
jax: 0.10.0
libtpu: 0.0.40
codegen_flags: <defaults>
</compile_context>

<pallas_src>
import functools

import jax
import jax.numpy as jnp
from jax.experimental import pallas as pl
from jax.experimental.pallas import tpu as pltpu


def _elu(v):
    return jnp.where(v > 0, v, jnp.exp(v) - 1.0)


def _round_up(n, m):
    return ((n + m - 1) // m) * m


def _choose_tiles(n_pad):
    """n_pad is a multiple of 256. Keep the row-tile count even (v7x 2-TC
    balance) and prefer large column tiles (amortise the ~0.35us grid-step
    overhead)."""
    if n_pad % 512 == 0:
        return 256, 512
    return 128, 256


def _default_compute_dtype():
    """bf16 elementwise math on chips with a bf16 VPU/EUP (v6e/v7x); f32 on
    v5e and older (no bf16 VALU -> casts would only add work)."""
    try:
        kind = jax.devices()[0].device_kind.lower()
    except Exception:
        return jnp.float32
    if any(t in kind for t in ("v2", "v3", "v4", "v5")):
        return jnp.float32
    return jnp.bfloat16


# --------------------------------------------------------------------------
# Stage 1: projection kernel.
#   h = x @ W  (bf16 MXU, f32 acc);  f = h @ A  (A packs [a1|a2] per head)
#   h_aug[hh] = [h_hh | 1]  pre-packed aggregation RHS (compute dtype)
# --------------------------------------------------------------------------
def _make_proj_kernel(nheads, d):
    def kernel(x_ref, w_ref, a_ref, haug_ref, f1_ref, f2_ref):
        xb = x_ref[...].astype(jnp.bfloat16)
        h = jnp.dot(xb, w_ref[...], preferred_element_type=jnp.float32)  # (TM, H*D)
        # tiny matmul -> keep f32 operands for logit precision
        fa = jnp.dot(h, a_ref[...], preferred_element_type=jnp.float32)  # (TM, 2H)
        f1_ref[...] = fa[:, :nheads]
        f2_ref[...] = fa[:, nheads:]
        ones = jnp.ones((h.shape[0], 1), jnp.float32)
        for hh in range(nheads):
            haug_ref[hh] = jnp.concatenate(
                [h[:, hh * d:(hh + 1) * d], ones], axis=1).astype(haug_ref.dtype)
    return kernel


def _project(x, w_bf16, a_all, *, nheads, d, tm, haug_dtype):
    n, f = x.shape
    hd = nheads * d
    kernel = _make_proj_kernel(nheads, d)
    return pl.pallas_call(
        kernel,
        out_shape=(jax.ShapeDtypeStruct((nheads, n, d + 1), haug_dtype),
                   jax.ShapeDtypeStruct((n, nheads), jnp.float32),
                   jax.ShapeDtypeStruct((n, nheads), jnp.float32)),
        grid_spec=pltpu.PrefetchScalarGridSpec(
            num_scalar_prefetch=0,
            grid=(n // tm,),
            in_specs=[pl.BlockSpec((tm, f), lambda i: (i, 0)),
                      pl.BlockSpec((f, hd), lambda i: (0, 0)),
                      pl.BlockSpec((hd, 2 * nheads), lambda i: (0, 0))],
            out_specs=[pl.BlockSpec((nheads, tm, d + 1), lambda i: (0, i, 0)),
                       pl.BlockSpec((tm, nheads), lambda i: (i, 0)),
                       pl.BlockSpec((tm, nheads), lambda i: (i, 0))]),
        compiler_params=pltpu.CompilerParams(
            dimension_semantics=("parallel",)),
    )(x, w_bf16, a_all)


# --------------------------------------------------------------------------
# Stage 2: fused multi-head attention + aggregation kernel.
#   s_h[i,j] = f1_h[i] + f2_h[j]
#   e_h      = where(adj!=0, exp(min(-s, -alpha*s)), 0)
#   acc_h   += e_h @ h_aug_h         (rowsum folded into the matmul)
#   out      = concat_h( act(acc_h[:, :D] / acc_h[:, D]) )
# Empty (row_tile, col_tile) blocks of adj are skipped via the prefetched
# per-tile nnz counts.
# --------------------------------------------------------------------------
def _make_attn_kernel(nheads, d, alpha, mode, n_col_tiles, tn, compute_dtype):
    neg_alpha = float(-alpha)

    def kernel(nnz_ref, f1_ref, f2t_ref, haug_ref, adj_ref, out_ref, acc_ref):
        i = pl.program_id(0)
        j = pl.program_id(1)
        nj = pl.num_programs(1)

        @pl.when(j == 0)
        def _init():
            acc_ref[...] = jnp.zeros_like(acc_ref)

        @pl.when(nnz_ref[i * n_col_tiles + j] > 0)
        def _compute():
            mask = adj_ref[...] != 0                               # (TM, TN)
            col = pl.multiple_of(j * tn, tn)
            na = jnp.asarray(neg_alpha, compute_dtype)
            zero = jnp.asarray(0.0, compute_dtype)
            for hh in range(nheads):
                f1 = f1_ref[:, hh:hh + 1].astype(compute_dtype)            # (TM, 1)
                f2 = f2t_ref[hh:hh + 1, pl.ds(col, tn)].astype(compute_dtype)  # (1, TN)
                s = f1 + f2                                        # (TM, TN)
                # -leakyrelu(s) == min(-s, -alpha*s); select-mask (no inf*0)
                e = jnp.where(mask, jnp.exp(jnp.minimum(-s, na * s)), zero)
                hcol = haug_ref[hh, pl.ds(col, tn), :]             # (TN, D+1)
                acc_ref[hh] += jnp.dot(e, hcol,
                                       preferred_element_type=jnp.float32)

        @pl.when(j == nj - 1)
        def _finalize():
            outs = []
            for hh in range(nheads):
                blk = acc_ref[hh]                                  # (TM, D+1)
                num = blk[:, :d]
                den = jnp.maximum(blk[:, d:d + 1], 1e-30)          # isolated/padded rows
                hp = num / den
                if mode == "elu":                                  # hidden heads
                    hp = _elu(hp)
                outs.append(hp)
            out = outs[0] if nheads == 1 else jnp.concatenate(outs, axis=1)
            if mode == "final":                                    # out layer
                out = _elu(out)
                m = jnp.max(out, axis=1, keepdims=True)
                lse = jnp.log(jnp.sum(jnp.exp(out - m), axis=1, keepdims=True)) + m
                out = out - lse
            out_ref[...] = out.astype(out_ref.dtype)

    return kernel


def _attention_aggregate(nnz, f1, f2t, h_aug, adj_i8, *, nheads, d, alpha,
                         mode, tm, tn, compute_dtype):
    n = adj_i8.shape[0]
    hd = nheads * d
    n_col_tiles = n // tn
    kernel = _make_attn_kernel(nheads, d, alpha, mode, n_col_tiles, tn,
                               compute_dtype)
    return pl.pallas_call(
        kernel,
        out_shape=jax.ShapeDtypeStruct((n, hd), jnp.float32),
        grid_spec=pltpu.PrefetchScalarGridSpec(
            num_scalar_prefetch=1,                       # per-tile nnz counts
            grid=(n // tm, n_col_tiles),
            in_specs=[
                pl.BlockSpec((tm, nheads), lambda i, j, nz: (i, 0)),        # f1
                pl.BlockSpec((nheads, n), lambda i, j, nz: (0, 0)),         # f2^T resident
                pl.BlockSpec((nheads, n, d + 1), lambda i, j, nz: (0, 0, 0)),  # h_aug resident
                pl.BlockSpec((tm, tn), lambda i, j, nz: (i, j)),            # adj int8
            ],
            out_specs=pl.BlockSpec((tm, hd), lambda i, j, nz: (i, 0)),
            scratch_shapes=[pltpu.VMEM((nheads, tm, d + 1), jnp.float32)]),
        compiler_params=pltpu.CompilerParams(
            dimension_semantics=("parallel", "arbitrary"),
            vmem_limit_bytes=64 * 1024 * 1024),
    )(nnz, f1, f2t, h_aug, adj_i8)


def gat_layer(x, adj_i8, nnz, w_all, a_all, *, nheads, d, alpha, mode, tm, tn,
              compute_dtype):
    """One (multi-head-fused) SpGraphAttentionLayer forward."""
    h_aug, f1, f2 = _project(x, w_all.astype(jnp.bfloat16), a_all,
                             nheads=nheads, d=d, tm=tm, haug_dtype=compute_dtype)
    f2t = jnp.transpose(f2)   # (H, N): tiny one-time relayout for lane-dense reads
    return _attention_aggregate(nnz, f1, f2t, h_aug, adj_i8,
                                nheads=nheads, d=d, alpha=alpha, mode=mode,
                                tm=tm, tn=tn, compute_dtype=compute_dtype)


# --------------------------------------------------------------------------
# Parameters (pyGAT xavier init), packed for the fused kernels.
# --------------------------------------------------------------------------
def init_spgat_params(key, nfeat, nhid, nclass, nheads):
    gain = 1.414

    def xavier(k, shape):
        fan_in, fan_out = shape
        std = gain * (2.0 / (fan_in + fan_out)) ** 0.5
        return jax.random.normal(k, shape, jnp.float32) * std

    ws, a1s, a2s = [], [], []
    for _ in range(nheads):
        key, k1, k2 = jax.random.split(key, 3)
        ws.append(xavier(k1, (nfeat, nhid)))
        a = xavier(k2, (1, 2 * nhid))
        a1s.append(a[0, :nhid])
        a2s.append(a[0, nhid:])
    w_hidden = jnp.concatenate(ws, axis=1)                       # (F, H*D)
    a_hidden = jnp.zeros((nheads * nhid, 2 * nheads), jnp.float32)
    for h in range(nheads):                                      # block-diagonal pack
        a_hidden = a_hidden.at[h * nhid:(h + 1) * nhid, h].set(a1s[h])
        a_hidden = a_hidden.at[h * nhid:(h + 1) * nhid, nheads + h].set(a2s[h])

    key, k1, k2 = jax.random.split(key, 3)
    in_dim = nhid * nheads
    w_out = xavier(k1, (in_dim, nclass))
    a_out = xavier(k2, (1, 2 * nclass))
    a_out_packed = jnp.stack([a_out[0, :nclass], a_out[0, nclass:]], axis=1)  # (C, 2)

    return {"W_hidden": w_hidden, "A_hidden": a_hidden,
            "W_out": w_out, "A_out": a_out_packed}


@functools.partial(jax.jit, static_argnames=("nheads", "nhid", "nclass", "alpha"))
def spgat_forward(x, adj_i8, params, *, nheads, nhid, nclass, alpha):
    # F.dropout(..., training=False) -> identity in eval mode
    n = x.shape[0]
    n_pad = _round_up(n, 256)
    tm, tn = _choose_tiles(n_pad)
    compute_dtype = _default_compute_dtype()

    pad = n_pad - n
    x_p = jnp.pad(x, ((0, pad), (0, 0)))
    adj_p = jnp.pad(adj_i8, ((0, pad), (0, pad)))      # zero rows/cols: masked out

    # Block-sparse schedule shared by both layers: per-(row_tile, col_tile)
    # edge counts, flattened to 1D (SMEM-friendly).
    nnz = adj_p.reshape(n_pad // tm, tm, n_pad // tn, tn).sum(
        axis=(1, 3), dtype=jnp.int32).reshape(-1)

    h = gat_layer(x_p, adj_p, nnz, params["W_hidden"], params["A_hidden"],
                  nheads=nheads, d=nhid, alpha=alpha, mode="elu",
                  tm=tm, tn=tn, compute_dtype=compute_dtype)       # (Np, H*nhid)
    # dropout -> identity
    out = gat_layer(h, adj_p, nnz, params["W_out"], params["A_out"],
                    nheads=1, d=nclass, alpha=alpha, mode="final",
                    tm=tm, tn=tn, compute_dtype=compute_dtype)     # (Np, nclass)
    return out[:n]


if __name__ == "__main__":
    # N chosen non-multiple of 128 so the padding path is exercised; banded
    # adjacency so some (row, col) tiles are truly empty and the block-skip
    # path is exercised (pad 600 -> 768, attention grid (6, 3)).
    N, nfeat, nhid, nclass, nheads = 600, 64, 16, 8, 4
    alpha = 0.2

    key = jax.random.PRNGKey(0)
    kx, kadj, kp = jax.random.split(key, 3)

    x = jax.random.normal(kx, (N, nfeat), jnp.float32)

    ii = jnp.arange(N)
    band = jnp.abs(ii[:, None] - ii[None, :]) < 48
    rnd = jax.random.uniform(kadj, (N, N)) < 0.3
    adj = jnp.logical_or(jnp.logical_and(band, rnd), jnp.eye(N, dtype=bool))
    adj = adj.astype(jnp.int8)

    params = init_spgat_params(kp, nfeat, nhid, nclass, nheads)

    out = spgat_forward(x, adj, params, nheads=nheads, nhid=nhid,
                        nclass=nclass, alpha=alpha)
    out = jax.block_until_ready(out)

    assert out.shape == (N, nclass)
    assert bool(jnp.all(jnp.isfinite(out)))
    # rows of log_softmax should exponentiate-and-sum to 1
    assert bool(jnp.allclose(jnp.sum(jnp.exp(out), axis=1), 1.0, atol=1e-3))

    print("KERNEL_OK")
</pallas_src>

<mosaic_0001>
module attributes {stable_mosaic.version = 11 : i64} {
  func.func @kernel(%arg0: i32, %arg1: memref<128x64xf32, #tpu.memory_space<vmem>>, %arg2: memref<64x64xbf16, #tpu.memory_space<vmem>>, %arg3: memref<64x8xf32, #tpu.memory_space<vmem>>, %arg4: memref<4x128x17xbf16, #tpu.memory_space<vmem>>, %arg5: memref<128x4xf32, #tpu.memory_space<vmem>>, %arg6: memref<128x4xf32, #tpu.memory_space<vmem>>) attributes {dimension_semantics = [#tpu.dimension_semantics<parallel>], iteration_bounds = array<i64: 6>, scalar_prefetch = 0 : i64, scratch_operands = 0 : i64, tpu.core_type = #tpu.core_type<tc>, window_params = [{transform_indices = @transform_0, window_bounds = array<i64: 128, 64>}, {pipeline_mode = #tpu.pipeline_mode<synchronous>, transform_indices = @transform_1, window_bounds = array<i64: 64, 64>}, {pipeline_mode = #tpu.pipeline_mode<synchronous>, transform_indices = @transform_2, window_bounds = array<i64: 64, 8>}, {transform_indices = @transform_3, window_bounds = array<i64: 4, 128, 17>}, {transform_indices = @transform_4, window_bounds = array<i64: 128, 4>}, {transform_indices = @transform_5, window_bounds = array<i64: 128, 4>}]} {
    %c0 = arith.constant 0 : index
    %c0_0 = arith.constant 0 : index
    %0 = vector.load %arg1[%c0, %c0_0] : memref<128x64xf32, #tpu.memory_space<vmem>>, vector<128x64xf32>
    %1 = arith.truncf %0 : vector<128x64xf32> to vector<128x64xbf16>
    %c0_1 = arith.constant 0 : index
    %c0_2 = arith.constant 0 : index
    %2 = vector.load %arg2[%c0_1, %c0_2] : memref<64x64xbf16, #tpu.memory_space<vmem>>, vector<64x64xbf16>
    %cst = arith.constant dense<0.000000e+00> : vector<128x64xf32>
    %3 = tpu.matmul %1, %2, %cst {dimension_numbers = #tpu.dot_dimension_numbers<[1], [0], [0], [1], [0, 0, 1, 1], [], []>} : vector<128x64xbf16>, vector<64x64xbf16>, vector<128x64xf32> -> vector<128x64xf32>
    %c0_3 = arith.constant 0 : index
    %c0_4 = arith.constant 0 : index
    %4 = vector.load %arg3[%c0_3, %c0_4] : memref<64x8xf32, #tpu.memory_space<vmem>>, vector<64x8xf32>
    %cst_5 = arith.constant dense<0.000000e+00> : vector<128x8xf32>
    %5 = tpu.matmul %3, %4, %cst_5 {dimension_numbers = #tpu.dot_dimension_numbers<[1], [0], [0], [1], [0, 0, 1, 1], [], []>} : vector<128x64xf32>, vector<64x8xf32>, vector<128x8xf32> -> vector<128x8xf32>
    %6 = vector.extract_strided_slice %5 {offsets = [0, 0], sizes = [128, 4], strides = [1, 1]} : vector<128x8xf32> to vector<128x4xf32>
    %c0_6 = arith.constant 0 : index
    %c0_7 = arith.constant 0 : index
    %7 = vector.load %arg5[%c0_6, %c0_7] : memref<128x4xf32, #tpu.memory_space<vmem>>, vector<128x4xf32>
    tpu.vector_store %arg5[%c0_6, %c0_7], %6 {strides = array<i32>} : memref<128x4xf32, #tpu.memory_space<vmem>>, vector<128x4xf32>,
    %8 = vector.extract_strided_slice %5 {offsets = [0, 4], sizes = [128, 4], strides = [1, 1]} : vector<128x8xf32> to vector<128x4xf32>
    %c0_8 = arith.constant 0 : index
    %c0_9 = arith.constant 0 : index
    %9 = vector.load %arg6[%c0_8, %c0_9] : memref<128x4xf32, #tpu.memory_space<vmem>>, vector<128x4xf32>
    tpu.vector_store %arg6[%c0_8, %c0_9], %8 {strides = array<i32>} : memref<128x4xf32, #tpu.memory_space<vmem>>, vector<128x4xf32>,
    %cst_10 = arith.constant 1.000000e+00 : f32
    %10 = vector.broadcast %cst_10 : f32 to vector<128x1xf32>
    %11 = vector.extract_strided_slice %3 {offsets = [0, 0], sizes = [128, 16], strides = [1, 1]} : vector<128x64xf32> to vector<128x16xf32>
    %12 = tpu.concatenate %11, %10 in 1 : vector<128x16xf32>, vector<128x1xf32> -> vector<128x17xf32>
    %13 = arith.truncf %12 : vector<128x17xf32> to vector<128x17xbf16>
    %c0_11 = arith.constant 0 : index
    %c0_12 = arith.constant 0 : index
    %c0_13 = arith.constant 0 : index
    %14 = vector.load %arg4[%c0_11, %c0_12, %c0_13] : memref<4x128x17xbf16, #tpu.memory_space<vmem>>, vector<1x128x17xbf16>
    %15 = vector.shape_cast %14 : vector<1x128x17xbf16> to vector<128x17xbf16>
    %16 = vector.shape_cast %13 : vector<128x17xbf16> to vector<1x128x17xbf16>
    tpu.vector_store %arg4[%c0_11, %c0_12, %c0_13], %16 {strides = array<i32>} : memref<4x128x17xbf16, #tpu.memory_space<vmem>>, vector<1x128x17xbf16>,
    %17 = vector.extract_strided_slice %3 {offsets = [0, 16], sizes = [128, 16], strides = [1, 1]} : vector<128x64xf32> to vector<128x16xf32>
    %18 = tpu.concatenate %17, %10 in 1 : vector<128x16xf32>, vector<128x1xf32> -> vector<128x17xf32>
    %19 = arith.truncf %18 : vector<128x17xf32> to vector<128x17xbf16>
    %c1 = arith.constant 1 : index
    %c0_14 = arith.constant 0 : index
    %c0_15 = arith.constant 0 : index
    %20 = vector.load %arg4[%c1, %c0_14, %c0_15] : memref<4x128x17xbf16, #tpu.memory_space<vmem>>, vector<1x128x17xbf16>
    %21 = vector.shape_cast %20 : vector<1x128x17xbf16> to vector<128x17xbf16>
    %22 = vector.shape_cast %19 : vector<128x17xbf16> to vector<1x128x17xbf16>
    tpu.vector_store %arg4[%c1, %c0_14, %c0_15], %22 {strides = array<i32>} : memref<4x128x17xbf16, #tpu.memory_space<vmem>>, vector<1x128x17xbf16>,
    %23 = vector.extract_strided_slice %3 {offsets = [0, 32], sizes = [128, 16], strides = [1, 1]} : vector<128x64xf32> to vector<128x16xf32>
    %24 = tpu.concatenate %23, %10 in 1 : vector<128x16xf32>, vector<128x1xf32> -> vector<128x17xf32>
    %25 = arith.truncf %24 : vector<128x17xf32> to vector<128x17xbf16>
    %c2 = arith.constant 2 : index
    %c0_16 = arith.constant 0 : index
    %c0_17 = arith.constant 0 : index
    %26 = vector.load %arg4[%c2, %c0_16, %c0_17] : memref<4x128x17xbf16, #tpu.memory_space<vmem>>, vector<1x128x17xbf16>
    %27 = vector.shape_cast %26 : vector<1x128x17xbf16> to vector<128x17xbf16>
    %28 = vector.shape_cast %25 : vector<128x17xbf16> to vector<1x128x17xbf16>
    tpu.vector_store %arg4[%c2, %c0_16, %c0_17], %28 {strides = array<i32>} : memref<4x128x17xbf16, #tpu.memory_space<vmem>>, vector<1x128x17xbf16>,
    %29 = vector.extract_strided_slice %3 {offsets = [0, 48], sizes = [128, 16], strides = [1, 1]} : vector<128x64xf32> to vector<128x16xf32>
    %30 = tpu.concatenate %29, %10 in 1 : vector<128x16xf32>, vector<128x1xf32> -> vector<128x17xf32>
    %31 = arith.truncf %30 : vector<128x17xf32> to vector<128x17xbf16>
    %c3 = arith.constant 3 : index
    %c0_18 = arith.constant 0 : index
    %c0_19 = arith.constant 0 : index
    %32 = vector.load %arg4[%c3, %c0_18, %c0_19] : memref<4x128x17xbf16, #tpu.memory_space<vmem>>, vector<1x128x17xbf16>
    %33 = vector.shape_cast %32 : vector<1x128x17xbf16> to vector<128x17xbf16>
    %34 = vector.shape_cast %31 : vector<128x17xbf16> to vector<1x128x17xbf16>
    tpu.vector_store %arg4[%c3, %c0_18, %c0_19], %34 {strides = array<i32>} : memref<4x128x17xbf16, #tpu.memory_space<vmem>>, vector<1x128x17xbf16>,
    return
  }
  func.func @transform_0(%arg0: i32) -> (i32, i32) {
    %c0_i32 = arith.constant 0 : i32
    %c0_i32_0 = arith.constant 0 : i32
    return %arg0, %c0_i32 : i32, i32
  }
  func.func @transform_1(%arg0: i32) -> (i32, i32) {
    %c0_i32 = arith.constant 0 : i32
    %c0_i32_0 = arith.constant 0 : i32
    %c0_i32_1 = arith.constant 0 : i32
    return %c0_i32, %c0_i32_0 : i32, i32
  }
  func.func @transform_2(%arg0: i32) -> (i32, i32) {
    %c0_i32 = arith.constant 0 : i32
    %c0_i32_0 = arith.constant 0 : i32
    %c0_i32_1 = arith.constant 0 : i32
    return %c0_i32, %c0_i32_0 : i32, i32
  }
  func.func @transform_3(%arg0: i32) -> (i32, i32, i32) {
    %c0_i32 = arith.constant 0 : i32
    %c0_i32_0 = arith.constant 0 : i32
    %c0_i32_1 = arith.constant 0 : i32
    return %c0_i32, %arg0, %c0_i32_0 : i32, i32, i32
  }
  func.func @transform_4(%arg0: i32) -> (i32, i32) {
    %c0_i32 = arith.constant 0 : i32
    %c0_i32_0 = arith.constant 0 : i32
    return %arg0, %c0_i32 : i32, i32
  }
  func.func @transform_5(%arg0: i32) -> (i32, i32) {
    %c0_i32 = arith.constant 0 : i32
    %c0_i32_0 = arith.constant 0 : i32
    return %arg0, %c0_i32 : i32, i32
  }
}

module attributes {stable_mosaic.version = 11 : i64} {
  func.func @kernel(%arg0: i32, %arg1: memref<128x64xf32, #tpu.memory_space<vmem>>, %arg2: memref<64x8xbf16, #tpu.memory_space<vmem>>, %arg3: memref<8x2xf32, #tpu.memory_space<vmem>>, %arg4: memref<1x128x9xbf16, #tpu.memory_space<vmem>>, %arg5: memref<128x1xf32, #tpu.memory_space<vmem>>, %arg6: memref<128x1xf32, #tpu.memory_space<vmem>>) attributes {dimension_semantics = [#tpu.dimension_semantics<parallel>], iteration_bounds = array<i64: 6>, scalar_prefetch = 0 : i64, scratch_operands = 0 : i64, tpu.core_type = #tpu.core_type<tc>, window_params = [{transform_indices = @transform_0, window_bounds = array<i64: 128, 64>}, {pipeline_mode = #tpu.pipeline_mode<synchronous>, transform_indices = @transform_1, window_bounds = array<i64: 64, 8>}, {pipeline_mode = #tpu.pipeline_mode<synchronous>, transform_indices = @transform_2, window_bounds = array<i64: 8, 2>}, {transform_indices = @transform_3, window_bounds = array<i64: 1, 128, 9>}, {transform_indices = @transform_4, window_bounds = array<i64: 128, 1>}, {transform_indices = @transform_5, window_bounds = array<i64: 128, 1>}]} {
    %c0 = arith.constant 0 : index
    %c0_0 = arith.constant 0 : index
    %0 = vector.load %arg1[%c0, %c0_0] : memref<128x64xf32, #tpu.memory_space<vmem>>, vector<128x64xf32>
    %1 = arith.truncf %0 : vector<128x64xf32> to vector<128x64xbf16>
    %c0_1 = arith.constant 0 : index
    %c0_2 = arith.constant 0 : index
    %2 = vector.load %arg2[%c0_1, %c0_2] : memref<64x8xbf16, #tpu.memory_space<vmem>>, vector<64x8xbf16>
    %cst = arith.constant dense<0.000000e+00> : vector<128x8xf32>
    %3 = tpu.matmul %1, %2, %cst {dimension_numbers = #tpu.dot_dimension_numbers<[1], [0], [0], [1], [0, 0, 1, 1], [], []>} : vector<128x64xbf16>, vector<64x8xbf16>, vector<128x8xf32> -> vector<128x8xf32>
    %c0_3 = arith.constant 0 : index
    %c0_4 = arith.constant 0 : index
    %4 = vector.load %arg3[%c0_3, %c0_4] : memref<8x2xf32, #tpu.memory_space<vmem>>, vector<8x2xf32>
    %cst_5 = arith.constant dense<0.000000e+00> : vector<128x2xf32>
    %5 = tpu.matmul %3, %4, %cst_5 {dimension_numbers = #tpu.dot_dimension_numbers<[1], [0], [0], [1], [0, 0, 1, 1], [], []>} : vector<128x8xf32>, vector<8x2xf32>, vector<128x2xf32> -> vector<128x2xf32>
    %6 = vector.extract_strided_slice %5 {offsets = [0, 0], sizes = [128, 1], strides = [1, 1]} : vector<128x2xf32> to vector<128x1xf32>
    %c0_6 = arith.constant 0 : index
    %c0_7 = arith.constant 0 : index
    %7 = vector.load %arg5[%c0_6, %c0_7] : memref<128x1xf32, #tpu.memory_space<vmem>>, vector<128x1xf32>
    tpu.vector_store %arg5[%c0_6, %c0_7], %6 {strides = array<i32>} : memref<128x1xf32, #tpu.memory_space<vmem>>, vector<128x1xf32>,
    %8 = vector.extract_strided_slice %5 {offsets = [0, 1], sizes = [128, 1], strides = [1, 1]} : vector<128x2xf32> to vector<128x1xf32>
    %c0_8 = arith.constant 0 : index
    %c0_9 = arith.constant 0 : index
    %9 = vector.load %arg6[%c0_8, %c0_9] : memref<128x1xf32, #tpu.memory_space<vmem>>, vector<128x1xf32>
    tpu.vector_store %arg6[%c0_8, %c0_9], %8 {strides = array<i32>} : memref<128x1xf32, #tpu.memory_space<vmem>>, vector<128x1xf32>,
    %cst_10 = arith.constant 1.000000e+00 : f32
    %10 = vector.broadcast %cst_10 : f32 to vector<128x1xf32>
    %11 = tpu.concatenate %3, %10 in 1 : vector<128x8xf32>, vector<128x1xf32> -> vector<128x9xf32>
    %12 = arith.truncf %11 : vector<128x9xf32> to vector<128x9xbf16>
    %c0_11 = arith.constant 0 : index
    %c0_12 = arith.constant 0 : index
    %c0_13 = arith.constant 0 : index
    %13 = vector.load %arg4[%c0_11, %c0_12, %c0_13] : memref<1x128x9xbf16, #tpu.memory_space<vmem>>, vector<1x128x9xbf16>
    %14 = vector.shape_cast %13 : vector<1x128x9xbf16> to vector<128x9xbf16>
    %15 = vector.shape_cast %12 : vector<128x9xbf16> to vector<1x128x9xbf16>
    tpu.vector_store %arg4[%c0_11, %c0_12, %c0_13], %15 {strides = array<i32>} : memref<1x128x9xbf16, #tpu.memory_space<vmem>>, vector<1x128x9xbf16>,
    return
  }
  func.func @transform_0(%arg0: i32) -> (i32, i32) {
    %c0_i32 = arith.constant 0 : i32
    %c0_i32_0 = arith.constant 0 : i32
    return %arg0, %c0_i32 : i32, i32
  }
  func.func @transform_1(%arg0: i32) -> (i32, i32) {
    %c0_i32 = arith.constant 0 : i32
    %c0_i32_0 = arith.constant 0 : i32
    %c0_i32_1 = arith.constant 0 : i32
    return %c0_i32, %c0_i32_0 : i32, i32
  }
  func.func @transform_2(%arg0: i32) -> (i32, i32) {
    %c0_i32 = arith.constant 0 : i32
    %c0_i32_0 = arith.constant 0 : i32
    %c0_i32_1 = arith.constant 0 : i32
    return %c0_i32, %c0_i32_0 : i32, i32
  }
  func.func @transform_3(%arg0: i32) -> (i32, i32, i32) {
    %c0_i32 = arith.constant 0 : i32
    %c0_i32_0 = arith.constant 0 : i32
    %c0_i32_1 = arith.constant 0 : i32
    return %c0_i32, %arg0, %c0_i32_0 : i32, i32, i32
  }
  func.func @transform_4(%arg0: i32) -> (i32, i32) {
    %c0_i32 = arith.constant 0 : i32
    %c0_i32_0 = arith.constant 0 : i32
    return %arg0, %c0_i32 : i32, i32
  }
  func.func @transform_5(%arg0: i32) -> (i32, i32) {
    %c0_i32 = arith.constant 0 : i32
    %c0_i32_0 = arith.constant 0 : i32
    return %arg0, %c0_i32 : i32, i32
  }
}

module attributes {stable_mosaic.version = 11 : i64} {
  func.func @kernel(%arg0: i32, %arg1: i32, %arg2: memref<18xi32, #tpu.memory_space<smem>>, %arg3: memref<128x4xf32, #tpu.memory_space<vmem>>, %arg4: memref<4x768xf32, #tpu.memory_space<vmem>>, %arg5: memref<4x768x17xbf16, #tpu.memory_space<vmem>>, %arg6: memref<128x256xi8, #tpu.memory_space<vmem>>, %arg7: memref<128x64xf32, #tpu.memory_space<vmem>>, %arg8: memref<4x128x17xf32, #tpu.memory_space<vmem>>) attributes {dimension_semantics = [#tpu.dimension_semantics<parallel>, #tpu.dimension_semantics<arbitrary>], iteration_bounds = array<i64: 6, 3>, scalar_prefetch = 1 : i64, scratch_operands = 1 : i64, tpu.core_type = #tpu.core_type<tc>, window_params = [{transform_indices = @transform_0, window_bounds = array<i64: 128, 4>}, {pipeline_mode = #tpu.pipeline_mode<synchronous>, transform_indices = @transform_1, window_bounds = array<i64: 4, 768>}, {pipeline_mode = #tpu.pipeline_mode<synchronous>, transform_indices = @transform_2, window_bounds = array<i64: 4, 768, 17>}, {transform_indices = @transform_3, window_bounds = array<i64: 128, 256>}, {transform_indices = @transform_4, window_bounds = array<i64: 128, 64>}]} {
    %c0_i32 = arith.constant 0 : i32
    %0 = arith.cmpi eq, %arg1, %c0_i32 : i32
    %1 = arith.extui %0 : i1 to i32
    %c0_i32_0 = arith.constant 0 : i32
    %2 = arith.cmpi ne, %1, %c0_i32_0 : i32
    scf.if %2 {
      %cst = arith.constant 0.000000e+00 : f32
      %13 = vector.broadcast %cst : f32 to vector<4x128x17xf32>
      %c0 = arith.constant 0 : index
      %c0_4 = arith.constant 0 : index
      %c0_5 = arith.constant 0 : index
      %14 = vector.load %arg8[%c0, %c0_4, %c0_5] : memref<4x128x17xf32, #tpu.memory_space<vmem>>, vector<4x128x17xf32>
      tpu.vector_store %arg8[%c0, %c0_4, %c0_5], %13 {strides = array<i32>} : memref<4x128x17xf32, #tpu.memory_space<vmem>>, vector<4x128x17xf32>,
    } else {
    }
    %c3_i32 = arith.constant 3 : i32
    %3 = arith.muli %arg0, %c3_i32 : i32
    %4 = arith.addi %3, %arg1 : i32
    %5 = arith.index_cast %4 : i32 to index
    %6 = memref.load %arg2[%5] : memref<18xi32, #tpu.memory_space<smem>>
    %c0_i32_1 = arith.constant 0 : i32
    %7 = arith.cmpi sgt, %6, %c0_i32_1 : i32
    %8 = arith.extui %7 : i1 to i32
    %c0_i32_2 = arith.constant 0 : i32
    %9 = arith.cmpi ne, %8, %c0_i32_2 : i32
    scf.if %9 {
      %c0 = arith.constant 0 : index
      %c0_4 = arith.constant 0 : index
      %13 = vector.load %arg6[%c0, %c0_4] : memref<128x256xi8, #tpu.memory_space<vmem>>, vector<128x256xi8>
      %c0_i8 = arith.constant 0 : i8
      %14 = vector.broadcast %c0_i8 : i8 to vector<128x256xi8>
      %15 = arith.cmpi ne, %13, %14 : vector<128x256xi8>
      %c256_i32 = arith.constant 256 : i32
      %16 = arith.muli %arg1, %c256_i32 : i32
      %17 = tpu.assume_multiple %16, 256 : i32
      %c0_5 = arith.constant 0 : index
      %c0_6 = arith.constant 0 : index
      %18 = vector.load %arg3[%c0_5, %c0_6] : memref<128x4xf32, #tpu.memory_space<vmem>>, vector<128x1xf32>
      %19 = arith.truncf %18 : vector<128x1xf32> to vector<128x1xbf16>
      %c0_7 = arith.constant 0 : index
      %20 = arith.index_cast %17 : i32 to index
      %21 = vector.load %arg4[%c0_7, %20] : memref<4x768xf32, #tpu.memory_space<vmem>>, vector<1x256xf32>
      %22 = arith.truncf %21 : vector<1x256xf32> to vector<1x256xbf16>
      %23 = vector.broadcast %19 : vector<128x1xbf16> to vector<128x256xbf16>
      %24 = vector.broadcast %22 : vector<1x256xbf16> to vector<128x256xbf16>
      %25 = arith.addf %23, %24 : vector<128x256xbf16>
      %cst = arith.constant 0.000000e+00 : bf16
      %26 = vector.broadcast %cst : bf16 to vector<128x256xbf16>
      %27 = arith.subf %26, %25 : vector<128x256xbf16>
      %cst_8 = arith.constant -2.001950e-01 : bf16
      %28 = vector.broadcast %cst_8 : bf16 to vector<128x256xbf16>
      %29 = arith.mulf %28, %25 : vector<128x256xbf16>
      %30 = arith.minimumf %27, %29 : vector<128x256xbf16>
      %31 = math.exp %30 : vector<128x256xbf16>
      %cst_9 = arith.constant 0.000000e+00 : bf16
      %32 = vector.broadcast %cst_9 : bf16 to vector<128x256xbf16>
      %33 = arith.select %15, %31, %32 : vector<128x256xi1>, vector<128x256xbf16>
      %c0_10 = arith.constant 0 : index
      %34 = arith.index_cast %17 : i32 to index
      %c0_11 = arith.constant 0 : index
      %35 = vector.load %arg5[%c0_10, %34, %c0_11] : memref<4x768x17xbf16, #tpu.memory_space<vmem>>, vector<1x256x17xbf16>
      %36 = vector.shape_cast %35 : vector<1x256x17xbf16> to vector<256x17xbf16>
      %c0_12 = arith.constant 0 : index
      %c0_13 = arith.constant 0 : index
      %c0_14 = arith.constant 0 : index
      %37 = vector.load %arg8[%c0_12, %c0_13, %c0_14] : memref<4x128x17xf32, #tpu.memory_space<vmem>>, vector<1x128x17xf32>
      %38 = vector.shape_cast %37 : vector<1x128x17xf32> to vector<128x17xf32>
      %cst_15 = arith.constant dense<0.000000e+00> : vector<128x17xf32>
      %39 = tpu.matmul %33, %36, %cst_15 {dimension_numbers = #tpu.dot_dimension_numbers<[1], [0], [0], [1], [0, 0, 1, 1], [], []>} : vector<128x256xbf16>, vector<256x17xbf16>, vector<128x17xf32> -> vector<128x17xf32>
      %40 = arith.addf %38, %39 : vector<128x17xf32>
      %c0_16 = arith.constant 0 : index
      %c0_17 = arith.constant 0 : index
      %c0_18 = arith.constant 0 : index
      %41 = vector.load %arg8[%c0_16, %c0_17, %c0_18] : memref<4x128x17xf32, #tpu.memory_space<vmem>>, vector<1x128x17xf32>
      %42 = vector.shape_cast %41 : vector<1x128x17xf32> to vector<128x17xf32>
      %43 = vector.shape_cast %40 : vector<128x17xf32> to vector<1x128x17xf32>
      tpu.vector_store %arg8[%c0_16, %c0_17, %c0_18], %43 {strides = array<i32>} : memref<4x128x17xf32, #tpu.memory_space<vmem>>, vector<1x128x17xf32>,
      %c0_19 = arith.constant 0 : index
      %c1 = arith.constant 1 : index
      %44 = vector.load %arg3[%c0_19, %c1] : memref<128x4xf32, #tpu.memory_space<vmem>>, vector<128x1xf32>
      %45 = arith.truncf %44 : vector<128x1xf32> to vector<128x1xbf16>
      %c1_20 = arith.constant 1 : index
      %46 = arith.index_cast %17 : i32 to index
      %47 = vector.load %arg4[%c1_20, %46] : memref<4x768xf32, #tpu.memory_space<vmem>>, vector<1x256xf32>
      %48 = arith.truncf %47 : vector<1x256xf32> to vector<1x256xbf16>
      %49 = vector.broadcast %45 : vector<128x1xbf16> to vector<128x256xbf16>
      %50 = vector.broadcast %48 : vector<1x256xbf16> to vector<128x256xbf16>
      %51 = arith.addf %49, %50 : vector<128x256xbf16>
      %cst_21 = arith.constant 0.000000e+00 : bf16
      %52 = vector.broadcast %cst_21 : bf16 to vector<128x256xbf16>
      %53 = arith.subf %52, %51 : vector<128x256xbf16>
      %cst_22 = arith.constant -2.001950e-01 : bf16
      %54 = vector.broadcast %cst_22 : bf16 to vector<128x256xbf16>
      %55 = arith.mulf %54, %51 : vector<128x256xbf16>
      %56 = arith.minimumf %53, %55 : vector<128x256xbf16>
      %57 = math.exp %56 : vector<128x256xbf16>
      %cst_23 = arith.constant 0.000000e+00 : bf16
      %58 = vector.broadcast %cst_23 : bf16 to vector<128x256xbf16>
      %59 = arith.select %15, %57, %58 : vector<128x256xi1>, vector<128x256xbf16>
      %c1_24 = arith.constant 1 : index
      %60 = arith.index_cast %17 : i32 to index
      %c0_25 = arith.constant 0 : index
      %61 = vector.load %arg5[%c1_24, %60, %c0_25] : memref<4x768x17xbf16, #tpu.memory_space<vmem>>, vector<1x256x17xbf16>
      %62 = vector.shape_cast %61 : vector<1x256x17xbf16> to vector<256x17xbf16>
      %c1_26 = arith.constant 1 : index
      %c0_27 = arith.constant 0 : index
      %c0_28 = arith.constant 0 : index
      %63 = vector.load %arg8[%c1_26, %c0_27, %c0_28] : memref<4x128x17xf32, #tpu.memory_space<vmem>>, vector<1x128x17xf32>
      %64 = vector.shape_cast %63 : vector<1x128x17xf32> to vector<128x17xf32>
      %cst_29 = arith.constant dense<0.000000e+00> : vector<128x17xf32>
      %65 = tpu.matmul %59, %62, %cst_29 {dimension_numbers = #tpu.dot_dimension_numbers<[1], [0], [0], [1], [0, 0, 1, 1], [], []>} : vector<128x256xbf16>, vector<256x17xbf16>, vector<128x17xf32> -> vector<128x17xf32>
      %66 = arith.addf %64, %65 : vector<128x17xf32>
      %c1_30 = arith.constant 1 : index
      %c0_31 = arith.constant 0 : index
      %c0_32 = arith.constant 0 : index
      %67 = vector.load %arg8[%c1_30, %c0_31, %c0_32] : memref<4x128x17xf32, #tpu.memory_space<vmem>>, vector<1x128x17xf32>
      %68 = vector.shape_cast %67 : vector<1x128x17xf32> to vector<128x17xf32>
      %69 = vector.shape_cast %66 : vector<128x17xf32> to vector<1x128x17xf32>
      tpu.vector_store %arg8[%c1_30, %c0_31, %c0_32], %69 {strides = array<i32>} : memref<4x128x17xf32, #tpu.memory_space<vmem>>, vector<1x128x17xf32>,
      %c0_33 = arith.constant 0 : index
      %c2 = arith.constant 2 : index
      %70 = vector.load %arg3[%c0_33, %c2] : memref<128x4xf32, #tpu.memory_space<vmem>>, vector<128x1xf32>
      %71 = arith.truncf %70 : vector<128x1xf32> to vector<128x1xbf16>
      %c2_34 = arith.constant 2 : index
      %72 = arith.index_cast %17 : i32 to index
      %73 = vector.load %arg4[%c2_34, %72] : memref<4x768xf32, #tpu.memory_space<vmem>>, vector<1x256xf32>
      %74 = arith.truncf %73 : vector<1x256xf32> to vector<1x256xbf16>
      %75 = vector.broadcast %71 : vector<128x1xbf16> to vector<128x256xbf16>
      %76 = vector.broadcast %74 : vector<1x256xbf16> to vector<128x256xbf16>
      %77 = arith.addf %75, %76 : vector<128x256xbf16>
      %cst_35 = arith.constant 0.000000e+00 : bf16
      %78 = vector.broadcast %cst_35 : bf16 to vector<128x256xbf16>
      %79 = arith.subf %78, %77 : vector<128x256xbf16>
      %cst_36 = arith.constant -2.001950e-01 : bf16
      %80 = vector.broadcast %cst_36 : bf16 to vector<128x256xbf16>
      %81 = arith.mulf %80, %77 : vector<128x256xbf16>
      %82 = arith.minimumf %79, %81 : vector<128x256xbf16>
      %83 = math.exp %82 : vector<128x256xbf16>
      %cst_37 = arith.constant 0.000000e+00 : bf16
      %84 = vector.broadcast %cst_37 : bf16 to vector<128x256xbf16>
      %85 = arith.select %15, %83, %84 : vector<128x256xi1>, vector<128x256xbf16>
      %c2_38 = arith.constant 2 : index
      %86 = arith.index_cast %17 : i32 to index
      %c0_39 = arith.constant 0 : index
      %87 = vector.load %arg5[%c2_38, %86, %c0_39] : memref<4x768x17xbf16, #tpu.memory_space<vmem>>, vector<1x256x17xbf16>
      %88 = vector.shape_cast %87 : vector<1x256x17xbf16> to vector<256x17xbf16>
      %c2_40 = arith.constant 2 : index
      %c0_41 = arith.constant 0 : index
      %c0_42 = arith.constant 0 : index
      %89 = vector.load %arg8[%c2_40, %c0_41, %c0_42] : memref<4x128x17xf32, #tpu.memory_space<vmem>>, vector<1x128x17xf32>
      %90 = vector.shape_cast %89 : vector<1x128x17xf32> to vector<128x17xf32>
      %cst_43 = arith.constant dense<0.000000e+00> : vector<128x17xf32>
      %91 = tpu.matmul %85, %88, %cst_43 {dimension_numbers = #tpu.dot_dimension_numbers<[1], [0], [0], [1], [0, 0, 1, 1], [], []>} : vector<128x256xbf16>, vector<256x17xbf16>, vector<128x17xf32> -> vector<128x17xf32>
      %92 = arith.addf %90, %91 : vector<128x17xf32>
      %c2_44 = arith.constant 2 : index
      %c0_45 = arith.constant 0 : index
      %c0_46 = arith.constant 0 : index
      %93 = vector.load %arg8[%c2_44, %c0_45, %c0_46] : memref<4x128x17xf32, #tpu.memory_space<vmem>>, vector<1x128x17xf32>
      %94 = vector.shape_cast %93 : vector<1x128x17xf32> to vector<128x17xf32>
      %95 = vector.shape_cast %92 : vector<128x17xf32> to vector<1x128x17xf32>
      tpu.vector_store %arg8[%c2_44, %c0_45, %c0_46], %95 {strides = array<i32>} : memref<4x128x17xf32, #tpu.memory_space<vmem>>, vector<1x128x17xf32>,
      %c0_47 = arith.constant 0 : index
      %c3 = arith.constant 3 : index
      %96 = vector.load %arg3[%c0_47, %c3] : memref<128x4xf32, #tpu.memory_space<vmem>>, vector<128x1xf32>
      %97 = arith.truncf %96 : vector<128x1xf32> to vector<128x1xbf16>
      %c3_48 = arith.constant 3 : index
      %98 = arith.index_cast %17 : i32 to index
      %99 = vector.load %arg4[%c3_48, %98] : memref<4x768xf32, #tpu.memory_space<vmem>>, vector<1x256xf32>
      %100 = arith.truncf %99 : vector<1x256xf32> to vector<1x256xbf16>
      %101 = vector.broadcast %97 : vector<128x1xbf16> to vector<128x256xbf16>
      %102 = vector.broadcast %100 : vector<1x256xbf16> to vector<128x256xbf16>
      %103 = arith.addf %101, %102 : vector<128x256xbf16>
      %cst_49 = arith.constant 0.000000e+00 : bf16
      %104 = vector.broadcast %cst_49 : bf16 to vector<128x256xbf16>
      %105 = arith.subf %104, %103 : vector<128x256xbf16>
      %cst_50 = arith.constant -2.001950e-01 : bf16
      %106 = vector.broadcast %cst_50 : bf16 to vector<128x256xbf16>
      %107 = arith.mulf %106, %103 : vector<128x256xbf16>
      %108 = arith.minimumf %105, %107 : vector<128x256xbf16>
      %109 = math.exp %108 : vector<128x256xbf16>
      %cst_51 = arith.constant 0.000000e+00 : bf16
      %110 = vector.broadcast %cst_51 : bf16 to vector<128x256xbf16>
      %111 = arith.select %15, %109, %110 : vector<128x256xi1>, vector<128x256xbf16>
      %c3_52 = arith.constant 3 : index
      %112 = arith.index_cast %17 : i32 to index
      %c0_53 = arith.constant 0 : index
      %113 = vector.load %arg5[%c3_52, %112, %c0_53] : memref<4x768x17xbf16, #tpu.memory_space<vmem>>, vector<1x256x17xbf16>
      %114 = vector.shape_cast %113 : vector<1x256x17xbf16> to vector<256x17xbf16>
      %c3_54 = arith.constant 3 : index
      %c0_55 = arith.constant 0 : index
      %c0_56 = arith.constant 0 : index
      %115 = vector.load %arg8[%c3_54, %c0_55, %c0_56] : memref<4x128x17xf32, #tpu.memory_space<vmem>>, vector<1x128x17xf32>
      %116 = vector.shape_cast %115 : vector<1x128x17xf32> to vector<128x17xf32>
      %cst_57 = arith.constant dense<0.000000e+00> : vector<128x17xf32>
      %117 = tpu.matmul %111, %114, %cst_57 {dimension_numbers = #tpu.dot_dimension_numbers<[1], [0], [0], [1], [0, 0, 1, 1], [], []>} : vector<128x256xbf16>, vector<256x17xbf16>, vector<128x17xf32> -> vector<128x17xf32>
      %118 = arith.addf %116, %117 : vector<128x17xf32>
      %c3_58 = arith.constant 3 : index
      %c0_59 = arith.constant 0 : index
      %c0_60 = arith.constant 0 : index
      %119 = vector.load %arg8[%c3_58, %c0_59, %c0_60] : memref<4x128x17xf32, #tpu.memory_space<vmem>>, vector<1x128x17xf32>
      %120 = vector.shape_cast %119 : vector<1x128x17xf32> to vector<128x17xf32>
      %121 = vector.shape_cast %118 : vector<128x17xf32> to vector<1x128x17xf32>
      tpu.vector_store %arg8[%c3_58, %c0_59, %c0_60], %121 {strides = array<i32>} : memref<4x128x17xf32, #tpu.memory_space<vmem>>, vector<1x128x17xf32>,
    } else {
    }
    %c2_i32 = arith.constant 2 : i32
    %10 = arith.cmpi eq, %arg1, %c2_i32 : i32
    %11 = arith.extui %10 : i1 to i32
    %c0_i32_3 = arith.constant 0 : i32
    %12 = arith.cmpi ne, %11, %c0_i32_3 : i32
    scf.if %12 {
      %c0 = arith.constant 0 : index
      %c0_4 = arith.constant 0 : index
      %c0_5 = arith.constant 0 : index
      %13 = vector.load %arg8[%c0, %c0_4, %c0_5] : memref<4x128x17xf32, #tpu.memory_space<vmem>>, vector<1x128x17xf32>
      %14 = vector.shape_cast %13 : vector<1x128x17xf32> to vector<128x17xf32>
      %15 = vector.extract_strided_slice %14 {offsets = [0, 0], sizes = [128, 16], strides = [1, 1]} : vector<128x17xf32> to vector<128x16xf32>
      %16 = vector.extract_strided_slice %14 {offsets = [0, 16], sizes = [128, 1], strides = [1, 1]} : vector<128x17xf32> to vector<128x1xf32>
      %cst = arith.constant 1.000000e-30 : f32
      %17 = vector.broadcast %cst : f32 to vector<128x1xf32>
      %18 = arith.maximumf %16, %17 : vector<128x1xf32>
      %19 = vector.broadcast %18 : vector<128x1xf32> to vector<128x16xf32>
      %20 = arith.divf %15, %19 : vector<128x16xf32>
      %cst_6 = arith.constant 0.000000e+00 : f32
      %21 = vector.broadcast %cst_6 : f32 to vector<128x16xf32>
      %22 = arith.cmpf ogt, %20, %21 : vector<128x16xf32>
      %23 = math.exp %20 : vector<128x16xf32>
      %cst_7 = arith.constant 1.000000e+00 : f32
      %24 = vector.broadcast %cst_7 : f32 to vector<128x16xf32>
      %25 = arith.subf %23, %24 : vector<128x16xf32>
      %26 = arith.select %22, %20, %25 : vector<128x16xi1>, vector<128x16xf32>
      %c1 = arith.constant 1 : index
      %c0_8 = arith.constant 0 : index
      %c0_9 = arith.constant 0 : index
      %27 = vector.load %arg8[%c1, %c0_8, %c0_9] : memref<4x128x17xf32, #tpu.memory_space<vmem>>, vector<1x128x17xf32>
      %28 = vector.shape_cast %27 : vector<1x128x17xf32> to vector<128x17xf32>
      %29 = vector.extract_strided_slice %28 {offsets = [0, 0], sizes = [128, 16], strides = [1, 1]} : vector<128x17xf32> to vector<128x16xf32>
      %30 = vector.extract_strided_slice %28 {offsets = [0, 16], sizes = [128, 1], strides = [1, 1]} : vector<128x17xf32> to vector<128x1xf32>
      %cst_10 = arith.constant 1.000000e-30 : f32
      %31 = vector.broadcast %cst_10 : f32 to vector<128x1xf32>
      %32 = arith.maximumf %30, %31 : vector<128x1xf32>
      %33 = vector.broadcast %32 : vector<128x1xf32> to vector<128x16xf32>
      %34 = arith.divf %29, %33 : vector<128x16xf32>
      %cst_11 = arith.constant 0.000000e+00 : f32
      %35 = vector.broadcast %cst_11 : f32 to vector<128x16xf32>
      %36 = arith.cmpf ogt, %34, %35 : vector<128x16xf32>
      %37 = math.exp %34 : vector<128x16xf32>
      %cst_12 = arith.constant 1.000000e+00 : f32
      %38 = vector.broadcast %cst_12 : f32 to vector<128x16xf32>
      %39 = arith.subf %37, %38 : vector<128x16xf32>
      %40 = arith.select %36, %34, %39 : vector<128x16xi1>, vector<128x16xf32>
      %c2 = arith.constant 2 : index
      %c0_13 = arith.constant 0 : index
      %c0_14 = arith.constant 0 : index
      %41 = vector.load %arg8[%c2, %c0_13, %c0_14] : memref<4x128x17xf32, #tpu.memory_space<vmem>>, vector<1x128x17xf32>
      %42 = vector.shape_cast %41 : vector<1x128x17xf32> to vector<128x17xf32>
      %43 = vector.extract_strided_slice %42 {offsets = [0, 0], sizes = [128, 16], strides = [1, 1]} : vector<128x17xf32> to vector<128x16xf32>
      %44 = vector.extract_strided_slice %42 {offsets = [0, 16], sizes = [128, 1], strides = [1, 1]} : vector<128x17xf32> to vector<128x1xf32>
      %cst_15 = arith.constant 1.000000e-30 : f32
      %45 = vector.broadcast %cst_15 : f32 to vector<128x1xf32>
      %46 = arith.maximumf %44, %45 : vector<128x1xf32>
      %47 = vector.broadcast %46 : vector<128x1xf32> to vector<128x16xf32>
      %48 = arith.divf %43, %47 : vector<128x16xf32>
      %cst_16 = arith.constant 0.000000e+00 : f32
      %49 = vector.broadcast %cst_16 : f32 to vector<128x16xf32>
      %50 = arith.cmpf ogt, %48, %49 : vector<128x16xf32>
      %51 = math.exp %48 : vector<128x16xf32>
      %cst_17 = arith.constant 1.000000e+00 : f32
      %52 = vector.broadcast %cst_17 : f32 to vector<128x16xf32>
      %53 = arith.subf %51, %52 : vector<128x16xf32>
      %54 = arith.select %50, %48, %53 : vector<128x16xi1>, vector<128x16xf32>
      %c3 = arith.constant 3 : index
      %c0_18 = arith.constant 0 : index
      %c0_19 = arith.constant 0 : index
      %55 = vector.load %arg8[%c3, %c0_18, %c0_19] : memref<4x128x17xf32, #tpu.memory_space<vmem>>, vector<1x128x17xf32>
      %56 = vector.shape_cast %55 : vector<1x128x17xf32> to vector<128x17xf32>
      %57 = vector.extract_strided_slice %56 {offsets = [0, 0], sizes = [128, 16], strides = [1, 1]} : vector<128x17xf32> to vector<128x16xf32>
      %58 = vector.extract_strided_slice %56 {offsets = [0, 16], sizes = [128, 1], strides = [1, 1]} : vector<128x17xf32> to vector<128x1xf32>
      %cst_20 = arith.constant 1.000000e-30 : f32
      %59 = vector.broadcast %cst_20 : f32 to vector<128x1xf32>
      %60 = arith.maximumf %58, %59 : vector<128x1xf32>
      %61 = vector.broadcast %60 : vector<128x1xf32> to vector<128x16xf32>
      %62 = arith.divf %57, %61 : vector<128x16xf32>
      %cst_21 = arith.constant 0.000000e+00 : f32
      %63 = vector.broadcast %cst_21 : f32 to vector<128x16xf32>
      %64 = arith.cmpf ogt, %62, %63 : vector<128x16xf32>
      %65 = math.exp %62 : vector<128x16xf32>
      %cst_22 = arith.constant 1.000000e+00 : f32
      %66 = vector.broadcast %cst_22 : f32 to vector<128x16xf32>
      %67 = arith.subf %65, %66 : vector<128x16xf32>
      %68 = arith.select %64, %62, %67 : vector<128x16xi1>, vector<128x16xf32>
      %69 = tpu.concatenate %26, %40, %54, %68 in 1 : vector<128x16xf32>, vector<128x16xf32>, vector<128x16xf32>, vector<128x16xf32> -> vector<128x64xf32>
      %c0_23 = arith.constant 0 : index
      %c0_24 = arith.constant 0 : index
      %70 = vector.load %arg7[%c0_23, %c0_24] : memref<128x64xf32, #tpu.memory_space<vmem>>, vector<128x64xf32>
      tpu.vector_store %arg7[%c0_23, %c0_24], %69 {strides = array<i32>} : memref<128x64xf32, #tpu.memory_space<vmem>>, vector<128x64xf32>,
    } else {
    }
    return
  }
  func.func @transform_0(%arg0: i32, %arg1: i32, %arg2: memref<18xi32, #tpu.memory_space<smem>>) -> (i32, i32) {
    %c0_i32 = arith.constant 0 : i32
    %c0_i32_0 = arith.constant 0 : i32
    return %arg0, %c0_i32 : i32, i32
  }
  func.func @transform_1(%arg0: i32, %arg1: i32, %arg2: memref<18xi32, #tpu.memory_space<smem>>) -> (i32, i32) {
    %c0_i32 = arith.constant 0 : i32
    %c0_i32_0 = arith.constant 0 : i32
    %c0_i32_1 = arith.constant 0 : i32
    return %c0_i32, %c0_i32_0 : i32, i32
  }
  func.func @transform_2(%arg0: i32, %arg1: i32, %arg2: memref<18xi32, #tpu.memory_space<smem>>) -> (i32, i32, i32) {
    %c0_i32 = arith.constant 0 : i32
    %c0_i32_0 = arith.constant 0 : i32
    %c0_i32_1 = arith.constant 0 : i32
    %c0_i32_2 = arith.constant 0 : i32
    return %c0_i32, %c0_i32_0, %c0_i32_1 : i32, i32, i32
  }
  func.func @transform_3(%arg0: i32, %arg1: i32, %arg2: memref<18xi32, #tpu.memory_space<smem>>) -> (i32, i32) {
    %c0_i32 = arith.constant 0 : i32
    return %arg0, %arg1 : i32, i32
  }
  func.func @transform_4(%arg0: i32, %arg1: i32, %arg2: memref<18xi32, #tpu.memory_space<smem>>) -> (i32, i32) {
    %c0_i32 = arith.constant 0 : i32
    %c0_i32_0 = arith.constant 0 : i32
    return %arg0, %c0_i32 : i32, i32
  }
}

module attributes {stable_mosaic.version = 11 : i64} {
  func.func @kernel(%arg0: i32, %arg1: i32, %arg2: memref<18xi32, #tpu.memory_space<smem>>, %arg3: memref<128x1xf32, #tpu.memory_space<vmem>>, %arg4: memref<1x768xf32, #tpu.memory_space<vmem>>, %arg5: memref<1x768x9xbf16, #tpu.memory_space<vmem>>, %arg6: memref<128x256xi8, #tpu.memory_space<vmem>>, %arg7: memref<128x8xf32, #tpu.memory_space<vmem>>, %arg8: memref<1x128x9xf32, #tpu.memory_space<vmem>>) attributes {dimension_semantics = [#tpu.dimension_semantics<parallel>, #tpu.dimension_semantics<arbitrary>], iteration_bounds = array<i64: 6, 3>, scalar_prefetch = 1 : i64, scratch_operands = 1 : i64, tpu.core_type = #tpu.core_type<tc>, window_params = [{transform_indices = @transform_0, window_bounds = array<i64: 128, 1>}, {pipeline_mode = #tpu.pipeline_mode<synchronous>, transform_indices = @transform_1, window_bounds = array<i64: 1, 768>}, {pipeline_mode = #tpu.pipeline_mode<synchronous>, transform_indices = @transform_2, window_bounds = array<i64: 1, 768, 9>}, {transform_indices = @transform_3, window_bounds = array<i64: 128, 256>}, {transform_indices = @transform_4, window_bounds = array<i64: 128, 8>}]} {
    %c0_i32 = arith.constant 0 : i32
    %0 = arith.cmpi eq, %arg1, %c0_i32 : i32
    %1 = arith.extui %0 : i1 to i32
    %c0_i32_0 = arith.constant 0 : i32
    %2 = arith.cmpi ne, %1, %c0_i32_0 : i32
    scf.if %2 {
      %cst = arith.constant 0.000000e+00 : f32
      %13 = vector.broadcast %cst : f32 to vector<1x128x9xf32>
      %c0 = arith.constant 0 : index
      %c0_4 = arith.constant 0 : index
      %c0_5 = arith.constant 0 : index
      %14 = vector.load %arg8[%c0, %c0_4, %c0_5] : memref<1x128x9xf32, #tpu.memory_space<vmem>>, vector<1x128x9xf32>
      tpu.vector_store %arg8[%c0, %c0_4, %c0_5], %13 {strides = array<i32>} : memref<1x128x9xf32, #tpu.memory_space<vmem>>, vector<1x128x9xf32>,
    } else {
    }
    %c3_i32 = arith.constant 3 : i32
    %3 = arith.muli %arg0, %c3_i32 : i32
    %4 = arith.addi %3, %arg1 : i32
    %5 = arith.index_cast %4 : i32 to index
    %6 = memref.load %arg2[%5] : memref<18xi32, #tpu.memory_space<smem>>
    %c0_i32_1 = arith.constant 0 : i32
    %7 = arith.cmpi sgt, %6, %c0_i32_1 : i32
    %8 = arith.extui %7 : i1 to i32
    %c0_i32_2 = arith.constant 0 : i32
    %9 = arith.cmpi ne, %8, %c0_i32_2 : i32
    scf.if %9 {
      %c0 = arith.constant 0 : index
      %c0_4 = arith.constant 0 : index
      %13 = vector.load %arg6[%c0, %c0_4] : memref<128x256xi8, #tpu.memory_space<vmem>>, vector<128x256xi8>
      %c0_i8 = arith.constant 0 : i8
      %14 = vector.broadcast %c0_i8 : i8 to vector<128x256xi8>
      %15 = arith.cmpi ne, %13, %14 : vector<128x256xi8>
      %c256_i32 = arith.constant 256 : i32
      %16 = arith.muli %arg1, %c256_i32 : i32
      %17 = tpu.assume_multiple %16, 256 : i32
      %c0_5 = arith.constant 0 : index
      %c0_6 = arith.constant 0 : index
      %18 = vector.load %arg3[%c0_5, %c0_6] : memref<128x1xf32, #tpu.memory_space<vmem>>, vector<128x1xf32>
      %19 = arith.truncf %18 : vector<128x1xf32> to vector<128x1xbf16>
      %c0_7 = arith.constant 0 : index
      %20 = arith.index_cast %17 : i32 to index
      %21 = vector.load %arg4[%c0_7, %20] : memref<1x768xf32, #tpu.memory_space<vmem>>, vector<1x256xf32>
      %22 = arith.truncf %21 : vector<1x256xf32> to vector<1x256xbf16>
      %23 = vector.broadcast %19 : vector<128x1xbf16> to vector<128x256xbf16>
      %24 = vector.broadcast %22 : vector<1x256xbf16> to vector<128x256xbf16>
      %25 = arith.addf %23, %24 : vector<128x256xbf16>
      %cst = arith.constant 0.000000e+00 : bf16
      %26 = vector.broadcast %cst : bf16 to vector<128x256xbf16>
      %27 = arith.subf %26, %25 : vector<128x256xbf16>
      %cst_8 = arith.constant -2.001950e-01 : bf16
      %28 = vector.broadcast %cst_8 : bf16 to vector<128x256xbf16>
      %29 = arith.mulf %28, %25 : vector<128x256xbf16>
      %30 = arith.minimumf %27, %29 : vector<128x256xbf16>
      %31 = math.exp %30 : vector<128x256xbf16>
      %cst_9 = arith.constant 0.000000e+00 : bf16
      %32 = vector.broadcast %cst_9 : bf16 to vector<128x256xbf16>
      %33 = arith.select %15, %31, %32 : vector<128x256xi1>, vector<128x256xbf16>
      %c0_10 = arith.constant 0 : index
      %34 = arith.index_cast %17 : i32 to index
      %c0_11 = arith.constant 0 : index
      %35 = vector.load %arg5[%c0_10, %34, %c0_11] : memref<1x768x9xbf16, #tpu.memory_space<vmem>>, vector<1x256x9xbf16>
      %36 = vector.shape_cast %35 : vector<1x256x9xbf16> to vector<256x9xbf16>
      %c0_12 = arith.constant 0 : index
      %c0_13 = arith.constant 0 : index
      %c0_14 = arith.constant 0 : index
      %37 = vector.load %arg8[%c0_12, %c0_13, %c0_14] : memref<1x128x9xf32, #tpu.memory_space<vmem>>, vector<1x128x9xf32>
      %38 = vector.shape_cast %37 : vector<1x128x9xf32> to vector<128x9xf32>
      %cst_15 = arith.constant dense<0.000000e+00> : vector<128x9xf32>
      %39 = tpu.matmul %33, %36, %cst_15 {dimension_numbers = #tpu.dot_dimension_numbers<[1], [0], [0], [1], [0, 0, 1, 1], [], []>} : vector<128x256xbf16>, vector<256x9xbf16>, vector<128x9xf32> -> vector<128x9xf32>
      %40 = arith.addf %38, %39 : vector<128x9xf32>
      %c0_16 = arith.constant 0 : index
      %c0_17 = arith.constant 0 : index
      %c0_18 = arith.constant 0 : index
      %41 = vector.load %arg8[%c0_16, %c0_17, %c0_18] : memref<1x128x9xf32, #tpu.memory_space<vmem>>, vector<1x128x9xf32>
      %42 = vector.shape_cast %41 : vector<1x128x9xf32> to vector<128x9xf32>
      %43 = vector.shape_cast %40 : vector<128x9xf32> to vector<1x128x9xf32>
      tpu.vector_store %arg8[%c0_16, %c0_17, %c0_18], %43 {strides = array<i32>} : memref<1x128x9xf32, #tpu.memory_space<vmem>>, vector<1x128x9xf32>,
    } else {
    }
    %c2_i32 = arith.constant 2 : i32
    %10 = arith.cmpi eq, %arg1, %c2_i32 : i32
    %11 = arith.extui %10 : i1 to i32
    %c0_i32_3 = arith.constant 0 : i32
    %12 = arith.cmpi ne, %11, %c0_i32_3 : i32
    scf.if %12 {
      %c0 = arith.constant 0 : index
      %c0_4 = arith.constant 0 : index
      %c0_5 = arith.constant 0 : index
      %13 = vector.load %arg8[%c0, %c0_4, %c0_5] : memref<1x128x9xf32, #tpu.memory_space<vmem>>, vector<1x128x9xf32>
      %14 = vector.shape_cast %13 : vector<1x128x9xf32> to vector<128x9xf32>
      %15 = vector.extract_strided_slice %14 {offsets = [0, 0], sizes = [128, 8], strides = [1, 1]} : vector<128x9xf32> to vector<128x8xf32>
      %16 = vector.extract_strided_slice %14 {offsets = [0, 8], sizes = [128, 1], strides = [1, 1]} : vector<128x9xf32> to vector<128x1xf32>
      %cst = arith.constant 1.000000e-30 : f32
      %17 = vector.broadcast %cst : f32 to vector<128x1xf32>
      %18 = arith.maximumf %16, %17 : vector<128x1xf32>
      %19 = vector.broadcast %18 : vector<128x1xf32> to vector<128x8xf32>
      %20 = arith.divf %15, %19 : vector<128x8xf32>
      %cst_6 = arith.constant 0.000000e+00 : f32
      %21 = vector.broadcast %cst_6 : f32 to vector<128x8xf32>
      %22 = arith.cmpf ogt, %20, %21 : vector<128x8xf32>
      %23 = math.exp %20 : vector<128x8xf32>
      %cst_7 = arith.constant 1.000000e+00 : f32
      %24 = vector.broadcast %cst_7 : f32 to vector<128x8xf32>
      %25 = arith.subf %23, %24 : vector<128x8xf32>
      %26 = arith.select %22, %20, %25 : vector<128x8xi1>, vector<128x8xf32>
      %cst_8 = arith.constant dense<0xFF800000> : vector<128xf32>
      %27 = vector.multi_reduction <maximumf>, %26, %cst_8 [1] : vector<128x8xf32> to vector<128xf32>
      %28 = vector.shape_cast %27 : vector<128xf32> to vector<128x1xf32>
      %29 = vector.broadcast %28 : vector<128x1xf32> to vector<128x8xf32>
      %30 = arith.subf %26, %29 : vector<128x8xf32>
      %31 = math.exp %30 : vector<128x8xf32>
      %cst_9 = arith.constant dense<0.000000e+00> : vector<128xf32>
      %32 = vector.multi_reduction <add>, %31, %cst_9 [1] : vector<128x8xf32> to vector<128xf32>
      %33 = vector.shape_cast %32 : vector<128xf32> to vector<128x1xf32>
      %34 = math.log %33 : vector<128x1xf32>
      %35 = arith.addf %34, %28 : vector<128x1xf32>
      %36 = vector.broadcast %35 : vector<128x1xf32> to vector<128x8xf32>
      %37 = arith.subf %26, %36 : vector<128x8xf32>
      %c0_10 = arith.constant 0 : index
      %c0_11 = arith.constant 0 : index
      %38 = vector.load %arg7[%c0_10, %c0_11] : memref<128x8xf32, #tpu.memory_space<vmem>>, vector<128x8xf32>
      tpu.vector_store %arg7[%c0_10, %c0_11], %37 {strides = array<i32>} : memref<128x8xf32, #tpu.memory_space<vmem>>, vector<128x8xf32>,
    } else {
    }
    return
  }
  func.func @transform_0(%arg0: i32, %arg1: i32, %arg2: memref<18xi32, #tpu.memory_space<smem>>) -> (i32, i32) {
    %c0_i32 = arith.constant 0 : i32
    %c0_i32_0 = arith.constant 0 : i32
    return %arg0, %c0_i32 : i32, i32
  }
  func.func @transform_1(%arg0: i32, %arg1: i32, %arg2: memref<18xi32, #tpu.memory_space<smem>>) -> (i32, i32) {
    %c0_i32 = arith.constant 0 : i32
    %c0_i32_0 = arith.constant 0 : i32
    %c0_i32_1 = arith.constant 0 : i32
    return %c0_i32, %c0_i32_0 : i32, i32
  }
  func.func @transform_2(%arg0: i32, %arg1: i32, %arg2: memref<18xi32, #tpu.memory_space<smem>>) -> (i32, i32, i32) {
    %c0_i32 = arith.constant 0 : i32
    %c0_i32_0 = arith.constant 0 : i32
    %c0_i32_1 = arith.constant 0 : i32
    %c0_i32_2 = arith.constant 0 : i32
    return %c0_i32, %c0_i32_0, %c0_i32_1 : i32, i32, i32
  }
  func.func @transform_3(%arg0: i32, %arg1: i32, %arg2: memref<18xi32, #tpu.memory_space<smem>>) -> (i32, i32) {
    %c0_i32 = arith.constant 0 : i32
    return %arg0, %arg1 : i32, i32
  }
  func.func @transform_4(%arg0: i32, %arg1: i32, %arg2: memref<18xi32, #tpu.memory_space<smem>>) -> (i32, i32) {
    %c0_i32 = arith.constant 0 : i32
    %c0_i32_0 = arith.constant 0 : i32
    return %arg0, %c0_i32 : i32, i32
  }
}

</mosaic_0001>

<bundles_post_ra>
// kernel: spgat_forward.6
= control target key start
LH: loop header
LB: loop body
LE: loop exit
PB: predicated region body
PF: predicated region fallthrough
CT: control target
= control target key end

     0   :  { %11 = vsyncpa [#allocation3], 0  ;;  %s1800_s0 = inlined_call_operand.hbm [shape: f32[768,64], index: 0, kind: input, shape index: {}]   ;;  %s1801_s1 = inlined_call_operand.vmem [shape: bf16[64,8], index: 1, kind: input, shape index: {}]   ;;  %s1802_s2 = inlined_call_operand.vmem [shape: f32[8,2], index: 2, kind: input, shape index: {}]   ;;  %s1803_s3 = inlined_call_operand.hbm [shape: bf16[1,768,9], index: 3, kind: output, shape index: {0}]   ;;  %s1804_s4 = inlined_call_operand.hbm [shape: f32[768,1], index: 4, kind: output, shape index: {1}]   ;;  %s1805_s5 = inlined_call_operand.vmem [shape: f32[768,1], index: 5, kind: output, shape index: {2}]  }
   0x1   :  { %13 = vsyncpa [#allocation3 + $0x1], 0 }
   0x2   :  { %14 = vsyncpa [#allocation4], 0 }
   0x3   :  { %16 = vsyncpa [#allocation4 + $0x1], 0 }
   0x4   :  { %17 = vsyncpa [#allocation7], 0 }
   0x5   :  { %19 = vsyncpa [#allocation7 + $0x1], 0  ;;  %s1406_s18 = smov 0   ;;  %s1408_s19 = smov 0  }
   0x6   :  { %s1410_s20 = smov 0   ;;  %s1412_s21 = smov 0  }
   0x7 LB: > { %s1427_s22 = sadd.s32 4294967295, %s1364_s21   ;;  %s1012_s23 = sadd.s32 4294967294, %s1364_s21   ;;  %s1364_s21 = sphi %s1412_s21, %s1817_s21   ;;  %s1360_s20 = sphi %s1410_s20, %s1816_s20   ;;  %s1356_s19 = sphi %s1408_s19, %s1815_s19   ;;  %s1352_s18 = sphi %s1406_s18, %s1814_s18  }
   0x8   : > { %s1431_s24 = sadd.s32 1, %s1364_s21   ;;  %s32_s25 = sadd.s32 1, %s1360_s20 }
   0x9   : > { %s29_s26 = ssub.s32 %s1364_s21, %s1431_s24  ;;  %p39_p0 = scmp.ne.s32.totalorder %s1360_s20, %s1356_s19 }
   0xa   : > { %p30_p1 = scmp.eq.s32.totalorder %s29_s26, 0  ;;  %p40_p2 = scmp.eq.s32.totalorder %s1364_s21, 0 }
   0xb   : > { %p45_p3 = scmp.ne.s32.totalorder %s1356_s19, %s1352_s18  ;;  %p46_p4 = scmp.eq.s32.totalorder %s1427_s22, 0 }
   0xc   : > { %s1443_s27 = scalar_select %p30_p1, %s1360_s20, %s32_s25  }
   0xd   : > { %p1445_p5 = por %p40_p2, %p39_p0  ;;  %p1449_p6 = por %p46_p4, %p45_p3 }
   0xe   : > { %p111_p7 = scmp.eq.s32.totalorder %s1427_s22, 5  ;;  %p117_p8 = scmp.eq.s32.totalorder %s1012_s23, 5 }
   0xf   : > { %p1191_p9 = scmp.lt.s32.totalorder %s1364_s21, 6  ;;  %s195_s7 = sand.u32 1, %s1360_s20  }
  0x10   : > { %p1455_p10 = por %p111_p7, %p39_p0  ;;  %p1459_p11 = por %p117_p8, %p45_p3 }
  0x11   : > { %s1076_s8 = sshll.u32 %s1364_s21, 11  ;;  %s1015_s9 = sshll.u32 %s195_s7, 7 }
  0x12   : > { %s1809_s30 = scalar_select %p1455_p10, 1, 0 }
  0x13   : > { %s1810_s6 = scalar_select %p1459_p11, 1, 0 }
  0x14   : > { %s1468_s12 = scalar_lea.hbm %s1800_s0, %s1076_s8  ;;  %s199_s13 = scalar_lea.vmem [#allocation2], %s1015_s9 }
  0x15   : > { %s206_s14 = sshll.u32 %s199_s13, 4  ;;  %p1472_p12 = pnand %p1191_p9, %p1445_p5  ;;  %s1476_s14 = int_to_ptr.vmem [resolvable:$true] %s206_s14 }
  0x16   : > { %s1478_s16 = scalar_lea.sflag [#allocation3], %s195_s7  ;;  %s1236_s17 = scalar_lea.hbm %s1468_s12, 2048 }
  0x17   : > { %p1237_p13 = scmp.ne.s32.totalorder %s1468_s12, %s1236_s17  ;;  %p1238_p0 = pneg %p1472_p12 }
  0x18   : > { %s1241_s26 = scalar_lea.hbm %s1800_s0, 12288  ;;  %p1242_p3 = scmp.lt.u32.totalorder %s1468_s12, %s1800_s0 }
  0x19   : > { %p1239_p1 = pnand %p1238_p0, %p1237_p13  ;;  %p1243_p4 = scmp.lt.u32.totalorder %s1241_s26, %s1236_s17 }
  0x1a   : > { %p1245_p7 = scmp.lt.u32.totalorder %s1236_s17, %s1468_s12 }
  0x1b   : > { %p1240_p2 = pneg %p1239_p1  ;;  %p1244_p5 = por %p1243_p4, %p1242_p3 }
  0x1d   : > { %p1246_p8 = por %p1245_p7, %p1244_p5 }
  0x1f   : > { %p1247_p9 = pnand %p1246_p8, %p1240_p2 }
  0x21   : > { %1250 = shalt.err (!%p1247_p9)
}
  0x22   : > { %s1251_s7 = scalar_lea.vmem %s1476_s14, 2048  ;;  %s1366_s9 = smov [#allocation2]  }
  0x23   : > { %p1252_p13 = scmp.ne.s32.totalorder %s1476_s14, %s1251_s7  ;;  %s1256_s10 = sshll.u32 %s1366_s9, 4  ;;  %s1257_s10 = int_to_ptr.vmem [resolvable:$false] %s1256_s10 }
  0x24   : > { %s1258_s11 = scalar_lea.vmem %s1257_s10, 4096  ;;  %p1259_p10 = scmp.lt.s32.totalorder %s1476_s14, %s1257_s10 }
  0x25   : > { %p1254_p1 = pnand %p1252_p13, %p1238_p0  ;;  %p1260_p3 = scmp.lt.s32.totalorder %s1258_s11, %s1251_s7 }
  0x27   : > { %p1255_p11 = pneg %p1254_p1  ;;  %p1261_p4 = por %p1260_p3, %p1259_p10 }
  0x29   : > { %p1262_p5 = pnand %p1261_p4, %p1255_p11 }
  0x2b   : > { %1265 = shalt.err (!%p1262_p5)
}
  0x2c   : > { %s1367_s13 = smov 128   ;;  %s1368_s17 = smov 8  }
  0x2d   : > { %1183 = dma.hbm_to_vmem [thread:$0]  (!%p1472_p12), %s1468_s12, 2048, %s1476_s14, %s1478_s16, %s1367_s13, %s1367_s13, %s1368_s17  }
  0x2e   : > { %p1018_p0 = scmp.ge.s32.totalorder %s1364_s21, 1  ;;  %p214_p2 = scmp.lt.s32.totalorder %s1364_s21, 7 }
  0x30   : > { %p215_p7 = pnand %p1018_p0, %p214_p2 }
  0x31   : > { %s1509_s23 = sand.u32 (!%p215_p7), 1, %s1356_s19  }
  0x32   : > { %218 = sbr.rel (%p215_p7) target bundleno = 677 (0x2a5), region = 32  ;;  %s1019_s25 = sshll.u32 (!%p215_p7), %s1509_s23, 7 }
  0x33   : > { %s221_s26 = scalar_lea.sflag (!%p215_p7), [#allocation3], %s1509_s23  ;;  %s1515_s28 = scalar_lea.vmem (!%p215_p7), [#allocation2], %s1019_s25 }
  0x39   : > { %1339 = dma.done.wait (%p1449_p6), %s221_s26, 2048  }
  0x3a   : > { %1341 = vsyncadd (%p1449_p6), %s221_s26, 4294965248  ;;  %v1232_v0 = vld [vmem:[%s1801_s1] sm:$0xff]   ;;  %v1233_v1 = vld [vmem:[%s1801_s1 + $0x8] sm:$0xff]   ;;  %vm327_vm0 = vcmask 523264   ;;  %s1020_s13 = sshll.u32 %s1509_s23, 6  ;;  %vm450_vm1 = vcmask 64512  }
  0x3b   : > { %1124 = vmatprep.subr.bf16.mxu0 %v1232_v0  ;;  %v1234_v2 = vld [vmem:[%s1801_s1 + $0x10] sm:$0xff]   ;;  %v271_v3 = vld [vmem:[%s1515_s28] sm:$0xff]  ;;  %v272_v4 = vld [vmem:[%s1515_s28 + $0x8] sm:$0xff]  ;;  %vm821_vm2 = vcmask 68608   ;;  %s1565_s17 = scalar_lea.vmem [#allocation5], %s1020_s13  ;;  %vm644_vm3 = vcmask 7168  }
  0x3c   : > { %1125 = vmatpush3.bf16.msra.mxu0 %v1232_v0  ;;  %v287_v5 = vpack.c.bf16 %v272_v4, %v271_v3  ;;  %v1235_v6 = vld [vmem:[%s1801_s1 + $0x18] sm:$0xff]   ;;  %v273_v7 = vld [vmem:[%s1515_s28 + $0x10] sm:$0xff]  ;;  %v275_v9 = vld [vmem:[%s1515_s28 + $0x20] sm:$0xff]  ;;  %s1629_s26 = scalar_lea.vmem [#allocation6], %s1019_s25  ;;  %s1093_s25 = sshll.u32 %s1427_s22, 10 }
  0x3d   : > { %1126 = vmatprep.subr.bf16.mxu0 %v1233_v1  ;;  %v274_v8 = vld [vmem:[%s1515_s28 + $0x18] sm:$0xff]  ;;  %v276_v10 = vld [vmem:[%s1515_s28 + $0x28] sm:$0xff]  ;;  %v277_v13 = vld [vmem:[%s1515_s28 + $0x30] sm:$0xff]  ;;  %s862_s12 = sshll.u32 %s1565_s17, 4  ;;  %s1665_s16 = scalar_lea.hbm %s1803_s3, %s1093_s25  ;;  %s1667_s12 = int_to_ptr.vmem [resolvable:$true] %s862_s12 }
  0x3e   : > { %1132 = vmatprep.mubr.msk.bf16.mxu0 %vm327_vm0, %v287_v5  ;;  %v288_v11 = vpack.c.bf16 %v274_v8, %v273_v7  ;;  %v289_v12 = vpack.c.bf16 %v276_v10, %v275_v9  ;;  %v278_v14 = vld [vmem:[%s1515_s28 + $0x38] sm:$0xff]  ;;  %v279_v15 = vld [vmem:[%s1515_s28 + $0x40] sm:$0xff]  ;;  %v280_v16 = vld [vmem:[%s1515_s28 + $0x48] sm:$0xff]  ;;  %s839_s8 = scalar_lea.sflag [#allocation4], %s1509_s23  ;;  %s1266_s29 = scalar_lea.vmem %s1667_s12, 1024 }
  0x3f   : > { %v290_v17 = vpack.c.bf16 %v278_v14, %v277_v13  ;;  %v291_v18 = vpack.c.bf16 %v280_v16, %v279_v15  ;;  %v281_v19 = vld [vmem:[%s1515_s28 + $0x50] sm:$0xff]  ;;  %v282_v20 = vld [vmem:[%s1515_s28 + $0x58] sm:$0xff]  ;;  %v283_v21 = vld [vmem:[%s1515_s28 + $0x60] sm:$0xff]  ;;  %p1267_p6 = scmp.ne.s32.totalorder %s1667_s12, %s1266_s29  ;;  %p1812_p10 = scmp.ne.s32.totalorder %s1809_s30, 0 }
  0x40   : > { %1127 = vmatpush3.bf16.msra.mxu0 %v1233_v1  ;;  %v284_v22 = vld [vmem:[%s1515_s28 + $0x68] sm:$0xff]  ;;  %v292_v23 = vpack.c.bf16 %v282_v20, %v281_v19  ;;  %v285_v25 = vld [vmem:[%s1515_s28 + $0x70] sm:$0xff]  ;;  %v286_v26 = vld [vmem:[%s1515_s28 + $0x78] sm:$0xff]  ;;  %s1369_s28 = smov 127   ;;  %s1370_s7 = smov [#allocation5]  }
  0x41   : > { %1128 = vmatprep.subr.bf16.mxu0 %v1234_v2  ;;  %v293_v24 = vpack.c.bf16 %v284_v22, %v283_v21  ;;  %v294_v27 = vpack.c.bf16 %v286_v26, %v285_v25  ;;  %v449_v28 = vld [vmem:[%s1802_s2] sm:$0xff]  ;;  %p1268_p11 = pnand %p1267_p6, %p1812_p10  ;;  %s1270_s9 = sshll.u32 %s1370_s7, 4  ;;  %s1271_s9 = int_to_ptr.vmem [resolvable:$false] %s1270_s9 }
  0x42   : > { %1148 = vmatprep.subr.mxu1 %v449_v28  ;;  %s1272_s10 = scalar_lea.vmem %s1271_s9, 2048  ;;  %p1273_p8 = scmp.lt.s32.totalorder %s1667_s12, %s1271_s9 }
  0x43   : > { %1149 = vmatpush3.msra.mxu1 %v449_v28  ;;  %p1269_p12 = pneg %p1268_p11  ;;  %p1274_p9 = scmp.lt.s32.totalorder %s1272_s10, %s1266_s29 }
  0x44   : > { %1129 = vmatpush3.bf16.msra.mxu0 %v1234_v2 }
  0x45   : > { %1130 = vmatprep.subr.bf16.mxu0 %v1235_v6  ;;  %p1275_p13 = por %p1274_p9, %p1273_p8 }
  0x47   : > { %p1276_p1 = pnand %p1275_p13, %p1269_p12 }
  0x48   : > { %1131 = vmatpush3.bf16.msra.mxu0 %v1235_v6 }
  0x4b   : > { %1133 = vmatmul.mubr.msk.bf16.vlgmr.msra.gmra.mrb[0].mxu0 %vm327_vm0, %v288_v11 }
  0x4c   : > { %1136 = vmatprep.mubr.msk.bf16.mxu0 %vm327_vm0, %v289_v12 }
  0x53   : > { %1137 = vmatmul.mubr.msk.bf16.gmra.mrb[4].mxu0 %vm327_vm0, %v290_v17 }
  0x54   : > { %1140 = vmatprep.mubr.msk.bf16.mxu0 %vm327_vm0, %v291_v18 }
  0x5b   : > { %1141 = vmatmul.mubr.msk.bf16.gmra.mrb[8].mxu0 %vm327_vm0, %v292_v23 }
  0x5c   : > { %1144 = vmatprep.mubr.msk.bf16.mxu0 %vm327_vm0, %v293_v24 }
  0x63   : > { %1145 = vmatmul.mubr.msk.bf16.gmra.mrb[12].mxu0 %vm327_vm0, %v294_v27 }
 0x11e   : > { %v1134_v29 = vpop.f32.mrb[0].mxu0 }
 0x11f   : > { %v743_v30 = vsel %vm450_vm1, %v1134_v29, 1.0  ;;  %v386_v31 = vpop.f32.mrb[1].mxu0 }
 0x120   : > { %v1079_v32 = vpack.c.bf16 %v743_v30, %v743_v30  ;;  %v741_v33 = vsel %vm450_vm1, %v386_v31, 1.0  ;;  %v1135_v34 = vpop.f32.mrb[2].mxu0  ;;  %1150 = vmatprep.mubr.msk.f32.mxu1 %vm450_vm1, %v386_v31 }
 0x121   : > { %v1077_v35 = vpack.c.bf16 %v741_v33, %v741_v33  ;;  %v744_v36 = vsel %vm450_vm1, %v1135_v34, 1.0  ;;  %v389_v37 = vpop.f32.mrb[3].mxu0 }
 0x122   : > { %824 = vst.msk [vmem:[%s1565_s17 + $0x8] sm:$0xf] %vm821_vm2, %v1079_v32  ;;  %v1080_v38 = vpack.c.bf16 %v744_v36, %v744_v36  ;;  %v742_v39 = vsel %vm450_vm1, %v389_v37, 1.0  ;;  %1151 = vmatmul.mubr.msk.f32.vlgmr.msra.gmra.mrb[0].mxu1 %vm450_vm1, %v389_v37 }
 0x123   : > { %822 = vst.msk [vmem:[%s1565_s17] sm:$0xf] %vm821_vm2, %v1077_v35  ;;  %v1078_v40 = vpack.c.bf16 %v742_v39, %v742_v39  ;;  %1153 = vmatprep.mubr.msk.f32.mxu1 %vm450_vm1, %v1134_v29 }
 0x124   : > { %825 = vst.msk [vmem:[%s1565_s17 + $0xc] sm:$0xf] %vm821_vm2, %v1080_v38 }
 0x125   : > { %823 = vst.msk [vmem:[%s1565_s17 + $0x4] sm:$0xf] %vm821_vm2, %v1078_v40 }
 0x126   : > { %v1138_v41 = vpop.f32.mrb[4].mxu0  ;;  %1154 = vmatmul.mubr.msk.f32.gmra.mrb[2].mxu1 %vm450_vm1, %v1135_v34 }
 0x127   : > { %v747_v42 = vsel %vm450_vm1, %v1138_v41, 1.0  ;;  %v402_v43 = vpop.f32.mrb[5].mxu0 }
 0x128   : > { %v1083_v44 = vpack.c.bf16 %v747_v42, %v747_v42  ;;  %v745_v45 = vsel %vm450_vm1, %v402_v43, 1.0  ;;  %v1139_v46 = vpop.f32.mrb[6].mxu0  ;;  %1156 = vmatprep.mubr.msk.f32.mxu1 %vm450_vm1, %v402_v43 }
 0x129   : > { %v1081_v47 = vpack.c.bf16 %v745_v45, %v745_v45  ;;  %v748_v48 = vsel %vm450_vm1, %v1139_v46, 1.0  ;;  %v405_v49 = vpop.f32.mrb[7].mxu0 }
 0x12a   : > { %828 = vst.msk [vmem:[%s1565_s17 + $0x18] sm:$0xf] %vm821_vm2, %v1083_v44  ;;  %v1084_v50 = vpack.c.bf16 %v748_v48, %v748_v48  ;;  %v746_v51 = vsel %vm450_vm1, %v405_v49, 1.0  ;;  %1157 = vmatmul.mubr.msk.f32.gmra.mrb[4].mxu1 %vm450_vm1, %v405_v49 }
 0x12b   : > { %826 = vst.msk [vmem:[%s1565_s17 + $0x10] sm:$0xf] %vm821_vm2, %v1081_v47  ;;  %v1082_v52 = vpack.c.bf16 %v746_v51, %v746_v51  ;;  %1159 = vmatprep.mubr.msk.f32.mxu1 %vm450_vm1, %v1138_v41 }
 0x12c   : > { %829 = vst.msk [vmem:[%s1565_s17 + $0x1c] sm:$0xf] %vm821_vm2, %v1084_v50 }
 0x12d   : > { %827 = vst.msk [vmem:[%s1565_s17 + $0x14] sm:$0xf] %vm821_vm2, %v1082_v52 }
 0x12e   : > { %v1142_v53 = vpop.f32.mrb[8].mxu0  ;;  %1160 = vmatmul.mubr.msk.f32.gmra.mrb[6].mxu1 %vm450_vm1, %v1139_v46 }
 0x12f   : > { %v751_v54 = vsel %vm450_vm1, %v1142_v53, 1.0  ;;  %v418_v55 = vpop.f32.mrb[9].mxu0 }
 0x130   : > { %v1087_v56 = vpack.c.bf16 %v751_v54, %v751_v54  ;;  %v749_v57 = vsel %vm450_vm1, %v418_v55, 1.0  ;;  %v1143_v58 = vpop.f32.mrb[10].mxu0  ;;  %1162 = vmatprep.mubr.msk.f32.mxu1 %vm450_vm1, %v418_v55 }
 0x131   : > { %v1085_v59 = vpack.c.bf16 %v749_v57, %v749_v57  ;;  %v752_v60 = vsel %vm450_vm1, %v1143_v58, 1.0  ;;  %v421_v61 = vpop.f32.mrb[11].mxu0 }
 0x132   : > { %832 = vst.msk [vmem:[%s1565_s17 + $0x28] sm:$0xf] %vm821_vm2, %v1087_v56  ;;  %v1088_v62 = vpack.c.bf16 %v752_v60, %v752_v60  ;;  %v750_v63 = vsel %vm450_vm1, %v421_v61, 1.0  ;;  %1163 = vmatmul.mubr.msk.f32.gmra.mrb[8].mxu1 %vm450_vm1, %v421_v61 }
 0x133   : > { %830 = vst.msk [vmem:[%s1565_s17 + $0x20] sm:$0xf] %vm821_vm2, %v1085_v59  ;;  %v1086_v0 = vpack.c.bf16 %v750_v63, %v750_v63  ;;  %1165 = vmatprep.mubr.msk.f32.mxu1 %vm450_vm1, %v1142_v53 }
 0x134   : > { %833 = vst.msk [vmem:[%s1565_s17 + $0x2c] sm:$0xf] %vm821_vm2, %v1088_v62 }
 0x135   : > { %831 = vst.msk [vmem:[%s1565_s17 + $0x24] sm:$0xf] %vm821_vm2, %v1086_v0 }
 0x136   : > { %v1146_v1 = vpop.f32.mrb[12].mxu0  ;;  %1166 = vmatmul.mubr.msk.f32.gmra.mrb[10].mxu1 %vm450_vm1, %v1143_v58 }
 0x137   : > { %v755_v2 = vsel %vm450_vm1, %v1146_v1, 1.0  ;;  %v434_v3 = vpop.f32.mrb[13].mxu0 }
 0x138   : > { %v1091_v4 = vpack.c.bf16 %v755_v2, %v755_v2  ;;  %v753_v5 = vsel %vm450_vm1, %v434_v3, 1.0  ;;  %v1147_v6 = vpop.f32.mrb[14].mxu0  ;;  %1168 = vmatprep.mubr.msk.f32.mxu1 %vm450_vm1, %v434_v3 }
 0x139   : > { %v1089_v7 = vpack.c.bf16 %v753_v5, %v753_v5  ;;  %v756_v8 = vsel %vm450_vm1, %v1147_v6, 1.0  ;;  %v437_v9 = vpop.f32.mrb[15].mxu0 }
 0x13a   : > { %836 = vst.msk [vmem:[%s1565_s17 + $0x38] sm:$0xf] %vm821_vm2, %v1091_v4  ;;  %v1092_v10 = vpack.c.bf16 %v756_v8, %v756_v8  ;;  %v754_v11 = vsel %vm450_vm1, %v437_v9, 1.0  ;;  %1169 = vmatmul.mubr.msk.f32.gmra.mrb[12].mxu1 %vm450_vm1, %v437_v9 }
 0x13b   : > { %834 = vst.msk [vmem:[%s1565_s17 + $0x30] sm:$0xf] %vm821_vm2, %v1089_v7  ;;  %v1090_v12 = vpack.c.bf16 %v754_v11, %v754_v11  ;;  %1171 = vmatprep.mubr.msk.f32.mxu1 %vm450_vm1, %v1146_v1 }
 0x13c   : > { %837 = vst.msk [vmem:[%s1565_s17 + $0x3c] sm:$0xf] %vm821_vm2, %v1092_v10 }
 0x13d   : > { %835 = vst.msk [vmem:[%s1565_s17 + $0x34] sm:$0xf] %vm821_vm2, %v1090_v12 }
 0x13e   : > { %1172 = vmatmul.mubr.msk.f32.gmra.mrb[14].mxu1 %vm450_vm1, %v1147_v6 }
 0x1f5   : > { %v1152_v13 = vpop.f32.mrb[0].mxu1 }
 0x1f6   : > { %646 = vst.msk [vmem:[%s1629_s26 + $0x8] sm:$0xff] %vm644_vm3, %v1152_v13  ;;  %679 = vrot.lane.b32.xlu0 %v1152_v13, %s1369_s28  ;;  %v565_v14 = vpop.f32.mrb[1].mxu1 }
 0x1f7   : > { %645 = vst.msk [vmem:[%s1629_s26] sm:$0xff] %vm644_vm3, %v565_v14 }
 0x1f9   : > { %v1155_v15 = vpop.f32.mrb[2].mxu1 }
 0x1fa   : > { %648 = vst.msk [vmem:[%s1629_s26 + $0x18] sm:$0xff] %vm644_vm3, %v1155_v15  ;;  %677 = vrot.lane.b32.xlu0 %v565_v14, %s1369_s28  ;;  %683 = vrot.lane.b32.xlu1 %v1155_v15, %s1369_s28  ;;  %v575_v16 = vpop.f32.mrb[3].mxu1 }
 0x1fb   : > { %647 = vst.msk [vmem:[%s1629_s26 + $0x10] sm:$0xff] %vm644_vm3, %v575_v16 }
 0x1fd   : > { %v1158_v17 = vpop.f32.mrb[4].mxu1 }
 0x1fe   : > { %650 = vst.msk [vmem:[%s1629_s26 + $0x28] sm:$0xff] %vm644_vm3, %v1158_v17  ;;  %681 = vrot.lane.b32.xlu1 %v575_v16, %s1369_s28  ;;  %v585_v18 = vpop.f32.mrb[5].mxu1 }
 0x1ff   : > { %649 = vst.msk [vmem:[%s1629_s26 + $0x20] sm:$0xff] %vm644_vm3, %v585_v18  ;;  %685 = vrot.lane.b32.xlu0 %v585_v18, %s1369_s28 }
 0x201   : > { %v1161_v19 = vpop.f32.mrb[6].mxu1 }
 0x202   : > { %652 = vst.msk [vmem:[%s1629_s26 + $0x38] sm:$0xff] %vm644_vm3, %v1161_v19  ;;  %687 = vrot.lane.b32.xlu1 %v1158_v17, %s1369_s28  ;;  %v595_v20 = vpop.f32.mrb[7].mxu1 }
 0x203   : > { %651 = vst.msk [vmem:[%s1629_s26 + $0x30] sm:$0xff] %vm644_vm3, %v595_v20  ;;  %689 = vrot.lane.b32.xlu0 %v595_v20, %s1369_s28 }
 0x205   : > { %v1164_v21 = vpop.f32.mrb[8].mxu1 }
 0x206   : > { %654 = vst.msk [vmem:[%s1629_s26 + $0x48] sm:$0xff] %vm644_vm3, %v1164_v21  ;;  %691 = vrot.lane.b32.xlu1 %v1161_v19, %s1369_s28  ;;  %v605_v22 = vpop.f32.mrb[9].mxu1 }
 0x207   : > { %653 = vst.msk [vmem:[%s1629_s26 + $0x40] sm:$0xff] %vm644_vm3, %v605_v22  ;;  %693 = vrot.lane.b32.xlu0 %v605_v22, %s1369_s28 }
 0x209   : > { %v1167_v23 = vpop.f32.mrb[10].mxu1 }
 0x20a   : > { %656 = vst.msk [vmem:[%s1629_s26 + $0x58] sm:$0xff] %vm644_vm3, %v1167_v23  ;;  %695 = vrot.lane.b32.xlu1 %v1164_v21, %s1369_s28  ;;  %v615_v24 = vpop.f32.mrb[11].mxu1 }
 0x20b   : > { %655 = vst.msk [vmem:[%s1629_s26 + $0x50] sm:$0xff] %vm644_vm3, %v615_v24  ;;  %697 = vrot.lane.b32.xlu0 %v615_v24, %s1369_s28 }
 0x20c   : > { %1279 = shalt.err (!%p1276_p1)
}
 0x20d   : > { %s1280_s11 = scalar_lea.hbm %s1665_s16, 1024  ;;  %s1284_s25 = scalar_lea.hbm %s1803_s3, 6144 }
 0x20e   : > { %p1281_p3 = scmp.ne.s32.totalorder %s1665_s16, %s1280_s11  ;;  %p1285_p0 = scmp.lt.u32.totalorder %s1665_s16, %s1803_s3 }
 0x20f   : > { %p1286_p2 = scmp.lt.u32.totalorder %s1284_s25, %s1280_s11  ;;  %p1288_p6 = scmp.lt.u32.totalorder %s1280_s11, %s1665_s16 }
 0x210   : > { %p1282_p4 = pnand %p1281_p3, %p1812_p10 }
 0x211   : > { %p1287_p7 = por %p1286_p2, %p1285_p0 }
 0x212   : > { %p1283_p5 = pneg %p1282_p4 }
 0x213   : > { %p1289_p11 = por %p1288_p6, %p1287_p7 }
 0x215   : > { %p1290_p12 = pnand %p1289_p11, %p1283_p5 }
 0x217   : > { %1293 = shalt.err (!%p1290_p12)
}
 0x218   : > { %s1371_s29 = smov 64   ;;  %s1372_s7 = smov 4   ;;  %v1170_v25 = vpop.f32.mrb[12].mxu1  ;;  %699 = vrot.lane.b32.xlu1 %v1167_v23, %s1369_s28 }
 0x219   : > { %1176 = dma.vmem_to_hbm [thread:$0]  (%p1812_p10), %s1667_s12, 1024, %s1665_s16, %s839_s8, %s1371_s29, %s1371_s29, %s1372_s7   ;;  %v625_v26 = vpop.f32.mrb[13].mxu1 }
 0x21a   : > { %s1094_s9 = sshll.u32 %s1427_s22, 11  ;;  %s878_s10 = sshll.u32 %s1629_s26, 4  ;;  %658 = vst.msk [vmem:[%s1629_s26 + $0x68] sm:$0xff] %vm644_vm3, %v1170_v25  ;;  %657 = vst.msk [vmem:[%s1629_s26 + $0x60] sm:$0xff] %vm644_vm3, %v625_v26  ;;  %701 = vrot.lane.b32.xlu0 %v625_v26, %s1369_s28  ;;  %v1173_v27 = vpop.f32.mrb[14].mxu1  ;;  %s1712_s10 = int_to_ptr.vmem [resolvable:$true] %s878_s10 }
 0x21b   : > { %s1710_s17 = scalar_lea.hbm %s1804_s4, %s1094_s9  ;;  %660 = vst.msk [vmem:[%s1629_s26 + $0x78] sm:$0xff] %vm644_vm3, %v1173_v27  ;;  %v635_v28 = vpop.f32.mrb[15].mxu1  ;;  %s844_s12 = scalar_lea.sflag [#allocation7], %s1509_s23 }
 0x21c   : > { %703 = vrot.lane.b32.xlu1 %v1170_v25, %s1369_s28  ;;  %659 = vst.msk [vmem:[%s1629_s26 + $0x70] sm:$0xff] %vm644_vm3, %v635_v28  ;;  %s1294_s16 = scalar_lea.vmem %s1712_s10, 2048  ;;  %s1373_s8 = smov [#allocation6]  }
 0x21d   : > { %p1295_p8 = scmp.ne.s32.totalorder %s1712_s10, %s1294_s16  ;;  %s1298_s25 = sshll.u32 %s1373_s8, 4  ;;  %s1299_s25 = int_to_ptr.vmem [resolvable:$false] %s1298_s25 }
 0x21e   : > { %705 = vrot.lane.b32.xlu0 %v635_v28, %s1369_s28  ;;  %s1300_s14 = scalar_lea.vmem %s1299_s25, 4096  ;;  %p1301_p1 = scmp.lt.s32.totalorder %s1712_s10, %s1299_s25 }
 0x21f   : > { %p1296_p9 = pnand %p1295_p8, %p1812_p10  ;;  %p1302_p3 = scmp.lt.s32.totalorder %s1300_s14, %s1294_s16 }
 0x221   : > { %p1297_p13 = pneg %p1296_p9  ;;  %p1303_p4 = por %p1302_p3, %p1301_p1 }
 0x223   : > { %p1304_p5 = pnand %p1303_p4, %p1297_p13 }
 0x225   : > { %1307 = shalt.err (!%p1304_p5)
}
 0x226   : > { %s1308_s26 = scalar_lea.hbm %s1710_s17, 2048  ;;  %s1312_s7 = scalar_lea.hbm %s1804_s4, 12288 }
 0x227   : > { %p1309_p0 = scmp.ne.s32.totalorder %s1710_s17, %s1308_s26  ;;  %p1313_p6 = scmp.lt.u32.totalorder %s1710_s17, %s1804_s4 }
 0x228   : > { %p1314_p11 = scmp.lt.u32.totalorder %s1312_s7, %s1308_s26  ;;  %p1316_p8 = scmp.lt.u32.totalorder %s1308_s26, %s1710_s17 }
 0x229   : > { %p1310_p2 = pnand %p1309_p0, %p1812_p10 }
 0x22a   : > { %p1315_p12 = por %p1314_p11, %p1313_p6 }
 0x22b   : > { %p1311_p7 = pneg %p1310_p2 }
 0x22c   : > { %p1317_p9 = por %p1316_p8, %p1315_p12 }
 0x22e   : > { %p1318_p13 = pnand %p1317_p9, %p1311_p7 }
 0x230   : > { %1321 = shalt.err (!%p1318_p13)
}
 0x231   : > { %s1374_s13 = smov 128   ;;  %s1375_s16 = smov 8   ;;  %707 = vrot.lane.b32.xlu1 %v1173_v27, %s1369_s28 }
 0x232   : > { %1177 = dma.vmem_to_hbm [thread:$0]  (%p1812_p10), %s1712_s10, 2048, %s1710_s17, %s844_s12, %s1374_s13, %s1374_s13, %s1375_s16  }
 0x233   : > { %s1022_s8 = sshll.u32 %s1427_s22, 4 }
 0x234   : > { %p265_p1 = scmp.lt.s32.totalorder %s1022_s8, 95 }
 0x236   : > { %s1819_s8 = smov (!%p265_p1, %s1022_s8), 95 }
 0x237   : > { %s1023_s25 = sshll.u32 %s1819_s8, 3 }
 0x238   : > { %s1749_s15 = scalar_lea.vmem %s1805_s5, %s1023_s25 }
 0x268   : > { %v680_v29 = vpop.permute.xlu0 %679 }
 0x269   : > { %726 = vst.msk [vmem:[%s1749_s15 + $0x8] sm:$0xff] %vm644_vm3, %v680_v29 }
 0x26c   : > { %v678_v30 = vpop.permute.xlu0 %677  ;;  %v684_v31 = vpop.permute.xlu1 %683 }
 0x26d   : > { %725 = vst.msk [vmem:[%s1749_s15] sm:$0xff] %vm644_vm3, %v678_v30  ;;  %728 = vst.msk [vmem:[%s1749_s15 + $0x18] sm:$0xff] %vm644_vm3, %v684_v31 }
 0x270   : > { %v682_v32 = vpop.permute.xlu1 %681 }
 0x271   : > { %727 = vst.msk [vmem:[%s1749_s15 + $0x10] sm:$0xff] %vm644_vm3, %v682_v32  ;;  %v686_v33 = vpop.permute.xlu0 %685 }
 0x272   : > { %729 = vst.msk [vmem:[%s1749_s15 + $0x20] sm:$0xff] %vm644_vm3, %v686_v33 }
 0x274   : > { %v688_v34 = vpop.permute.xlu1 %687 }
 0x275   : > { %730 = vst.msk [vmem:[%s1749_s15 + $0x28] sm:$0xff] %vm644_vm3, %v688_v34  ;;  %v690_v35 = vpop.permute.xlu0 %689 }
 0x276   : > { %731 = vst.msk [vmem:[%s1749_s15 + $0x30] sm:$0xff] %vm644_vm3, %v690_v35 }
 0x278   : > { %v692_v36 = vpop.permute.xlu1 %691 }
 0x279   : > { %732 = vst.msk [vmem:[%s1749_s15 + $0x38] sm:$0xff] %vm644_vm3, %v692_v36  ;;  %v694_v37 = vpop.permute.xlu0 %693 }
 0x27a   : > { %733 = vst.msk [vmem:[%s1749_s15 + $0x40] sm:$0xff] %vm644_vm3, %v694_v37 }
 0x27c   : > { %v696_v38 = vpop.permute.xlu1 %695 }
 0x27d   : > { %734 = vst.msk [vmem:[%s1749_s15 + $0x48] sm:$0xff] %vm644_vm3, %v696_v38  ;;  %v698_v39 = vpop.permute.xlu0 %697 }
 0x27e   : > { %735 = vst.msk [vmem:[%s1749_s15 + $0x50] sm:$0xff] %vm644_vm3, %v698_v39 }
 0x28a   : > { %v700_v40 = vpop.permute.xlu1 %699 }
 0x28b   : > { %736 = vst.msk [vmem:[%s1749_s15 + $0x58] sm:$0xff] %vm644_vm3, %v700_v40 }
 0x28c   : > { %v702_v41 = vpop.permute.xlu0 %701 }
 0x28d   : > { %737 = vst.msk [vmem:[%s1749_s15 + $0x60] sm:$0xff] %vm644_vm3, %v702_v41 }
 0x28e   : > { %v704_v42 = vpop.permute.xlu1 %703 }
 0x28f   : > { %738 = vst.msk [vmem:[%s1749_s15 + $0x68] sm:$0xff] %vm644_vm3, %v704_v42 }
 0x290   : > { %v706_v43 = vpop.permute.xlu0 %705 }
 0x291   : > { %739 = vst.msk [vmem:[%s1749_s15 + $0x70] sm:$0xff] %vm644_vm3, %v706_v43 }
 0x2a3   : > { %v708_v44 = vpop.permute.xlu1 %707 }
 0x2a4   : > { %740 = vst.msk [vmem:[%s1749_s15 + $0x78] sm:$0xff] %vm644_vm3, %v708_v44 }
 0x2a5 PF: > { %p1192_p10 = scmp.ge.s32.totalorder %s1364_s21, 2  ;;  %s897_s22 = sand.u32 1, %s1352_s18  }
 0x2a6   : > { %p1813_p3 = scmp.ne.s32.totalorder %s1810_s6, 0  ;;  %s898_s30 = scalar_lea.sflag [#allocation4], %s897_s22 }
 0x2a8   : > { %p1185_p4 = pnand %p1192_p10, %p1813_p3 }
 0x2aa   : > { %1343 = dma.done.wait (!%p1185_p4), %s898_s30, 1024  }
 0x2ab   : > { %1345 = vsyncadd (!%p1185_p4), %s898_s30, 4294966272  ;;  %s907_s23 = scalar_lea.sflag [#allocation7], %s897_s22 }
 0x2ac   : > { %1347 = dma.done.wait (!%p1185_p4), %s907_s23, 2048  }
 0x2ad   : > { %1349 = vsyncadd (!%p1185_p4), %s907_s23, 4294965248  ;;  %p22_p5 = scmp.ge.s32.totalorder %s1431_s24, 8   ;;  %s1814_s18 = smov %s1356_s19 }
 0x2ae   : > { %s1815_s19 = smov %s1360_s20  ;;  %s1816_s20 = smov %s1443_s27 }
 0x2af   : > { %s1817_s21 = smov %s1431_s24  ;;  %24 = sbr.rel (!%p22_p5) target bundleno = 7 (0x7), region = 106 }
 0x2b6   :  { %920 = vsyncpa [#allocation3], 1 }
 0x2b7   :  { %922 = vsyncpa [#allocation3 + $0x1], 1 }
 0x2b8   :  { %923 = vsyncpa [#allocation4], 1 }
 0x2b9   :  { %925 = vsyncpa [#allocation4 + $0x1], 1 }
 0x2ba   :  { %926 = vsyncpa [#allocation7], 1 }
 0x2bb   :  { %928 = vsyncpa [#allocation7 + $0x1], 1 }

// kernel: spgat_forward.4
= control target key start
LH: loop header
LB: loop body
LE: loop exit
PB: predicated region body
PF: predicated region fallthrough
CT: control target
= control target key end

     0   :  { %11 = vsyncpa [#allocation3], 0  ;;  %s2619_s0 = inlined_call_operand.vmem [shape: f32[768,64], index: 0, kind: input, shape index: {}]   ;;  %s2620_s1 = inlined_call_operand.vmem [shape: bf16[64,64], index: 1, kind: input, shape index: {}]   ;;  %s2621_s2 = inlined_call_operand.vmem [shape: f32[64,8], index: 2, kind: input, shape index: {}]   ;;  %s2622_s3 = inlined_call_operand.hbm [shape: bf16[4,768,17], index: 3, kind: output, shape index: {0}]   ;;  %s2623_s4 = inlined_call_operand.hbm [shape: f32[768,4], index: 4, kind: output, shape index: {1}]   ;;  %s2624_s5 = inlined_call_operand.vmem [shape: f32[768,4], index: 5, kind: output, shape index: {2}]  }
   0x1   :  { %13 = vsyncpa [#allocation3 + $0x1], 0 }
   0x2   :  { %14 = vsyncpa [#allocation5], 0 }
   0x3   :  { %16 = vsyncpa [#allocation5 + $0x1], 0  ;;  %s2092_s18 = smov 0   ;;  %s2094_s19 = smov 0  }
   0x4   :  { %s2096_s20 = smov 0   ;;  %s2098_s21 = smov 0  }
   0x5 LB: > { %s2113_s22 = sadd.s32 4294967295, %s2046_s21   ;;  %s1453_s23 = sadd.s32 4294967294, %s2046_s21   ;;  %s2046_s21 = sphi %s2098_s21, %s2630_s21   ;;  %s2042_s20 = sphi %s2096_s20, %s2629_s20   ;;  %s2038_s19 = sphi %s2094_s19, %s2628_s19   ;;  %s2034_s18 = sphi %s2092_s18, %s2627_s18  }
   0x6   : > { %s2117_s24 = sadd.s32 1, %s2046_s21   ;;  %s97_s25 = sadd.s32 1, %s2042_s20 }
   0x7   : > { %s94_s26 = ssub.s32 %s2046_s21, %s2117_s24  ;;  %p107_p0 = scmp.ne.s32.totalorder %s2042_s20, %s2038_s19 }
   0x8   : > { %p95_p1 = scmp.eq.s32.totalorder %s94_s26, 0  ;;  %p108_p2 = scmp.eq.s32.totalorder %s2113_s22, 5 }
   0x9   : > { %p113_p3 = scmp.ne.s32.totalorder %s2038_s19, %s2034_s18  ;;  %p114_p4 = scmp.eq.s32.totalorder %s1453_s23, 5 }
   0xa   : > { %s2128_s27 = scalar_select %p95_p1, %s2042_s20, %s97_s25  }
   0xb   : > { %p2130_p5 = por %p108_p2, %p107_p0  ;;  %p2134_p6 = por %p114_p4, %p113_p3 }
   0xc   : > { %p1456_p7 = scmp.ge.s32.totalorder %s2046_s21, 1  ;;  %p199_p8 = scmp.lt.s32.totalorder %s2046_s21, 7 }
   0xe   : > { %p200_p9 = pnand %p1456_p7, %p199_p8 }
   0xf   : > { %v1976_v0 = vld [vmem:[%s2620_s1] sm:$0xff] (!%p200_p9)   ;;  %s1459_s7 = sshll.u32 (!%p200_p9), %s2113_s22, 4  ;;  %v1977_v1 = vld [vmem:[%s2620_s1 + $0x8] sm:$0xff] (!%p200_p9)   ;;  %v1978_v2 = vld [vmem:[%s2620_s1 + $0x10] sm:$0xff] (!%p200_p9)   ;;  %vm308_vm0 = vcmask (!%p200_p9), 523264   ;;  %s2212_s26 = sand.u32 (!%p200_p9), 1, %s2038_s19  }
  0x10   : > { %203 = sbr.rel (%p200_p9) target bundleno = 650 (0x28a), region = 32  ;;  %p238_p10 = scmp.lt.s32.totalorder (!%p200_p9), %s1459_s7, 95  ;;  %1713 = vmatprep.subr.bf16.mxu0 (!%p200_p9), %v1976_v0  ;;  %v430_v3 = vld [vmem:[%s2621_s2] sm:$0xff] (!%p200_p9)  ;;  %v431_v4 = vld [vmem:[%s2621_s2 + $0x8] sm:$0xff] (!%p200_p9)  ;;  %v432_v5 = vld [vmem:[%s2621_s2 + $0x10] sm:$0xff] (!%p200_p9)  ;;  %vm728_vm1 = vcmask (!%p200_p9), 130048  }
  0x11   : > { %1714 = vmatpush3.bf16.msra.mxu0 (!%p200_p9), %v1976_v0  ;;  %v1777_v6 = vpack.c.bf16 (!%p200_p9), %v431_v4, %v430_v3  ;;  %v433_v7 = vld [vmem:[%s2621_s2 + $0x18] sm:$0xff] (!%p200_p9)  ;;  %v434_v9 = vld [vmem:[%s2621_s2 + $0x20] sm:$0xff] (!%p200_p9)  ;;  %v435_v10 = vld [vmem:[%s2621_s2 + $0x28] sm:$0xff] (!%p200_p9)  ;;  %s1457_s30 = sshll.u32 (!%p200_p9), %s2212_s26, 8  ;;  %vm809_vm2 = vcmask (!%p200_p9), 134144   ;;  %s2049_s9 = smov (!%p200_p9), 96  }
  0x12   : > { %1715 = vmatprep.subr.bf16.mxu0 (!%p200_p9), %v1977_v1  ;;  %v1781_v8 = vpack.c.bf16 (!%p200_p9), %v433_v7, %v432_v5  ;;  %v1979_v13 = vld [vmem:[%s2620_s1 + $0x18] sm:$0xff] (!%p200_p9)   ;;  %v1785_v15 = vpack.c.bf16 (!%p200_p9), %v435_v10, %v434_v9  ;;  %v436_v37 = vld [vmem:[%s2621_s2 + $0x30] sm:$0xff] (!%p200_p9)  ;;  %s2219_s6 = scalar_lea.vmem (!%p200_p9), [#allocation2], %s1457_s30  ;;  %s2050_s10 = smov (!%p200_p9), 80   ;;  %vm631_vm3 = vcmask (!%p200_p9), 31744  }
  0x13   : > { %1778 = vmatprep.subr.bf16.mxu1 (!%p200_p9), %v1777_v6  ;;  %v437_v38 = vld [vmem:[%s2621_s2 + $0x38] sm:$0xff] (!%p200_p9)  ;;  %s1458_s11 = sshll.u32 (!%p200_p9), %s2212_s26, 7  ;;  %s2051_s13 = smov (!%p200_p9), 124  }
  0x14   : > { %1780 = vmatpush3.bf16.msra.mxu1 (!%p200_p9), %v1777_v6  ;;  %v1789_v39 = vpack.c.bf16 (!%p200_p9), %v437_v38, %v436_v37  ;;  %s2444_s12 = scalar_lea.vmem (!%p200_p9), [#allocation4], %s1458_s11 }
  0x15   : > { %1716 = vmatpush3.bf16.msra.mxu0 (!%p200_p9), %v1977_v1  ;;  %1782 = vmatprep.subr.bf16.mxu1 (!%p200_p9), %v1781_v8 }
  0x16   : > { %1717 = vmatprep.subr.bf16.mxu0 (!%p200_p9), %v1978_v2 }
  0x17   : > { %s2632_s7 = smov (!%p238_p10, %s1459_s7), 95 }
  0x18   : > { %s1460_s23 = sshll.u32 %s2632_s7, 3  ;;  %1784 = vmatpush3.bf16.msra.mxu1 %v1781_v8  ;;  %s1262_s7 = scalar_lea.sflag [#allocation3], %s2212_s26 }
  0x19   : > { %s2170_s8 = scalar_lea.vmem %s2619_s0, %s1460_s23  ;;  %1718 = vmatpush3.bf16.msra.mxu0 %v1978_v2  ;;  %1786 = vmatprep.subr.bf16.mxu1 %v1785_v15  ;;  %s2503_s16 = scalar_lea.vmem %s2624_s5, %s1460_s23 }
  0x1a   : > { %v252_v11 = vld [vmem:[%s2170_s8] sm:$0xff]  ;;  %v253_v12 = vld [vmem:[%s2170_s8 + $0x8] sm:$0xff]  ;;  %v254_v16 = vld [vmem:[%s2170_s8 + $0x10] sm:$0xff]  ;;  %1719 = vmatprep.subr.bf16.mxu0 %v1979_v13  ;;  %s1267_s23 = scalar_lea.sflag [#allocation5], %s2212_s26 }
  0x1b   : > { %v268_v14 = vpack.c.bf16 %v253_v12, %v252_v11  ;;  %v255_v17 = vld [vmem:[%s2170_s8 + $0x18] sm:$0xff]  ;;  %v256_v18 = vld [vmem:[%s2170_s8 + $0x20] sm:$0xff]  ;;  %v257_v19 = vld [vmem:[%s2170_s8 + $0x28] sm:$0xff] }
  0x1c   : > { %v269_v20 = vpack.c.bf16 %v255_v17, %v254_v16  ;;  %v270_v21 = vpack.c.bf16 %v257_v19, %v256_v18  ;;  %1788 = vmatpush3.bf16.msra.mxu1 %v1785_v15  ;;  %v258_v22 = vld [vmem:[%s2170_s8 + $0x30] sm:$0xff]  ;;  %v259_v23 = vld [vmem:[%s2170_s8 + $0x38] sm:$0xff]  ;;  %v260_v24 = vld [vmem:[%s2170_s8 + $0x40] sm:$0xff] }
  0x1d   : > { %1721 = vmatprep.mubr.msk.bf16.mxu0 %vm308_vm0, %v268_v14  ;;  %1720 = vmatpush3.bf16.msra.mxu0 %v1979_v13  ;;  %v261_v25 = vld [vmem:[%s2170_s8 + $0x48] sm:$0xff]  ;;  %v271_v26 = vpack.c.bf16 %v259_v23, %v258_v22  ;;  %v262_v28 = vld [vmem:[%s2170_s8 + $0x50] sm:$0xff]  ;;  %v263_v29 = vld [vmem:[%s2170_s8 + $0x58] sm:$0xff] }
  0x1e   : > { %v272_v27 = vpack.c.bf16 %v261_v25, %v260_v24  ;;  %v264_v30 = vld [vmem:[%s2170_s8 + $0x60] sm:$0xff]  ;;  %v265_v31 = vld [vmem:[%s2170_s8 + $0x68] sm:$0xff]  ;;  %v273_v32 = vpack.c.bf16 %v263_v29, %v262_v28  ;;  %v266_v34 = vld [vmem:[%s2170_s8 + $0x70] sm:$0xff]  ;;  %1790 = vmatprep.subr.bf16.mxu1 %v1789_v39 }
  0x1f   : > { %v274_v33 = vpack.c.bf16 %v265_v31, %v264_v30  ;;  %v267_v35 = vld [vmem:[%s2170_s8 + $0x78] sm:$0xff]  ;;  %s2048_s8 = smov 112  }
  0x20   : > { %1722 = vmatmul.mubr.msk.bf16.vlgmr.msra.gmra.mrb[0].mxu0 %vm308_vm0, %v269_v20  ;;  %v275_v36 = vpack.c.bf16 %v267_v35, %v266_v34  ;;  %1792 = vmatpush3.bf16.msra.mxu1 %v1789_v39 }
  0x21   : > { %1725 = vmatprep.mubr.msk.bf16.mxu0 %vm308_vm0, %v270_v21 }
  0x28   : > { %1726 = vmatmul.mubr.msk.bf16.gmra.mrb[4].mxu0 %vm308_vm0, %v271_v26 }
  0x29   : > { %1729 = vmatprep.mubr.msk.bf16.mxu0 %vm308_vm0, %v272_v27 }
  0x30   : > { %1730 = vmatmul.mubr.msk.bf16.gmra.mrb[8].mxu0 %vm308_vm0, %v273_v32 }
  0x31   : > { %1733 = vmatprep.mubr.msk.bf16.mxu0 %vm308_vm0, %v274_v33 }
  0x38   : > { %1734 = vmatmul.mubr.msk.bf16.gmra.mrb[12].mxu0 %vm308_vm0, %v275_v36 }
  0xf3   : > { %v1723_v40 = vpop.f32.mrb[0].mxu0 }
  0xf4   : > { %v731_v41 = vsel %vm728_vm1, %v1723_v40, 1.0  ;;  %v367_v42 = vpop.f32.mrb[1].mxu0 }
  0xf5   : > { %v1613_v43 = vpack.c.bf16 %v731_v41, %v731_v41  ;;  %v729_v44 = vsel %vm728_vm1, %v367_v42, 1.0  ;;  %v1724_v45 = vpop.f32.mrb[2].mxu0  ;;  %1753 = vmatprep.mubr.msk.f32.mxu1 %vm308_vm0, %v367_v42 }
  0xf6   : > { %v1611_v46 = vpack.c.bf16 %v729_v44, %v729_v44  ;;  %v732_v47 = vsel %vm728_vm1, %v1724_v45, 1.0  ;;  %v370_v48 = vpop.f32.mrb[3].mxu0  ;;  %v1856_v49 = vpack.i.bf16 %v1724_v45, %v1723_v40 }
  0xf7   : > { %812 = vst.msk [vmem:[%s2219_s6 + $0x8] sm:$0xf] %vm809_vm2, %v1613_v43  ;;  %v1614_v50 = vpack.c.bf16 %v732_v47, %v732_v47  ;;  %v730_v51 = vsel %vm728_vm1, %v370_v48, 1.0  ;;  %1754 = vmatmul.mubr.msk.f32.vlgmr.msra.gmra.mrb[0].mxu1 %vm308_vm0, %v370_v48  ;;  %v1871_v52 = vpack.i.bf16 %v370_v48, %v367_v42 }
  0xf8   : > { %810 = vst.msk [vmem:[%s2219_s6] sm:$0xf] %vm809_vm2, %v1611_v46  ;;  %v1612_v53 = vpack.c.bf16 %v730_v51, %v730_v51  ;;  %1857 = vrot.lane.b32.xlu1 %v1856_v49, %s2048_s8  ;;  %1756 = vmatprep.mubr.msk.f32.mxu1 %vm308_vm0, %v1723_v40 }
  0xf9   : > { %813 = vst.msk [vmem:[%s2219_s6 + $0xc] sm:$0xf] %vm809_vm2, %v1614_v50  ;;  %1872 = vrot.lane.b32.xlu0 %v1871_v52, %s2048_s8 }
  0xfa   : > { %811 = vst.msk [vmem:[%s2219_s6 + $0x4] sm:$0xf] %vm809_vm2, %v1612_v53 }
  0xfb   : > { %v1727_v54 = vpop.f32.mrb[4].mxu0  ;;  %1757 = vmatmul.mubr.msk.f32.gmra.mrb[2].mxu1 %vm308_vm0, %v1724_v45 }
  0xfc   : > { %v735_v55 = vsel %vm728_vm1, %v1727_v54, 1.0  ;;  %1862 = vrot.lane.b32.xlu1 %v1856_v49, %s2049_s9  ;;  %v383_v56 = vpop.f32.mrb[5].mxu0 }
  0xfd   : > { %v1617_v57 = vpack.c.bf16 %v735_v55, %v735_v55  ;;  %v733_v58 = vsel %vm728_vm1, %v383_v56, 1.0  ;;  %1877 = vrot.lane.b32.xlu0 %v1871_v52, %s2049_s9  ;;  %v1728_v59 = vpop.f32.mrb[6].mxu0  ;;  %1759 = vmatprep.mubr.msk.f32.mxu1 %vm308_vm0, %v383_v56 }
  0xfe   : > { %v1615_v60 = vpack.c.bf16 %v733_v58, %v733_v58  ;;  %v736_v61 = vsel %vm728_vm1, %v1728_v59, 1.0  ;;  %v386_v62 = vpop.f32.mrb[7].mxu0  ;;  %v1886_v63 = vpack.i.bf16 %v1728_v59, %v1727_v54 }
  0xff   : > { %816 = vst.msk [vmem:[%s2219_s6 + $0x18] sm:$0xf] %vm809_vm2, %v1617_v57  ;;  %v1618_v0 = vpack.c.bf16 %v736_v61, %v736_v61  ;;  %v734_v1 = vsel %vm728_vm1, %v386_v62, 1.0  ;;  %1760 = vmatmul.mubr.msk.f32.gmra.mrb[4].mxu1 %vm308_vm0, %v386_v62  ;;  %v1901_v2 = vpack.i.bf16 %v386_v62, %v383_v56 }
 0x100   : > { %814 = vst.msk [vmem:[%s2219_s6 + $0x10] sm:$0xf] %vm809_vm2, %v1615_v60  ;;  %v1616_v3 = vpack.c.bf16 %v734_v1, %v734_v1  ;;  %1867 = vrot.lane.b32.xlu1 %v1856_v49, %s2050_s10  ;;  %1762 = vmatprep.mubr.msk.f32.mxu1 %vm308_vm0, %v1727_v54 }
 0x101   : > { %817 = vst.msk [vmem:[%s2219_s6 + $0x1c] sm:$0xf] %vm809_vm2, %v1618_v0  ;;  %1882 = vrot.lane.b32.xlu0 %v1871_v52, %s2050_s10 }
 0x102   : > { %815 = vst.msk [vmem:[%s2219_s6 + $0x14] sm:$0xf] %vm809_vm2, %v1616_v3 }
 0x103   : > { %v1731_v4 = vpop.f32.mrb[8].mxu0  ;;  %1763 = vmatmul.mubr.msk.f32.gmra.mrb[6].mxu1 %vm308_vm0, %v1728_v59 }
 0x104   : > { %v739_v5 = vsel %vm728_vm1, %v1731_v4, 1.0  ;;  %1887 = vrot.lane.b32.xlu1 %v1886_v63, %s2048_s8  ;;  %v399_v6 = vpop.f32.mrb[9].mxu0 }
 0x105   : > { %v1621_v7 = vpack.c.bf16 %v739_v5, %v739_v5  ;;  %v737_v8 = vsel %vm728_vm1, %v399_v6, 1.0  ;;  %1902 = vrot.lane.b32.xlu0 %v1901_v2, %s2048_s8  ;;  %v1732_v9 = vpop.f32.mrb[10].mxu0  ;;  %1765 = vmatprep.mubr.msk.f32.mxu1 %vm308_vm0, %v399_v6 }
 0x106   : > { %v1619_v10 = vpack.c.bf16 %v737_v8, %v737_v8  ;;  %v740_v11 = vsel %vm728_vm1, %v1732_v9, 1.0  ;;  %v402_v12 = vpop.f32.mrb[11].mxu0  ;;  %v1916_v13 = vpack.i.bf16 %v1732_v9, %v1731_v4 }
 0x107   : > { %820 = vst.msk [vmem:[%s2219_s6 + $0x28] sm:$0xf] %vm809_vm2, %v1621_v7  ;;  %v1622_v14 = vpack.c.bf16 %v740_v11, %v740_v11  ;;  %v738_v15 = vsel %vm728_vm1, %v402_v12, 1.0  ;;  %1766 = vmatmul.mubr.msk.f32.gmra.mrb[8].mxu1 %vm308_vm0, %v402_v12  ;;  %v1931_v16 = vpack.i.bf16 %v402_v12, %v399_v6 }
 0x108   : > { %818 = vst.msk [vmem:[%s2219_s6 + $0x20] sm:$0xf] %vm809_vm2, %v1619_v10  ;;  %v1620_v17 = vpack.c.bf16 %v738_v15, %v738_v15  ;;  %1892 = vrot.lane.b32.xlu1 %v1886_v63, %s2049_s9  ;;  %1768 = vmatprep.mubr.msk.f32.mxu1 %vm308_vm0, %v1731_v4 }
 0x109   : > { %821 = vst.msk [vmem:[%s2219_s6 + $0x2c] sm:$0xf] %vm809_vm2, %v1622_v14  ;;  %1907 = vrot.lane.b32.xlu0 %v1901_v2, %s2049_s9 }
 0x10a   : > { %819 = vst.msk [vmem:[%s2219_s6 + $0x24] sm:$0xf] %vm809_vm2, %v1620_v17 }
 0x10b   : > { %v1735_v18 = vpop.f32.mrb[12].mxu0  ;;  %1769 = vmatmul.mubr.msk.f32.gmra.mrb[10].mxu1 %vm308_vm0, %v1732_v9 }
 0x10c   : > { %v743_v19 = vsel %vm728_vm1, %v1735_v18, 1.0  ;;  %1897 = vrot.lane.b32.xlu1 %v1886_v63, %s2050_s10  ;;  %v415_v20 = vpop.f32.mrb[13].mxu0 }
 0x10d   : > { %v1625_v21 = vpack.c.bf16 %v743_v19, %v743_v19  ;;  %v741_v22 = vsel %vm728_vm1, %v415_v20, 1.0  ;;  %1912 = vrot.lane.b32.xlu0 %v1901_v2, %s2050_s10  ;;  %v1736_v23 = vpop.f32.mrb[14].mxu0  ;;  %1771 = vmatprep.mubr.msk.f32.mxu1 %vm308_vm0, %v415_v20 }
 0x10e   : > { %v1623_v24 = vpack.c.bf16 %v741_v22, %v741_v22  ;;  %v744_v25 = vsel %vm728_vm1, %v1736_v23, 1.0  ;;  %v418_v26 = vpop.f32.mrb[15].mxu0  ;;  %v2281_v27 = vpack.i.bf16 %v1736_v23, %v1735_v18 }
 0x10f   : > { %824 = vst.msk [vmem:[%s2219_s6 + $0x38] sm:$0xf] %vm809_vm2, %v1625_v21  ;;  %v1626_v28 = vpack.c.bf16 %v744_v25, %v744_v25  ;;  %v742_v29 = vsel %vm728_vm1, %v418_v26, 1.0  ;;  %1772 = vmatmul.mubr.msk.f32.gmra.mrb[12].mxu1 %vm308_vm0, %v418_v26  ;;  %v2287_v30 = vpack.i.bf16 %v418_v26, %v415_v20 }
 0x110   : > { %822 = vst.msk [vmem:[%s2219_s6 + $0x30] sm:$0xf] %vm809_vm2, %v1623_v24  ;;  %v1624_v31 = vpack.c.bf16 %v742_v29, %v742_v29  ;;  %1917 = vrot.lane.b32.xlu1 %v1916_v13, %s2048_s8  ;;  %1774 = vmatprep.mubr.msk.f32.mxu1 %vm308_vm0, %v1735_v18 }
 0x111   : > { %825 = vst.msk [vmem:[%s2219_s6 + $0x3c] sm:$0xf] %vm809_vm2, %v1626_v28  ;;  %1932 = vrot.lane.b32.xlu0 %v1931_v16, %s2048_s8 }
 0x112   : > { %823 = vst.msk [vmem:[%s2219_s6 + $0x34] sm:$0xf] %vm809_vm2, %v1624_v31 }
 0x113   : > { %1775 = vmatmul.mubr.msk.f32.gmra.mrb[14].mxu1 %vm308_vm0, %v1736_v23 }
 0x114   : > { %1922 = vrot.lane.b32.xlu1 %v1916_v13, %s2049_s9 }
 0x115   : > { %1937 = vrot.lane.b32.xlu0 %v1931_v16, %s2049_s9 }
 0x118   : > { %1927 = vrot.lane.b32.xlu1 %v1916_v13, %s2050_s10 }
 0x119   : > { %1942 = vrot.lane.b32.xlu0 %v1931_v16, %s2050_s10 }
 0x11c   : > { %1947 = vrot.lane.b32.xlu1 %v2281_v27, %s2048_s8 }
 0x11d   : > { %1957 = vrot.lane.b32.xlu0 %v2287_v30, %s2048_s8 }
 0x120   : > { %1952 = vrot.lane.b32.xlu1 %v2281_v27, %s2049_s9 }
 0x121   : > { %1962 = vrot.lane.b32.xlu0 %v2287_v30, %s2049_s9 }
 0x16a   : > { %v1858_v32 = vpop.permute.xlu1 %1857 }
 0x16b   : > { %v1860_v33 = vunpack.i.h.bf16 %v1858_v32  ;;  %v1859_v34 = vunpack.i.l.bf16 %v1858_v32  ;;  %v1873_v35 = vpop.permute.xlu0 %1872 }
 0x16c   : > { %v1875_v36 = vunpack.i.h.bf16 %v1873_v35  ;;  %v1874_v37 = vunpack.i.l.bf16 %v1873_v35 }
 0x16d   : > { %v877_v38 = vsel %vm728_vm1, %v1860_v33, 1.0  ;;  %v876_v39 = vsel %vm728_vm1, %v1859_v34, 1.0 }
 0x16e   : > { %v1630_v40 = vpack.c.bf16 %v877_v38, %v877_v38  ;;  %v1629_v41 = vpack.c.bf16 %v876_v39, %v876_v39  ;;  %v875_v42 = vsel %vm728_vm1, %v1875_v36, 1.0  ;;  %v874_v43 = vsel %vm728_vm1, %v1874_v37, 1.0  ;;  %v1863_v44 = vpop.permute.xlu1 %1862 }
 0x16f   : > { %v1628_v45 = vpack.c.bf16 %v875_v42, %v875_v42  ;;  %v1627_v46 = vpack.c.bf16 %v874_v43, %v874_v43  ;;  %v1865_v47 = vunpack.i.h.bf16 %v1863_v44  ;;  %v1864_v48 = vunpack.i.l.bf16 %v1863_v44  ;;  %v1878_v49 = vpop.permute.xlu0 %1877 }
 0x170   : > { %1525 = vst.msk [vmem:[%s2219_s6 + $0x48] sm:$0xf] %vm809_vm2, %v1629_v41  ;;  %1526 = vst.msk [vmem:[%s2219_s6 + $0x4c] sm:$0xf] %vm809_vm2, %v1630_v40  ;;  %v1880_v50 = vunpack.i.h.bf16 %v1878_v49  ;;  %v1879_v51 = vunpack.i.l.bf16 %v1878_v49 }
 0x171   : > { %1523 = vst.msk [vmem:[%s2219_s6 + $0x40] sm:$0xf] %vm809_vm2, %v1627_v46  ;;  %1524 = vst.msk [vmem:[%s2219_s6 + $0x44] sm:$0xf] %vm809_vm2, %v1628_v45  ;;  %v1022_v52 = vsel %vm728_vm1, %v1865_v47, 1.0  ;;  %v1021_v53 = vsel %vm728_vm1, %v1864_v48, 1.0 }
 0x172   : > { %v1646_v54 = vpack.c.bf16 %v1022_v52, %v1022_v52  ;;  %v1645_v55 = vpack.c.bf16 %v1021_v53, %v1021_v53  ;;  %v1020_v56 = vsel %vm728_vm1, %v1880_v50, 1.0  ;;  %v1019_v57 = vsel %vm728_vm1, %v1879_v51, 1.0  ;;  %v1868_v58 = vpop.permute.xlu1 %1867 }
 0x173   : > { %v1644_v59 = vpack.c.bf16 %v1020_v56, %v1020_v56  ;;  %v1643_v60 = vpack.c.bf16 %v1019_v57, %v1019_v57  ;;  %v1870_v61 = vunpack.i.h.bf16 %v1868_v58  ;;  %v1869_v62 = vunpack.i.l.bf16 %v1868_v58  ;;  %v1883_v63 = vpop.permute.xlu0 %1882 }
 0x174   : > { %1557 = vst.msk [vmem:[%s2219_s6 + $0x88] sm:$0xf] %vm809_vm2, %v1645_v55  ;;  %1558 = vst.msk [vmem:[%s2219_s6 + $0x8c] sm:$0xf] %vm809_vm2, %v1646_v54  ;;  %v1885_v0 = vunpack.i.h.bf16 %v1883_v63  ;;  %v1884_v1 = vunpack.i.l.bf16 %v1883_v63 }
 0x175   : > { %1555 = vst.msk [vmem:[%s2219_s6 + $0x80] sm:$0xf] %vm809_vm2, %v1643_v60  ;;  %1556 = vst.msk [vmem:[%s2219_s6 + $0x84] sm:$0xf] %vm809_vm2, %v1644_v59  ;;  %v1167_v2 = vsel %vm728_vm1, %v1870_v61, 1.0  ;;  %v1166_v3 = vsel %vm728_vm1, %v1869_v62, 1.0 }
 0x176   : > { %v1662_v4 = vpack.c.bf16 %v1167_v2, %v1167_v2  ;;  %v1661_v5 = vpack.c.bf16 %v1166_v3, %v1166_v3  ;;  %v1165_v6 = vsel %vm728_vm1, %v1885_v0, 1.0  ;;  %v1164_v7 = vsel %vm728_vm1, %v1884_v1, 1.0  ;;  %v1888_v8 = vpop.permute.xlu1 %1887 }
 0x177   : > { %v1660_v9 = vpack.c.bf16 %v1165_v6, %v1165_v6  ;;  %v1659_v10 = vpack.c.bf16 %v1164_v7, %v1164_v7  ;;  %v1890_v11 = vunpack.i.h.bf16 %v1888_v8  ;;  %v1889_v12 = vunpack.i.l.bf16 %v1888_v8  ;;  %v1903_v13 = vpop.permute.xlu0 %1902 }
 0x178   : > { %1589 = vst.msk [vmem:[%s2219_s6 + $0xc8] sm:$0xf] %vm809_vm2, %v1661_v5  ;;  %1590 = vst.msk [vmem:[%s2219_s6 + $0xcc] sm:$0xf] %vm809_vm2, %v1662_v4  ;;  %v1905_v14 = vunpack.i.h.bf16 %v1903_v13  ;;  %v1904_v15 = vunpack.i.l.bf16 %v1903_v13 }
 0x179   : > { %1587 = vst.msk [vmem:[%s2219_s6 + $0xc0] sm:$0xf] %vm809_vm2, %v1659_v10  ;;  %1588 = vst.msk [vmem:[%s2219_s6 + $0xc4] sm:$0xf] %vm809_vm2, %v1660_v9  ;;  %v881_v16 = vsel %vm728_vm1, %v1890_v11, 1.0  ;;  %v880_v17 = vsel %vm728_vm1, %v1889_v12, 1.0 }
 0x17a   : > { %v1634_v18 = vpack.c.bf16 %v881_v16, %v881_v16  ;;  %v1633_v19 = vpack.c.bf16 %v880_v17, %v880_v17  ;;  %v879_v20 = vsel %vm728_vm1, %v1905_v14, 1.0  ;;  %v878_v21 = vsel %vm728_vm1, %v1904_v15, 1.0  ;;  %v1893_v22 = vpop.permute.xlu1 %1892 }
 0x17b   : > { %v1632_v23 = vpack.c.bf16 %v879_v20, %v879_v20  ;;  %v1631_v24 = vpack.c.bf16 %v878_v21, %v878_v21  ;;  %v1895_v25 = vunpack.i.h.bf16 %v1893_v22  ;;  %v1894_v26 = vunpack.i.l.bf16 %v1893_v22  ;;  %v1908_v28 = vpop.permute.xlu0 %1907 }
 0x17c   : > { %1529 = vst.msk [vmem:[%s2219_s6 + $0x58] sm:$0xf] %vm809_vm2, %v1633_v19  ;;  %1530 = vst.msk [vmem:[%s2219_s6 + $0x5c] sm:$0xf] %vm809_vm2, %v1634_v18  ;;  %v1910_v29 = vunpack.i.h.bf16 %v1908_v28  ;;  %v1909_v31 = vunpack.i.l.bf16 %v1908_v28 }
 0x17d   : > { %1527 = vst.msk [vmem:[%s2219_s6 + $0x50] sm:$0xf] %vm809_vm2, %v1631_v24  ;;  %1528 = vst.msk [vmem:[%s2219_s6 + $0x54] sm:$0xf] %vm809_vm2, %v1632_v23  ;;  %v1026_v32 = vsel %vm728_vm1, %v1895_v25, 1.0  ;;  %v1025_v33 = vsel %vm728_vm1, %v1894_v26, 1.0 }
 0x17e   : > { %v1650_v34 = vpack.c.bf16 %v1026_v32, %v1026_v32  ;;  %v1649_v35 = vpack.c.bf16 %v1025_v33, %v1025_v33  ;;  %v1024_v36 = vsel %vm728_vm1, %v1910_v29, 1.0  ;;  %v1023_v37 = vsel %vm728_vm1, %v1909_v31, 1.0  ;;  %v1898_v38 = vpop.permute.xlu1 %1897 }
 0x17f   : > { %v1648_v39 = vpack.c.bf16 %v1024_v36, %v1024_v36  ;;  %v1647_v40 = vpack.c.bf16 %v1023_v37, %v1023_v37  ;;  %v1900_v41 = vunpack.i.h.bf16 %v1898_v38  ;;  %v1899_v42 = vunpack.i.l.bf16 %v1898_v38  ;;  %v1913_v43 = vpop.permute.xlu0 %1912 }
 0x180   : > { %1561 = vst.msk [vmem:[%s2219_s6 + $0x98] sm:$0xf] %vm809_vm2, %v1649_v35  ;;  %1562 = vst.msk [vmem:[%s2219_s6 + $0x9c] sm:$0xf] %vm809_vm2, %v1650_v34  ;;  %v1915_v44 = vunpack.i.h.bf16 %v1913_v43  ;;  %v1914_v45 = vunpack.i.l.bf16 %v1913_v43 }
 0x181   : > { %1559 = vst.msk [vmem:[%s2219_s6 + $0x90] sm:$0xf] %vm809_vm2, %v1647_v40  ;;  %1560 = vst.msk [vmem:[%s2219_s6 + $0x94] sm:$0xf] %vm809_vm2, %v1648_v39  ;;  %v1171_v46 = vsel %vm728_vm1, %v1900_v41, 1.0  ;;  %v1170_v47 = vsel %vm728_vm1, %v1899_v42, 1.0 }
 0x182   : > { %v1666_v48 = vpack.c.bf16 %v1171_v46, %v1171_v46  ;;  %v1665_v49 = vpack.c.bf16 %v1170_v47, %v1170_v47  ;;  %v1169_v50 = vsel %vm728_vm1, %v1915_v44, 1.0  ;;  %v1168_v51 = vsel %vm728_vm1, %v1914_v45, 1.0  ;;  %v1918_v52 = vpop.permute.xlu1 %1917 }
 0x183   : > { %v1664_v53 = vpack.c.bf16 %v1169_v50, %v1169_v50  ;;  %v1663_v54 = vpack.c.bf16 %v1168_v51, %v1168_v51  ;;  %v1920_v55 = vunpack.i.h.bf16 %v1918_v52  ;;  %v1919_v56 = vunpack.i.l.bf16 %v1918_v52  ;;  %v1933_v57 = vpop.permute.xlu0 %1932 }
 0x184   : > { %1593 = vst.msk [vmem:[%s2219_s6 + $0xd8] sm:$0xf] %vm809_vm2, %v1665_v49  ;;  %1594 = vst.msk [vmem:[%s2219_s6 + $0xdc] sm:$0xf] %vm809_vm2, %v1666_v48  ;;  %v1935_v58 = vunpack.i.h.bf16 %v1933_v57  ;;  %v1934_v59 = vunpack.i.l.bf16 %v1933_v57 }
 0x185   : > { %1591 = vst.msk [vmem:[%s2219_s6 + $0xd0] sm:$0xf] %vm809_vm2, %v1663_v54  ;;  %1592 = vst.msk [vmem:[%s2219_s6 + $0xd4] sm:$0xf] %vm809_vm2, %v1664_v53  ;;  %v885_v60 = vsel %vm728_vm1, %v1920_v55, 1.0  ;;  %v884_v61 = vsel %vm728_vm1, %v1919_v56, 1.0 }
 0x186   : > { %v1638_v62 = vpack.c.bf16 %v885_v60, %v885_v60  ;;  %v1637_v63 = vpack.c.bf16 %v884_v61, %v884_v61  ;;  %v883_v0 = vsel %vm728_vm1, %v1935_v58, 1.0  ;;  %v882_v1 = vsel %vm728_vm1, %v1934_v59, 1.0  ;;  %v1923_v2 = vpop.permute.xlu1 %1922 }
 0x187   : > { %v1636_v3 = vpack.c.bf16 %v883_v0, %v883_v0  ;;  %v1635_v4 = vpack.c.bf16 %v882_v1, %v882_v1  ;;  %v1925_v5 = vunpack.i.h.bf16 %v1923_v2  ;;  %v1924_v6 = vunpack.i.l.bf16 %v1923_v2  ;;  %v1938_v7 = vpop.permute.xlu0 %1937 }
 0x188   : > { %1533 = vst.msk [vmem:[%s2219_s6 + $0x68] sm:$0xf] %vm809_vm2, %v1637_v63  ;;  %1534 = vst.msk [vmem:[%s2219_s6 + $0x6c] sm:$0xf] %vm809_vm2, %v1638_v62  ;;  %v1940_v8 = vunpack.i.h.bf16 %v1938_v7  ;;  %v1939_v9 = vunpack.i.l.bf16 %v1938_v7 }
 0x189   : > { %1531 = vst.msk [vmem:[%s2219_s6 + $0x60] sm:$0xf] %vm809_vm2, %v1635_v4  ;;  %1532 = vst.msk [vmem:[%s2219_s6 + $0x64] sm:$0xf] %vm809_vm2, %v1636_v3  ;;  %v1030_v10 = vsel %vm728_vm1, %v1925_v5, 1.0  ;;  %v1029_v11 = vsel %vm728_vm1, %v1924_v6, 1.0 }
 0x18a   : > { %v1654_v12 = vpack.c.bf16 %v1030_v10, %v1030_v10  ;;  %v1653_v13 = vpack.c.bf16 %v1029_v11, %v1029_v11  ;;  %v1028_v14 = vsel %vm728_vm1, %v1940_v8, 1.0  ;;  %v1027_v15 = vsel %vm728_vm1, %v1939_v9, 1.0  ;;  %v1928_v16 = vpop.permute.xlu1 %1927 }
 0x18b   : > { %v1652_v17 = vpack.c.bf16 %v1028_v14, %v1028_v14  ;;  %v1651_v18 = vpack.c.bf16 %v1027_v15, %v1027_v15  ;;  %v1930_v19 = vunpack.i.h.bf16 %v1928_v16  ;;  %v1929_v20 = vunpack.i.l.bf16 %v1928_v16  ;;  %v1943_v21 = vpop.permute.xlu0 %1942 }
 0x18c   : > { %1565 = vst.msk [vmem:[%s2219_s6 + $0xa8] sm:$0xf] %vm809_vm2, %v1653_v13  ;;  %1566 = vst.msk [vmem:[%s2219_s6 + $0xac] sm:$0xf] %vm809_vm2, %v1654_v12  ;;  %v1945_v22 = vunpack.i.h.bf16 %v1943_v21  ;;  %v1944_v23 = vunpack.i.l.bf16 %v1943_v21 }
 0x18d   : > { %1563 = vst.msk [vmem:[%s2219_s6 + $0xa0] sm:$0xf] %vm809_vm2, %v1651_v18  ;;  %1564 = vst.msk [vmem:[%s2219_s6 + $0xa4] sm:$0xf] %vm809_vm2, %v1652_v17  ;;  %v1175_v24 = vsel %vm728_vm1, %v1930_v19, 1.0  ;;  %v1174_v25 = vsel %vm728_vm1, %v1929_v20, 1.0 }
 0x18e   : > { %v1670_v26 = vpack.c.bf16 %v1175_v24, %v1175_v24  ;;  %v1669_v28 = vpack.c.bf16 %v1174_v25, %v1174_v25  ;;  %v1173_v29 = vsel %vm728_vm1, %v1945_v22, 1.0  ;;  %v1172_v31 = vsel %vm728_vm1, %v1944_v23, 1.0  ;;  %v1948_v32 = vpop.permute.xlu1 %1947 }
 0x18f   : > { %v1668_v33 = vpack.c.bf16 %v1173_v29, %v1173_v29  ;;  %v1667_v34 = vpack.c.bf16 %v1172_v31, %v1172_v31  ;;  %v1950_v35 = vunpack.i.h.bf16 %v1948_v32  ;;  %v1949_v36 = vunpack.i.l.bf16 %v1948_v32  ;;  %v1958_v37 = vpop.permute.xlu0 %1957 }
 0x190   : > { %1597 = vst.msk [vmem:[%s2219_s6 + $0xe8] sm:$0xf] %vm809_vm2, %v1669_v28  ;;  %1598 = vst.msk [vmem:[%s2219_s6 + $0xec] sm:$0xf] %vm809_vm2, %v1670_v26  ;;  %v1960_v38 = vunpack.i.h.bf16 %v1958_v37  ;;  %v1959_v39 = vunpack.i.l.bf16 %v1958_v37 }
 0x191   : > { %1595 = vst.msk [vmem:[%s2219_s6 + $0xe0] sm:$0xf] %vm809_vm2, %v1667_v34  ;;  %1596 = vst.msk [vmem:[%s2219_s6 + $0xe4] sm:$0xf] %vm809_vm2, %v1668_v33  ;;  %v889_v40 = vsel %vm728_vm1, %v1950_v35, 1.0  ;;  %v888_v41 = vsel %vm728_vm1, %v1949_v36, 1.0 }
 0x192   : > { %v1642_v42 = vpack.c.bf16 %v889_v40, %v889_v40  ;;  %v1641_v43 = vpack.c.bf16 %v888_v41, %v888_v41  ;;  %v887_v44 = vsel %vm728_vm1, %v1960_v38, 1.0  ;;  %v886_v45 = vsel %vm728_vm1, %v1959_v39, 1.0  ;;  %v1953_v46 = vpop.permute.xlu1 %1952 }
 0x193   : > { %v1640_v47 = vpack.c.bf16 %v887_v44, %v887_v44  ;;  %v1639_v48 = vpack.c.bf16 %v886_v45, %v886_v45  ;;  %v1955_v49 = vunpack.i.h.bf16 %v1953_v46  ;;  %v1954_v50 = vunpack.i.l.bf16 %v1953_v46  ;;  %v1963_v51 = vpop.permute.xlu0 %1962 }
 0x194   : > { %1537 = vst.msk [vmem:[%s2219_s6 + $0x78] sm:$0xf] %vm809_vm2, %v1641_v43  ;;  %1538 = vst.msk [vmem:[%s2219_s6 + $0x7c] sm:$0xf] %vm809_vm2, %v1642_v42  ;;  %v1965_v52 = vunpack.i.h.bf16 %v1963_v51  ;;  %v1964_v53 = vunpack.i.l.bf16 %v1963_v51 }
 0x195   : > { %1535 = vst.msk [vmem:[%s2219_s6 + $0x70] sm:$0xf] %vm809_vm2, %v1639_v48  ;;  %1536 = vst.msk [vmem:[%s2219_s6 + $0x74] sm:$0xf] %vm809_vm2, %v1640_v47  ;;  %v1034_v54 = vsel %vm728_vm1, %v1955_v49, 1.0  ;;  %v1033_v55 = vsel %vm728_vm1, %v1954_v50, 1.0 }
 0x196   : > { %v1658_v56 = vpack.c.bf16 %v1034_v54, %v1034_v54  ;;  %v1657_v57 = vpack.c.bf16 %v1033_v55, %v1033_v55  ;;  %v1032_v58 = vsel %vm728_vm1, %v1965_v52, 1.0  ;;  %v1031_v59 = vsel %vm728_vm1, %v1964_v53, 1.0 }
 0x197   : > { %v1656_v60 = vpack.c.bf16 %v1032_v58, %v1032_v58  ;;  %v1655_v61 = vpack.c.bf16 %v1031_v59, %v1031_v59 }
 0x198   : > { %1569 = vst.msk [vmem:[%s2219_s6 + $0xb8] sm:$0xf] %vm809_vm2, %v1657_v57  ;;  %1570 = vst.msk [vmem:[%s2219_s6 + $0xbc] sm:$0xf] %vm809_vm2, %v1658_v56 }
 0x199   : > { %1567 = vst.msk [vmem:[%s2219_s6 + $0xb0] sm:$0xf] %vm809_vm2, %v1655_v61  ;;  %1568 = vst.msk [vmem:[%s2219_s6 + $0xb4] sm:$0xf] %vm809_vm2, %v1656_v60 }
 0x1ca   : > { %v1755_v62 = vpop.f32.mrb[0].mxu1 }
 0x1cb   : > { %633 = vst.msk [vmem:[%s2444_s12 + $0x8] sm:$0xff] %vm631_vm3, %v1755_v62  ;;  %v552_v63 = vpop.f32.mrb[1].mxu1  ;;  %666 = vrot.lane.b32.xlu0 %v1755_v62, %s2051_s13 }
 0x1cc   : > { %632 = vst.msk [vmem:[%s2444_s12] sm:$0xff] %vm631_vm3, %v552_v63 }
 0x1ce   : > { %v1758_v0 = vpop.f32.mrb[2].mxu1 }
 0x1cf   : > { %635 = vst.msk [vmem:[%s2444_s12 + $0x18] sm:$0xff] %vm631_vm3, %v1758_v0  ;;  %v562_v1 = vpop.f32.mrb[3].mxu1  ;;  %670 = vrot.lane.b32.xlu1 %v1758_v0, %s2051_s13  ;;  %664 = vrot.lane.b32.xlu0 %v552_v63, %s2051_s13 }
 0x1d0   : > { %634 = vst.msk [vmem:[%s2444_s12 + $0x10] sm:$0xff] %vm631_vm3, %v562_v1 }
 0x1d2   : > { %v1761_v2 = vpop.f32.mrb[4].mxu1 }
 0x1d3   : > { %637 = vst.msk [vmem:[%s2444_s12 + $0x28] sm:$0xff] %vm631_vm3, %v1761_v2  ;;  %v572_v3 = vpop.f32.mrb[5].mxu1  ;;  %668 = vrot.lane.b32.xlu1 %v562_v1, %s2051_s13 }
 0x1d4   : > { %636 = vst.msk [vmem:[%s2444_s12 + $0x20] sm:$0xff] %vm631_vm3, %v572_v3  ;;  %672 = vrot.lane.b32.xlu0 %v572_v3, %s2051_s13 }
 0x1d6   : > { %v1764_v4 = vpop.f32.mrb[6].mxu1 }
 0x1d7   : > { %639 = vst.msk [vmem:[%s2444_s12 + $0x38] sm:$0xff] %vm631_vm3, %v1764_v4  ;;  %v582_v5 = vpop.f32.mrb[7].mxu1  ;;  %674 = vrot.lane.b32.xlu1 %v1761_v2, %s2051_s13 }
 0x1d8   : > { %638 = vst.msk [vmem:[%s2444_s12 + $0x30] sm:$0xff] %vm631_vm3, %v582_v5  ;;  %676 = vrot.lane.b32.xlu0 %v582_v5, %s2051_s13 }
 0x1da   : > { %v1767_v6 = vpop.f32.mrb[8].mxu1 }
 0x1db   : > { %641 = vst.msk [vmem:[%s2444_s12 + $0x48] sm:$0xff] %vm631_vm3, %v1767_v6  ;;  %v592_v7 = vpop.f32.mrb[9].mxu1  ;;  %678 = vrot.lane.b32.xlu1 %v1764_v4, %s2051_s13 }
 0x1dc   : > { %640 = vst.msk [vmem:[%s2444_s12 + $0x40] sm:$0xff] %vm631_vm3, %v592_v7  ;;  %680 = vrot.lane.b32.xlu0 %v592_v7, %s2051_s13 }
 0x1de   : > { %v1770_v8 = vpop.f32.mrb[10].mxu1 }
 0x1df   : > { %643 = vst.msk [vmem:[%s2444_s12 + $0x58] sm:$0xff] %vm631_vm3, %v1770_v8  ;;  %v602_v9 = vpop.f32.mrb[11].mxu1  ;;  %682 = vrot.lane.b32.xlu1 %v1767_v6, %s2051_s13 }
 0x1e0   : > { %642 = vst.msk [vmem:[%s2444_s12 + $0x50] sm:$0xff] %vm631_vm3, %v602_v9  ;;  %684 = vrot.lane.b32.xlu0 %v602_v9, %s2051_s13 }
 0x1e2   : > { %v1773_v10 = vpop.f32.mrb[12].mxu1 }
 0x1e3   : > { %645 = vst.msk [vmem:[%s2444_s12 + $0x68] sm:$0xff] %vm631_vm3, %v1773_v10  ;;  %686 = vrot.lane.b32.xlu1 %v1770_v8, %s2051_s13  ;;  %v612_v11 = vpop.f32.mrb[13].mxu1 }
 0x1e4   : > { %644 = vst.msk [vmem:[%s2444_s12 + $0x60] sm:$0xff] %vm631_vm3, %v612_v11  ;;  %688 = vrot.lane.b32.xlu0 %v612_v11, %s2051_s13 }
 0x1e6   : > { %v1776_v12 = vpop.f32.mrb[14].mxu1 }
 0x1e7   : > { %647 = vst.msk [vmem:[%s2444_s12 + $0x78] sm:$0xff] %vm631_vm3, %v1776_v12  ;;  %690 = vrot.lane.b32.xlu1 %v1773_v10, %s2051_s13  ;;  %v622_v13 = vpop.f32.mrb[15].mxu1 }
 0x1e8   : > { %646 = vst.msk [vmem:[%s2444_s12 + $0x70] sm:$0xff] %vm631_vm3, %v622_v13  ;;  %692 = vrot.lane.b32.xlu0 %v622_v13, %s2051_s13 }
 0x1eb   : > { %694 = vrot.lane.b32.xlu1 %v1776_v12, %s2051_s13 }
 0x1ec   : > { %1967 = vrot.lane.b32.xlu0 %v2287_v30, %s2050_s10 }
 0x1ef   : > { %1972 = vrot.lane.b32.xlu1 %v2281_v27, %s2050_s10 }
 0x23d   : > { %v667_v14 = vpop.permute.xlu0 %666 }
 0x23e   : > { %713 = vst.msk [vmem:[%s2503_s16 + $0x8] sm:$0xff] %vm631_vm3, %v667_v14 }
 0x241   : > { %v671_v30 = vpop.permute.xlu1 %670  ;;  %v665_v27 = vpop.permute.xlu0 %664 }
 0x242   : > { %715 = vst.msk [vmem:[%s2503_s16 + $0x18] sm:$0xff] %vm631_vm3, %v671_v30  ;;  %712 = vst.msk [vmem:[%s2503_s16] sm:$0xff] %vm631_vm3, %v665_v27 }
 0x245   : > { %v669_v15 = vpop.permute.xlu1 %668 }
 0x246   : > { %714 = vst.msk [vmem:[%s2503_s16 + $0x10] sm:$0xff] %vm631_vm3, %v669_v15  ;;  %v673_v16 = vpop.permute.xlu0 %672 }
 0x247   : > { %716 = vst.msk [vmem:[%s2503_s16 + $0x20] sm:$0xff] %vm631_vm3, %v673_v16 }
 0x249   : > { %v675_v17 = vpop.permute.xlu1 %674 }
 0x24a   : > { %717 = vst.msk [vmem:[%s2503_s16 + $0x28] sm:$0xff] %vm631_vm3, %v675_v17  ;;  %v677_v18 = vpop.permute.xlu0 %676 }
 0x24b   : > { %718 = vst.msk [vmem:[%s2503_s16 + $0x30] sm:$0xff] %vm631_vm3, %v677_v18 }
 0x24d   : > { %v679_v19 = vpop.permute.xlu1 %678 }
 0x24e   : > { %719 = vst.msk [vmem:[%s2503_s16 + $0x38] sm:$0xff] %vm631_vm3, %v679_v19  ;;  %v681_v20 = vpop.permute.xlu0 %680 }
 0x24f   : > { %720 = vst.msk [vmem:[%s2503_s16 + $0x40] sm:$0xff] %vm631_vm3, %v681_v20 }
 0x251   : > { %v683_v21 = vpop.permute.xlu1 %682 }
 0x252   : > { %721 = vst.msk [vmem:[%s2503_s16 + $0x48] sm:$0xff] %vm631_vm3, %v683_v21  ;;  %v685_v22 = vpop.permute.xlu0 %684 }
 0x253   : > { %722 = vst.msk [vmem:[%s2503_s16 + $0x50] sm:$0xff] %vm631_vm3, %v685_v22 }
 0x255   : > { %v687_v23 = vpop.permute.xlu1 %686 }
 0x256   : > { %723 = vst.msk [vmem:[%s2503_s16 + $0x58] sm:$0xff] %vm631_vm3, %v687_v23  ;;  %v689_v24 = vpop.permute.xlu0 %688 }
 0x257   : > { %724 = vst.msk [vmem:[%s2503_s16 + $0x60] sm:$0xff] %vm631_vm3, %v689_v24 }
 0x259   : > { %v691_v25 = vpop.permute.xlu1 %690 }
 0x25a   : > { %725 = vst.msk [vmem:[%s2503_s16 + $0x68] sm:$0xff] %vm631_vm3, %v691_v25  ;;  %v693_v26 = vpop.permute.xlu0 %692 }
 0x25b   : > { %726 = vst.msk [vmem:[%s2503_s16 + $0x70] sm:$0xff] %vm631_vm3, %v693_v26 }
 0x25d   : > { %v695_v28 = vpop.permute.xlu1 %694 }
 0x25e   : > { %727 = vst.msk [vmem:[%s2503_s16 + $0x78] sm:$0xff] %vm631_vm3, %v695_v28  ;;  %v1968_v29 = vpop.permute.xlu0 %1967 }
 0x25f   : > { %v1970_v31 = vunpack.i.h.bf16 %v1968_v29  ;;  %v1969_v32 = vunpack.i.l.bf16 %v1968_v29 }
 0x261   : > { %v1177_v33 = vsel %vm728_vm1, %v1970_v31, 1.0  ;;  %v1176_v34 = vsel %vm728_vm1, %v1969_v32, 1.0  ;;  %v1973_v35 = vpop.permute.xlu1 %1972 }
 0x262   : > { %v1672_v36 = vpack.c.bf16 %v1177_v33, %v1177_v33  ;;  %v1671_v37 = vpack.c.bf16 %v1176_v34, %v1176_v34  ;;  %v1975_v38 = vunpack.i.h.bf16 %v1973_v35  ;;  %v1974_v39 = vunpack.i.l.bf16 %v1973_v35 }
 0x264   : > { %1599 = vst.msk [vmem:[%s2219_s6 + $0xf0] sm:$0xf] %vm809_vm2, %v1671_v37  ;;  %1600 = vst.msk [vmem:[%s2219_s6 + $0xf4] sm:$0xf] %vm809_vm2, %v1672_v36  ;;  %v1179_v40 = vsel %vm728_vm1, %v1975_v38, 1.0  ;;  %v1178_v41 = vsel %vm728_vm1, %v1974_v39, 1.0 }
 0x265   : > { %v1674_v42 = vpack.c.bf16 %v1179_v40, %v1179_v40  ;;  %v1673_v43 = vpack.c.bf16 %v1178_v41, %v1178_v41 }
 0x267   : > { %1601 = vst.msk [vmem:[%s2219_s6 + $0xf8] sm:$0xf] %vm809_vm2, %v1673_v43  ;;  %1602 = vst.msk [vmem:[%s2219_s6 + $0xfc] sm:$0xf] %vm809_vm2, %v1674_v42 }
 0x268   : > { %s1675_s17 = sshll.u32 %s2113_s22, 10  ;;  %s1301_s25 = sshll.u32 %s2219_s6, 4  ;;  %s1302_s25 = int_to_ptr.vmem [resolvable:$true] %s1301_s25 }
 0x269   : > { %s1284_s9 = scalar_lea.hbm %s2622_s3, %s1675_s17  ;;  %s2052_s10 = smov 1024  }
 0x26a   : > { %1793 = sst [smem:[#allocation7]] (%p2130_p5), %s2052_s10  ;;  %s2053_s11 = smov 6144  }
 0x26b   : > { %1794 = sst [smem:[#allocation7 + $0x1]] (%p2130_p5), %s2053_s11  ;;  %s2054_s13 = smov 16  }
 0x26c   : > { %1795 = sst [smem:[#allocation7 + $0x2]] (%p2130_p5), %s2054_s13  ;;  %s2055_s14 = smov 64  }
 0x26d   : > { %1796 = sst [smem:[#allocation7 + $0x3]] (%p2130_p5), %s2055_s14  ;;  %s2056_s6 = smov 4  }
 0x26e   : > { %1797 = sst [smem:[#allocation7 + $0x4]] (%p2130_p5), %s2055_s14  ;;  %s2057_s15 = smov [#allocation6]  }
 0x26f   : > { %1798 = sst [smem:[#allocation7 + $0x5]] (%p2130_p5), %s2056_s6  ;;  %s2058_s16 = smov 0  }
 0x270   : > { %1799 = dma.general (%p2130_p5), %s1302_s25, 4096, %s1284_s9, %s1262_s7, %s2057_s15, [#allocation7], %s2058_s16, 0  }
 0x271   : > { %s1676_s17 = sshll.u32 %s2113_s22, 11  ;;  %s1330_s30 = sshll.u32 %s2444_s12, 4  ;;  %s2577_s30 = int_to_ptr.vmem [resolvable:$true] %s1330_s30 }
 0x272   : > { %s2575_s11 = scalar_lea.hbm %s2623_s4, %s1676_s17  ;;  %s1980_s13 = scalar_lea.vmem %s2577_s30, 2048 }
 0x273   : > { %p1981_p11 = scmp.ne.s32.totalorder %s2577_s30, %s1980_s13  ;;  %s2059_s7 = smov [#allocation4]  }
 0x274   : > { %s1984_s25 = sshll.u32 %s2059_s7, 4  ;;  %s1985_s25 = int_to_ptr.vmem [resolvable:$false] %s1984_s25 }
 0x275   : > { %p1982_p12 = pnand %p1981_p11, %p2130_p5  ;;  %s1986_s22 = scalar_lea.vmem %s1985_s25, 4096 }
 0x276   : > { %p1987_p0 = scmp.lt.s32.totalorder %s2577_s30, %s1985_s25  ;;  %p1988_p1 = scmp.lt.s32.totalorder %s1986_s22, %s1980_s13 }
 0x277   : > { %p1983_p13 = pneg %p1982_p12 }
 0x278   : > { %p1989_p2 = por %p1988_p1, %p1987_p0 }
 0x27a   : > { %p1990_p3 = pnand %p1989_p2, %p1983_p13 }
 0x27c   : > { %1993 = shalt.err (!%p1990_p3)
}
 0x27d   : > { %s1994_s12 = scalar_lea.hbm %s2575_s11, 2048  ;;  %s1998_s6 = scalar_lea.hbm %s2623_s4, 12288 }
 0x27e   : > { %p1995_p4 = scmp.ne.s32.totalorder %s2575_s11, %s1994_s12  ;;  %p1999_p9 = scmp.lt.u32.totalorder %s2575_s11, %s2623_s4 }
 0x27f   : > { %p2000_p10 = scmp.lt.u32.totalorder %s1998_s6, %s1994_s12  ;;  %p2002_p12 = scmp.lt.u32.totalorder %s1994_s12, %s2575_s11 }
 0x280   : > { %p1996_p7 = pnand %p1995_p4, %p2130_p5 }
 0x281   : > { %p2001_p11 = por %p2000_p10, %p1999_p9 }
 0x282   : > { %p1997_p8 = pneg %p1996_p7 }
 0x283   : > { %p2003_p13 = por %p2002_p12, %p2001_p11 }
 0x285   : > { %p2004_p0 = pnand %p2003_p13, %p1997_p8 }
 0x287   : > { %2007 = shalt.err (!%p2004_p0)
}
 0x288   : > { %s2060_s17 = smov 128   ;;  %s2061_s8 = smov 8  }
 0x289   : > { %1800 = dma.vmem_to_hbm [thread:$0]  (%p2130_p5), %s2577_s30, 2048, %s2575_s11, %s1267_s23, %s2060_s17, %s2060_s17, %s2061_s8  }
 0x28a PF: > { %p1810_p1 = scmp.ge.s32.totalorder %s2046_s21, 2  ;;  %s1349_s10 = sand.u32 1, %s2034_s18  }
 0x28b   : > { %s1350_s13 = scalar_lea.sflag [#allocation3], %s1349_s10 }
 0x28c   : > { %p1804_p2 = pnand %p1810_p1, %p2134_p6 }
 0x28e   : > { %2025 = dma.done.wait (!%p1804_p2), %s1350_s13, 4096  }
 0x28f   : > { %2027 = vsyncadd (!%p1804_p2), %s1350_s13, 4294963200  ;;  %s1359_s7 = scalar_lea.sflag [#allocation5], %s1349_s10 }
 0x290   : > { %2029 = dma.done.wait (!%p1804_p2), %s1359_s7, 2048  }
 0x291   : > { %2031 = vsyncadd (!%p1804_p2), %s1359_s7, 4294965248  ;;  %p19_p5 = scmp.ge.s32.totalorder %s2117_s24, 8   ;;  %s2627_s18 = smov %s2038_s19 }
 0x292   : > { %s2628_s19 = smov %s2042_s20  ;;  %s2629_s20 = smov %s2128_s27 }
 0x293   : > { %s2630_s21 = smov %s2117_s24  ;;  %21 = sbr.rel (!%p19_p5) target bundleno = 5 (0x5), region = 104 }
 0x29a   :  { %1372 = vsyncpa [#allocation3], 1 }
 0x29b   :  { %1374 = vsyncpa [#allocation3 + $0x1], 1 }
 0x29c   :  { %1375 = vsyncpa [#allocation5], 1 }
 0x29d   :  { %1377 = vsyncpa [#allocation5 + $0x1], 1 }

// kernel: spgat_forward.7
= control target key start
LH: loop header
LB: loop body
LE: loop exit
PB: predicated region body
PF: predicated region fallthrough
CT: control target
= control target key end

     0   :  { %s3282_s0 = inlined_call_operand.hbm [shape: s32[18], index: 0, kind: input, shape index: {}]   ;;  %s3283_s1 = inlined_call_operand.hbm [shape: f32[768,1], index: 1, kind: input, shape index: {}]   ;;  %s3284_s2 = inlined_call_operand.hbm [shape: f32[1,768], index: 2, kind: input, shape index: {}]   ;;  %s3285_s3 = inlined_call_operand.hbm [shape: bf16[1,768,9], index: 3, kind: input, shape index: {}]   ;;  %s3286_s4 = inlined_call_operand.hbm [shape: s8[768,768], index: 4, kind: input, shape index: {}]   ;;  %s3287_s5 = inlined_call_operand.hbm [shape: f32[768,8], index: 5, kind: output, shape index: {}]  }
   0x1   :  { %3302 = sst [smem:[#allocation25_spill]] %s3283_s1  ;;  %s2037_s20 = scalar_lea.hbm %s3282_s0, 16 }
   0x2   :  { %3303 = sst [smem:[#allocation26_spill]] %s3284_s2  ;;  %p2038_p0 = scmp.ne.s32.totalorder %s3282_s0, %s2037_s20 }
   0x3   :  { %3304 = sst [smem:[#allocation27_spill]] %s3285_s3  ;;  %p2041_p1 = scmp.lt.u32.totalorder %s2037_s20, %s3282_s0 }
   0x4   :  { %3305 = sst [smem:[#allocation28_spill]] %s3287_s5 }
   0x5   :  { %p2043_p2 = pnand %p2041_p1, %p2038_p0 }
   0x7   :  { %2046 = shalt.err (!%p2043_p2)  }
   0x8   :  { %s2297_s25 = smov [#allocation4]  }
   0x9   :  { %11 = dma.hbm_to_smem %s3282_s0, 16, %s2297_s25, [#allocation3] }
   0xa   :  { %2235 = dma.done.wait [#allocation3], 16 }
   0xb   :  { %2236 = vsyncadd [#allocation3], 4294967280 }
   0xc   :  { %13 = sfence }
   0xd   :  { %14 = vsyncpa [#allocation6], 0 }
   0xe   :  { %16 = vsyncpa [#allocation6 + $0x1], 0 }
   0xf   :  { %17 = vsyncpa [#allocation9], 0 }
  0x10   :  { %18 = vsyncpa [#allocation12], 0 }
  0x11   :  { %20 = vsyncpa [#allocation12 + $0x1], 0 }
  0x12   :  { %21 = vsyncpa [#allocation7], 0 }
  0x13   :  { %23 = vsyncpa [#allocation7 + $0x1], 0  ;;  %s2357_s28 = smov 0   ;;  %s2359_s29 = smov 0  }
  0x14   :  { %s2361_s30 = smov 0   ;;  %s2363_s6 = smov 0  }
  0x15   :  { %s2365_s7 = smov 0   ;;  %s2367_s0 = smov 0  }
  0x16   :  { %s2369_s8 = smov 0   ;;  %s2371_s9 = smov 0  }
  0x17   :  { %s2373_s10 = smov 0   ;;  %s2375_s11 = smov 0  }
  0x18   :  { %s2377_s12 = smov 0  }
  0x19 LB: > { %3306 = sst [smem:[#allocation19_spill]] %s2267_s6  ;;  %s1555_s13 = sadd.s32 4294967295, %s2295_s12   ;;  %s2295_s12 = sphi %s2377_s12, %s29_s12   ;;  %s2291_s11 = sphi %s2375_s11, %s3355_s11   ;;  %s2287_s10 = sphi %s2373_s10, %s3354_s10   ;;  %s2283_s9 = sphi %s2371_s9, %s3353_s9   ;;  %s2279_s8 = sphi %s2369_s8, %s3345_s8   ;;  %s2275_s0 = sphi %s2367_s0, %s3352_s0   ;;  %s2271_s7 = sphi %s2365_s7, %s3351_s7   ;;  %s2267_s6 = sphi %s2363_s6, %s3350_s6   ;;  %s2263_s30 = sphi %s2361_s30, %s3349_s30   ;;  %s2259_s29 = sphi %s2359_s29, %s3348_s29   ;;  %s2255_s28 = sphi %s2357_s28, %s3347_s28  }
  0x1a   : > { %3307 = sst [smem:[#allocation20_spill]] %s2283_s9  ;;  %s1556_s14 = sadd.s32 4294967294, %s2295_s12  }
  0x1b   : > { %3308 = sst [smem:[#allocation21_spill]] %s2287_s10  ;;  %p61_p3 = scmp.ne.s32.totalorder %s2271_s7, %s2267_s6 }
  0x1c   : > { %p2414_p4 = scmp.eq.s32.totalorder %s1555_s13, 0  ;;  %p131_p5 = scmp.ne.s32.totalorder %s2259_s29, %s2255_s28 }
  0x1d   : > { %p2419_p6 = scmp.eq.s32.totalorder %s1555_s13, 17  ;;  %p161_p8 = scmp.eq.s32.totalorder %s1556_s14, 17 }
  0x1e   : > { %s3309_s15 = scalar_select %p2414_p4, 1, 0 }
  0x1f   : > { %s3310_s16 = scalar_select %p2419_p6, 1, 0 }
  0x20   : > { %p2425_p7 = por %p2414_p4, %p61_p3  ;;  %p2431_p9 = por %p131_p5, %p2414_p4 }
  0x21   : > { %p1557_p10 = scmp.ge.s32.totalorder %s2295_s12, 1  ;;  %p2436_p11 = por %p161_p8, %p61_p3 }
  0x22   : > { %s3311_s17 = scalar_select %p2425_p7, 1, 0 }
  0x23   : > { %s3312_s18 = scalar_select %p2431_p9, 1, 0 }
  0x24   : > { %s3313_s19 = scalar_select %p2436_p11, 1, 0 }
  0x25   : > { %p168_p12 = scmp.lt.s32.totalorder %s2295_s12, 19  ;;  %s2298_s21 = smov [#allocation8]  }
  0x26   : > { %3314 = sst [smem:[#allocation22_spill]] %s3313_s19  ;;  %s181_s22 = sshll.u32 %s2298_s21, 4  ;;  %s182_s22 = int_to_ptr.vmem [resolvable:$true] %s181_s22 }
  0x27   : > { %p2441_p13 = pnand %p1557_p10, %p168_p12  ;;  %s2299_s23 = smov [#allocation10]  }
  0x28   : > { %s191_s24 = sshll.u32 %s2299_s23, 4  ;;  %s3317_s2 = sld [smem:[#allocation26_spill]]  ;;  %s2453_s24 = int_to_ptr.vmem [resolvable:$true] %s191_s24 }
  0x29   : > { %s3315_s20 = scalar_select %p2441_p13, 1, 0 }
  0x2a   : > { %p1730_p0 = pneg %p2441_p13 }
  0x2c   : > { %p2449_p1 = pnand %p1730_p0, %p2414_p4 }
  0x2e   : > { %s2047_s28 = scalar_lea.hbm %s3317_s2, 96  ;;  %p2049_p3 = pneg %p2449_p1 }
  0x2f   : > { %p2048_p2 = scmp.ne.s32.totalorder %s3317_s2, %s2047_s28  ;;  %p2054_p10 = scmp.lt.u32.totalorder %s2047_s28, %s3317_s2 }
  0x31   : > { %p2050_p5 = pnand %p2049_p3, %p2048_p2 }
  0x33   : > { %p2051_p8 = pneg %p2050_p5 }
  0x35   : > { %p2056_p12 = pnand %p2054_p10, %p2051_p8 }
  0x37   : > { %2059 = shalt.err (!%p2056_p12)
}
  0x38   : > { %s2060_s19 = scalar_lea.vmem %s182_s22, 96  ;;  %p2068_p4 = scmp.lt.s32.totalorder %s182_s22, %s182_s22 }
  0x39   : > { %p2061_p0 = scmp.ne.s32.totalorder %s182_s22, %s2060_s19  ;;  %p2069_p7 = scmp.lt.s32.totalorder %s2060_s19, %s2060_s19 }
  0x3b   : > { %p2063_p11 = pnand %p2061_p0, %p2049_p3  ;;  %p2070_p13 = por %p2069_p7, %p2068_p4 }
  0x3d   : > { %p2064_p9 = pneg %p2063_p11 }
  0x3f   : > { %p2071_p6 = pnand %p2070_p13, %p2064_p9 }
  0x41   : > { %2074 = shalt.err (!%p2071_p6)
}
  0x42   : > { %1733 = dma.hbm_to_vmem [thread:$0]  (!%p2449_p1), %s3317_s2, 96, %s182_s22, [#allocation9]  }
  0x43   : > { %s3318_s3 = sld [smem:[#allocation27_spill]] }
  0x49   : > { %s2075_s14 = scalar_lea.hbm %s3318_s3, 6144 }
  0x4a   : > { %p2076_p11 = scmp.ne.s32.totalorder %s3318_s3, %s2075_s14  ;;  %p2082_p6 = scmp.lt.u32.totalorder %s2075_s14, %s3318_s3 }
  0x4c   : > { %p2078_p4 = pnand %p2076_p11, %p2049_p3 }
  0x4e   : > { %p2079_p7 = pneg %p2078_p4 }
  0x50   : > { %p2084_p9 = pnand %p2082_p6, %p2079_p7 }
  0x52   : > { %2087 = shalt.err (!%p2084_p9)
}
  0x53   : > { %s2088_s22 = scalar_lea.vmem %s2453_s24, 6144  ;;  %p2096_p8 = scmp.lt.s32.totalorder %s2453_s24, %s2453_s24 }
  0x54   : > { %p2089_p13 = scmp.ne.s32.totalorder %s2453_s24, %s2088_s22  ;;  %p2097_p10 = scmp.lt.s32.totalorder %s2088_s22, %s2088_s22 }
  0x56   : > { %p2091_p2 = pnand %p2089_p13, %p2049_p3  ;;  %p2098_p12 = por %p2097_p10, %p2096_p8 }
  0x58   : > { %p2092_p5 = pneg %p2091_p2 }
  0x5a   : > { %p2099_p0 = pnand %p2098_p12, %p2092_p5 }
  0x5c   : > { %2102 = shalt.err (!%p2099_p0)
}
  0x5d   : > { %s2300_s6 = smov 64   ;;  %s2301_s26 = smov 4  }
  0x5e   : > { %1736 = dma.hbm_to_vmem [thread:$0]  (!%p2449_p1), %s3318_s3, 6144, %s2453_s24, [#allocation9], %s2300_s6, %s2300_s6, %s2301_s26  }
  0x5f   : > { %s41_s13 = sadd.s32 1, %s2291_s11  ;;  %p55_p3 = scmp.ne.s32.totalorder %s2275_s0, %s2271_s7 }
  0x60   : > { %p3296_p11 = scmp.eq.s32.totalorder %s2295_s12, 0  ;;  %p3295_p4 = scmp.lt.s32.totalorder %s2295_s12, 18 }
  0x61   : > { %s205_s21 = sand.u32 1, %s2275_s0   ;;  %p3319_p6 = scmp.ne.s32.totalorder %s3310_s16, 0 }
  0x62   : > { %p57_p7 = por %p3296_p11, %p55_p3  ;;  %s1561_s19 = sshll.u32 %s205_s21, 7 }
  0x63   : > { %p2513_p9 = por %p3319_p6, %p55_p3  ;;  %s1633_s25 = sshll.u32 %s2291_s11, 11 }
  0x64   : > { %s3322_s1 = sld [smem:[#allocation25_spill]]  ;;  %s209_s24 = scalar_lea.vmem [#allocation5], %s1561_s19 }
  0x65   : > { %s3320_s23 = scalar_select %p2513_p9, 1, 0 }
  0x66   : > { %s216_s6 = sshll.u32 %s209_s24, 4  ;;  %p2527_p1 = pnand %p3295_p4, %p57_p7  ;;  %s2523_s6 = int_to_ptr.vmem [resolvable:$true] %s216_s6 }
  0x67   : > { %3321 = sst [smem:[#allocation23_spill]] %s3320_s23  ;;  %s2531_s26 = scalar_lea.sflag [#allocation6], %s205_s21 }
  0x68   : > { %p2105_p2 = pneg %p2527_p1 }
  0x6a   : > { %s2521_s27 = scalar_lea.hbm %s3322_s1, %s1633_s25  ;;  %s2108_s25 = scalar_lea.hbm %s3322_s1, 12288 }
  0x6b   : > { %s2103_s2 = scalar_lea.hbm %s2521_s27, 2048  ;;  %p2109_p10 = scmp.lt.u32.totalorder %s2521_s27, %s3322_s1 }
  0x6c   : > { %p2104_p13 = scmp.ne.s32.totalorder %s2521_s27, %s2103_s2  ;;  %p2110_p12 = scmp.lt.u32.totalorder %s2108_s25, %s2103_s2 }
  0x6d   : > { %p2112_p3 = scmp.lt.u32.totalorder %s2103_s2, %s2521_s27 }
  0x6e   : > { %p2106_p5 = pnand %p2105_p2, %p2104_p13  ;;  %p2111_p0 = por %p2110_p12, %p2109_p10 }
  0x70   : > { %p2107_p8 = pneg %p2106_p5  ;;  %p2113_p7 = por %p2112_p3, %p2111_p0 }
  0x72   : > { %p2114_p6 = pnand %p2113_p7, %p2107_p8 }
  0x74   : > { %2117 = shalt.err (!%p2114_p6)
}
  0x75   : > { %s2118_s21 = scalar_lea.vmem %s2523_s6, 2048  ;;  %s2302_s28 = smov [#allocation5]  }
  0x76   : > { %p2119_p13 = scmp.ne.s32.totalorder %s2523_s6, %s2118_s21  ;;  %s2123_s19 = sshll.u32 %s2302_s28, 4  ;;  %s2124_s19 = int_to_ptr.vmem [resolvable:$false] %s2123_s19 }
  0x77   : > { %s2125_s22 = scalar_lea.vmem %s2124_s19, 4096  ;;  %p2126_p11 = scmp.lt.s32.totalorder %s2523_s6, %s2124_s19 }
  0x78   : > { %p2121_p5 = pnand %p2119_p13, %p2105_p2  ;;  %p2127_p10 = scmp.lt.s32.totalorder %s2125_s22, %s2118_s21 }
  0x7a   : > { %p2122_p4 = pneg %p2121_p5  ;;  %p2128_p12 = por %p2127_p10, %p2126_p11 }
  0x7c   : > { %p2129_p0 = pnand %p2128_p12, %p2122_p4 }
  0x7e   : > { %2132 = shalt.err (!%p2129_p0)
}
  0x7f   : > { %s2303_s2 = smov 128   ;;  %s2304_s25 = smov 8  }
  0x80   : > { %1740 = dma.hbm_to_vmem [thread:$0]  (!%p2527_p1), %s2521_s27, 2048, %s2523_s6, %s2531_s26, %s2303_s2, %s2303_s2, %s2304_s25  }
  0x81   : > { %s118_s24 = sadd.s32 1, %s2263_s30  ;;  %s38_s21 = sadd.s32 1, %s2287_s10 }
  0x82   : > { %p125_p11 = scmp.ne.s32.totalorder %s2263_s30, %s2259_s29  ;;  %p39_p4 = scmp.ge.s32.totalorder %s38_s21, 3 }
  0x83   : > { %s226_s28 = sand.u32 1, %s2263_s30   ;;  %p3324_p2 = scmp.eq.s32.totalorder %s2295_s12, 0 }
  0x84   : > { %s3357_s21 = smov (%p39_p4, %s38_s21), 0  ;;  %s3359_s13 = smov (!%p39_p4, %s41_s13), %s2291_s11 }
  0x85   : > { %p2566_p8 = por %p125_p11, %p3324_p2  ;;  %3326 = sst [smem:[#allocation24_spill]] %s3357_s21 }
  0x86   : > { %s114_s16 = ssub.s32 %s2287_s10, %s3357_s21  ;;  %s1564_s27 = sshll.u32 %s226_s28, 6 }
  0x87   : > { %p43_p1 = scmp.ge.s32.totalorder %s3359_s13, 6  ;;  %s1566_s6 = sshll.u32 %s2287_s10, 1 }
  0x88   : > { %s1715_s26 = smul.u32 24, %s2291_s11  ;;  %s230_s2 = scalar_lea.vmem [#allocation11], %s1564_s27 }
  0x89   : > { %s3361_s13 = smov (%p43_p1, %s3359_s13), 0  ;;  %s240_s25 = sshll.u32 %s230_s2, 4  ;;  %s2596_s25 = int_to_ptr.vmem [resolvable:$true] %s240_s25 }
  0x8a   : > { %s237_s22 = sadd.s32 %s1715_s26, %s1566_s6  ;;  %s45_s14 = ssub.s32 %s2291_s11, %s3361_s13 }
  0x8b   : > { %s1568_s1 = sshll.u32 %s237_s22, 7  ;;  %p46_p3 = scmp.eq.s32.totalorder %s45_s14, 0 }
  0x8c   : > { %s115_s3 = sor.u32 %s114_s16, %s45_s14  ;;  %s2586_s23 = scalar_lea.hbm %s3286_s4, %s1568_s1 }
  0x8d   : > { %p116_p7 = scmp.eq.s32.totalorder %s115_s3, 0  ;;  %s3327_s9 = sadd.s32 1, %s2275_s0 }
  0x8e   : > { %s2591_s10 = scalar_select %p46_p3, %s2275_s0, %s3327_s9  }
  0x8f   : > { %s2594_s6 = scalar_select %p116_p7, %s2263_s30, %s118_s24  }
  0x90   : > { %p3328_p6 = scmp.lt.s32.totalorder %s2295_s12, 18  ;;  %s2606_s1 = scalar_lea.sflag [#allocation12], %s226_s28 }
  0x91   : > { %s2133_s5 = scalar_lea.hbm %s2586_s23, 1024  ;;  %s2138_s24 = scalar_lea.hbm %s3286_s4, 18432 }
  0x92   : > { %p2602_p13 = pnand %p3328_p6, %p2566_p8  ;;  %p2134_p5 = scmp.ne.s32.totalorder %s2586_s23, %s2133_s5 }
  0x93   : > { %p2139_p11 = scmp.lt.u32.totalorder %s2586_s23, %s3286_s4  ;;  %p2140_p4 = scmp.lt.u32.totalorder %s2138_s24, %s2133_s5 }
  0x94   : > { %p2135_p10 = pneg %p2602_p13  ;;  %p2142_p8 = scmp.lt.u32.totalorder %s2133_s5, %s2586_s23 }
  0x95   : > { %p2141_p2 = por %p2140_p4, %p2139_p11 }
  0x96   : > { %p2136_p12 = pnand %p2135_p10, %p2134_p5 }
  0x97   : > { %p2143_p1 = por %p2142_p8, %p2141_p2 }
  0x98   : > { %p2137_p0 = pneg %p2136_p12 }
  0x9a   : > { %p2144_p3 = pnand %p2143_p1, %p2137_p0 }
  0x9c   : > { %2147 = shalt.err (!%p2144_p3)
}
  0x9d   : > { %s2148_s28 = scalar_lea.vmem %s2596_s25, 1024  ;;  %s2305_s16 = smov [#allocation11]  }
  0x9e   : > { %p2149_p7 = scmp.ne.s32.totalorder %s2596_s25, %s2148_s28  ;;  %s2153_s27 = sshll.u32 %s2305_s16, 4  ;;  %s2154_s27 = int_to_ptr.vmem [resolvable:$false] %s2153_s27 }
  0x9f   : > { %s2155_s26 = scalar_lea.vmem %s2154_s27, 2048  ;;  %p2156_p12 = scmp.lt.s32.totalorder %s2596_s25, %s2154_s27 }
  0xa0   : > { %p2151_p6 = pnand %p2149_p7, %p2135_p10  ;;  %p2157_p11 = scmp.lt.s32.totalorder %s2155_s26, %s2148_s28 }
  0xa2   : > { %p2152_p5 = pneg %p2151_p6  ;;  %p2158_p4 = por %p2157_p11, %p2156_p12 }
  0xa4   : > { %p2159_p2 = pnand %p2158_p4, %p2152_p5 }
  0xa6   : > { %2162 = shalt.err (!%p2159_p2)
}
  0xa7   : > { %s2306_s22 = smov 768   ;;  %s2307_s2 = smov 256  }
  0xa8   : > { %s2308_s5 = smov 16   ;;  %p3330_p10 = scmp.ne.s32.totalorder %s3315_s20, 0 }
  0xa9   : > { %1743 = dma.hbm_to_vmem [thread:$0]  (!%p2602_p13), %s2586_s23, 1024, %s2596_s25, %s2606_s1, %s2306_s22, %s2307_s2, %s2308_s5  }
  0xaa   : > { %252 = sbr.rel (%p3330_p10) target bundleno = 1157 (0x485), region = 36  ;;  %s2637_s9 = sand.u32 (!%p3330_p10), 1, %s2271_s7  }
  0xab   : > { %s1570_s14 = sshll.u32 (!%p3330_p10), %s2637_s9, 7  ;;  %s255_s24 = scalar_lea.sflag (!%p3330_p10), [#allocation6], %s2637_s9 }
  0xac   : > { %s2641_s21 = scalar_lea.vmem (!%p3330_p10), [#allocation5], %s1570_s14  ;;  %p3331_p0 = scmp.ne.s32.totalorder (!%p3330_p10), %s3311_s17, 0 }
  0xb1   : > { %2238 = dma.done.wait (%p3331_p0), %s255_s24, 2048  }
  0xb2   : > { %2240 = vsyncadd (%p3331_p0), %s255_s24, 4294965248  ;;  %p3332_p13 = scmp.ne.s32.totalorder %s3309_s15, 0 }
  0xb4   : > { %2242 = dma.done.wait (%p3332_p13), [#allocation9], 6240  }
  0xb5   : > { %2244 = vsyncadd (%p3332_p13), [#allocation9], 4294961056  ;;  %s271_s20 = sand.u32 1, %s2259_s29   ;;  %p3333_p8 = scmp.ne.s32.totalorder %s3312_s18, 0 }
  0xb6   : > { %s1573_s23 = sshll.u32 %s271_s20, 6  ;;  %s272_s25 = scalar_lea.sflag [#allocation12], %s271_s20 }
  0xb7   : > { %s2652_s3 = scalar_lea.vmem [#allocation11], %s1573_s23 }
  0xb8   : > { %2246 = dma.done.wait (%p3333_p8), %s272_s25, 1024  }
  0xb9   : > { %2248 = vsyncadd (%p3333_p8), %s272_s25, 4294966272  ;;  %s2658_s17 = scalar_lea.vmem [#allocation13], %s1570_s14  ;;  %p1575_p1 = scmp.ne.s32.totalorder %s2279_s8, 0 }
  0xba   : > { %vm318_vm0 = vcmask (!%p1575_p1), 72704   ;;  %v2309_v0 = vmov (!%p1575_p1), 0.0  }
  0xbb   : > { %317 = sbr.rel (%p1575_p1) target bundleno = 195 (0xc3), region = 56  ;;  %319 = vst.msk [vmem:[#allocation2] sm:$0xff] (!%p1575_p1), %vm318_vm0, %v2309_v0  ;;  %320 = vst.msk [vmem:[#allocation2 + $0x8] sm:$0xff] (!%p1575_p1), %vm318_vm0, %v2309_v0 }
  0xbc   : > { %321 = vst.msk [vmem:[#allocation2 + $0x10] sm:$0xff] (!%p1575_p1), %vm318_vm0, %v2309_v0  ;;  %322 = vst.msk [vmem:[#allocation2 + $0x18] sm:$0xff] (!%p1575_p1), %vm318_vm0, %v2309_v0 }
  0xbd   : > { %323 = vst.msk [vmem:[#allocation2 + $0x20] sm:$0xff] (!%p1575_p1), %vm318_vm0, %v2309_v0  ;;  %324 = vst.msk [vmem:[#allocation2 + $0x28] sm:$0xff] (!%p1575_p1), %vm318_vm0, %v2309_v0 }
  0xbe   : > { %325 = vst.msk [vmem:[#allocation2 + $0x30] sm:$0xff] (!%p1575_p1), %vm318_vm0, %v2309_v0  ;;  %326 = vst.msk [vmem:[#allocation2 + $0x38] sm:$0xff] (!%p1575_p1), %vm318_vm0, %v2309_v0 }
  0xbf   : > { %327 = vst.msk [vmem:[#allocation2 + $0x40] sm:$0xff] (!%p1575_p1), %vm318_vm0, %v2309_v0  ;;  %328 = vst.msk [vmem:[#allocation2 + $0x48] sm:$0xff] (!%p1575_p1), %vm318_vm0, %v2309_v0 }
  0xc0   : > { %329 = vst.msk [vmem:[#allocation2 + $0x50] sm:$0xff] (!%p1575_p1), %vm318_vm0, %v2309_v0  ;;  %330 = vst.msk [vmem:[#allocation2 + $0x58] sm:$0xff] (!%p1575_p1), %vm318_vm0, %v2309_v0 }
  0xc1   : > { %331 = vst.msk [vmem:[#allocation2 + $0x60] sm:$0xff] (!%p1575_p1), %vm318_vm0, %v2309_v0  ;;  %332 = vst.msk [vmem:[#allocation2 + $0x68] sm:$0xff] (!%p1575_p1), %vm318_vm0, %v2309_v0 }
  0xc2   : > { %333 = vst.msk [vmem:[#allocation2 + $0x70] sm:$0xff] %vm318_vm0, %v2309_v0  ;;  %334 = vst.msk [vmem:[#allocation2 + $0x78] sm:$0xff] %vm318_vm0, %v2309_v0 }
  0xc3 PF: > { %s3334_s15 = sld [smem:[#allocation20_spill]] }
  0xc9   : > { %s335_s18 = smul.u32 3, %s3334_s15 }
  0xcb   : > { %s336_s1 = sadd.s32 %s2279_s8, %s335_s18 }
  0xcc   : > { %s337_s19 = sld [smem:[#allocation4 + %s336_s1]] }
  0xd2   : > { %p1576_p3 = scmp.le.s32.totalorder %s337_s19, 0 }
  0xd3   : > { %v361_v1 = vld [vmem:[%s2641_s21 + $0x10] sm:$0xff] (!%p1576_p3)  ;;  %v362_v2 = vld [vmem:[%s2641_s21 + $0x18] sm:$0xff] (!%p1576_p3)  ;;  %v359_v3 = vld [vmem:[%s2641_s21] sm:$0xff] (!%p1576_p3)  ;;  %s1577_s28 = sshll.u32 (!%p1576_p3), %s2279_s8, 8  ;;  %v2310_v4 = vmov (!%p1576_p3), 0   ;;  %v388_v42 = vlaneseq (!%p1576_p3) }
  0xd4   : > { %341 = sbr.rel (%p1576_p3) target bundleno = 614 (0x266), region = 60  ;;  %1858 = vset.pattern.permute.xlu1 (!%p1576_p3), %v2310_v4  ;;  %1857 = vset.pattern.permute.xlu0 (!%p1576_p3), %v2310_v4  ;;  %v376_v5 = vpack.c.bf16 (!%p1576_p3), %v362_v2, %v361_v1  ;;  %v360_v6 = vld [vmem:[%s2641_s21 + $0x8] sm:$0xff] (!%p1576_p3)  ;;  %v369_v7 = vld [vmem:[%s2641_s21 + $0x50] sm:$0xff] (!%p1576_p3)  ;;  %v370_v8 = vld [vmem:[%s2641_s21 + $0x58] sm:$0xff] (!%p1576_p3)  ;;  %s678_s16 = sshra.s32 (!%p1576_p3), %s1577_s28, 3 }
  0xd5   : > { %v375_v9 = vpack.c.bf16 (!%p1576_p3), %v360_v6, %v359_v3  ;;  %v367_v10 = vld [vmem:[%s2641_s21 + $0x40] sm:$0xff] (!%p1576_p3)  ;;  %v368_v11 = vld [vmem:[%s2641_s21 + $0x48] sm:$0xff] (!%p1576_p3)  ;;  %s1578_s27 = sshll.u32 (!%p1576_p3), %s678_s16, 2  ;;  %v380_v12 = vpack.c.bf16 (!%p1576_p3), %v370_v8, %v369_v7  ;;  %v373_v18 = vld [vmem:[%s2641_s21 + $0x70] sm:$0xff] (!%p1576_p3)  ;;  %s383_s22 = sshra.s32 (!%p1576_p3), %s1577_s28, 7  ;;  %v389_v47 = vshrl.u32 (!%p1576_p3), %v388_v42, 7 }
  0xd6   : > { %407 = vperm.xlu1 (!%p1576_p3), %1858, %v376_v5   ;;  %v379_v13 = vpack.c.bf16 (!%p1576_p3), %v368_v11, %v367_v10  ;;  %v371_v14 = vld [vmem:[%s2641_s21 + $0x60] sm:$0xff] (!%p1576_p3)  ;;  %v372_v15 = vld [vmem:[%s2641_s21 + $0x68] sm:$0xff] (!%p1576_p3)  ;;  %s2696_s26 = scalar_lea.vmem (!%p1576_p3), [#allocation10], %s1578_s27  ;;  %v374_v19 = vld [vmem:[%s2641_s21 + $0x78] sm:$0xff] (!%p1576_p3)  ;;  %s385_s2 = scalar_lea.vmem (!%p1576_p3), [#allocation8], %s383_s22 }
  0xd7   : > { %402 = vperm.xlu0 (!%p1576_p3), %1857, %v375_v9   ;;  %v363_v16 = vld [vmem:[%s2641_s21 + $0x20] sm:$0xff] (!%p1576_p3)  ;;  %v364_v17 = vld [vmem:[%s2641_s21 + $0x28] sm:$0xff] (!%p1576_p3)  ;;  %v381_v21 = vpack.c.bf16 (!%p1576_p3), %v372_v15, %v371_v14  ;;  %v365_v22 = vld [vmem:[%s2641_s21 + $0x30] sm:$0xff] (!%p1576_p3)  ;;  %v382_v29 = vpack.c.bf16 (!%p1576_p3), %v374_v19, %v373_v18  ;;  %v390_v48 = vsub.s32 (!%p1576_p3), 0, %v389_v47  ;;  %v394_v49 = vsub.s32 (!%p1576_p3), 1, %v389_v47 }
  0xd8   : > { %v1859_v20 = vld [vmem:[%s2696_s26 + $0x40] sm:$0xff] (!%p1576_p3)   ;;  %v366_v23 = vld [vmem:[%s2641_s21 + $0x38] sm:$0xff] (!%p1576_p3)  ;;  %v377_v25 = vpack.c.bf16 (!%p1576_p3), %v364_v17, %v363_v16  ;;  %v1861_v26 = vld [vmem:[%s2696_s26 + $0x48] sm:$0xff] (!%p1576_p3)  }
  0xd9   : > { %v1860_v24 = vld [vmem:[%s2696_s26] sm:$0xff] (!%p1576_p3)   ;;  %1635 = vmatprep.subr.bf16.mxu0 (!%p1576_p3), %v1859_v20  ;;  %1699 = vmatprep.subr.bf16.mxu1 (!%p1576_p3), %v1859_v20  ;;  %v1862_v27 = vld [vmem:[%s2696_s26 + $0x8] sm:$0xff] (!%p1576_p3)   ;;  %v1863_v28 = vld [vmem:[%s2696_s26 + $0x50] sm:$0xff] (!%p1576_p3)   ;;  %v378_v30 = vpack.c.bf16 (!%p1576_p3), %v366_v23, %v365_v22 }
  0xda   : > { %427 = vperm.xlu1 (!%p1576_p3), %1858, %v380_v12   ;;  %1636 = vmatpush3.bf16.msra.mxu0 (!%p1576_p3), %v1860_v24  ;;  %v1864_v31 = vld [vmem:[%s2696_s26 + $0x10] sm:$0xff] (!%p1576_p3)   ;;  %v1865_v32 = vld [vmem:[%s2696_s26 + $0x58] sm:$0xff] (!%p1576_p3)   ;;  %v1867_v34 = vld [vmem:[%s2696_s26 + $0x60] sm:$0xff] (!%p1576_p3)  }
  0xdb   : > { %422 = vperm.xlu0 %1857, %v379_v13   ;;  %1637 = vmatprep.subr.bf16.mxu0 %v1861_v26  ;;  %v1866_v33 = vld [vmem:[%s2696_s26 + $0x18] sm:$0xff]   ;;  %v1868_v35 = vld [vmem:[%s2696_s26 + $0x20] sm:$0xff]   ;;  %v1869_v36 = vld [vmem:[%s2696_s26 + $0x68] sm:$0xff]  }
  0xdc   : > { %1707 = vmatpush3.bf16.msra.mxu1 %v1860_v24  ;;  %v1870_v37 = vld [vmem:[%s2696_s26 + $0x28] sm:$0xff]   ;;  %v1871_v38 = vld [vmem:[%s2696_s26 + $0x70] sm:$0xff]   ;;  %v1873_v40 = vld [vmem:[%s2696_s26 + $0x78] sm:$0xff]  }
  0xdd   : > { %1700 = vmatprep.subr.bf16.mxu1 %v1861_v26  ;;  %v1872_v39 = vld [vmem:[%s2696_s26 + $0x30] sm:$0xff]   ;;  %v1874_v41 = vld [vmem:[%s2696_s26 + $0x38] sm:$0xff]   ;;  %v342_v43 = vld [vmem:[%s2652_s3] sm:$0xff] }
  0xde   : > { %432 = vperm.xlu1 %1858, %v381_v21   ;;  %1638 = vmatpush3.bf16.msra.mxu0 %v1862_v27  ;;  %v343_v44 = vld [vmem:[%s2652_s3 + $0x8] sm:$0xff]  ;;  %v346_v45 = vld [vmem:[%s2652_s3 + $0x20] sm:$0xff]  ;;  %vm350_vm1 = vnez %v342_v43  ;;  %v386_v52 = vld [vmem:[%s385_s2] sm:$0x3] }
  0xdf   : > { %412 = vperm.xlu0 %1857, %v377_v25   ;;  %1639 = vmatprep.subr.bf16.mxu0 %v1863_v28  ;;  %v347_v46 = vld [vmem:[%s2652_s3 + $0x28] sm:$0xff]  ;;  %vm351_vm2 = vnez %v343_v44  ;;  %vm354_vm3 = vnez %v346_v45  ;;  %v566_v50 = vsel %vm350_vm1, 16843009, %v2310_v4  ;;  %v391_v56 = vrot.slane %v386_v52, %v390_v48  ;;  %v344_v13 = vld [vmem:[%s2652_s3 + $0x10] sm:$0xff]  ;;  %v345_v15 = vld [vmem:[%s2652_s3 + $0x18] sm:$0xff] }
  0xe0   : > { %1708 = vmatpush3.bf16.msra.mxu1 %v1862_v27  ;;  %vm355_vm4 = vnez %v347_v46  ;;  %v567_v51 = vsel %vm351_vm2, 16843009, %v2310_v4  ;;  %v570_v53 = vsel %vm354_vm3, 16843009, %v2310_v4  ;;  %v395_v57 = vrot.slane %v386_v52, %v394_v49  ;;  %v348_v27 = vld [vmem:[%s2652_s3 + $0x30] sm:$0xff] }
  0xe1   : > { %1701 = vmatprep.subr.bf16.mxu1 %v1863_v28  ;;  %v571_v54 = vsel %vm355_vm4, 16843009, %v2310_v4  ;;  %v574_v55 = vcombine.low %v566_v50, %v567_v51  ;;  %v575_v59 = vcombine.high %v566_v50, %v567_v51  ;;  %v398_v60 = vpack.c.bf16 %v391_v56, %v391_v56  ;;  %v349_v50 = vld [vmem:[%s2652_s3 + $0x38] sm:$0xff] }
  0xe2   : > { %437 = vperm.xlu1 %1858, %v382_v29   ;;  %1640 = vmatpush3.bf16.msra.mxu0 %v1864_v31  ;;  %v578_v58 = vcombine.low %v570_v53, %v571_v54  ;;  %v399_v61 = vpack.c.bf16 %v395_v57, %v395_v57  ;;  %v579_v62 = vcombine.high %v570_v53, %v571_v54 }
  0xe3   : > { %417 = vperm.xlu0 %1857, %v378_v30   ;;  %1641 = vmatprep.subr.bf16.mxu0 %v1865_v32  ;;  %vm582_vm5 = vnez %v574_v55  ;;  %vm583_vm7 = vnez %v575_v59  ;;  %v441_v1 = vpack.i.b16 %v398_v60, %v398_v60  ;;  %vm352_vm9 = vnez %v344_v13 }
  0xe4   : > { %1709 = vmatpush3.bf16.msra.mxu1 %v1864_v31  ;;  %vm586_vm6 = vnez %v578_v58  ;;  %v590_v63 = vsel %vm582_vm5, 16843009, %v2310_v4  ;;  %v448_v2 = vpack.i.b16 %v399_v61, %v399_v61  ;;  %vm587_vm8 = vnez %v579_v62 }
  0xe5   : > { %1702 = vmatprep.subr.bf16.mxu1 %v1865_v32  ;;  %v594_v0 = vsel %vm586_vm6, 16843009, %v2310_v4  ;;  %v601_v3 = vunpack.c.3.s8 %v590_v63  ;;  %v602_v5 = vunpack.c.2.s8 %v590_v63  ;;  %v598_v6 = vunpack.c.1.s8 %v590_v63 }
  0xe6   : > { %1642 = vmatpush3.bf16.msra.mxu0 %v1866_v33  ;;  %v599_v7 = vunpack.c.0.s8 %v590_v63  ;;  %v625_v8 = vunpack.c.3.s8 %v594_v0  ;;  %v626_v9 = vunpack.c.2.s8 %v594_v0  ;;  %v2731_v10 = vsel %vm583_vm7, 16843009, %v2310_v4 }
  0xe7   : > { %1643 = vmatprep.subr.bf16.mxu0 %v1867_v34  ;;  %v622_v11 = vunpack.c.1.s8 %v594_v0  ;;  %v623_v12 = vunpack.c.0.s8 %v594_v0  ;;  %v2735_v14 = vsel %vm587_vm8, 16843009, %v2310_v4  ;;  %v2738_v16 = vrot.slane %v441_v1, %v390_v48 }
  0xe8   : > { %1710 = vmatpush3.bf16.msra.mxu1 %v1866_v33  ;;  %v2740_v17 = vrot.slane %v448_v2, %v390_v48  ;;  %v607_v18 = vunpack.c.3.s8 %v2731_v10  ;;  %v608_v19 = vunpack.c.2.s8 %v2731_v10  ;;  %v2744_v20 = vpack.c.b16 %v601_v3, %v602_v5 }
  0xe9   : > { %1703 = vmatprep.subr.bf16.mxu1 %v1867_v34  ;;  %v2746_v21 = vpack.c.b16 %v598_v6, %v599_v7  ;;  %v2748_v22 = vpack.c.b16 %v625_v8, %v626_v9  ;;  %v2750_v24 = vpack.c.b16 %v622_v11, %v623_v12  ;;  %v631_v25 = vunpack.c.3.s8 %v2735_v14 }
  0xea   : > { %1644 = vmatpush3.bf16.msra.mxu0 %v1868_v35  ;;  %v632_v26 = vunpack.c.2.s8 %v2735_v14  ;;  %vm353_vm10 = vnez %v345_v15  ;;  %v604_v31 = vunpack.c.1.s8 %v2731_v10  ;;  %v605_v32 = vunpack.c.0.s8 %v2731_v10 }
  0xeb   : > { %1645 = vmatprep.subr.bf16.mxu0 %v1869_v36  ;;  %vm356_vm11 = vnez %v348_v27  ;;  %vm357_vm12 = vnez %v349_v50  ;;  %vm647_vm13 = vcmp.ne.s16.totalorder %v2744_v20, 0  ;;  %vm646_vm15 = vcmp.ne.s16.totalorder %v2746_v21, 0 }
  0xec   : > { %1711 = vmatpush3.bf16.msra.mxu1 %v1868_v35  ;;  %v2761_v35 = vpack.c.b16 %v607_v18, %v608_v19  ;;  %v2774_v58 = vpack.c.b16 %v631_v25, %v632_v26  ;;  %v2780_v2 = vsel %vm356_vm11, 16843009, %v2310_v4  ;;  %v2786_v19 = vsel %vm357_vm12, 16843009, %v2310_v4 }
  0xed   : > { %1704 = vmatprep.subr.bf16.mxu1 %v1869_v36  ;;  %v2764_v36 = vsel %vm352_vm9, 16843009, %v2310_v4  ;;  %v2789_v27 = vpack.c.b16 %v604_v31, %v605_v32  ;;  %vm655_vm1 = vcmp.ne.s16.totalorder %v2748_v22, 0  ;;  %vm654_vm2 = vcmp.ne.s16.totalorder %v2750_v24, 0 }
  0xee   : > { %1646 = vmatpush3.bf16.msra.mxu0 %v1870_v37  ;;  %vm649_vm0 = vcmp.ne.s16.totalorder %v2761_v35, 0  ;;  %vm657_vm3 = vcmp.ne.s16.totalorder %v2774_v58, 0 }
  0xef   : > { %1647 = vmatprep.subr.bf16.mxu0 %v1871_v38  ;;  %vm648_vm5 = vcmp.ne.s16.totalorder %v2789_v27, 0 }
  0xf0   : > { %1712 = vmatpush3.bf16.msra.mxu1 %v1870_v37 }
  0xf1   : > { %1705 = vmatprep.subr.bf16.mxu1 %v1871_v38 }
  0xf2   : > { %1648 = vmatpush3.bf16.msra.mxu0 %v1872_v39 }
  0xf3   : > { %1649 = vmatprep.subr.bf16.mxu0 %v1873_v40 }
  0xf4   : > { %1713 = vmatpush3.bf16.msra.mxu1 %v1872_v39  ;;  %v2767_v39 = vsel %vm353_vm10, 16843009, %v2310_v4 }
  0xf5   : > { %1706 = vmatprep.subr.bf16.mxu1 %v1873_v40  ;;  %v576_v62 = vcombine.low %v2764_v36, %v2767_v39 }
  0xf6   : > { %1650 = vmatpush3.bf16.msra.mxu0 %v1874_v41 }
  0xf7   : > { %vm584_vm14 = vnez %v576_v62 }
  0xf8   : > { %1714 = vmatpush3.bf16.msra.mxu1 %v1874_v41 }
 0x155   : > { %v408_v23 = vpop.permute.xlu1 %407 }
 0x156   : > { %v456_v28 = vadd.bf16 %v2738_v16, %v408_v23  ;;  %v457_v29 = vadd.bf16 %v2740_v17, %v408_v23  ;;  %v403_v30 = vpop.permute.xlu0 %402 }
 0x157   : > { %v454_v33 = vadd.bf16 %v2738_v16, %v403_v30  ;;  %v455_v34 = vadd.bf16 %v2740_v17, %v403_v30 }
 0x158   : > { %v473_v37 = vsub.bf16 0, %v457_v29  ;;  %v489_v38 = vmul.bf16 3192766029, %v457_v29  ;;  %v472_v45 = vsub.bf16 0, %v456_v28  ;;  %v488_v46 = vmul.bf16 3192766029, %v456_v28 }
 0x159   : > { %v470_v40 = vsub.bf16 0, %v454_v33  ;;  %v471_v41 = vsub.bf16 0, %v455_v34  ;;  %v486_v42 = vmul.bf16 3192766029, %v454_v33  ;;  %v487_v43 = vmul.bf16 3192766029, %v455_v34  ;;  %v428_v44 = vpop.permute.xlu1 %427 }
 0x15a   : > { %v505_v47 = vmin.bf16 %v489_v38, %v473_v37  ;;  %v465_v48 = vadd.bf16 %v2740_v17, %v428_v44  ;;  %v423_v49 = vpop.permute.xlu0 %422  ;;  %v464_v56 = vadd.bf16 %v2738_v16, %v428_v44  ;;  %v504_v3 = vmin.bf16 %v488_v46, %v472_v45 }
 0x15b   : > { %v502_v51 = vmin.bf16 %v486_v42, %v470_v40  ;;  %v503_v52 = vmin.bf16 %v487_v43, %v471_v41  ;;  %v462_v53 = vadd.bf16 %v2738_v16, %v423_v49  ;;  %v463_v54 = vadd.bf16 %v2740_v17, %v423_v49 }
 0x15c   : > { %v528_v55 = vmul.bf16 1069105081, %v505_v47  ;;  %v481_v57 = vsub.bf16 0, %v465_v48  ;;  %v497_v63 = vmul.bf16 3192766029, %v465_v48  ;;  %v480_v7 = vsub.bf16 0, %v464_v56 }
 0x15d   : > { %v519_v59 = vmul.bf16 1069105081, %v502_v51  ;;  %v522_v60 = vmul.bf16 1069105081, %v503_v52  ;;  %v433_v61 = vpop.permute.xlu1 %432  ;;  %v478_v0 = vsub.bf16 0, %v462_v53  ;;  %v479_v1 = vsub.bf16 0, %v463_v54 }
 0x15e   : > { %1875 = vpow.bf16 %v528_v55  ;;  %v494_v5 = vmul.bf16 3192766029, %v462_v53  ;;  %v495_v6 = vmul.bf16 3192766029, %v463_v54  ;;  %v513_v8 = vmin.bf16 %v497_v63, %v481_v57  ;;  %v413_v10 = vpop.permute.xlu0 %412 }
 0x15f   : > { %1877 = vpow.bf16 %v519_v59  ;;  %v467_v9 = vadd.bf16 %v2740_v17, %v433_v61  ;;  %v496_v11 = vmul.bf16 3192766029, %v464_v56  ;;  %v525_v28 = vmul.bf16 1069105081, %v504_v3 }
 0x160   : > { %1879 = vpow.bf16 %v522_v60  ;;  %v510_v12 = vmin.bf16 %v494_v5, %v478_v0  ;;  %v511_v13 = vmin.bf16 %v495_v6, %v479_v1  ;;  %v552_v15 = vmul.bf16 1069105081, %v513_v8 }
 0x161   : > { %v483_v18 = vsub.bf16 0, %v467_v9  ;;  %v499_v26 = vmul.bf16 3192766029, %v467_v9  ;;  %v458_v29 = vadd.bf16 %v2738_v16, %v413_v10  ;;  %v459_v30 = vadd.bf16 %v2740_v17, %v413_v10  ;;  %v438_v34 = vpop.permute.xlu1 %437 }
 0x162   : > { %v543_v23 = vmul.bf16 1069105081, %v510_v12  ;;  %v546_v25 = vmul.bf16 1069105081, %v511_v13  ;;  %1881 = vpow.bf16 %v552_v15  ;;  %v512_v33 = vmin.bf16 %v496_v11, %v480_v7  ;;  %v418_v41 = vpop.permute.xlu0 %417 }
 0x163   : > { %v2795_v37 = vsel %vm584_vm14, 16843009, %v2310_v4  ;;  %v580_v38 = vcombine.low %v2780_v2, %v2786_v19  ;;  %v466_v31 = vadd.bf16 %v2738_v16, %v433_v61  ;;  %v474_v32 = vsub.bf16 0, %v458_v29 }
 0x164   : > { %1883 = vpow.bf16 %v543_v23  ;;  %v475_v40 = vsub.bf16 0, %v459_v30  ;;  %v515_v42 = vmin.bf16 %v499_v26, %v483_v18  ;;  %v490_v43 = vmul.bf16 3192766029, %v458_v29 }
 0x165   : > { %1885 = vpow.bf16 %v546_v25  ;;  %v491_v44 = vmul.bf16 3192766029, %v459_v30  ;;  %v628_v45 = vunpack.c.1.s8 %v2735_v14  ;;  %v469_v46 = vadd.bf16 %v2740_v17, %v438_v34 }
 0x166   : > { %1887 = vpow.bf16 %v525_v28  ;;  %v629_v47 = vunpack.c.0.s8 %v2735_v14  ;;  %v577_v48 = vcombine.high %v2764_v36, %v2767_v39  ;;  %v460_v50 = vadd.bf16 %v2738_v16, %v418_v41 }
 0x167   : > { %v507_v49 = vmin.bf16 %v491_v44, %v475_v40  ;;  %v613_v51 = vunpack.c.3.s8 %v2795_v37  ;;  %vm2810_vm4 = vnez %v580_v38  ;;  %v549_v54 = vmul.bf16 1069105081, %v512_v33 }
 0x168   : > { %v482_v55 = vsub.bf16 0, %v466_v31  ;;  %v506_v56 = vmin.bf16 %v490_v43, %v474_v32  ;;  %v461_v14 = vadd.bf16 %v2740_v17, %v418_v41  ;;  %v498_v59 = vmul.bf16 3192766029, %v466_v31 }
 0x169   : > { %v1876_v53 = vpop.eup %1875  ;;  %v558_v36 = vmul.bf16 1069105081, %v515_v42  ;;  %v534_v39 = vmul.bf16 1069105081, %v507_v49  ;;  %v614_v60 = vunpack.c.2.s8 %v2795_v37  ;;  %v485_v62 = vsub.bf16 0, %v469_v46 }
 0x16a   : > { %v1878_v57 = vpop.eup %1877  ;;  %v501_v63 = vmul.bf16 3192766029, %v469_v46  ;;  %v477_v0 = vsub.bf16 0, %v461_v14  ;;  %v493_v1 = vmul.bf16 3192766029, %v461_v14  ;;  %v476_v3 = vsub.bf16 0, %v460_v50 }
 0x16b   : > { %v1880_v61 = vpop.eup %1879  ;;  %v2822_v17 = vsel %vm2810_vm4, 16843009, %v2310_v4  ;;  %vm2824_vm6 = vnez %v577_v48  ;;  %v581_v6 = vcombine.high %v2780_v2, %v2786_v19  ;;  %v531_v7 = vmul.bf16 1069105081, %v506_v56 }
 0x16c   : > { %1595 = vmatprep.mubr.msk.bf16.mxu0 %vm647_vm13, %v1880_v61  ;;  %1889 = vpow.bf16 %v534_v39  ;;  %v492_v8 = vmul.bf16 3192766029, %v460_v50  ;;  %v509_v9 = vmin.bf16 %v493_v1, %v477_v0  ;;  %v514_v10 = vmin.bf16 %v498_v59, %v482_v55  ;;  %v715_v0 = vld [vmem:[#allocation2 + $0x8] sm:$0xff] }
 0x16d   : > { %1596 = vmatmul.mubr.msk.bf16.vlgmr.msra.gmra.mrb[0].mxu0 %vm646_vm15, %v1878_v57  ;;  %v1882_v20 = vpop.eup %1881  ;;  %1891 = vpow.bf16 %v549_v54  ;;  %v468_v11 = vadd.bf16 %v2738_v16, %v438_v34  ;;  %v610_v12 = vunpack.c.1.s8 %v2795_v37  ;;  %v517_v2 = vmin.bf16 %v501_v63, %v485_v62 }
 0x16e   : > { %1597 = vmatprep.mubr.msk.bf16.mxu0 %vm649_vm0, %v1876_v53  ;;  %1893 = vpow.bf16 %v558_v36  ;;  %v540_v15 = vmul.bf16 1069105081, %v509_v9  ;;  %v611_v18 = vunpack.c.0.s8 %v2795_v37  ;;  %v630_v23 = vpack.c.b16 %v628_v45, %v629_v47 }
 0x16f   : > { %v1884_v13 = vpop.eup %1883  ;;  %v637_v21 = vunpack.c.3.s8 %v2822_v17  ;;  %v638_v25 = vunpack.c.2.s8 %v2822_v17  ;;  %v593_v16 = vsel %vm2824_vm6, 16843009, %v2310_v4  ;;  %1895 = vpow.bf16 %v531_v7  ;;  %v722_v7 = vld [vmem:[#allocation2 + $0x40] sm:$0xff] }
 0x170   : > { %v1886_v19 = vpop.eup %1885  ;;  %v508_v35 = vmin.bf16 %v492_v8, %v476_v3  ;;  %v615_v26 = vpack.c.b16 %v613_v51, %v614_v60  ;;  %vm589_vm7 = vnez %v581_v6  ;;  %v555_v29 = vmul.bf16 1069105081, %v514_v10  ;;  %v714_v60 = vld [vmem:[#allocation2] sm:$0xff]  ;;  %v723_v10 = vld [vmem:[#allocation2 + $0x48] sm:$0xff] }
 0x171   : > { %1603 = vmatprep.mubr.msk.bf16.mxu1 %vm655_vm1, %v1886_v19  ;;  %v1888_v28 = vpop.eup %1887  ;;  %v484_v30 = vsub.bf16 0, %v468_v11  ;;  %v500_v33 = vmul.bf16 3192766029, %v468_v11  ;;  %1897 = vpow.bf16 %v540_v15  ;;  %v564_v34 = vmul.bf16 1069105081, %v517_v2  ;;  %v716_v15 = vld [vmem:[#allocation2 + $0x10] sm:$0xff] }
 0x172   : > { %1604 = vmatmul.mubr.msk.bf16.vlgmr.msra.gmra.mrb[0].mxu1 %vm654_vm2, %v1884_v13  ;;  %v619_v37 = vunpack.c.3.s8 %v593_v16  ;;  %v620_v38 = vunpack.c.2.s8 %v593_v16  ;;  %v639_v31 = vpack.c.b16 %v637_v21, %v638_v25  ;;  %v537_v32 = vmul.bf16 1069105081, %v508_v35  ;;  %v717_v25 = vld [vmem:[#allocation2 + $0x18] sm:$0xff] }
 0x173   : > { %1605 = vmatprep.mubr.msk.bf16.mxu1 %vm657_vm3, %v1882_v20  ;;  %v612_v22 = vpack.c.b16 %v610_v12, %v611_v18  ;;  %v597_v40 = vsel %vm589_vm7, 16843009, %v2310_v4  ;;  %1899 = vpow.bf16 %v555_v29  ;;  %v516_v41 = vmin.bf16 %v500_v33, %v484_v30  ;;  %v724_v30 = vld [vmem:[#allocation2 + $0x50] sm:$0xff] }
 0x174   : > { %vm651_vm8 = vcmp.ne.s16.totalorder %v615_v26, 0  ;;  %vm656_vm9 = vcmp.ne.s16.totalorder %v630_v23, 0  ;;  %1901 = vpow.bf16 %v564_v34  ;;  %v621_v24 = vpack.c.b16 %v619_v37, %v620_v38  ;;  %v725_v38 = vld [vmem:[#allocation2 + $0x58] sm:$0xff] }
 0x175   : > { %1598 = vmatmul.mubr.msk.bf16.gmra.mrb[4].mxu0 %vm648_vm5, %v1888_v28  ;;  %v634_v42 = vunpack.c.1.s8 %v2822_v17  ;;  %v635_v58 = vunpack.c.0.s8 %v2822_v17  ;;  %vm659_vm10 = vcmp.ne.s16.totalorder %v639_v31, 0  ;;  %v643_v44 = vunpack.c.3.s8 %v597_v40 }
 0x176   : > { %v644_v45 = vunpack.c.2.s8 %v597_v40  ;;  %1903 = vpow.bf16 %v537_v32  ;;  %v561_v47 = vmul.bf16 1069105081, %v516_v41  ;;  %vm650_vm11 = vcmp.ne.s16.totalorder %v612_v22, 0  ;;  %v718_v41 = vld [vmem:[#allocation2 + $0x20] sm:$0xff] }
 0x177   : > { %v1890_v43 = vpop.eup %1889  ;;  %v616_v4 = vunpack.c.1.s8 %v593_v16  ;;  %v617_v48 = vunpack.c.0.s8 %v593_v16  ;;  %vm653_vm12 = vcmp.ne.s16.totalorder %v621_v24, 0  ;;  %v636_v49 = vpack.c.b16 %v634_v42, %v635_v58 }
 0x178   : > { %v1892_v46 = vpop.eup %1891  ;;  %1599 = vmatprep.mubr.msk.bf16.mxu0 %vm651_vm8, %v1890_v43  ;;  %v645_v51 = vpack.c.b16 %v643_v44, %v644_v45  ;;  %1905 = vpow.bf16 %v561_v47  ;;  %v640_v54 = vunpack.c.1.s8 %v597_v40  ;;  %v641_v55 = vunpack.c.0.s8 %v597_v40  ;;  %v719_v44 = vld [vmem:[#allocation2 + $0x28] sm:$0xff] }
 0x179   : > { %v1894_v27 = vpop.eup %1893  ;;  %v618_v53 = vpack.c.b16 %v616_v4, %v617_v48  ;;  %vm658_vm13 = vcmp.ne.s16.totalorder %v636_v49, 0  ;;  %vm939_vm1 = vcmask 72704   ;;  %v726_v48 = vld [vmem:[#allocation2 + $0x60] sm:$0xff] }
 0x17a   : > { %1606 = vmatmul.mubr.msk.bf16.gmra.mrb[4].mxu1 %vm656_vm9, %v1892_v46  ;;  %v1896_v50 = vpop.eup %1895  ;;  %vm661_vm14 = vcmp.ne.s16.totalorder %v645_v51, 0  ;;  %v642_v57 = vpack.c.b16 %v640_v54, %v641_v55 }
 0x17b   : > { %1607 = vmatprep.mubr.msk.bf16.mxu1 %vm659_vm10, %v1894_v27  ;;  %vm652_vm15 = vcmp.ne.s16.totalorder %v618_v53, 0 }
 0x17c   : > { %v1898_v52 = vpop.eup %1897  ;;  %vm660_vm0 = vcmp.ne.s16.totalorder %v642_v57, 0 }
 0x17d   : > { %1600 = vmatmul.mubr.msk.bf16.gmra.mrb[8].mxu0 %vm650_vm11, %v1896_v50 }
 0x17e   : > { %1601 = vmatprep.mubr.msk.bf16.mxu0 %vm653_vm12, %v1898_v52  ;;  %v1900_v56 = vpop.eup %1899  ;;  %v727_v52 = vld [vmem:[#allocation2 + $0x68] sm:$0xff] }
 0x17f   : > { %v1902_v14 = vpop.eup %1901 }
 0x181   : > { %v1904_v59 = vpop.eup %1903 }
 0x182   : > { %1608 = vmatmul.mubr.msk.bf16.gmra.mrb[8].mxu1 %vm658_vm13, %v1900_v56 }
 0x183   : > { %1609 = vmatprep.mubr.msk.bf16.mxu1 %vm661_vm14, %v1902_v14  ;;  %v1906_v36 = vpop.eup %1905  ;;  %v720_v14 = vld [vmem:[#allocation2 + $0x30] sm:$0xff] }
 0x185   : > { %1602 = vmatmul.mubr.msk.bf16.gmra.mrb[12].mxu0 %vm652_vm15, %v1904_v59 }
 0x18a   : > { %1610 = vmatmul.mubr.msk.bf16.gmra.mrb[12].mxu1 %vm660_vm0, %v1906_v36 }
 0x240   : > { %v1651_v39 = vpop.f32.mrb[0].mxu0 }
 0x241   : > { %v1652_v61 = vpop.f32.mrb[1].mxu0 }
 0x242   : > { %v1653_v62 = vadd.f32 %v1652_v61, %v1651_v39  ;;  %v1654_v63 = vpop.f32.mrb[2].mxu0 }
 0x243   : > { %v1655_v1 = vpop.f32.mrb[3].mxu0 }
 0x244   : > { %v923_v3 = vadd.f32 %v1653_v62, %v714_v60  ;;  %v1656_v17 = vadd.f32 %v1655_v1, %v1654_v63  ;;  %v721_v60 = vld [vmem:[#allocation2 + $0x38] sm:$0xff] }
 0x245   : > { %v1675_v5 = vpop.f32.mrb[0].mxu1 }
 0x246   : > { %940 = vst.msk [vmem:[#allocation2] sm:$0xff] %vm939_vm1, %v923_v3  ;;  %v924_v6 = vadd.f32 %v1656_v17, %v715_v0  ;;  %v1676_v8 = vpop.f32.mrb[1].mxu1  ;;  %v728_v3 = vld [vmem:[#allocation2 + $0x70] sm:$0xff] }
 0x247   : > { %v1677_v9 = vadd.f32 %v1676_v8, %v1675_v5  ;;  %v1678_v20 = vpop.f32.mrb[2].mxu1 }
 0x248   : > { %941 = vst.msk [vmem:[#allocation2 + $0x8] sm:$0xff] %vm939_vm1, %v924_v6  ;;  %v1679_v11 = vpop.f32.mrb[3].mxu1  ;;  %v1657_v12 = vpop.f32.mrb[4].mxu0 }
 0x249   : > { %v931_v13 = vadd.f32 %v1677_v9, %v722_v7  ;;  %v1680_v2 = vadd.f32 %v1679_v11, %v1678_v20  ;;  %v1658_v18 = vpop.f32.mrb[5].mxu0  ;;  %v729_v7 = vld [vmem:[#allocation2 + $0x78] sm:$0xff] }
 0x24a   : > { %v1659_v19 = vadd.f32 %v1658_v18, %v1657_v12  ;;  %v1660_v23 = vpop.f32.mrb[6].mxu0 }
 0x24b   : > { %948 = vst.msk [vmem:[#allocation2 + $0x40] sm:$0xff] %vm939_vm1, %v931_v13  ;;  %v932_v21 = vadd.f32 %v1680_v2, %v723_v10  ;;  %v1661_v16 = vpop.f32.mrb[7].mxu0 }
 0x24c   : > { %v925_v35 = vadd.f32 %v1659_v19, %v716_v15  ;;  %v1662_v26 = vadd.f32 %v1661_v16, %v1660_v23 }
 0x24d   : > { %949 = vst.msk [vmem:[#allocation2 + $0x48] sm:$0xff] %vm939_vm1, %v932_v21  ;;  %v1681_v28 = vpop.f32.mrb[4].mxu1 }
 0x24e   : > { %942 = vst.msk [vmem:[#allocation2 + $0x10] sm:$0xff] %vm939_vm1, %v925_v35  ;;  %v926_v29 = vadd.f32 %v1662_v26, %v717_v25  ;;  %v1682_v33 = vpop.f32.mrb[5].mxu1 }
 0x24f   : > { %v1683_v34 = vadd.f32 %v1682_v33, %v1681_v28  ;;  %v1684_v37 = vpop.f32.mrb[6].mxu1 }
 0x250   : > { %943 = vst.msk [vmem:[#allocation2 + $0x18] sm:$0xff] %vm939_vm1, %v926_v29  ;;  %v1685_v31 = vpop.f32.mrb[7].mxu1  ;;  %v1663_v32 = vpop.f32.mrb[8].mxu0 }
 0x251   : > { %v933_v22 = vadd.f32 %v1683_v34, %v724_v30  ;;  %v1686_v40 = vadd.f32 %v1685_v31, %v1684_v37  ;;  %v1664_v24 = vpop.f32.mrb[9].mxu0 }
 0x252   : > { %v1665_v42 = vadd.f32 %v1664_v24, %v1663_v32  ;;  %v1666_v58 = vpop.f32.mrb[10].mxu0 }
 0x253   : > { %950 = vst.msk [vmem:[#allocation2 + $0x50] sm:$0xff] %vm939_vm1, %v933_v22  ;;  %v934_v43 = vadd.f32 %v1686_v40, %v725_v38  ;;  %v1667_v45 = vpop.f32.mrb[11].mxu0 }
 0x254   : > { %v927_v46 = vadd.f32 %v1665_v42, %v718_v41  ;;  %v1668_v27 = vadd.f32 %v1667_v45, %v1666_v58 }
 0x255   : > { %951 = vst.msk [vmem:[#allocation2 + $0x58] sm:$0xff] %vm939_vm1, %v934_v43  ;;  %v1687_v47 = vpop.f32.mrb[8].mxu1 }
 0x256   : > { %944 = vst.msk [vmem:[#allocation2 + $0x20] sm:$0xff] %vm939_vm1, %v927_v46  ;;  %v928_v4 = vadd.f32 %v1668_v27, %v719_v44  ;;  %v1688_v49 = vpop.f32.mrb[9].mxu1 }
 0x257   : > { %v1689_v50 = vadd.f32 %v1688_v49, %v1687_v47  ;;  %v1690_v51 = vpop.f32.mrb[10].mxu1 }
 0x258   : > { %945 = vst.msk [vmem:[#allocation2 + $0x28] sm:$0xff] %vm939_vm1, %v928_v4  ;;  %v1691_v53 = vpop.f32.mrb[11].mxu1  ;;  %v1669_v54 = vpop.f32.mrb[12].mxu0 }
 0x259   : > { %v935_v55 = vadd.f32 %v1689_v50, %v726_v48  ;;  %v1692_v56 = vadd.f32 %v1691_v53, %v1690_v51  ;;  %v1670_v57 = vpop.f32.mrb[13].mxu0 }
 0x25a   : > { %v1671_v59 = vadd.f32 %v1670_v57, %v1669_v54  ;;  %v1672_v36 = vpop.f32.mrb[14].mxu0 }
 0x25b   : > { %952 = vst.msk [vmem:[#allocation2 + $0x60] sm:$0xff] %vm939_vm1, %v935_v55  ;;  %v936_v39 = vadd.f32 %v1692_v56, %v727_v52  ;;  %v1673_v61 = vpop.f32.mrb[15].mxu0 }
 0x25c   : > { %v929_v62 = vadd.f32 %v1671_v59, %v720_v14  ;;  %v1674_v63 = vadd.f32 %v1673_v61, %v1672_v36 }
 0x25d   : > { %953 = vst.msk [vmem:[#allocation2 + $0x68] sm:$0xff] %vm939_vm1, %v936_v39  ;;  %v1693_v0 = vpop.f32.mrb[12].mxu1 }
 0x25e   : > { %946 = vst.msk [vmem:[#allocation2 + $0x30] sm:$0xff] %vm939_vm1, %v929_v62  ;;  %v930_v1 = vadd.f32 %v1674_v63, %v721_v60  ;;  %v1694_v17 = vpop.f32.mrb[13].mxu1 }
 0x25f   : > { %v1695_v5 = vadd.f32 %v1694_v17, %v1693_v0  ;;  %v1696_v6 = vpop.f32.mrb[14].mxu1 }
 0x260   : > { %947 = vst.msk [vmem:[#allocation2 + $0x38] sm:$0xff] %vm939_vm1, %v930_v1  ;;  %v1697_v8 = vpop.f32.mrb[15].mxu1 }
 0x261   : > { %v937_v9 = vadd.f32 %v1695_v5, %v728_v3  ;;  %v1698_v20 = vadd.f32 %v1697_v8, %v1696_v6 }
 0x263   : > { %954 = vst.msk [vmem:[#allocation2 + $0x70] sm:$0xff] %vm939_vm1, %v937_v9  ;;  %v938_v10 = vadd.f32 %v1698_v20, %v729_v7 }
 0x265   : > { %955 = vst.msk [vmem:[#allocation2 + $0x78] sm:$0xff] %vm939_vm1, %v938_v10 }
 0x266 PF: > { %p1611_p7 = scmp.ne.s32.totalorder %s2279_s8, 2 }
 0x267   : > { %v2870_v11 = vld [vmem:[#allocation2 + $0x10] sm:$0xff] (!%p1611_p7)  ;;  %v2872_v12 = vld [vmem:[#allocation2] sm:$0xff] (!%p1611_p7)  ;;  %v2874_v13 = vld [vmem:[#allocation2 + $0x18] sm:$0xff] (!%p1611_p7)  ;;  %v2311_v2 = vmov (!%p1611_p7), 8   ;;  %vm1184_vm2 = vcmask (!%p1611_p7), 64512  }
 0x268   : > { %959 = sbr.rel (%p1611_p7) target bundleno = 1131 (0x46b), region = 64  ;;  %1908 = vset.pattern.permute.xlu1 (!%p1611_p7), %v2311_v2  ;;  %1907 = vset.pattern.permute.xlu0 (!%p1611_p7), %v2311_v2  ;;  %v978_v15 = vmax.f32 (!%p1611_p7), %v2870_v11, 1e-30  ;;  %v976_v18 = vmax.f32 (!%p1611_p7), %v2872_v12, 1e-30  ;;  %v2878_v19 = vld [vmem:[#allocation2 + $0x8] sm:$0xff] (!%p1611_p7) }
 0x269   : > { %v979_v23 = vmax.f32 (!%p1611_p7), %v2874_v13, 1e-30  ;;  %v977_v21 = vmax.f32 (!%p1611_p7), %v2878_v19, 1e-30  ;;  %v2882_v25 = vld [vmem:[#allocation2 + $0x28] sm:$0xff] (!%p1611_p7)  ;;  %v2884_v16 = vld [vmem:[#allocation2 + $0x20] sm:$0xff] (!%p1611_p7) }
 0x26a   : > { %1004 = vperm.xlu1 (!%p1611_p7), %1908, %v978_v15   ;;  %994 = vperm.xlu0 (!%p1611_p7), %1907, %v976_v18   ;;  %v981_v35 = vmax.f32 (!%p1611_p7), %v2882_v25, 1e-30  ;;  %v980_v26 = vmax.f32 (!%p1611_p7), %v2884_v16, 1e-30  ;;  %v2888_v28 = vld [vmem:[#allocation2 + $0x38] sm:$0xff] (!%p1611_p7)  ;;  %v2890_v29 = vld [vmem:[#allocation2 + $0x30] sm:$0xff] (!%p1611_p7) }
 0x26b   : > { %v983_v30 = vmax.f32 (!%p1611_p7), %v2888_v28, 1e-30  ;;  %v982_v33 = vmax.f32 (!%p1611_p7), %v2890_v29, 1e-30  ;;  %v2894_v34 = vld [vmem:[#allocation2 + $0x48] sm:$0xff] (!%p1611_p7)  ;;  %v2896_v37 = vld [vmem:[#allocation2 + $0x40] sm:$0xff] (!%p1611_p7) }
 0x26c   : > { %v985_v38 = vmax.f32 (!%p1611_p7), %v2894_v34, 1e-30  ;;  %v984_v31 = vmax.f32 (!%p1611_p7), %v2896_v37, 1e-30  ;;  %v2900_v32 = vld [vmem:[#allocation2 + $0x58] sm:$0xff] (!%p1611_p7)  ;;  %v2902_v22 = vld [vmem:[#allocation2 + $0x50] sm:$0xff] (!%p1611_p7) }
 0x26d   : > { %v987_v40 = vmax.f32 (!%p1611_p7), %v2900_v32, 1e-30  ;;  %v986_v41 = vmax.f32 (!%p1611_p7), %v2902_v22, 1e-30  ;;  %v2906_v24 = vld [vmem:[#allocation2 + $0x68] sm:$0xff] (!%p1611_p7)  ;;  %v2908_v42 = vld [vmem:[#allocation2 + $0x60] sm:$0xff] (!%p1611_p7) }
 0x26e   : > { %1009 = vperm.xlu1 (!%p1611_p7), %1908, %v979_v23   ;;  %999 = vperm.xlu0 (!%p1611_p7), %1907, %v977_v21   ;;  %v989_v58 = vmax.f32 (!%p1611_p7), %v2906_v24, 1e-30  ;;  %v988_v43 = vmax.f32 (!%p1611_p7), %v2908_v42, 1e-30  ;;  %v2912_v44 = vld [vmem:[#allocation2 + $0x78] sm:$0xff] (!%p1611_p7)  ;;  %v2914_v45 = vld [vmem:[#allocation2 + $0x70] sm:$0xff] (!%p1611_p7) }
 0x26f   : > { %v991_v46 = vmax.f32 %v2912_v44, 1e-30  ;;  %v990_v27 = vmax.f32 %v2914_v45, 1e-30 }
 0x272   : > { %1019 = vperm.xlu1 %1908, %v981_v35   ;;  %1014 = vperm.xlu0 %1907, %v980_v26  }
 0x276   : > { %1029 = vperm.xlu1 %1908, %v983_v30   ;;  %1024 = vperm.xlu0 %1907, %v982_v33  }
 0x27a   : > { %1039 = vperm.xlu1 %1908, %v985_v38   ;;  %1034 = vperm.xlu0 %1907, %v984_v31  }
 0x27e   : > { %1049 = vperm.xlu1 %1908, %v987_v40   ;;  %1044 = vperm.xlu0 %1907, %v986_v41  }
 0x282   : > { %1059 = vperm.xlu1 %1908, %v989_v58   ;;  %1054 = vperm.xlu0 %1907, %v988_v43  }
 0x286   : > { %1069 = vperm.xlu1 %1908, %v991_v46   ;;  %1064 = vperm.xlu0 %1907, %v990_v27  }
 0x2e9   : > { %v1005_v47 = vpop.permute.xlu1 %1004  ;;  %v995_v4 = vpop.permute.xlu0 %994 }
 0x2ea   : > { %1909 = vrcp.f32 %v1005_v47 }
 0x2eb   : > { %1911 = vrcp.f32 %v995_v4 }
 0x2ed   : > { %v1010_v48 = vpop.permute.xlu1 %1009  ;;  %v1000_v49 = vpop.permute.xlu0 %999 }
 0x2ee   : > { %1913 = vrcp.f32 %v1010_v48 }
 0x2ef   : > { %1915 = vrcp.f32 %v1000_v49 }
 0x2f1   : > { %v1020_v50 = vpop.permute.xlu1 %1019  ;;  %v1015_v51 = vpop.permute.xlu0 %1014 }
 0x2f2   : > { %1917 = vrcp.f32 %v1020_v50 }
 0x2f3   : > { %1919 = vrcp.f32 %v1015_v51 }
 0x2f4   : > { %v1910_v52 = vpop.eup %1909 }
 0x2f5   : > { %v1912_v53 = vpop.eup %1911  ;;  %v1030_v54 = vpop.permute.xlu1 %1029  ;;  %v2919_v56 = vmul.f32 %v1910_v52, %v2870_v11 }
 0x2f6   : > { %v1025_v55 = vpop.permute.xlu0 %1024  ;;  %1921 = vrcp.f32 %v1030_v54  ;;  %v1073_v14 = vmul.f32 %v1912_v53, %v2872_v12 }
 0x2f7   : > { %1923 = vrcp.f32 %v1025_v55  ;;  %v1124_v57 = vmul.f32 1.442695, %v2919_v56  ;;  %vm1106_vm4 = vcmp.gt.f32.partialorder %v2919_v56, 0.0 }
 0x2f8   : > { %v1914_v59 = vpop.eup %1913  ;;  %v1120_v36 = vmul.f32 1.442695, %v1073_v14  ;;  %vm1104_vm3 = vcmp.gt.f32.partialorder %v1073_v14, 0.0 }
 0x2f9   : > { %v1916_v39 = vpop.eup %1915  ;;  %v1040_v60 = vpop.permute.xlu1 %1039  ;;  %1925 = vpow2.f32 %v1124_v57  ;;  %v2924_v62 = vmul.f32 %v1914_v59, %v2874_v13 }
 0x2fa   : > { %v1035_v61 = vpop.permute.xlu0 %1034  ;;  %1927 = vrcp.f32 %v1040_v60  ;;  %v2927_v63 = vmul.f32 %v1916_v39, %v2878_v19 }
 0x2fb   : > { %1929 = vrcp.f32 %v1035_v61  ;;  %v1126_v0 = vmul.f32 1.442695, %v2924_v62  ;;  %vm1107_vm6 = vcmp.gt.f32.partialorder %v2924_v62, 0.0 }
 0x2fc   : > { %v1918_v1 = vpop.eup %1917  ;;  %1931 = vpow2.f32 %v1120_v36  ;;  %v1122_v3 = vmul.f32 1.442695, %v2927_v63  ;;  %vm1105_vm5 = vcmp.gt.f32.partialorder %v2927_v63, 0.0 }
 0x2fd   : > { %v1920_v17 = vpop.eup %1919  ;;  %v1050_v5 = vpop.permute.xlu1 %1049  ;;  %1933 = vpow2.f32 %v1126_v0  ;;  %v2932_v7 = vmul.f32 %v1918_v1, %v2882_v25 }
 0x2fe   : > { %v1045_v6 = vpop.permute.xlu0 %1044  ;;  %1935 = vrcp.f32 %v1050_v5  ;;  %v2935_v8 = vmul.f32 %v1920_v17, %v2884_v16 }
 0x2ff   : > { %1937 = vrcp.f32 %v1045_v6  ;;  %v1130_v9 = vmul.f32 1.442695, %v2932_v7  ;;  %vm1109_vm8 = vcmp.gt.f32.partialorder %v2932_v7, 0.0 }
 0x300   : > { %v1922_v20 = vpop.eup %1921  ;;  %1939 = vpow2.f32 %v1122_v3  ;;  %v1128_v10 = vmul.f32 1.442695, %v2935_v8  ;;  %vm1108_vm7 = vcmp.gt.f32.partialorder %v2935_v8, 0.0 }
 0x301   : > { %v1924_v11 = vpop.eup %1923  ;;  %v1060_v12 = vpop.permute.xlu1 %1059  ;;  %1941 = vpow2.f32 %v1130_v9  ;;  %v2940_v2 = vmul.f32 %v1922_v20, %v2888_v28 }
 0x302   : > { %v1055_v13 = vpop.permute.xlu0 %1054  ;;  %1943 = vrcp.f32 %v1060_v12  ;;  %v2943_v15 = vmul.f32 %v1924_v11, %v2890_v29 }
 0x303   : > { %v1926_v18 = vpop.eup %1925  ;;  %1945 = vrcp.f32 %v1055_v13  ;;  %v1134_v19 = vmul.f32 1.442695, %v2940_v2  ;;  %vm1111_vm10 = vcmp.gt.f32.partialorder %v2940_v2, 0.0 }
 0x304   : > { %v1928_v23 = vpop.eup %1927  ;;  %1947 = vpow2.f32 %v1128_v10  ;;  %v1132_v21 = vmul.f32 1.442695, %v2943_v15  ;;  %v1614_v38 = vadd.f32 -1.0, %v1926_v18  ;;  %vm1110_vm9 = vcmp.gt.f32.partialorder %v2943_v15, 0.0 }
 0x305   : > { %v1930_v25 = vpop.eup %1929  ;;  %v1070_v16 = vpop.permute.xlu1 %1069  ;;  %1949 = vpow2.f32 %v1134_v19  ;;  %v2948_v26 = vmul.f32 %v1928_v23, %v2894_v34 }
 0x306   : > { %v1065_v35 = vpop.permute.xlu0 %1064  ;;  %v1932_v28 = vpop.eup %1931  ;;  %1951 = vrcp.f32 %v1070_v16  ;;  %v2951_v29 = vmul.f32 %v1930_v25, %v2896_v37  ;;  %v2967_v4 = vsel %vm1106_vm4, %v2919_v56, %v1614_v38 }
 0x307   : > { %v1934_v30 = vpop.eup %1933  ;;  %1953 = vrcp.f32 %v1065_v35  ;;  %v1612_v33 = vadd.f32 -1.0, %v1932_v28  ;;  %v1138_v34 = vmul.f32 1.442695, %v2948_v26  ;;  %v1191_v55 = vsel %vm1184_vm2, %v2967_v4, -inf }
 0x308   : > { %v1936_v31 = vpop.eup %1935  ;;  %1955 = vpow2.f32 %v1132_v21  ;;  %v1136_v40 = vmul.f32 1.442695, %v2951_v29  ;;  %v1615_v49 = vadd.f32 -1.0, %v1934_v30  ;;  %vm1112_vm11 = vcmp.gt.f32.partialorder %v2951_v29, 0.0 }
 0x309   : > { %v1938_v41 = vpop.eup %1937  ;;  %v2954_v58 = vsel %vm1104_vm3, %v1073_v14, %v1612_v33  ;;  %v2958_v43 = vmul.f32 %v1936_v31, %v2900_v32  ;;  %vm1113_vm12 = vcmp.gt.f32.partialorder %v2948_v26, 0.0 }
 0x30a   : > { %v1940_v37 = vpop.eup %1939  ;;  %v1185_v46 = vsel %vm1184_vm2, %v2954_v58, -inf  ;;  %1957 = vpow2.f32 %v1136_v40  ;;  %v2964_v27 = vmul.f32 %v1938_v41, %v2902_v22  ;;  %v2987_v59 = vsel %vm1107_vm6, %v2924_v62, %v1615_v49 }
 0x30b   : > { %v1942_v47 = vpop.eup %1941  ;;  %1186 = vmax.xlane.f32.xlu0 %v1185_v46  ;;  %v1613_v48 = vadd.f32 -1.0, %v1940_v37  ;;  %1959 = vpow2.f32 %v1138_v34  ;;  %v1142_v51 = vmul.f32 1.442695, %v2958_v43  ;;  %v1194_v1 = vsel %vm1184_vm2, %v2987_v59, -inf }
 0x30c   : > { %v1944_v32 = vpop.eup %1943  ;;  %v1140_v50 = vmul.f32 1.442695, %v2964_v27  ;;  %vm1114_vm13 = vcmp.gt.f32.partialorder %v2964_v27, 0.0  ;;  %vm1115_vm14 = vcmp.gt.f32.partialorder %v2958_v43, 0.0 }
 0x30d   : > { %v1946_v52 = vpop.eup %1945  ;;  %v2973_v53 = vsel %vm1105_vm5, %v2927_v63, %v1613_v48  ;;  %v2977_v22 = vmul.f32 %v1944_v32, %v2906_v24  ;;  %v1617_v24 = vadd.f32 -1.0, %v1942_v47 }
 0x30e   : > { %v1948_v54 = vpop.eup %1947  ;;  %v1188_v56 = vsel %vm1184_vm2, %v2973_v53, -inf  ;;  %1961 = vpow2.f32 %v1140_v50  ;;  %v2984_v14 = vmul.f32 %v1946_v52, %v2908_v42 }
 0x30f   : > { %v1950_v57 = vpop.eup %1949  ;;  %1192 = vmax.xlane.f32.xlu0 %v1191_v55  ;;  %1189 = vmax.xlane.f32.xlu1 %v1188_v56  ;;  %v1616_v36 = vadd.f32 -1.0, %v1948_v54  ;;  %1963 = vpow2.f32 %v1142_v51  ;;  %v1146_v61 = vmul.f32 1.442695, %v2977_v22  ;;  %v3005_v5 = vsel %vm1109_vm8, %v2932_v7, %v1617_v24 }
 0x310   : > { %v1952_v39 = vpop.eup %1951  ;;  %v1144_v60 = vmul.f32 1.442695, %v2984_v14  ;;  %v1200_v7 = vsel %vm1184_vm2, %v3005_v5, -inf  ;;  %vm1116_vm15 = vcmp.gt.f32.partialorder %v2984_v14, 0.0  ;;  %vm1117_vm0 = vcmp.gt.f32.partialorder %v2977_v22, 0.0 }
 0x311   : > { %v1954_v63 = vpop.eup %1953  ;;  %v2993_v42 = vsel %vm1108_vm7, %v2935_v8, %v1616_v36  ;;  %v2997_v0 = vmul.f32 %v1952_v39, %v2912_v44  ;;  %v1619_v8 = vadd.f32 -1.0, %v1950_v57 }
 0x312   : > { %v1956_v62 = vpop.eup %1955  ;;  %v1197_v3 = vsel %vm1184_vm2, %v2993_v42, -inf  ;;  %1965 = vpow2.f32 %v1144_v60  ;;  %v1101_v17 = vmul.f32 %v1954_v63, %v2914_v45 }
 0x313   : > { %1195 = vmax.xlane.f32.xlu0 %v1194_v1  ;;  %1198 = vmax.xlane.f32.xlu1 %v1197_v3  ;;  %v1618_v6 = vadd.f32 -1.0, %v1956_v62  ;;  %1967 = vpow2.f32 %v1146_v61  ;;  %v1150_v20 = vmul.f32 1.442695, %v2997_v0  ;;  %v3019_v13 = vsel %vm1111_vm10, %v2940_v2, %v1619_v8 }
 0x314   : > { %v1958_v44 = vpop.eup %1957  ;;  %v1148_v9 = vmul.f32 1.442695, %v1101_v17  ;;  %v1206_v16 = vsel %vm1184_vm2, %v3019_v13, -inf  ;;  %vm1118_vm1 = vcmp.gt.f32.partialorder %v1101_v17, 0.0  ;;  %vm1119_vm3 = vcmp.gt.f32.partialorder %v2997_v0, 0.0 }
 0x315   : > { %v1960_v10 = vpop.eup %1959  ;;  %v3010_v11 = vsel %vm1110_vm9, %v2943_v15, %v1618_v6  ;;  %v1620_v45 = vadd.f32 -1.0, %v1958_v44 }
 0x316   : > { %v1203_v12 = vsel %vm1184_vm2, %v3010_v11, -inf  ;;  %1969 = vpow2.f32 %v1148_v9  ;;  %v1621_v18 = vadd.f32 -1.0, %v1960_v10 }
 0x317   : > { %1201 = vmax.xlane.f32.xlu0 %v1200_v7  ;;  %1204 = vmax.xlane.f32.xlu1 %v1203_v12  ;;  %v3022_v15 = vsel %vm1112_vm11, %v2951_v29, %v1620_v45  ;;  %1971 = vpow2.f32 %v1150_v20 }
 0x318   : > { %v1962_v19 = vpop.eup %1961  ;;  %v1209_v23 = vsel %vm1184_vm2, %v3022_v15, -inf  ;;  %v3031_v2 = vsel %vm1113_vm12, %v2948_v26, %v1621_v18 }
 0x319   : > { %v1964_v21 = vpop.eup %1963  ;;  %v1622_v25 = vadd.f32 -1.0, %v1962_v19  ;;  %v1212_v31 = vsel %vm1184_vm2, %v3031_v2, -inf }
 0x31a   : > { %v1623_v28 = vadd.f32 -1.0, %v1964_v21 }
 0x31b   : > { %1207 = vmax.xlane.f32.xlu0 %v1206_v16  ;;  %1210 = vmax.xlane.f32.xlu1 %v1209_v23  ;;  %v3034_v35 = vsel %vm1114_vm13, %v2964_v27, %v1622_v25 }
 0x31c   : > { %v1966_v29 = vpop.eup %1965  ;;  %v1215_v30 = vsel %vm1184_vm2, %v3034_v35, -inf  ;;  %v3043_v26 = vsel %vm1115_vm14, %v2958_v43, %v1623_v28 }
 0x31d   : > { %v1968_v33 = vpop.eup %1967  ;;  %v1624_v38 = vadd.f32 -1.0, %v1966_v29  ;;  %v1218_v47 = vsel %vm1184_vm2, %v3043_v26, -inf }
 0x31e   : > { %v1625_v41 = vadd.f32 -1.0, %v1968_v33 }
 0x31f   : > { %1213 = vmax.xlane.f32.xlu0 %v1212_v31  ;;  %1216 = vmax.xlane.f32.xlu1 %v1215_v30  ;;  %v3046_v40 = vsel %vm1116_vm15, %v2984_v14, %v1624_v38 }
 0x320   : > { %v1970_v34 = vpop.eup %1969  ;;  %v1221_v37 = vsel %vm1184_vm2, %v3046_v40, -inf  ;;  %v3054_v43 = vsel %vm1117_vm0, %v2977_v22, %v1625_v41 }
 0x321   : > { %v1972_v46 = vpop.eup %1971  ;;  %v1626_v27 = vadd.f32 -1.0, %v1970_v34  ;;  %v1224_v50 = vsel %vm1184_vm2, %v3054_v43, -inf }
 0x322   : > { %v1627_v49 = vadd.f32 -1.0, %v1972_v46 }
 0x323   : > { %1219 = vmax.xlane.f32.xlu0 %v1218_v47  ;;  %1222 = vmax.xlane.f32.xlu1 %v1221_v37  ;;  %v3056_v48 = vsel %vm1118_vm1, %v1101_v17, %v1626_v27 }
 0x324   : > { %v1227_v32 = vsel %vm1184_vm2, %v3056_v48, -inf  ;;  %v3064_v51 = vsel %vm1119_vm3, %v2997_v0, %v1627_v49 }
 0x325   : > { %v1230_v52 = vsel %vm1184_vm2, %v3064_v51, -inf }
 0x327   : > { %1225 = vmax.xlane.f32.xlu0 %v1224_v50  ;;  %1228 = vmax.xlane.f32.xlu1 %v1227_v32 }
 0x32b   : > { %1231 = vmax.xlane.f32.xlu0 %v1230_v52 }
 0x398   : > { %v3068_v22 = vpop.xlane.xlu0 %1186 }
 0x399   : > { %v1233_v54 = vsub.f32 %v2954_v58, %v3068_v22 }
 0x39b   : > { %v1249_v55 = vmul.f32 1.442695, %v1233_v54 }
 0x39c   : > { %v3072_v56 = vpop.xlane.xlu1 %1189  ;;  %v3074_v14 = vpop.xlane.xlu0 %1192 }
 0x39d   : > { %1973 = vpow2.f32 %v1249_v55  ;;  %v1234_v57 = vsub.f32 %v2973_v53, %v3072_v56  ;;  %v1235_v36 = vsub.f32 %v2967_v4, %v3074_v14 }
 0x39f   : > { %v1251_v24 = vmul.f32 1.442695, %v1234_v57  ;;  %v1253_v39 = vmul.f32 1.442695, %v1235_v36 }
 0x3a0   : > { %v3080_v60 = vpop.xlane.xlu1 %1198  ;;  %v3082_v61 = vpop.xlane.xlu0 %1195 }
 0x3a1   : > { %1975 = vpow2.f32 %v1251_v24  ;;  %v1237_v63 = vsub.f32 %v2993_v42, %v3080_v60  ;;  %v1236_v0 = vsub.f32 %v2987_v59, %v3082_v61 }
 0x3a2   : > { %1977 = vpow2.f32 %v1253_v39 }
 0x3a3   : > { %v1257_v62 = vmul.f32 1.442695, %v1237_v63  ;;  %v1255_v1 = vmul.f32 1.442695, %v1236_v0 }
 0x3a4   : > { %v3088_v3 = vpop.xlane.xlu1 %1204  ;;  %v3090_v17 = vpop.xlane.xlu0 %1201 }
 0x3a5   : > { %1979 = vpow2.f32 %v1257_v62  ;;  %v1239_v6 = vsub.f32 %v3010_v11, %v3088_v3  ;;  %v1238_v8 = vsub.f32 %v3005_v5, %v3090_v17 }
 0x3a6   : > { %1981 = vpow2.f32 %v1255_v1 }
 0x3a7   : > { %v1974_v44 = vpop.eup %1973  ;;  %v1261_v9 = vmul.f32 1.442695, %v1239_v6  ;;  %v1259_v20 = vmul.f32 1.442695, %v1238_v8 }
 0x3a8   : > { %v3096_v10 = vpop.xlane.xlu1 %1210  ;;  %v3098_v45 = vpop.xlane.xlu0 %1207  ;;  %v1281_v7 = vsel %vm1184_vm2, %v1974_v44, 0.0 }
 0x3a9   : > { %1983 = vpow2.f32 %v1261_v9  ;;  %v1241_v12 = vsub.f32 %v3022_v15, %v3096_v10  ;;  %v1240_v18 = vsub.f32 %v3019_v13, %v3098_v45  ;;  %1282 = vadd.xlane.f32.xlu1 %v1281_v7 }
 0x3aa   : > { %1985 = vpow2.f32 %v1259_v20 }
 0x3ab   : > { %v1976_v19 = vpop.eup %1975  ;;  %v1265_v23 = vmul.f32 1.442695, %v1241_v12  ;;  %v1263_v21 = vmul.f32 1.442695, %v1240_v18 }
 0x3ac   : > { %v1978_v25 = vpop.eup %1977  ;;  %v3105_v16 = vpop.xlane.xlu1 %1216  ;;  %v1284_v29 = vsel %vm1184_vm2, %v1976_v19, 0.0 }
 0x3ad   : > { %v3107_v28 = vpop.xlane.xlu0 %1213  ;;  %1987 = vpow2.f32 %v1265_v23  ;;  %v1243_v30 = vsub.f32 %v3034_v35, %v3105_v16  ;;  %1285 = vadd.xlane.f32.xlu0 %v1284_v29  ;;  %v1287_v38 = vsel %vm1184_vm2, %v1978_v25, 0.0 }
 0x3ae   : > { %v1242_v33 = vsub.f32 %v3031_v2, %v3107_v28  ;;  %1989 = vpow2.f32 %v1263_v21  ;;  %1288 = vadd.xlane.f32.xlu1 %v1287_v38 }
 0x3af   : > { %v1980_v31 = vpop.eup %1979  ;;  %v1269_v41 = vmul.f32 1.442695, %v1243_v30 }
 0x3b0   : > { %v1267_v34 = vmul.f32 1.442695, %v1242_v33  ;;  %v1982_v37 = vpop.eup %1981  ;;  %v3115_v46 = vpop.xlane.xlu1 %1222  ;;  %v1293_v47 = vsel %vm1184_vm2, %v1980_v31, 0.0 }
 0x3b1   : > { %v3117_v27 = vpop.xlane.xlu0 %1219  ;;  %1991 = vpow2.f32 %v1269_v41  ;;  %v1245_v49 = vsub.f32 %v3046_v40, %v3115_v46  ;;  %v1290_v50 = vsel %vm1184_vm2, %v1982_v37, 0.0 }
 0x3b2   : > { %v1244_v32 = vsub.f32 %v3043_v26, %v3117_v27  ;;  %1993 = vpow2.f32 %v1267_v34  ;;  %1294 = vadd.xlane.f32.xlu1 %v1293_v47  ;;  %1291 = vadd.xlane.f32.xlu0 %v1290_v50 }
 0x3b3   : > { %v1984_v52 = vpop.eup %1983  ;;  %v1273_v54 = vmul.f32 1.442695, %v1245_v49 }
 0x3b4   : > { %v1271_v55 = vmul.f32 1.442695, %v1244_v32  ;;  %v1986_v57 = vpop.eup %1985  ;;  %v3125_v36 = vpop.xlane.xlu1 %1228  ;;  %v1299_v39 = vsel %vm1184_vm2, %v1984_v52, 0.0 }
 0x3b5   : > { %v3127_v24 = vpop.xlane.xlu0 %1225  ;;  %1995 = vpow2.f32 %v1273_v54  ;;  %v1247_v63 = vsub.f32 %v3056_v48, %v3125_v36  ;;  %v1296_v62 = vsel %vm1184_vm2, %v1986_v57, 0.0 }
 0x3b6   : > { %v1246_v0 = vsub.f32 %v3054_v43, %v3127_v24  ;;  %1997 = vpow2.f32 %v1271_v55  ;;  %1300 = vadd.xlane.f32.xlu1 %v1299_v39  ;;  %1297 = vadd.xlane.f32.xlu0 %v1296_v62 }
 0x3b7   : > { %v1988_v1 = vpop.eup %1987  ;;  %v1277_v6 = vmul.f32 1.442695, %v1247_v63 }
 0x3b8   : > { %v1275_v8 = vmul.f32 1.442695, %v1246_v0  ;;  %v1990_v44 = vpop.eup %1989  ;;  %v1305_v20 = vsel %vm1184_vm2, %v1988_v1, 0.0 }
 0x3b9   : > { %v3135_v9 = vpop.xlane.xlu0 %1231  ;;  %1999 = vpow2.f32 %v1277_v6  ;;  %v1302_v12 = vsel %vm1184_vm2, %v1990_v44, 0.0 }
 0x3ba   : > { %v1248_v7 = vsub.f32 %v3064_v51, %v3135_v9  ;;  %2001 = vpow2.f32 %v1275_v8  ;;  %1306 = vadd.xlane.f32.xlu1 %v1305_v20  ;;  %1303 = vadd.xlane.f32.xlu0 %v1302_v12 }
 0x3bb   : > { %v1992_v18 = vpop.eup %1991 }
 0x3bc   : > { %v1279_v19 = vmul.f32 1.442695, %v1248_v7  ;;  %v1994_v23 = vpop.eup %1993  ;;  %v1311_v21 = vsel %vm1184_vm2, %v1992_v18, 0.0 }
 0x3bd   : > { %v1308_v25 = vsel %vm1184_vm2, %v1994_v23, 0.0 }
 0x3be   : > { %2003 = vpow2.f32 %v1279_v19  ;;  %1312 = vadd.xlane.f32.xlu1 %v1311_v21  ;;  %1309 = vadd.xlane.f32.xlu0 %v1308_v25 }
 0x3bf   : > { %v1996_v29 = vpop.eup %1995 }
 0x3c0   : > { %v1998_v30 = vpop.eup %1997  ;;  %v1317_v33 = vsel %vm1184_vm2, %v1996_v29, 0.0 }
 0x3c1   : > { %v1314_v38 = vsel %vm1184_vm2, %v1998_v30, 0.0 }
 0x3c2   : > { %1318 = vadd.xlane.f32.xlu1 %v1317_v33  ;;  %1315 = vadd.xlane.f32.xlu0 %v1314_v38 }
 0x3c3   : > { %v2000_v31 = vpop.eup %1999 }
 0x3c4   : > { %v2002_v41 = vpop.eup %2001  ;;  %v1323_v34 = vsel %vm1184_vm2, %v2000_v31, 0.0 }
 0x3c5   : > { %v1320_v37 = vsel %vm1184_vm2, %v2002_v41, 0.0 }
 0x3c6   : > { %1324 = vadd.xlane.f32.xlu1 %v1323_v34  ;;  %1321 = vadd.xlane.f32.xlu0 %v1320_v37 }
 0x3c8   : > { %v2004_v47 = vpop.eup %2003 }
 0x3c9   : > { %v1326_v49 = vsel %vm1184_vm2, %v2004_v47, 0.0 }
 0x3ca   : > { %1327 = vadd.xlane.f32.xlu0 %v1326_v49 }
 0x436   : > { %v1283_v32 = vpop.xlane.xlu1 %1282 }
 0x437   : > { %2005 = vlog2.f32 %v1283_v32 }
 0x43a   : > { %v1286_v50 = vpop.xlane.xlu0 %1285 }
 0x43b   : > { %v1289_v52 = vpop.xlane.xlu1 %1288  ;;  %2007 = vlog2.f32 %v1286_v50 }
 0x43c   : > { %2009 = vlog2.f32 %v1289_v52 }
 0x43f   : > { %v1295_v54 = vpop.xlane.xlu1 %1294  ;;  %v1292_v55 = vpop.xlane.xlu0 %1291 }
 0x440   : > { %2011 = vlog2.f32 %v1295_v54 }
 0x441   : > { %v2006_v57 = vpop.eup %2005  ;;  %2013 = vlog2.f32 %v1292_v55 }
 0x442   : > { %v1330_v39 = vmul.f32 0.6931472, %v2006_v57 }
 0x443   : > { %v1301_v63 = vpop.xlane.xlu1 %1300  ;;  %v1298_v0 = vpop.xlane.xlu0 %1297 }
 0x444   : > { %v1361_v62 = vadd.f32 %v1330_v39, %v3068_v22  ;;  %2015 = vlog2.f32 %v1301_v63 }
 0x445   : > { %v2008_v1 = vpop.eup %2007  ;;  %2017 = vlog2.f32 %v1298_v0 }
 0x446   : > { %v2010_v6 = vpop.eup %2009  ;;  %v1377_v8 = vsub.f32 %v2954_v58, %v1361_v62  ;;  %v1332_v44 = vmul.f32 0.6931472, %v2008_v1 }
 0x447   : > { %v1334_v20 = vmul.f32 0.6931472, %v2010_v6  ;;  %v1307_v7 = vpop.xlane.xlu1 %1306  ;;  %v1304_v12 = vpop.xlane.xlu0 %1303 }
 0x448   : > { %1393 = vst.msk [vmem:[%s2658_s17] sm:$0xff] %vm1184_vm2, %v1377_v8  ;;  %v1362_v18 = vadd.f32 %v1332_v44, %v3072_v56  ;;  %2019 = vlog2.f32 %v1307_v7 }
 0x449   : > { %v1363_v19 = vadd.f32 %v1334_v20, %v3074_v14  ;;  %2021 = vlog2.f32 %v1304_v12 }
 0x44a   : > { %v2012_v22 = vpop.eup %2011  ;;  %v1378_v23 = vsub.f32 %v2973_v53, %v1362_v18 }
 0x44b   : > { %v2014_v21 = vpop.eup %2013  ;;  %v1379_v58 = vsub.f32 %v2967_v4, %v1363_v19  ;;  %v1338_v25 = vmul.f32 0.6931472, %v2012_v22  ;;  %v1313_v29 = vpop.xlane.xlu1 %1312 }
 0x44c   : > { %v1310_v30 = vpop.xlane.xlu0 %1309  ;;  %1394 = vst.msk [vmem:[%s2658_s17 + $0x8] sm:$0xff] %vm1184_vm2, %v1378_v23  ;;  %v1336_v33 = vmul.f32 0.6931472, %v2014_v21  ;;  %2023 = vlog2.f32 %v1313_v29 }
 0x44d   : > { %1395 = vst.msk [vmem:[%s2658_s17 + $0x10] sm:$0xff] %vm1184_vm2, %v1379_v58  ;;  %v1365_v56 = vadd.f32 %v1338_v25, %v3080_v60  ;;  %2025 = vlog2.f32 %v1310_v30 }
 0x44e   : > { %v2016_v14 = vpop.eup %2015  ;;  %v1364_v53 = vadd.f32 %v1336_v33, %v3082_v61 }
 0x44f   : > { %v2018_v38 = vpop.eup %2017  ;;  %v1381_v4 = vsub.f32 %v2993_v42, %v1365_v56  ;;  %v1342_v31 = vmul.f32 0.6931472, %v2016_v14  ;;  %v1319_v41 = vpop.xlane.xlu1 %1318 }
 0x450   : > { %v1316_v34 = vpop.xlane.xlu0 %1315  ;;  %v1380_v37 = vsub.f32 %v2987_v59, %v1364_v53  ;;  %v1340_v47 = vmul.f32 0.6931472, %v2018_v38  ;;  %2027 = vlog2.f32 %v1319_v41 }
 0x451   : > { %1397 = vst.msk [vmem:[%s2658_s17 + $0x20] sm:$0xff] %vm1184_vm2, %v1381_v4  ;;  %v1367_v60 = vadd.f32 %v1342_v31, %v3088_v3  ;;  %2029 = vlog2.f32 %v1316_v34 }
 0x452   : > { %v2020_v49 = vpop.eup %2019  ;;  %1396 = vst.msk [vmem:[%s2658_s17 + $0x18] sm:$0xff] %vm1184_vm2, %v1380_v37  ;;  %v1366_v61 = vadd.f32 %v1340_v47, %v3090_v17 }
 0x453   : > { %v2022_v42 = vpop.eup %2021  ;;  %v1383_v32 = vsub.f32 %v3010_v11, %v1367_v60  ;;  %v1346_v50 = vmul.f32 0.6931472, %v2020_v49  ;;  %v1325_v52 = vpop.xlane.xlu1 %1324 }
 0x454   : > { %v1322_v59 = vpop.xlane.xlu0 %1321  ;;  %v1382_v54 = vsub.f32 %v3005_v5, %v1366_v61  ;;  %v1344_v55 = vmul.f32 0.6931472, %v2022_v42  ;;  %2031 = vlog2.f32 %v1325_v52 }
 0x455   : > { %1399 = vst.msk [vmem:[%s2658_s17 + $0x30] sm:$0xff] %vm1184_vm2, %v1383_v32  ;;  %v1369_v3 = vadd.f32 %v1346_v50, %v3096_v10  ;;  %2033 = vlog2.f32 %v1322_v59 }
 0x456   : > { %v2024_v57 = vpop.eup %2023  ;;  %1398 = vst.msk [vmem:[%s2658_s17 + $0x28] sm:$0xff] %vm1184_vm2, %v1382_v54  ;;  %v1368_v17 = vadd.f32 %v1344_v55, %v3098_v45 }
 0x457   : > { %v2026_v11 = vpop.eup %2025  ;;  %v1385_v39 = vsub.f32 %v3022_v15, %v1369_v3  ;;  %v1350_v63 = vmul.f32 0.6931472, %v2024_v57 }
 0x458   : > { %v1328_v5 = vpop.xlane.xlu0 %1327  ;;  %v1384_v0 = vsub.f32 %v3019_v13, %v1368_v17  ;;  %v1348_v62 = vmul.f32 0.6931472, %v2026_v11 }
 0x459   : > { %2035 = vlog2.f32 %v1328_v5  ;;  %1401 = vst.msk [vmem:[%s2658_s17 + $0x40] sm:$0xff] %vm1184_vm2, %v1385_v39  ;;  %v1371_v10 = vadd.f32 %v1350_v63, %v3105_v16 }
 0x45a   : > { %v2028_v1 = vpop.eup %2027  ;;  %1400 = vst.msk [vmem:[%s2658_s17 + $0x38] sm:$0xff] %vm1184_vm2, %v1384_v0  ;;  %v1370_v45 = vadd.f32 %v1348_v62, %v3107_v28 }
 0x45b   : > { %v2030_v6 = vpop.eup %2029  ;;  %v1387_v15 = vsub.f32 %v3034_v35, %v1371_v10  ;;  %v1354_v8 = vmul.f32 0.6931472, %v2028_v1 }
 0x45c   : > { %v1386_v13 = vsub.f32 %v3031_v2, %v1370_v45  ;;  %v1352_v44 = vmul.f32 0.6931472, %v2030_v6 }
 0x45d   : > { %1403 = vst.msk [vmem:[%s2658_s17 + $0x50] sm:$0xff] %vm1184_vm2, %v1387_v15  ;;  %v1373_v20 = vadd.f32 %v1354_v8, %v3115_v46 }
 0x45e   : > { %v2032_v7 = vpop.eup %2031  ;;  %1402 = vst.msk [vmem:[%s2658_s17 + $0x48] sm:$0xff] %vm1184_vm2, %v1386_v13  ;;  %v1372_v16 = vadd.f32 %v1352_v44, %v3117_v27 }
 0x45f   : > { %v2034_v28 = vpop.eup %2033  ;;  %v1389_v12 = vsub.f32 %v3046_v40, %v1373_v20  ;;  %v1358_v35 = vmul.f32 0.6931472, %v2032_v7 }
 0x460   : > { %v1388_v18 = vsub.f32 %v3043_v26, %v1372_v16  ;;  %v1356_v2 = vmul.f32 0.6931472, %v2034_v28 }
 0x461   : > { %1405 = vst.msk [vmem:[%s2658_s17 + $0x60] sm:$0xff] %vm1184_vm2, %v1389_v12  ;;  %v1375_v19 = vadd.f32 %v1358_v35, %v3125_v36 }
 0x462   : > { %1404 = vst.msk [vmem:[%s2658_s17 + $0x58] sm:$0xff] %vm1184_vm2, %v1388_v18  ;;  %v1374_v22 = vadd.f32 %v1356_v2, %v3127_v24 }
 0x463   : > { %v2036_v46 = vpop.eup %2035  ;;  %v1391_v27 = vsub.f32 %v3056_v48, %v1375_v19 }
 0x464   : > { %v1360_v23 = vmul.f32 0.6931472, %v2036_v46  ;;  %v1390_v21 = vsub.f32 %v3054_v43, %v1374_v22 }
 0x465   : > { %1407 = vst.msk [vmem:[%s2658_s17 + $0x70] sm:$0xff] %vm1184_vm2, %v1391_v27 }
 0x466   : > { %v1376_v40 = vadd.f32 %v1360_v23, %v3135_v9  ;;  %1406 = vst.msk [vmem:[%s2658_s17 + $0x68] sm:$0xff] %vm1184_vm2, %v1390_v21 }
 0x468   : > { %v1392_v26 = vsub.f32 %v3064_v51, %v1376_v40 }
 0x46a   : > { %1408 = vst.msk [vmem:[%s2658_s17 + $0x78] sm:$0xff] %vm1184_vm2, %v1392_v26 }
 0x46b PF: > { %s3339_s8 = sld [smem:[#allocation20_spill]]  ;;  %s3341_s20 = sld [smem:[#allocation28_spill]] }
 0x46c   : > { %s1423_s25 = sshll.u32 %s2658_s17, 4  ;;  %s1410_s3 = scalar_lea.sflag [#allocation7], %s2637_s9  ;;  %s3219_s25 = int_to_ptr.vmem [resolvable:$true] %s1423_s25 }
 0x46d   : > { %s2163_s15 = scalar_lea.vmem %s3219_s25, 2048  ;;  %s2312_s18 = smov [#allocation13]  }
 0x46e   : > { %p2164_p6 = scmp.ne.s32.totalorder %s3219_s25, %s2163_s15  ;;  %s2167_s1 = sshll.u32 %s2312_s18, 4  ;;  %s2168_s1 = int_to_ptr.vmem [resolvable:$false] %s2167_s1 }
 0x46f   : > { %s2169_s19 = scalar_lea.vmem %s2168_s1, 4096  ;;  %p2170_p11 = scmp.lt.s32.totalorder %s3219_s25, %s2168_s1 }
 0x470   : > { %p2165_p5 = pnand %p2164_p6, %p2513_p9  ;;  %p2171_p4 = scmp.lt.s32.totalorder %s2169_s19, %s2163_s15 }
 0x471   : > { %s1634_s14 = sshll.u32 %s3339_s8, 11 }
 0x472   : > { %s3216_s23 = scalar_lea.hbm %s3341_s20, %s1634_s14  ;;  %p2166_p12 = pneg %p2165_p5 }
 0x473   : > { %p2172_p2 = por %p2171_p4, %p2170_p11 }
 0x475   : > { %p2173_p10 = pnand %p2172_p2, %p2166_p12 }
 0x477   : > { %2176 = shalt.err (!%p2173_p10)
}
 0x478   : > { %s2177_s17 = scalar_lea.hbm %s3216_s23, 2048  ;;  %s2181_s27 = scalar_lea.hbm %s3341_s20, 12288 }
 0x479   : > { %p2178_p0 = scmp.ne.s32.totalorder %s3216_s23, %s2177_s17  ;;  %p2182_p1 = scmp.lt.u32.totalorder %s3216_s23, %s3341_s20 }
 0x47a   : > { %p2183_p3 = scmp.lt.u32.totalorder %s2181_s27, %s2177_s17  ;;  %p2185_p6 = scmp.lt.u32.totalorder %s2177_s17, %s3216_s23 }
 0x47b   : > { %p2179_p13 = pnand %p2178_p0, %p2513_p9 }
 0x47c   : > { %p2184_p7 = por %p2183_p3, %p2182_p1 }
 0x47d   : > { %p2180_p8 = pneg %p2179_p13 }
 0x47e   : > { %p2186_p5 = por %p2185_p6, %p2184_p7 }
 0x480   : > { %p2187_p12 = pnand %p2186_p5, %p2180_p8 }
 0x482   : > { %2190 = shalt.err (!%p2187_p12)
}
 0x483   : > { %s2313_s2 = smov 128   ;;  %s2314_s8 = smov 8  }
 0x484   : > { %1728 = dma.vmem_to_hbm [thread:$0]  (%p2513_p9), %s3219_s25, 2048, %s3216_s23, %s1410_s3, %s2313_s2, %s2313_s2, %s2314_s8  }
 0x485 PF: > { %s3342_s14 = sld [smem:[#allocation19_spill]]  ;;  %s3343_s24 = sld [smem:[#allocation22_spill]] }
 0x486   : > { %p1753_p11 = scmp.ge.s32.totalorder %s2295_s12, 2 }
 0x48b   : > { %s1438_s21 = sand.u32 1, %s3342_s14   ;;  %p3344_p4 = scmp.ne.s32.totalorder %s3343_s24, 0 }
 0x48c   : > { %s1439_s15 = scalar_lea.sflag [#allocation7], %s1438_s21 }
 0x48d   : > { %p1745_p2 = pnand %p1753_p11, %p3344_p4 }
 0x48f   : > { %2250 = dma.done.wait (!%p1745_p2), %s1439_s15, 2048  }
 0x490   : > { %2252 = vsyncadd (!%p1745_p2), %s1439_s15, 4294965248  ;;  %s29_s12 = sadd.s32 1, %s2295_s12   ;;  %s3345_s8 = sld [smem:[#allocation21_spill]] }
 0x491   : > { %p26_p10 = scmp.ge.s32.totalorder %s29_s12, 20   ;;  %s3346_s5 = sld [smem:[#allocation24_spill]] }
 0x492   : > { %s3347_s28 = smov %s2259_s29  ;;  %s3348_s29 = smov %s2263_s30 }
 0x493   : > { %s3349_s30 = smov %s2594_s6  ;;  %s3350_s6 = smov %s2271_s7 }
 0x494   : > { %s3351_s7 = smov %s2275_s0  ;;  %s3352_s0 = smov %s2591_s10 }
 0x495   : > { %s3353_s9 = smov %s2291_s11  ;;  %s3355_s11 = smov %s3361_s13 }
 0x496   :  { %28 = sbr.rel (!%p26_p10) target bundleno = 25 (0x19), region = 116 }
 0x497   : > { %s3354_s10 = smov %s3346_s5 }
 0x49d   :  { %1444 = vsyncpa [#allocation6], 1 }
 0x49e   :  { %1446 = vsyncpa [#allocation6 + $0x1], 1 }
 0x49f   :  { %1447 = vsyncpa [#allocation9], 1 }
 0x4a0   :  { %1448 = vsyncpa [#allocation12], 1 }
 0x4a1   :  { %1450 = vsyncpa [#allocation12 + $0x1], 1 }
 0x4a2   :  { %1451 = vsyncpa [#allocation7], 1 }
 0x4a3   :  { %1453 = vsyncpa [#allocation7 + $0x1], 1 }

// kernel: spgat_forward.5
= control target key start
LH: loop header
LB: loop body
LE: loop exit
PB: predicated region body
PF: predicated region fallthrough
CT: control target
= control target key end

     0   :  { %s7245_s0 = inlined_call_operand.hbm [shape: s32[18], index: 0, kind: input, shape index: {}]   ;;  %s7246_s1 = inlined_call_operand.hbm [shape: f32[768,4], index: 1, kind: input, shape index: {}]   ;;  %s7247_s2 = inlined_call_operand.hbm [shape: f32[4,768], index: 2, kind: input, shape index: {}]   ;;  %s7248_s3 = inlined_call_operand.hbm [shape: bf16[4,768,17], index: 3, kind: input, shape index: {}]   ;;  %s7249_s4 = inlined_call_operand.hbm [shape: s8[768,768], index: 4, kind: input, shape index: {}]   ;;  %s7250_s5 = inlined_call_operand.hbm [shape: f32[768,64], index: 5, kind: output, shape index: {}]  }
   0x1   :  { %7265 = sst [smem:[#allocation41_spill]] %s7246_s1  ;;  %s5031_s20 = scalar_lea.hbm %s7245_s0, 16 }
   0x2   :  { %7266 = sst [smem:[#allocation42_spill]] %s7247_s2  ;;  %p5032_p0 = scmp.ne.s32.totalorder %s7245_s0, %s5031_s20 }
   0x3   :  { %7267 = sst [smem:[#allocation43_spill]] %s7248_s3  ;;  %p5035_p1 = scmp.lt.u32.totalorder %s5031_s20, %s7245_s0 }
   0x4   :  { %7268 = sst [smem:[#allocation44_spill]] %s7250_s5 }
   0x5   :  { %p5037_p2 = pnand %p5035_p1, %p5032_p0 }
   0x7   :  { %5040 = shalt.err (!%p5037_p2)  }
   0x8   :  { %s5291_s25 = smov [#allocation4]  }
   0x9   :  { %11 = dma.hbm_to_smem %s7245_s0, 16, %s5291_s25, [#allocation3] }
   0xa   :  { %5229 = dma.done.wait [#allocation3], 16 }
   0xb   :  { %5230 = vsyncadd [#allocation3], 4294967280 }
   0xc   :  { %13 = sfence }
   0xd   :  { %14 = vsyncpa [#allocation6], 0 }
   0xe   :  { %16 = vsyncpa [#allocation6 + $0x1], 0 }
   0xf   :  { %17 = vsyncpa [#allocation9], 0 }
  0x10   :  { %18 = vsyncpa [#allocation12], 0 }
  0x11   :  { %20 = vsyncpa [#allocation12 + $0x1], 0 }
  0x12   :  { %21 = vsyncpa [#allocation7], 0 }
  0x13   :  { %23 = vsyncpa [#allocation7 + $0x1], 0  ;;  %s5357_s28 = smov 0   ;;  %s5359_s29 = smov 0  }
  0x14   :  { %s5361_s30 = smov 0   ;;  %s5363_s6 = smov 0  }
  0x15   :  { %s5365_s7 = smov 0   ;;  %s5367_s0 = smov 0  }
  0x16   :  { %s5369_s8 = smov 0   ;;  %s5371_s9 = smov 0  }
  0x17   :  { %s5373_s10 = smov 0   ;;  %s5375_s11 = smov 0  }
  0x18   :  { %s5377_s12 = smov 0  }
  0x19 LB: > { %7269 = sst [smem:[#allocation19_spill]] %s5261_s6  ;;  %s3818_s13 = sadd.s32 4294967295, %s5289_s12   ;;  %s5289_s12 = sphi %s5377_s12, %s29_s12   ;;  %s5285_s11 = sphi %s5375_s11, %s7352_s11   ;;  %s5281_s10 = sphi %s5373_s10, %s7351_s10   ;;  %s5277_s9 = sphi %s5371_s9, %s7350_s9   ;;  %s5273_s8 = sphi %s5369_s8, %s7342_s8   ;;  %s5269_s0 = sphi %s5367_s0, %s7349_s0   ;;  %s5265_s7 = sphi %s5365_s7, %s7348_s7   ;;  %s5261_s6 = sphi %s5363_s6, %s7347_s6   ;;  %s5257_s30 = sphi %s5361_s30, %s7346_s30   ;;  %s5253_s29 = sphi %s5359_s29, %s7345_s29   ;;  %s5249_s28 = sphi %s5357_s28, %s7344_s28  }
  0x1a   : > { %7270 = sst [smem:[#allocation20_spill]] %s5277_s9  ;;  %s3819_s14 = sadd.s32 4294967294, %s5289_s12  }
  0x1b   : > { %7271 = sst [smem:[#allocation21_spill]] %s5281_s10  ;;  %p61_p3 = scmp.ne.s32.totalorder %s5265_s7, %s5261_s6 }
  0x1c   : > { %p5414_p4 = scmp.eq.s32.totalorder %s3818_s13, 0  ;;  %p131_p5 = scmp.ne.s32.totalorder %s5253_s29, %s5249_s28 }
  0x1d   : > { %p5419_p6 = scmp.eq.s32.totalorder %s3818_s13, 17  ;;  %p161_p8 = scmp.eq.s32.totalorder %s3819_s14, 17 }
  0x1e   : > { %s7272_s15 = scalar_select %p5414_p4, 1, 0 }
  0x1f   : > { %s7273_s16 = scalar_select %p5419_p6, 1, 0 }
  0x20   : > { %p5425_p7 = por %p5414_p4, %p61_p3  ;;  %p5431_p9 = por %p131_p5, %p5414_p4 }
  0x21   : > { %p3820_p10 = scmp.ge.s32.totalorder %s5289_s12, 1  ;;  %p5436_p11 = por %p161_p8, %p61_p3 }
  0x22   : > { %s7274_s17 = scalar_select %p5425_p7, 1, 0 }
  0x23   : > { %s7275_s18 = scalar_select %p5431_p9, 1, 0 }
  0x24   : > { %s7276_s19 = scalar_select %p5436_p11, 1, 0 }
  0x25   : > { %p168_p12 = scmp.lt.s32.totalorder %s5289_s12, 19  ;;  %s5292_s21 = smov [#allocation8]  }
  0x26   : > { %7277 = sst [smem:[#allocation22_spill]] %s7276_s19  ;;  %s181_s22 = sshll.u32 %s5292_s21, 4  ;;  %s182_s22 = int_to_ptr.vmem [resolvable:$true] %s181_s22 }
  0x27   : > { %p5441_p13 = pnand %p3820_p10, %p168_p12  ;;  %s5293_s23 = smov [#allocation10]  }
  0x28   : > { %s191_s24 = sshll.u32 %s5293_s23, 4  ;;  %s7280_s2 = sld [smem:[#allocation42_spill]]  ;;  %s5453_s24 = int_to_ptr.vmem [resolvable:$true] %s191_s24 }
  0x29   : > { %s7278_s20 = scalar_select %p5441_p13, 1, 0 }
  0x2a   : > { %p4416_p0 = pneg %p5441_p13 }
  0x2c   : > { %p5449_p1 = pnand %p4416_p0, %p5414_p4 }
  0x2e   : > { %s5041_s28 = scalar_lea.hbm %s7280_s2, 384  ;;  %p5043_p3 = pneg %p5449_p1 }
  0x2f   : > { %p5042_p2 = scmp.ne.s32.totalorder %s7280_s2, %s5041_s28  ;;  %p5048_p10 = scmp.lt.u32.totalorder %s5041_s28, %s7280_s2 }
  0x31   : > { %p5044_p5 = pnand %p5043_p3, %p5042_p2 }
  0x33   : > { %p5045_p8 = pneg %p5044_p5 }
  0x35   : > { %p5050_p12 = pnand %p5048_p10, %p5045_p8 }
  0x37   : > { %5053 = shalt.err (!%p5050_p12)
}
  0x38   : > { %s5054_s19 = scalar_lea.vmem %s182_s22, 384  ;;  %p5062_p4 = scmp.lt.s32.totalorder %s182_s22, %s182_s22 }
  0x39   : > { %p5055_p0 = scmp.ne.s32.totalorder %s182_s22, %s5054_s19  ;;  %p5063_p7 = scmp.lt.s32.totalorder %s5054_s19, %s5054_s19 }
  0x3b   : > { %p5057_p11 = pnand %p5055_p0, %p5043_p3  ;;  %p5064_p13 = por %p5063_p7, %p5062_p4 }
  0x3d   : > { %p5058_p9 = pneg %p5057_p11 }
  0x3f   : > { %p5065_p6 = pnand %p5064_p13, %p5058_p9 }
  0x41   : > { %5068 = shalt.err (!%p5065_p6)
}
  0x42   : > { %4419 = dma.hbm_to_vmem [thread:$0]  (!%p5449_p1), %s7280_s2, 384, %s182_s22, [#allocation9]  }
  0x43   : > { %s7281_s3 = sld [smem:[#allocation43_spill]] }
  0x49   : > { %s5069_s14 = scalar_lea.hbm %s7281_s3, 24576 }
  0x4a   : > { %p5070_p11 = scmp.ne.s32.totalorder %s7281_s3, %s5069_s14  ;;  %p5076_p6 = scmp.lt.u32.totalorder %s5069_s14, %s7281_s3 }
  0x4c   : > { %p5072_p4 = pnand %p5070_p11, %p5043_p3 }
  0x4e   : > { %p5073_p7 = pneg %p5072_p4 }
  0x50   : > { %p5078_p9 = pnand %p5076_p6, %p5073_p7 }
  0x52   : > { %5081 = shalt.err (!%p5078_p9)
}
  0x53   : > { %s5082_s22 = scalar_lea.vmem %s5453_s24, 24576  ;;  %p5090_p8 = scmp.lt.s32.totalorder %s5453_s24, %s5453_s24 }
  0x54   : > { %p5083_p13 = scmp.ne.s32.totalorder %s5453_s24, %s5082_s22  ;;  %p5091_p10 = scmp.lt.s32.totalorder %s5082_s22, %s5082_s22 }
  0x56   : > { %p5085_p2 = pnand %p5083_p13, %p5043_p3  ;;  %p5092_p12 = por %p5091_p10, %p5090_p8 }
  0x58   : > { %p5086_p5 = pneg %p5085_p2 }
  0x5a   : > { %p5093_p0 = pnand %p5092_p12, %p5086_p5 }
  0x5c   : > { %5096 = shalt.err (!%p5093_p0)
}
  0x5d   : > { %s5294_s6 = smov 64   ;;  %s5295_s26 = smov 4  }
  0x5e   : > { %4422 = dma.hbm_to_vmem [thread:$0]  (!%p5449_p1), %s7281_s3, 24576, %s5453_s24, [#allocation9], %s5294_s6, %s5294_s6, %s5295_s26  }
  0x5f   : > { %s41_s13 = sadd.s32 1, %s5285_s11  ;;  %p55_p3 = scmp.ne.s32.totalorder %s5269_s0, %s5265_s7 }
  0x60   : > { %p7259_p11 = scmp.eq.s32.totalorder %s5289_s12, 0  ;;  %p7258_p4 = scmp.lt.s32.totalorder %s5289_s12, 18 }
  0x61   : > { %s205_s21 = sand.u32 1, %s5269_s0   ;;  %p7282_p6 = scmp.ne.s32.totalorder %s7273_s16, 0 }
  0x62   : > { %p57_p7 = por %p7259_p11, %p55_p3  ;;  %s3824_s19 = sshll.u32 %s205_s21, 7 }
  0x63   : > { %p5513_p9 = por %p7282_p6, %p55_p3  ;;  %s4143_s25 = sshll.u32 %s5285_s11, 11 }
  0x64   : > { %s7285_s1 = sld [smem:[#allocation41_spill]]  ;;  %s209_s24 = scalar_lea.vmem [#allocation5], %s3824_s19 }
  0x65   : > { %s7283_s23 = scalar_select %p5513_p9, 1, 0 }
  0x66   : > { %s216_s6 = sshll.u32 %s209_s24, 4  ;;  %p5527_p1 = pnand %p7258_p4, %p57_p7  ;;  %s5523_s6 = int_to_ptr.vmem [resolvable:$true] %s216_s6 }
  0x67   : > { %7284 = sst [smem:[#allocation23_spill]] %s7283_s23  ;;  %s5531_s26 = scalar_lea.sflag [#allocation6], %s205_s21 }
  0x68   : > { %p5099_p2 = pneg %p5527_p1 }
  0x6a   : > { %s5521_s27 = scalar_lea.hbm %s7285_s1, %s4143_s25  ;;  %s5102_s25 = scalar_lea.hbm %s7285_s1, 12288 }
  0x6b   : > { %s5097_s2 = scalar_lea.hbm %s5521_s27, 2048  ;;  %p5103_p10 = scmp.lt.u32.totalorder %s5521_s27, %s7285_s1 }
  0x6c   : > { %p5098_p13 = scmp.ne.s32.totalorder %s5521_s27, %s5097_s2  ;;  %p5104_p12 = scmp.lt.u32.totalorder %s5102_s25, %s5097_s2 }
  0x6d   : > { %p5106_p3 = scmp.lt.u32.totalorder %s5097_s2, %s5521_s27 }
  0x6e   : > { %p5100_p5 = pnand %p5099_p2, %p5098_p13  ;;  %p5105_p0 = por %p5104_p12, %p5103_p10 }
  0x70   : > { %p5101_p8 = pneg %p5100_p5  ;;  %p5107_p7 = por %p5106_p3, %p5105_p0 }
  0x72   : > { %p5108_p6 = pnand %p5107_p7, %p5101_p8 }
  0x74   : > { %5111 = shalt.err (!%p5108_p6)
}
  0x75   : > { %s5112_s21 = scalar_lea.vmem %s5523_s6, 2048  ;;  %s5296_s28 = smov [#allocation5]  }
  0x76   : > { %p5113_p13 = scmp.ne.s32.totalorder %s5523_s6, %s5112_s21  ;;  %s5117_s19 = sshll.u32 %s5296_s28, 4  ;;  %s5118_s19 = int_to_ptr.vmem [resolvable:$false] %s5117_s19 }
  0x77   : > { %s5119_s22 = scalar_lea.vmem %s5118_s19, 4096  ;;  %p5120_p11 = scmp.lt.s32.totalorder %s5523_s6, %s5118_s19 }
  0x78   : > { %p5115_p5 = pnand %p5113_p13, %p5099_p2  ;;  %p5121_p10 = scmp.lt.s32.totalorder %s5119_s22, %s5112_s21 }
  0x7a   : > { %p5116_p4 = pneg %p5115_p5  ;;  %p5122_p12 = por %p5121_p10, %p5120_p11 }
  0x7c   : > { %p5123_p0 = pnand %p5122_p12, %p5116_p4 }
  0x7e   : > { %5126 = shalt.err (!%p5123_p0)
}
  0x7f   : > { %s5297_s2 = smov 128   ;;  %s5298_s25 = smov 8  }
  0x80   : > { %4426 = dma.hbm_to_vmem [thread:$0]  (!%p5527_p1), %s5521_s27, 2048, %s5523_s6, %s5531_s26, %s5297_s2, %s5297_s2, %s5298_s25  }
  0x81   : > { %s118_s24 = sadd.s32 1, %s5257_s30  ;;  %s38_s21 = sadd.s32 1, %s5281_s10 }
  0x82   : > { %p125_p11 = scmp.ne.s32.totalorder %s5257_s30, %s5253_s29  ;;  %p39_p4 = scmp.ge.s32.totalorder %s38_s21, 3 }
  0x83   : > { %s226_s28 = sand.u32 1, %s5257_s30   ;;  %p7287_p2 = scmp.eq.s32.totalorder %s5289_s12, 0 }
  0x84   : > { %s7354_s21 = smov (%p39_p4, %s38_s21), 0  ;;  %s7356_s13 = smov (!%p39_p4, %s41_s13), %s5285_s11 }
  0x85   : > { %p5566_p8 = por %p125_p11, %p7287_p2  ;;  %7289 = sst [smem:[#allocation24_spill]] %s7354_s21 }
  0x86   : > { %s114_s16 = ssub.s32 %s5281_s10, %s7354_s21  ;;  %s3827_s27 = sshll.u32 %s226_s28, 6 }
  0x87   : > { %p43_p1 = scmp.ge.s32.totalorder %s7356_s13, 6  ;;  %s3829_s6 = sshll.u32 %s5281_s10, 1 }
  0x88   : > { %s4401_s26 = smul.u32 24, %s5285_s11  ;;  %s230_s2 = scalar_lea.vmem [#allocation11], %s3827_s27 }
  0x89   : > { %s7358_s13 = smov (%p43_p1, %s7356_s13), 0  ;;  %s240_s25 = sshll.u32 %s230_s2, 4  ;;  %s5596_s25 = int_to_ptr.vmem [resolvable:$true] %s240_s25 }
  0x8a   : > { %s237_s22 = sadd.s32 %s4401_s26, %s3829_s6  ;;  %s45_s14 = ssub.s32 %s5285_s11, %s7358_s13 }
  0x8b   : > { %s3831_s1 = sshll.u32 %s237_s22, 7  ;;  %p46_p3 = scmp.eq.s32.totalorder %s45_s14, 0 }
  0x8c   : > { %s115_s3 = sor.u32 %s114_s16, %s45_s14  ;;  %s5586_s23 = scalar_lea.hbm %s7249_s4, %s3831_s1 }
  0x8d   : > { %p116_p7 = scmp.eq.s32.totalorder %s115_s3, 0  ;;  %s7290_s9 = sadd.s32 1, %s5269_s0 }
  0x8e   : > { %s5591_s10 = scalar_select %p46_p3, %s5269_s0, %s7290_s9  }
  0x8f   : > { %s5594_s6 = scalar_select %p116_p7, %s5257_s30, %s118_s24  }
  0x90   : > { %p7291_p6 = scmp.lt.s32.totalorder %s5289_s12, 18  ;;  %s5606_s1 = scalar_lea.sflag [#allocation12], %s226_s28 }
  0x91   : > { %s5127_s5 = scalar_lea.hbm %s5586_s23, 1024  ;;  %s5132_s24 = scalar_lea.hbm %s7249_s4, 18432 }
  0x92   : > { %p5602_p13 = pnand %p7291_p6, %p5566_p8  ;;  %p5128_p5 = scmp.ne.s32.totalorder %s5586_s23, %s5127_s5 }
  0x93   : > { %p5133_p11 = scmp.lt.u32.totalorder %s5586_s23, %s7249_s4  ;;  %p5134_p4 = scmp.lt.u32.totalorder %s5132_s24, %s5127_s5 }
  0x94   : > { %p5129_p10 = pneg %p5602_p13  ;;  %p5136_p8 = scmp.lt.u32.totalorder %s5127_s5, %s5586_s23 }
  0x95   : > { %p5135_p2 = por %p5134_p4, %p5133_p11 }
  0x96   : > { %p5130_p12 = pnand %p5129_p10, %p5128_p5 }
  0x97   : > { %p5137_p1 = por %p5136_p8, %p5135_p2 }
  0x98   : > { %p5131_p0 = pneg %p5130_p12 }
  0x9a   : > { %p5138_p3 = pnand %p5137_p1, %p5131_p0 }
  0x9c   : > { %5141 = shalt.err (!%p5138_p3)
}
  0x9d   : > { %s5142_s28 = scalar_lea.vmem %s5596_s25, 1024  ;;  %s5299_s16 = smov [#allocation11]  }
  0x9e   : > { %p5143_p7 = scmp.ne.s32.totalorder %s5596_s25, %s5142_s28  ;;  %s5147_s27 = sshll.u32 %s5299_s16, 4  ;;  %s5148_s27 = int_to_ptr.vmem [resolvable:$false] %s5147_s27 }
  0x9f   : > { %s5149_s26 = scalar_lea.vmem %s5148_s27, 2048  ;;  %p5150_p12 = scmp.lt.s32.totalorder %s5596_s25, %s5148_s27 }
  0xa0   : > { %p5145_p6 = pnand %p5143_p7, %p5129_p10  ;;  %p5151_p11 = scmp.lt.s32.totalorder %s5149_s26, %s5142_s28 }
  0xa2   : > { %p5146_p5 = pneg %p5145_p6  ;;  %p5152_p4 = por %p5151_p11, %p5150_p12 }
  0xa4   : > { %p5153_p2 = pnand %p5152_p4, %p5146_p5 }
  0xa6   : > { %5156 = shalt.err (!%p5153_p2)
}
  0xa7   : > { %s5300_s22 = smov 768   ;;  %s5301_s2 = smov 256  }
  0xa8   : > { %s5302_s5 = smov 16   ;;  %p7293_p10 = scmp.ne.s32.totalorder %s7278_s20, 0 }
  0xa9   : > { %4429 = dma.hbm_to_vmem [thread:$0]  (!%p5602_p13), %s5586_s23, 1024, %s5596_s25, %s5606_s1, %s5300_s22, %s5301_s2, %s5302_s5  }
  0xaa   : > { %252 = sbr.rel (%p7293_p10) target bundleno = 1173 (0x495), region = 36  ;;  %s5637_s9 = sand.u32 (!%p7293_p10), 1, %s5265_s7  }
  0xab   : > { %s3833_s14 = sshll.u32 (!%p7293_p10), %s5637_s9, 7  ;;  %s255_s24 = scalar_lea.sflag (!%p7293_p10), [#allocation6], %s5637_s9 }
  0xac   : > { %s5641_s21 = scalar_lea.vmem (!%p7293_p10), [#allocation5], %s3833_s14  ;;  %p7294_p0 = scmp.ne.s32.totalorder (!%p7293_p10), %s7274_s17, 0 }
  0xb1   : > { %5232 = dma.done.wait (%p7294_p0), %s255_s24, 2048  }
  0xb2   : > { %5234 = vsyncadd (%p7294_p0), %s255_s24, 4294965248  ;;  %p7295_p13 = scmp.ne.s32.totalorder %s7272_s15, 0 }
  0xb4   : > { %5236 = dma.done.wait (%p7295_p13), [#allocation9], 24960  }
  0xb5   : > { %5238 = vsyncadd (%p7295_p13), [#allocation9], 4294942336  ;;  %s271_s20 = sand.u32 1, %s5253_s29   ;;  %p7296_p8 = scmp.ne.s32.totalorder %s7275_s18, 0 }
  0xb6   : > { %s3836_s23 = sshll.u32 %s271_s20, 6  ;;  %s272_s25 = scalar_lea.sflag [#allocation12], %s271_s20 }
  0xb7   : > { %s5652_s3 = scalar_lea.vmem [#allocation11], %s3836_s23 }
  0xb8   : > { %5240 = dma.done.wait (%p7296_p8), %s272_s25, 1024  }
  0xb9   : > { %5242 = vsyncadd (%p7296_p8), %s272_s25, 4294966272  ;;  %s5658_s17 = scalar_lea.vmem [#allocation13], %s3833_s14  ;;  %p3838_p1 = scmp.ne.s32.totalorder %s5273_s8, 0 }
  0xba   : > { %vm318_vm0 = vcmask (!%p3838_p1), 138240   ;;  %v5303_v0 = vmov (!%p3838_p1), 0.0  }
  0xbb   : > { %317 = sbr.rel (%p3838_p1) target bundleno = 219 (0xdb), region = 56  ;;  %319 = vst.msk [vmem:[#allocation2] sm:$0xff] (!%p3838_p1), %vm318_vm0, %v5303_v0  ;;  %320 = vst.msk [vmem:[#allocation2 + $0x8] sm:$0xff] (!%p3838_p1), %vm318_vm0, %v5303_v0 }
  0xbc   : > { %321 = vst.msk [vmem:[#allocation2 + $0x10] sm:$0xff] (!%p3838_p1), %vm318_vm0, %v5303_v0  ;;  %322 = vst.msk [vmem:[#allocation2 + $0x18] sm:$0xff] (!%p3838_p1), %vm318_vm0, %v5303_v0 }
  0xbd   : > { %323 = vst.msk [vmem:[#allocation2 + $0x20] sm:$0xff] (!%p3838_p1), %vm318_vm0, %v5303_v0  ;;  %324 = vst.msk [vmem:[#allocation2 + $0x28] sm:$0xff] (!%p3838_p1), %vm318_vm0, %v5303_v0 }
  0xbe   : > { %325 = vst.msk [vmem:[#allocation2 + $0x30] sm:$0xff] (!%p3838_p1), %vm318_vm0, %v5303_v0  ;;  %326 = vst.msk [vmem:[#allocation2 + $0x38] sm:$0xff] (!%p3838_p1), %vm318_vm0, %v5303_v0 }
  0xbf   : > { %327 = vst.msk [vmem:[#allocation2 + $0x40] sm:$0xff] (!%p3838_p1), %vm318_vm0, %v5303_v0  ;;  %328 = vst.msk [vmem:[#allocation2 + $0x48] sm:$0xff] (!%p3838_p1), %vm318_vm0, %v5303_v0 }
  0xc0   : > { %329 = vst.msk [vmem:[#allocation2 + $0x50] sm:$0xff] (!%p3838_p1), %vm318_vm0, %v5303_v0  ;;  %330 = vst.msk [vmem:[#allocation2 + $0x58] sm:$0xff] (!%p3838_p1), %vm318_vm0, %v5303_v0 }
  0xc1   : > { %331 = vst.msk [vmem:[#allocation2 + $0x60] sm:$0xff] (!%p3838_p1), %vm318_vm0, %v5303_v0  ;;  %332 = vst.msk [vmem:[#allocation2 + $0x68] sm:$0xff] (!%p3838_p1), %vm318_vm0, %v5303_v0 }
  0xc2   : > { %333 = vst.msk [vmem:[#allocation2 + $0x70] sm:$0xff] %vm318_vm0, %v5303_v0  ;;  %334 = vst.msk [vmem:[#allocation2 + $0x78] sm:$0xff] %vm318_vm0, %v5303_v0 }
  0xc3   : > { %335 = vst.msk [vmem:[#allocation2 + $0x80] sm:$0xff] %vm318_vm0, %v5303_v0  ;;  %336 = vst.msk [vmem:[#allocation2 + $0x88] sm:$0xff] %vm318_vm0, %v5303_v0 }
  0xc4   : > { %337 = vst.msk [vmem:[#allocation2 + $0x90] sm:$0xff] %vm318_vm0, %v5303_v0  ;;  %338 = vst.msk [vmem:[#allocation2 + $0x98] sm:$0xff] %vm318_vm0, %v5303_v0 }
  0xc5   : > { %339 = vst.msk [vmem:[#allocation2 + $0xa0] sm:$0xff] %vm318_vm0, %v5303_v0  ;;  %340 = vst.msk [vmem:[#allocation2 + $0xa8] sm:$0xff] %vm318_vm0, %v5303_v0 }
  0xc6   : > { %341 = vst.msk [vmem:[#allocation2 + $0xb0] sm:$0xff] %vm318_vm0, %v5303_v0  ;;  %342 = vst.msk [vmem:[#allocation2 + $0xb8] sm:$0xff] %vm318_vm0, %v5303_v0 }
  0xc7   : > { %343 = vst.msk [vmem:[#allocation2 + $0xc0] sm:$0xff] %vm318_vm0, %v5303_v0  ;;  %344 = vst.msk [vmem:[#allocation2 + $0xc8] sm:$0xff] %vm318_vm0, %v5303_v0 }
  0xc8   : > { %345 = vst.msk [vmem:[#allocation2 + $0xd0] sm:$0xff] %vm318_vm0, %v5303_v0  ;;  %346 = vst.msk [vmem:[#allocation2 + $0xd8] sm:$0xff] %vm318_vm0, %v5303_v0 }
  0xc9   : > { %347 = vst.msk [vmem:[#allocation2 + $0xe0] sm:$0xff] %vm318_vm0, %v5303_v0  ;;  %348 = vst.msk [vmem:[#allocation2 + $0xe8] sm:$0xff] %vm318_vm0, %v5303_v0 }
  0xca   : > { %349 = vst.msk [vmem:[#allocation2 + $0xf0] sm:$0xff] %vm318_vm0, %v5303_v0  ;;  %350 = vst.msk [vmem:[#allocation2 + $0xf8] sm:$0xff] %vm318_vm0, %v5303_v0 }
  0xcb   : > { %351 = vst.msk [vmem:[#allocation2 + $0x100] sm:$0xff] %vm318_vm0, %v5303_v0  ;;  %352 = vst.msk [vmem:[#allocation2 + $0x108] sm:$0xff] %vm318_vm0, %v5303_v0 }
  0xcc   : > { %353 = vst.msk [vmem:[#allocation2 + $0x110] sm:$0xff] %vm318_vm0, %v5303_v0  ;;  %354 = vst.msk [vmem:[#allocation2 + $0x118] sm:$0xff] %vm318_vm0, %v5303_v0 }
  0xcd   : > { %355 = vst.msk [vmem:[#allocation2 + $0x120] sm:$0xff] %vm318_vm0, %v5303_v0  ;;  %356 = vst.msk [vmem:[#allocation2 + $0x128] sm:$0xff] %vm318_vm0, %v5303_v0 }
  0xce   : > { %357 = vst.msk [vmem:[#allocation2 + $0x130] sm:$0xff] %vm318_vm0, %v5303_v0  ;;  %358 = vst.msk [vmem:[#allocation2 + $0x138] sm:$0xff] %vm318_vm0, %v5303_v0 }
  0xcf   : > { %359 = vst.msk [vmem:[#allocation2 + $0x140] sm:$0xff] %vm318_vm0, %v5303_v0  ;;  %360 = vst.msk [vmem:[#allocation2 + $0x148] sm:$0xff] %vm318_vm0, %v5303_v0 }
  0xd0   : > { %361 = vst.msk [vmem:[#allocation2 + $0x150] sm:$0xff] %vm318_vm0, %v5303_v0  ;;  %362 = vst.msk [vmem:[#allocation2 + $0x158] sm:$0xff] %vm318_vm0, %v5303_v0 }
  0xd1   : > { %363 = vst.msk [vmem:[#allocation2 + $0x160] sm:$0xff] %vm318_vm0, %v5303_v0  ;;  %364 = vst.msk [vmem:[#allocation2 + $0x168] sm:$0xff] %vm318_vm0, %v5303_v0 }
  0xd2   : > { %365 = vst.msk [vmem:[#allocation2 + $0x170] sm:$0xff] %vm318_vm0, %v5303_v0  ;;  %366 = vst.msk [vmem:[#allocation2 + $0x178] sm:$0xff] %vm318_vm0, %v5303_v0 }
  0xd3   : > { %367 = vst.msk [vmem:[#allocation2 + $0x180] sm:$0xff] %vm318_vm0, %v5303_v0  ;;  %368 = vst.msk [vmem:[#allocation2 + $0x188] sm:$0xff] %vm318_vm0, %v5303_v0 }
  0xd4   : > { %369 = vst.msk [vmem:[#allocation2 + $0x190] sm:$0xff] %vm318_vm0, %v5303_v0  ;;  %370 = vst.msk [vmem:[#allocation2 + $0x198] sm:$0xff] %vm318_vm0, %v5303_v0 }
  0xd5   : > { %371 = vst.msk [vmem:[#allocation2 + $0x1a0] sm:$0xff] %vm318_vm0, %v5303_v0  ;;  %372 = vst.msk [vmem:[#allocation2 + $0x1a8] sm:$0xff] %vm318_vm0, %v5303_v0 }
  0xd6   : > { %373 = vst.msk [vmem:[#allocation2 + $0x1b0] sm:$0xff] %vm318_vm0, %v5303_v0  ;;  %374 = vst.msk [vmem:[#allocation2 + $0x1b8] sm:$0xff] %vm318_vm0, %v5303_v0 }
  0xd7   : > { %375 = vst.msk [vmem:[#allocation2 + $0x1c0] sm:$0xff] %vm318_vm0, %v5303_v0  ;;  %376 = vst.msk [vmem:[#allocation2 + $0x1c8] sm:$0xff] %vm318_vm0, %v5303_v0 }
  0xd8   : > { %377 = vst.msk [vmem:[#allocation2 + $0x1d0] sm:$0xff] %vm318_vm0, %v5303_v0  ;;  %378 = vst.msk [vmem:[#allocation2 + $0x1d8] sm:$0xff] %vm318_vm0, %v5303_v0 }
  0xd9   : > { %379 = vst.msk [vmem:[#allocation2 + $0x1e0] sm:$0xff] %vm318_vm0, %v5303_v0  ;;  %380 = vst.msk [vmem:[#allocation2 + $0x1e8] sm:$0xff] %vm318_vm0, %v5303_v0 }
  0xda   : > { %381 = vst.msk [vmem:[#allocation2 + $0x1f0] sm:$0xff] %vm318_vm0, %v5303_v0  ;;  %382 = vst.msk [vmem:[#allocation2 + $0x1f8] sm:$0xff] %vm318_vm0, %v5303_v0 }
  0xdb PF: > { %s7297_s15 = sld [smem:[#allocation20_spill]] }
  0xe1   : > { %s383_s18 = smul.u32 3, %s7297_s15 }
  0xe3   : > { %s384_s1 = sadd.s32 %s5273_s8, %s383_s18 }
  0xe4   : > { %s385_s19 = sld [smem:[#allocation4 + %s384_s1]] }
  0xea   : > { %p3839_p3 = scmp.le.s32.totalorder %s385_s19, 0 }
  0xeb   : > { %v409_v1 = vld [vmem:[%s5641_s21 + $0x10] sm:$0xff] (!%p3839_p3)  ;;  %v410_v2 = vld [vmem:[%s5641_s21 + $0x18] sm:$0xff] (!%p3839_p3)  ;;  %v407_v3 = vld [vmem:[%s5641_s21] sm:$0xff] (!%p3839_p3)  ;;  %v5304_v4 = vmov (!%p3839_p3), 0   ;;  %s3840_s28 = sshll.u32 (!%p3839_p3), %s5273_s8, 8  ;;  %v5305_v11 = vmov (!%p3839_p3), 1   ;;  %v437_v63 = vlaneseq (!%p3839_p3) }
  0xec   : > { %389 = sbr.rel (%p3839_p3) target bundleno = 734 (0x2de), region = 60  ;;  %4551 = vset.pattern.permute.xlu1 (!%p3839_p3), %v5304_v4  ;;  %4549 = vset.pattern.permute.xlu0 (!%p3839_p3), %v5304_v4  ;;  %v5796_v5 = vpack.c.bf16 (!%p3839_p3), %v410_v2, %v409_v1  ;;  %v408_v6 = vld [vmem:[%s5641_s21 + $0x8] sm:$0xff] (!%p3839_p3)  ;;  %s727_s16 = sshra.s32 (!%p3839_p3), %s3840_s28, 3  ;;  %v1009_v8 = vld [vmem:[%s5641_s21 + $0x20] sm:$0xff] (!%p3839_p3)  ;;  %v1011_v13 = vld [vmem:[%s5641_s21 + $0x30] sm:$0xff] (!%p3839_p3)  ;;  %v5306_v57 = vmov (!%p3839_p3), 2  }
  0xed   : > { %v5800_v7 = vpack.c.bf16 (!%p3839_p3), %v408_v6, %v407_v3  ;;  %s3842_s27 = sshll.u32 (!%p3839_p3), %s727_s16, 2  ;;  %v1010_v9 = vld [vmem:[%s5641_s21 + $0x28] sm:$0xff] (!%p3839_p3)  ;;  %v1012_v14 = vld [vmem:[%s5641_s21 + $0x38] sm:$0xff] (!%p3839_p3)  ;;  %v1013_v20 = vld [vmem:[%s5641_s21 + $0x40] sm:$0xff] (!%p3839_p3)  ;;  %v5307_v58 = vmov (!%p3839_p3), 3   ;;  %s431_s22 = sshra.s32 (!%p3839_p3), %s3840_s28, 7 }
  0xee   : > { %456 = vperm.xlu1 (!%p3839_p3), %4551, %v5796_v5   ;;  %s5808_s26 = scalar_lea.vmem (!%p3839_p3), [#allocation10], %s3842_s27  ;;  %v5817_v16 = vpack.c.bf16 (!%p3839_p3), %v1010_v9, %v1009_v8  ;;  %v1014_v21 = vld [vmem:[%s5641_s21 + $0x48] sm:$0xff] (!%p3839_p3)  ;;  %v5828_v23 = vpack.c.bf16 (!%p3839_p3), %v1012_v14, %v1011_v13  ;;  %v1015_v27 = vld [vmem:[%s5641_s21 + $0x50] sm:$0xff] (!%p3839_p3)  ;;  %v1016_v28 = vld [vmem:[%s5641_s21 + $0x58] sm:$0xff] (!%p3839_p3)  ;;  %v438_v0 = vshrl.u32 (!%p3839_p3), %v437_v63, 7  ;;  %s3841_s2 = sshll.u32 (!%p3839_p3), %s431_s22, 2 }
  0xef   : > { %451 = vperm.xlu0 (!%p3839_p3), %4549, %v5800_v7   ;;  %v4565_v10 = vld [vmem:[%s5808_s26 + $0x40] sm:$0xff] (!%p3839_p3)   ;;  %v4567_v15 = vld [vmem:[%s5808_s26 + $0x48] sm:$0xff] (!%p3839_p3)   ;;  %v4571_v22 = vld [vmem:[%s5808_s26 + $0x50] sm:$0xff] (!%p3839_p3)   ;;  %v5838_v30 = vpack.c.bf16 (!%p3839_p3), %v1014_v21, %v1013_v20  ;;  %v5848_v37 = vpack.c.bf16 (!%p3839_p3), %v1016_v28, %v1015_v27  ;;  %s5897_s5 = scalar_lea.vmem (!%p3839_p3), [#allocation8], %s3841_s2 }
  0xf0   : > { %v4566_v12 = vld [vmem:[%s5808_s26] sm:$0xff] (!%p3839_p3)   ;;  %4145 = vmatprep.subr.bf16.mxu0 (!%p3839_p3), %v4565_v10  ;;  %v4569_v18 = vld [vmem:[%s5808_s26 + $0x8] sm:$0xff] (!%p3839_p3)   ;;  %v4573_v25 = vld [vmem:[%s5808_s26 + $0x10] sm:$0xff] (!%p3839_p3)   ;;  %v5895_v1 = vsub.s32 (!%p3839_p3), 0, %v438_v0  ;;  %v443_v2 = vsub.s32 (!%p3839_p3), 1, %v438_v0 }
  0xf1   : > { %v4568_v17 = vld [vmem:[%s5808_s26 + $0x1c0] sm:$0xff] (!%p3839_p3)   ;;  %4146 = vmatpush3.bf16.msra.mxu0 (!%p3839_p3), %v4566_v12  ;;  %v4572_v24 = vld [vmem:[%s5808_s26 + $0x1c8] sm:$0xff] (!%p3839_p3)   ;;  %v4575_v29 = vld [vmem:[%s5808_s26 + $0x58] sm:$0xff] (!%p3839_p3)  }
  0xf2   : > { %4552 = vset.pattern.permute.xlu1 (!%p3839_p3), %v5305_v11  ;;  %4147 = vmatprep.subr.bf16.mxu0 (!%p3839_p3), %v4567_v15  ;;  %v4570_v19 = vld [vmem:[%s5808_s26 + $0x180] sm:$0xff] (!%p3839_p3)   ;;  %v4574_v26 = vld [vmem:[%s5808_s26 + $0x188] sm:$0xff] (!%p3839_p3)   ;;  %v4576_v31 = vld [vmem:[%s5808_s26 + $0x1d0] sm:$0xff] (!%p3839_p3)  }
  0xf3   : > { %4550 = vset.pattern.permute.xlu0 %v5305_v11  ;;  %1051 = vperm.xlu1 %4552, %v5796_v5   ;;  %v4577_v32 = vld [vmem:[%s5808_s26 + $0x18] sm:$0xff]   ;;  %v4578_v33 = vld [vmem:[%s5808_s26 + $0x190] sm:$0xff]   ;;  %v1017_v34 = vld [vmem:[%s5641_s21 + $0x60] sm:$0xff] }
  0xf4   : > { %1046 = vperm.xlu0 %4550, %v5800_v7   ;;  %4209 = vmatprep.subr.bf16.mxu1 %v4568_v17  ;;  %v1018_v35 = vld [vmem:[%s5641_s21 + $0x68] sm:$0xff]  ;;  %v4579_v36 = vld [vmem:[%s5808_s26 + $0x60] sm:$0xff]   ;;  %v4580_v38 = vld [vmem:[%s5808_s26 + $0x1d8] sm:$0xff]  }
  0xf5   : > { %4148 = vmatpush3.bf16.msra.mxu0 %v4569_v18  ;;  %4210 = vmatpush3.bf16.msra.mxu1 %v4570_v19  ;;  %v4581_v39 = vld [vmem:[%s5808_s26 + $0x20] sm:$0xff]   ;;  %v4582_v40 = vld [vmem:[%s5808_s26 + $0x198] sm:$0xff]   ;;  %v1019_v41 = vld [vmem:[%s5641_s21 + $0x70] sm:$0xff]  ;;  %v5858_v44 = vpack.c.bf16 %v1018_v35, %v1017_v34 }
  0xf6   : > { %4149 = vmatprep.subr.bf16.mxu0 %v4571_v22  ;;  %4211 = vmatprep.subr.bf16.mxu1 %v4572_v24  ;;  %v1020_v42 = vld [vmem:[%s5641_s21 + $0x78] sm:$0xff]  ;;  %v4583_v43 = vld [vmem:[%s5808_s26 + $0x68] sm:$0xff]   ;;  %v4584_v45 = vld [vmem:[%s5808_s26 + $0x1e0] sm:$0xff]  }
  0xf7   : > { %4553 = vset.pattern.permute.xlu1 %v5304_v4  ;;  %v4585_v46 = vld [vmem:[%s5808_s26 + $0x28] sm:$0xff]   ;;  %v4586_v47 = vld [vmem:[%s5808_s26 + $0x1a0] sm:$0xff]   ;;  %v4587_v48 = vld [vmem:[%s5808_s26 + $0x70] sm:$0xff]   ;;  %v5866_v49 = vpack.c.bf16 %v1020_v42, %v1019_v41 }
  0xf8   : > { %1056 = vperm.xlu0 %4550, %v5817_v16   ;;  %461 = vperm.xlu1 %4553, %v5817_v16   ;;  %v4588_v50 = vld [vmem:[%s5808_s26 + $0x1e8] sm:$0xff]   ;;  %v4589_v51 = vld [vmem:[%s5808_s26 + $0x30] sm:$0xff]   ;;  %v4591_v53 = vld [vmem:[%s5808_s26 + $0x78] sm:$0xff]  }
  0xf9   : > { %4150 = vmatpush3.bf16.msra.mxu0 %v4573_v25  ;;  %4212 = vmatpush3.bf16.msra.mxu1 %v4574_v26  ;;  %v4590_v52 = vld [vmem:[%s5808_s26 + $0x1a8] sm:$0xff]   ;;  %v4592_v54 = vld [vmem:[%s5808_s26 + $0x1f0] sm:$0xff]   ;;  %v4593_v55 = vld [vmem:[%s5808_s26 + $0x38] sm:$0xff]  }
  0xfa   : > { %4151 = vmatprep.subr.bf16.mxu0 %v4575_v29  ;;  %4213 = vmatprep.subr.bf16.mxu1 %v4576_v31  ;;  %v4594_v56 = vld [vmem:[%s5808_s26 + $0x1b0] sm:$0xff]   ;;  %v4595_v59 = vld [vmem:[%s5808_s26 + $0x1f8] sm:$0xff]   ;;  %v4597_v61 = vld [vmem:[%s5808_s26 + $0x340] sm:$0xff]  }
  0xfb   : > { %v4596_v60 = vld [vmem:[%s5808_s26 + $0x1b8] sm:$0xff]   ;;  %v4598_v62 = vld [vmem:[%s5808_s26 + $0x4c0] sm:$0xff]   ;;  %v392_v24 = vld [vmem:[%s5652_s3 + $0x10] sm:$0xff] }
  0xfc   : > { %1061 = vperm.xlu0 %4550, %v5828_v23   ;;  %466 = vperm.xlu1 %4553, %v5828_v23   ;;  %v3941_v3 = vld [vmem:[%s5897_s5 + $0x2] ss:$4 sm:$0x3]  ;;  %v4007_v10 = vld [vmem:[%s5897_s5 + $0x3] ss:$4 sm:$0x3]  ;;  %vm400_vm3 = vnez %v392_v24 }
  0xfd   : > { %4152 = vmatpush3.bf16.msra.mxu0 %v4577_v32  ;;  %4214 = vmatpush3.bf16.msra.mxu1 %v4578_v33  ;;  %v1537_v6 = vrot.slane %v3941_v3, %v443_v2  ;;  %v2031_v12 = vrot.slane %v4007_v10, %v5895_v1  ;;  %v2035_v14 = vrot.slane %v4007_v10, %v443_v2  ;;  %v390_v22 = vld [vmem:[%s5652_s3] sm:$0xff]  ;;  %v393_v25 = vld [vmem:[%s5652_s3 + $0x18] sm:$0xff]  ;;  %v435_v28 = vld [vmem:[%s5897_s5] ss:$4 sm:$0x3] }
  0xfe   : > { %4153 = vmatprep.subr.bf16.mxu0 %v4579_v36  ;;  %4215 = vmatprep.subr.bf16.mxu1 %v4580_v38  ;;  %vm398_vm1 = vnez %v390_v22  ;;  %vm401_vm4 = vnez %v393_v25  ;;  %v3875_v29 = vld [vmem:[%s5897_s5 + $0x1] ss:$4 sm:$0x3]  ;;  %v440_v31 = vrot.slane %v435_v28, %v5895_v1  ;;  %v444_v32 = vrot.slane %v435_v28, %v443_v2 }
  0xff   : > { %v1541_v8 = vpack.c.bf16 %v1537_v6, %v1537_v6  ;;  %v2039_v17 = vpack.c.bf16 %v2035_v14, %v2035_v14  ;;  %v615_v26 = vsel %vm398_vm1, 16843009, %v5304_v4  ;;  %v617_v33 = vsel %vm400_vm3, 16843009, %v5304_v4 }
 0x100   : > { %1066 = vperm.xlu0 %4550, %v5838_v30   ;;  %471 = vperm.xlu1 %4553, %v5838_v30   ;;  %v618_v34 = vsel %vm401_vm4, 16843009, %v5304_v4  ;;  %v1035_v35 = vrot.slane %v3875_v29, %v5895_v1  ;;  %v1039_v36 = vrot.slane %v3875_v29, %v443_v2  ;;  %v394_v2 = vld [vmem:[%s5652_s3 + $0x20] sm:$0xff] }
 0x101   : > { %4154 = vmatpush3.bf16.msra.mxu0 %v4581_v39  ;;  %4216 = vmatpush3.bf16.msra.mxu1 %v4582_v40  ;;  %v1590_v11 = vpack.i.b16 %v1541_v8, %v1541_v8  ;;  %v2088_v19 = vpack.i.b16 %v2039_v17, %v2039_v17  ;;  %v625_v38 = vcombine.low %v617_v33, %v618_v34 }
 0x102   : > { %4155 = vmatprep.subr.bf16.mxu0 %v4583_v43  ;;  %4217 = vmatprep.subr.bf16.mxu1 %v4584_v45  ;;  %v447_v39 = vpack.c.bf16 %v440_v31, %v440_v31  ;;  %v448_v40 = vpack.c.bf16 %v444_v32, %v444_v32  ;;  %v1042_v41 = vpack.c.bf16 %v1035_v35, %v1035_v35 }
 0x103   : > { %v5909_v15 = vrot.slane %v1590_v11, %v5895_v1  ;;  %v5916_v21 = vrot.slane %v2088_v19, %v5895_v1  ;;  %v1043_v42 = vpack.c.bf16 %v1039_v36, %v1039_v36  ;;  %vm633_vm7 = vnez %v625_v38 }
 0x104   : > { %1071 = vperm.xlu0 %4550, %v5848_v37   ;;  %476 = vperm.xlu1 %4553, %v5848_v37   ;;  %v497_v45 = vpack.i.b16 %v448_v40, %v448_v40  ;;  %vm402_vm9 = vnez %v394_v2 }
 0x105   : > { %4156 = vmatpush3.bf16.msra.mxu0 %v4585_v46  ;;  %4218 = vmatpush3.bf16.msra.mxu1 %v4586_v47  ;;  %v626_v47 = vcombine.high %v617_v33, %v618_v34  ;;  %v5971_v35 = vsel %vm402_vm9, 16843009, %v5304_v4 }
 0x106   : > { %4157 = vmatprep.subr.bf16.mxu0 %v4587_v48  ;;  %4219 = vmatprep.subr.bf16.mxu1 %v4588_v50  ;;  %v1085_v48 = vpack.i.b16 %v1042_v41, %v1042_v41 }
 0x107   : > { %vm634_vm8 = vnez %v626_v47 }
 0x108   : > { %1076 = vperm.xlu0 %4550, %v5858_v44   ;;  %481 = vperm.xlu1 %4553, %v5858_v44  }
 0x109   : > { %4158 = vmatpush3.bf16.msra.mxu0 %v4589_v51  ;;  %4220 = vmatpush3.bf16.msra.mxu1 %v4590_v52 }
 0x10a   : > { %4159 = vmatprep.subr.bf16.mxu0 %v4591_v53  ;;  %4221 = vmatprep.subr.bf16.mxu1 %v4592_v54  ;;  %v641_v54 = vsel %vm633_vm7, 16843009, %v5304_v4 }
 0x10b   : > { %v659_v63 = vunpack.c.1.s8 %v641_v54  ;;  %v660_v0 = vunpack.c.0.s8 %v641_v54 }
 0x10c   : > { %1081 = vperm.xlu0 %4550, %v5866_v49   ;;  %486 = vperm.xlu1 %4553, %v5866_v49  }
 0x10d   : > { %4160 = vmatpush3.bf16.msra.mxu0 %v4593_v55  ;;  %4222 = vmatpush3.bf16.msra.mxu1 %v4594_v56  ;;  %v5965_v22 = vpack.c.b16 %v659_v63, %v660_v0 }
 0x10e   : > { %4223 = vmatprep.subr.bf16.mxu1 %v4595_v59  ;;  %4273 = vmatprep.subr.bf16.mxu0 %v4597_v61  ;;  %v662_v61 = vunpack.c.3.s8 %v641_v54 }
 0x10f   : > { %vm699_vm4 = vcmp.ne.s16.totalorder %v5965_v22, 0 }
 0x110   : > { %4554 = vset.pattern.permute.xlu1 %v5306_v57  ;;  %4555 = vset.pattern.permute.xlu0 %v5307_v58 }
 0x111   : > { %1544 = vperm.xlu1 %4554, %v5800_v7   ;;  %2042 = vperm.xlu0 %4555, %v5800_v7  }
 0x112   : > { %4224 = vmatpush3.bf16.msra.mxu1 %v4596_v60  ;;  %v5938_v60 = vrot.slane %v497_v45, %v5895_v1 }
 0x113   : > { %4337 = vmatprep.subr.bf16.mxu1 %v4598_v62  ;;  %v663_v62 = vunpack.c.2.s8 %v641_v54 }
 0x115   : > { %1549 = vperm.xlu1 %4554, %v5796_v5   ;;  %4557 = vset.pattern.permute.xlu0 %v5306_v57  ;;  %v5963_v19 = vpack.c.b16 %v662_v61, %v663_v62 }
 0x116   : > { %1554 = vperm.xlu0 %4557, %v5817_v16  }
 0x117   : > { %vm700_vm1 = vcmp.ne.s16.totalorder %v5963_v19, 0 }
 0x119   : > { %4556 = vset.pattern.permute.xlu1 %v5307_v58 }
 0x11a   : > { %2047 = vperm.xlu1 %4556, %v5796_v5   ;;  %4559 = vset.pattern.permute.xlu0 %v5307_v58  ;;  %v1533_v5 = vrot.slane %v3941_v3, %v5895_v1  ;;  %v395_v3 = vld [vmem:[%s5652_s3 + $0x28] sm:$0xff] }
 0x11b   : > { %2057 = vperm.xlu0 %4559, %v5828_v23   ;;  %vm403_vm10 = vnez %v395_v3 }
 0x11c   : > { %v1540_v7 = vpack.c.bf16 %v1533_v5, %v1533_v5  ;;  %v5943_v5 = vrot.slane %v1085_v48, %v5895_v1 }
 0x11e   : > { %2052 = vperm.xlu1 %4556, %v5817_v16   ;;  %v1583_v9 = vpack.i.b16 %v1540_v7, %v1540_v7  ;;  %v2038_v16 = vpack.c.bf16 %v2031_v12, %v2031_v12  ;;  %v5957_v12 = vsel %vm634_vm8, 16843009, %v5304_v4 }
 0x11f   : > { %4561 = vset.pattern.permute.xlu0 %v5306_v57  ;;  %v668_v25 = vunpack.c.3.s8 %v5957_v12  ;;  %v665_v48 = vunpack.c.1.s8 %v5957_v12 }
 0x120   : > { %1569 = vperm.xlu0 %4561, %v5848_v37   ;;  %v5906_v13 = vrot.slane %v1583_v9, %v5895_v1  ;;  %v2081_v18 = vpack.i.b16 %v2038_v16, %v2038_v16 }
 0x122   : > { %4558 = vset.pattern.permute.xlu1 %v5306_v57  ;;  %v5913_v20 = vrot.slane %v2081_v18, %v5895_v1 }
 0x123   : > { %1559 = vperm.xlu1 %4558, %v5828_v23   ;;  %v391_v23 = vld [vmem:[%s5652_s3 + $0x8] sm:$0xff] }
 0x124   : > { %4563 = vset.pattern.permute.xlu0 %v5307_v58  ;;  %vm399_vm2 = vnez %v391_v23 }
 0x125   : > { %2072 = vperm.xlu0 %4563, %v5858_v44   ;;  %v616_v27 = vsel %vm399_vm2, 16843009, %v5304_v4 }
 0x127   : > { %1564 = vperm.xlu1 %4558, %v5838_v30  }
 0x12b   : > { %4560 = vset.pattern.permute.xlu1 %v5307_v58 }
 0x12c   : > { %2062 = vperm.xlu1 %4560, %v5838_v30   ;;  %v623_v30 = vcombine.low %v615_v26, %v616_v27 }
 0x12e   : > { %vm631_vm5 = vnez %v623_v30 }
 0x12f   : > { %v639_v43 = vsel %vm631_vm5, 16843009, %v5304_v4 }
 0x130   : > { %2067 = vperm.xlu1 %4560, %v5848_v37   ;;  %v624_v37 = vcombine.high %v615_v26, %v616_v27  ;;  %v650_v50 = vunpack.c.3.s8 %v639_v43  ;;  %v651_v51 = vunpack.c.2.s8 %v639_v43  ;;  %v647_v52 = vunpack.c.1.s8 %v639_v43 }
 0x131   : > { %v648_v53 = vunpack.c.0.s8 %v639_v43  ;;  %v669_v26 = vunpack.c.2.s8 %v5957_v12 }
 0x132   : > { %vm632_vm6 = vnez %v624_v37  ;;  %v5948_v7 = vpack.c.b16 %v650_v50, %v651_v51 }
 0x133   : > { %v640_v46 = vsel %vm632_vm6, 16843009, %v5304_v4  ;;  %v5950_v9 = vpack.c.b16 %v647_v52, %v648_v53 }
 0x134   : > { %4562 = vset.pattern.permute.xlu1 %v5306_v57  ;;  %v656_v55 = vunpack.c.3.s8 %v640_v46  ;;  %v657_v56 = vunpack.c.2.s8 %v640_v46  ;;  %v653_v57 = vunpack.c.1.s8 %v640_v46  ;;  %vm696_vm11 = vcmp.ne.s16.totalorder %v5948_v7, 0 }
 0x135   : > { %1574 = vperm.xlu1 %4562, %v5858_v44   ;;  %v490_v44 = vpack.i.b16 %v447_v39, %v447_v39  ;;  %vm695_vm12 = vcmp.ne.s16.totalorder %v5950_v9, 0 }
 0x136   : > { %v5952_v10 = vpack.c.b16 %v656_v55, %v657_v56 }
 0x137   : > { %v5935_v59 = vrot.slane %v490_v44, %v5895_v1  ;;  %v620_v44 = vsel %vm403_vm10, 16843009, %v5304_v4 }
 0x138   : > { %v627_v2 = vcombine.low %v5971_v35, %v620_v44  ;;  %vm698_vm13 = vcmp.ne.s16.totalorder %v5952_v10, 0 }
 0x139   : > { %1579 = vperm.xlu1 %4562, %v5866_v49  }
 0x13a   : > { %vm635_vm14 = vnez %v627_v2 }
 0x13d   : > { %4564 = vset.pattern.permute.xlu1 %v5307_v58  ;;  %v654_v58 = vunpack.c.0.s8 %v640_v46 }
 0x13e   : > { %2077 = vperm.xlu1 %4564, %v5866_v49   ;;  %v1092_v49 = vpack.i.b16 %v1043_v42, %v1043_v42 }
 0x13f   : > { %v5954_v11 = vpack.c.b16 %v653_v57, %v654_v58 }
 0x140   : > { %v5946_v6 = vrot.slane %v1092_v49, %v5895_v1 }
 0x141   : > { %vm697_vm0 = vcmp.ne.s16.totalorder %v5954_v11, 0 }
 0x16d   : > { %v457_v8 = vpop.permute.xlu1 %456 }
 0x16e   : > { %v452_v14 = vpop.permute.xlu0 %451  ;;  %v505_v16 = vadd.bf16 %v5935_v59, %v457_v8  ;;  %v506_v17 = vadd.bf16 %v5938_v60, %v457_v8 }
 0x16f   : > { %v503_v1 = vadd.bf16 %v5935_v59, %v452_v14  ;;  %v504_v18 = vadd.bf16 %v5938_v60, %v452_v14 }
 0x170   : > { %v522_v23 = vsub.bf16 0, %v506_v17  ;;  %v538_v24 = vmul.bf16 3192766029, %v506_v17  ;;  %v521_v31 = vsub.bf16 0, %v505_v16  ;;  %v537_v32 = vmul.bf16 3192766029, %v505_v16 }
 0x171   : > { %v519_v27 = vsub.bf16 0, %v503_v1  ;;  %v520_v28 = vsub.bf16 0, %v504_v18  ;;  %v535_v29 = vmul.bf16 3192766029, %v503_v1  ;;  %v536_v30 = vmul.bf16 3192766029, %v504_v18 }
 0x172   : > { %v554_v33 = vmin.bf16 %v538_v24, %v522_v23  ;;  %v1052_v34 = vpop.permute.xlu1 %1051  ;;  %v553_v49 = vmin.bf16 %v537_v32, %v521_v31  ;;  %v628_v16 = vcombine.high %v5971_v35, %v620_v44  ;;  %v666_v32 = vunpack.c.0.s8 %v5957_v12 }
 0x173   : > { %v551_v36 = vmin.bf16 %v535_v29, %v519_v27  ;;  %v552_v37 = vmin.bf16 %v536_v30, %v520_v28  ;;  %v1047_v38 = vpop.permute.xlu0 %1046  ;;  %v1100_v39 = vadd.bf16 %v5943_v5, %v1052_v34  ;;  %v1101_v40 = vadd.bf16 %v5946_v6, %v1052_v34 }
 0x174   : > { %v577_v41 = vmul.bf16 1069105081, %v554_v33  ;;  %v1098_v42 = vadd.bf16 %v5943_v5, %v1047_v38  ;;  %v1099_v43 = vadd.bf16 %v5946_v6, %v1047_v38  ;;  %v574_v3 = vmul.bf16 1069105081, %v553_v49 }
 0x175   : > { %v568_v45 = vmul.bf16 1069105081, %v551_v36  ;;  %v571_v46 = vmul.bf16 1069105081, %v552_v37  ;;  %v1117_v47 = vsub.bf16 0, %v1101_v40  ;;  %v1116_v54 = vsub.bf16 0, %v1100_v39 }
 0x176   : > { %v1114_v50 = vsub.bf16 0, %v1098_v42  ;;  %v1115_v51 = vsub.bf16 0, %v1099_v43  ;;  %v1130_v52 = vmul.bf16 3192766029, %v1098_v42  ;;  %v1131_v53 = vmul.bf16 3192766029, %v1099_v43 }
 0x177   : > { %4629 = vpow.bf16 %v568_v45  ;;  %v1133_v55 = vmul.bf16 3192766029, %v1101_v40  ;;  %v1057_v56 = vpop.permute.xlu0 %1056  ;;  %v1132_v58 = vmul.bf16 3192766029, %v1100_v39  ;;  %v462_v0 = vpop.permute.xlu1 %461  ;;  %vm5991_vm15 = vnez %v628_v16 }
 0x178   : > { %4631 = vpow.bf16 %v571_v46  ;;  %v1146_v57 = vmin.bf16 %v1130_v52, %v1114_v50  ;;  %v1103_v61 = vadd.bf16 %v5946_v6, %v1057_v56  ;;  %v1147_v62 = vmin.bf16 %v1131_v53, %v1115_v51  ;;  %v4599_v53 = vld [vmem:[%s5808_s26 + $0x300] sm:$0xff]  }
 0x179   : > { %4633 = vpow.bf16 %v577_v41  ;;  %v1149_v63 = vmin.bf16 %v1133_v55, %v1117_v47  ;;  %v1102_v18 = vadd.bf16 %v5943_v5, %v1057_v56  ;;  %v507_v23 = vadd.bf16 %v5935_v59, %v462_v0 }
 0x17a   : > { %v1163_v8 = vmul.bf16 1069105081, %v1146_v57  ;;  %v1119_v14 = vsub.bf16 0, %v1103_v61  ;;  %v1166_v17 = vmul.bf16 1069105081, %v1147_v62  ;;  %v1148_v24 = vmin.bf16 %v1132_v58, %v1116_v54  ;;  %v4601_v54 = vld [vmem:[%s5808_s26 + $0x348] sm:$0xff]  }
 0x17b   : > { %v1172_v1 = vmul.bf16 1069105081, %v1149_v63  ;;  %v1135_v27 = vmul.bf16 3192766029, %v1103_v61  ;;  %v508_v28 = vadd.bf16 %v5938_v60, %v462_v0  ;;  %v1062_v29 = vpop.permute.xlu0 %1061  ;;  %v523_v30 = vsub.bf16 0, %v507_v23  ;;  %v467_v38 = vpop.permute.xlu1 %466 }
 0x17c   : > { %4635 = vpow.bf16 %v1163_v8  ;;  %v539_v31 = vmul.bf16 3192766029, %v507_v23  ;;  %v1105_v37 = vadd.bf16 %v5946_v6, %v1062_v29  ;;  %v1169_v39 = vmul.bf16 1069105081, %v1148_v24 }
 0x17d   : > { %4637 = vpow.bf16 %v1166_v17  ;;  %v1151_v33 = vmin.bf16 %v1135_v27, %v1119_v14  ;;  %v524_v34 = vsub.bf16 0, %v508_v28  ;;  %v540_v35 = vmul.bf16 3192766029, %v508_v28  ;;  %v6029_v14 = vld [vmem:[%s5652_s3 + $0x38] sm:$0xff]  ;;  %v4600_v28 = vld [vmem:[%s5808_s26 + $0x480] sm:$0xff]  }
 0x17e   : > { %4639 = vpow.bf16 %v574_v3  ;;  %v555_v36 = vmin.bf16 %v539_v31, %v523_v30  ;;  %v1118_v40 = vsub.bf16 0, %v1102_v18  ;;  %v1134_v41 = vmul.bf16 3192766029, %v1102_v18 }
 0x17f   : > { %4641 = vpow.bf16 %v1172_v1  ;;  %v1178_v43 = vmul.bf16 1069105081, %v1151_v33  ;;  %v556_v44 = vmin.bf16 %v540_v35, %v524_v34  ;;  %v5999_v45 = vpack.c.b16 %v668_v25, %v669_v26  ;;  %v1067_v63 = vpop.permute.xlu0 %1066  ;;  %v472_v8 = vpop.permute.xlu1 %471  ;;  %v4603_v1 = vld [vmem:[%s5808_s26 + $0x308] sm:$0xff]   ;;  %v4605_v33 = vld [vmem:[%s5808_s26 + $0x350] sm:$0xff]  }
 0x180   : > { %v6002_v46 = vsel %vm635_vm14, 16843009, %v5304_v4  ;;  %v1121_v49 = vsub.bf16 0, %v1105_v37  ;;  %v1137_v50 = vmul.bf16 3192766029, %v1105_v37  ;;  %v509_v51 = vadd.bf16 %v5935_v59, %v467_v38 }
 0x181   : > { %v510_v52 = vadd.bf16 %v5938_v60, %v467_v38  ;;  %v580_v56 = vmul.bf16 1069105081, %v555_v36  ;;  %v583_v57 = vmul.bf16 1069105081, %v556_v44  ;;  %v6011_v25 = vpack.c.b16 %v665_v48, %v666_v32  ;;  %v6024_v48 = vld [vmem:[%s5652_s3 + $0x30] sm:$0xff] }
 0x182   : > { %v4630_v47 = vpop.eup %4629  ;;  %v6016_v26 = vsel %vm5991_vm15, 16843009, %v5304_v4  ;;  %4643 = vpow.bf16 %v1169_v39  ;;  %v6018_v61 = vmin.bf16 %v1134_v41, %v1118_v40  ;;  %v674_v12 = vunpack.c.3.s8 %v6002_v46  ;;  %v4602_v32 = vld [vmem:[%s5808_s26 + $0x4c8] sm:$0xff]   ;;  %v4607_v41 = vld [vmem:[%s5808_s26 + $0x310] sm:$0xff]  }
 0x183   : > { %v4632_v55 = vpop.eup %4631  ;;  %v526_v62 = vsub.bf16 0, %v510_v52  ;;  %4645 = vpow.bf16 %v583_v57  ;;  %v525_v0 = vsub.bf16 0, %v509_v51  ;;  %v541_v2 = vmul.bf16 3192766029, %v509_v51  ;;  %v4604_v40 = vld [vmem:[%s5808_s26 + $0x488] sm:$0xff]   ;;  %v4606_v57 = vld [vmem:[%s5808_s26 + $0x4d0] sm:$0xff]  }
 0x184   : > { %v4634_v58 = vpop.eup %4633  ;;  %3859 = vmatprep.mubr.msk.bf16.mxu0 %vm696_vm11, %v4632_v55  ;;  %v542_v3 = vmul.bf16 3192766029, %v510_v52  ;;  %4647 = vpow.bf16 %v1178_v43  ;;  %v1104_v16 = vadd.bf16 %v5943_v5, %v1062_v29  ;;  %v6032_v17 = vmin.bf16 %v1137_v50, %v1121_v49 }
 0x185   : > { %3860 = vmatmul.mubr.msk.bf16.vlgmr.msra.gmra.mrb[0].mxu0 %vm695_vm12, %v4630_v47  ;;  %v675_v18 = vunpack.c.2.s8 %v6002_v46  ;;  %4649 = vpow.bf16 %v580_v56  ;;  %v1107_v27 = vadd.bf16 %v5946_v6, %v1067_v63  ;;  %v671_v29 = vunpack.c.1.s8 %v6002_v46  ;;  %v1072_v56 = vpop.permute.xlu0 %1071 }
 0x186   : > { %4274 = vmatpush3.bf16.msra.mxu0 %v4599_v53  ;;  %3861 = vmatprep.mubr.msk.bf16.mxu0 %vm698_vm13, %v4634_v58  ;;  %v558_v24 = vmin.bf16 %v542_v3, %v526_v62  ;;  %v512_v31 = vadd.bf16 %v5938_v60, %v472_v8  ;;  %v672_v34 = vunpack.c.0.s8 %v6002_v46  ;;  %vm404_vm2 = vnez %v6024_v48  ;;  %v477_v53 = vpop.permute.xlu1 %476 }
 0x187   : > { %v4636_v23 = vpop.eup %4635  ;;  %4275 = vmatprep.subr.bf16.mxu0 %v4601_v54  ;;  %vm405_vm3 = vnez %v6029_v14  ;;  %v1175_v36 = vmul.bf16 1069105081, %v6018_v61  ;;  %v557_v37 = vmin.bf16 %v541_v2, %v525_v0  ;;  %v511_v39 = vadd.bf16 %v5935_v59, %v472_v8  ;;  %v4609_v54 = vld [vmem:[%s5808_s26 + $0x358] sm:$0xff]  }
 0x188   : > { %v4638_v30 = vpop.eup %4637  ;;  %v589_v38 = vmul.bf16 1069105081, %v558_v24  ;;  %v1120_v43 = vsub.bf16 0, %v1104_v16  ;;  %v1136_v44 = vmul.bf16 3192766029, %v1104_v16  ;;  %v528_v49 = vsub.bf16 0, %v512_v31 }
 0x189   : > { %v4640_v35 = vpop.eup %4639  ;;  %3925 = vmatprep.mubr.msk.bf16.mxu1 %vm696_vm11, %v4638_v30  ;;  %v1184_v47 = vmul.bf16 1069105081, %v6032_v17  ;;  %v1123_v50 = vsub.bf16 0, %v1107_v27  ;;  %v1139_v51 = vmul.bf16 3192766029, %v1107_v27  ;;  %v1106_v55 = vadd.bf16 %v5943_v5, %v1067_v63  ;;  %v4611_v17 = vld [vmem:[%s5808_s26 + $0x318] sm:$0xff]  }
 0x18a   : > { %v4642_v42 = vpop.eup %4641  ;;  %3926 = vmatmul.mubr.msk.bf16.vlgmr.msra.gmra.mrb[0].mxu1 %vm695_vm12, %v4636_v23  ;;  %4276 = vmatpush3.bf16.msra.mxu0 %v4603_v1  ;;  %4651 = vpow.bf16 %v589_v38  ;;  %v544_v52 = vmul.bf16 3192766029, %v512_v31  ;;  %vm702_vm5 = vcmp.ne.s16.totalorder %v5999_v45, 0  ;;  %v680_v58 = vunpack.c.3.s8 %v6016_v26 }
 0x18b   : > { %4338 = vmatpush3.bf16.msra.mxu1 %v4600_v28  ;;  %3927 = vmatprep.mubr.msk.bf16.mxu1 %vm698_vm13, %v4642_v42  ;;  %v681_v61 = vunpack.c.2.s8 %v6016_v26  ;;  %v6069_v62 = vsel %vm404_vm2, 16843009, %v5304_v4  ;;  %v586_v0 = vmul.bf16 1069105081, %v557_v37  ;;  %v527_v2 = vsub.bf16 0, %v511_v39  ;;  %v4608_v28 = vld [vmem:[%s5808_s26 + $0x490] sm:$0xff]  }
 0x18c   : > { %4339 = vmatprep.subr.bf16.mxu1 %v4602_v32  ;;  %4277 = vmatprep.subr.bf16.mxu0 %v4605_v33  ;;  %v543_v63 = vmul.bf16 3192766029, %v511_v39  ;;  %v560_v3 = vmin.bf16 %v544_v52, %v528_v49  ;;  %4653 = vpow.bf16 %v1175_v36  ;;  %v1152_v8 = vmin.bf16 %v1136_v44, %v1120_v43  ;;  %v4613_v36 = vld [vmem:[%s5808_s26 + $0x360] sm:$0xff]   ;;  %v4612_v52 = vld [vmem:[%s5808_s26 + $0x498] sm:$0xff]  }
 0x18d   : > { %3862 = vmatmul.mubr.msk.bf16.gmra.mrb[4].mxu0 %vm697_vm0, %v4640_v35  ;;  %v514_v16 = vadd.bf16 %v5938_v60, %v477_v53  ;;  %v6078_v48 = vsel %vm405_vm3, 16843009, %v5304_v4  ;;  %v4644_v1 = vpop.eup %4643  ;;  %4655 = vpow.bf16 %v1184_v47  ;;  %v1155_v23 = vmin.bf16 %v1139_v51, %v1123_v50  ;;  %v4610_v35 = vld [vmem:[%s5808_s26 + $0x4d8] sm:$0xff]  }
 0x18e   : > { %4278 = vmatpush3.bf16.msra.mxu0 %v4607_v41  ;;  %v595_v24 = vmul.bf16 1069105081, %v560_v3  ;;  %v1109_v27 = vadd.bf16 %v5946_v6, %v1072_v56  ;;  %v4646_v30 = vpop.eup %4645  ;;  %v1122_v31 = vsub.bf16 0, %v1106_v55  ;;  %v1138_v32 = vmul.bf16 3192766029, %v1106_v55  ;;  %v482_v41 = vpop.permute.xlu1 %481 }
 0x18f   : > { %4340 = vmatpush3.bf16.msra.mxu1 %v4604_v40  ;;  %4279 = vmatprep.subr.bf16.mxu0 %v4609_v54  ;;  %v530_v33 = vsub.bf16 0, %v514_v16  ;;  %v6086_v14 = vpack.c.b16 %v674_v12, %v675_v18  ;;  %v4648_v37 = vpop.eup %4647  ;;  %4657 = vpow.bf16 %v586_v0  ;;  %v559_v38 = vmin.bf16 %v543_v63, %v527_v2  ;;  %v4615_v18 = vld [vmem:[%s5808_s26 + $0x320] sm:$0xff]  }
 0x190   : > { %4341 = vmatprep.subr.bf16.mxu1 %v4606_v57  ;;  %v513_v39 = vadd.bf16 %v5935_v59, %v477_v53  ;;  %v546_v40 = vmul.bf16 3192766029, %v514_v16  ;;  %3863 = vmatprep.mubr.msk.bf16.mxu0 %vm700_vm1, %v4646_v30  ;;  %v4650_v42 = vpop.eup %4649  ;;  %v1181_v43 = vmul.bf16 1069105081, %v1152_v8  ;;  %4659 = vpow.bf16 %v595_v24  ;;  %v4614_v54 = vld [vmem:[%s5808_s26 + $0x4e0] sm:$0xff]   ;;  %v4617_v57 = vld [vmem:[%s5808_s26 + $0x368] sm:$0xff]  }
 0x191   : > { %vm701_vm6 = vcmp.ne.s16.totalorder %v6011_v25, 0  ;;  %v6100_v12 = vpack.c.b16 %v671_v29, %v672_v34  ;;  %v629_v44 = vcombine.low %v6069_v62, %v6078_v48  ;;  %v1190_v47 = vmul.bf16 1069105081, %v1155_v23  ;;  %v1077_v29 = vpop.permute.xlu0 %1076  ;;  %v4616_v30 = vld [vmem:[%s5808_s26 + $0x4a0] sm:$0xff]  }
 0x192   : > { %3928 = vmatmul.mubr.msk.bf16.gmra.mrb[4].mxu1 %vm697_vm0, %v4644_v1  ;;  %4280 = vmatpush3.bf16.msra.mxu0 %v4611_v17  ;;  %v1125_v49 = vsub.bf16 0, %v1109_v27  ;;  %v1141_v50 = vmul.bf16 3192766029, %v1109_v27  ;;  %v562_v51 = vmin.bf16 %v546_v40, %v530_v33  ;;  %v1154_v53 = vmin.bf16 %v1138_v32, %v1122_v31  ;;  %v4619_v1 = vld [vmem:[%s5808_s26 + $0x328] sm:$0xff]   ;;  %v6120_v27 = vpop.permute.xlu1 %486 }
 0x193   : > { %3929 = vmatprep.mubr.msk.bf16.mxu1 %vm700_vm1, %v4648_v37  ;;  %4342 = vmatpush3.bf16.msra.mxu1 %v4608_v28  ;;  %v6109_v46 = vadd.bf16 %v5943_v5, %v1072_v56  ;;  %v516_v34 = vadd.bf16 %v5938_v60, %v482_v41  ;;  %v677_v55 = vunpack.c.1.s8 %v6016_v26  ;;  %v592_v0 = vmul.bf16 1069105081, %v559_v38 }
 0x194   : > { %4343 = vmatprep.subr.bf16.mxu1 %v4610_v35  ;;  %4281 = vmatprep.subr.bf16.mxu0 %v4613_v36  ;;  %v529_v2 = vsub.bf16 0, %v513_v39  ;;  %v545_v63 = vmul.bf16 3192766029, %v513_v39  ;;  %v678_v56 = vunpack.c.0.s8 %v6016_v26  ;;  %4661 = vpow.bf16 %v1181_v43  ;;  %v4618_v35 = vld [vmem:[%s5808_s26 + $0x4e8] sm:$0xff]   ;;  %v4621_v36 = vld [vmem:[%s5808_s26 + $0x370] sm:$0xff]  }
 0x195   : > { %3864 = vmatmul.mubr.msk.bf16.gmra.mrb[8].mxu0 %vm699_vm4, %v4650_v42  ;;  %v4652_v3 = vpop.eup %4651  ;;  %v601_v8 = vmul.bf16 1069105081, %v562_v51  ;;  %v532_v16 = vsub.bf16 0, %v516_v34  ;;  %v548_v17 = vmul.bf16 3192766029, %v516_v34  ;;  %4663 = vpow.bf16 %v1190_v47  ;;  %v4620_v42 = vld [vmem:[%s5808_s26 + $0x4a8] sm:$0xff]  }
 0x196   : > { %4282 = vmatpush3.bf16.msra.mxu0 %v4615_v18  ;;  %v1157_v23 = vmin.bf16 %v1141_v50, %v1125_v49  ;;  %v1111_v24 = vadd.bf16 %v5946_v6, %v1077_v29  ;;  %3865 = vmatprep.mubr.msk.bf16.mxu0 %vm702_vm5, %v4652_v3  ;;  %v6128_v28 = vpack.c.b16 %v680_v58, %v681_v61  ;;  %v1187_v31 = vmul.bf16 1069105081, %v1154_v53  ;;  %v4623_v43 = vld [vmem:[%s5808_s26 + $0x330] sm:$0xff]   ;;  %v4625_v49 = vld [vmem:[%s5808_s26 + $0x378] sm:$0xff]  }
 0x197   : > { %4344 = vmatpush3.bf16.msra.mxu1 %v4612_v52  ;;  %v1124_v32 = vsub.bf16 0, %v6109_v46  ;;  %vm704_vm7 = vcmp.ne.s16.totalorder %v6086_v14, 0  ;;  %vm6133_vm8 = vnez %v629_v44  ;;  %4283 = vmatprep.subr.bf16.mxu0 %v4617_v57  ;;  %v4654_v37 = vpop.eup %4653  ;;  %4665 = vpow.bf16 %v592_v0 }
 0x198   : > { %4345 = vmatprep.subr.bf16.mxu1 %v4614_v54  ;;  %v1140_v26 = vmul.bf16 3192766029, %v6109_v46  ;;  %v561_v58 = vmin.bf16 %v545_v63, %v529_v2  ;;  %v515_v61 = vadd.bf16 %v5935_v59, %v482_v41  ;;  %v4656_v38 = vpop.eup %4655  ;;  %4667 = vpow.bf16 %v601_v8  ;;  %v6148_v41 = vpop.permute.xlu0 %1081  ;;  %v4622_v46 = vld [vmem:[%s5808_s26 + $0x4f0] sm:$0xff]  }
 0x199   : > { %v564_v39 = vmin.bf16 %v548_v17, %v532_v16  ;;  %v518_v40 = vadd.bf16 %v5938_v60, %v6120_v27  ;;  %vm703_vm9 = vcmp.ne.s16.totalorder %v6100_v12, 0  ;;  %v1196_v18 = vmul.bf16 1069105081, %v1157_v23 }
 0x19a   : > { %3930 = vmatmul.mubr.msk.bf16.gmra.mrb[8].mxu1 %vm699_vm4, %v4654_v37  ;;  %4284 = vmatpush3.bf16.msra.mxu0 %v4619_v1  ;;  %v1127_v44 = vsub.bf16 0, %v1111_v24  ;;  %v1143_v47 = vmul.bf16 3192766029, %v1111_v24  ;;  %vm706_vm10 = vcmp.ne.s16.totalorder %v6128_v28, 0  ;;  %v6153_v60 = vpack.c.b16 %v677_v55, %v678_v56  ;;  %v4658_v50 = vpop.eup %4657  ;;  %v4624_v24 = vld [vmem:[%s5808_s26 + $0x4b0] sm:$0xff]  }
 0x19b   : > { %3931 = vmatprep.mubr.msk.bf16.mxu1 %vm702_vm5, %v4656_v38  ;;  %4346 = vmatpush3.bf16.msra.mxu1 %v4616_v30  ;;  %4669 = vpow.bf16 %v1187_v31  ;;  %v1110_v51 = vadd.bf16 %v5943_v5, %v1077_v29  ;;  %v6160_v52 = vsel %vm6133_vm8, 16843009, %v5304_v4  ;;  %v630_v53 = vcombine.high %v6069_v62, %v6078_v48  ;;  %v4660_v34 = vpop.eup %4659  ;;  %v6167_v29 = vpop.permute.xlu1 %1544  ;;  %v4627_v48 = vld [vmem:[%s5808_s26 + $0x338] sm:$0xff]  }
 0x19c   : > { %4347 = vmatprep.subr.bf16.mxu1 %v4618_v35  ;;  %4285 = vmatprep.subr.bf16.mxu0 %v4621_v36  ;;  %v1156_v54 = vmin.bf16 %v1140_v26, %v1124_v32  ;;  %v598_v55 = vmul.bf16 1069105081, %v561_v58  ;;  %v531_v57 = vsub.bf16 0, %v515_v61  ;;  %v547_v0 = vmul.bf16 3192766029, %v515_v61  ;;  %v4626_v35 = vld [vmem:[%s5808_s26 + $0x4f8] sm:$0xff]   ;;  %v2043_v61 = vpop.permute.xlu0 %2042 }
 0x19d   : > { %3866 = vmatmul.mubr.msk.bf16.gmra.mrb[12].mxu0 %vm701_vm6, %v4658_v50  ;;  %v607_v2 = vmul.bf16 1069105081, %v564_v39  ;;  %v1113_v63 = vadd.bf16 %v5946_v6, %v6148_v41  ;;  %v534_v56 = vsub.bf16 0, %v518_v40  ;;  %v550_v62 = vmul.bf16 3192766029, %v518_v40 }
 0x19e   : > { %3867 = vmatprep.mubr.msk.bf16.mxu0 %vm704_vm7, %v4660_v34  ;;  %4286 = vmatpush3.bf16.msra.mxu0 %v4623_v43  ;;  %4671 = vpow.bf16 %v1196_v18  ;;  %v1159_v3 = vmin.bf16 %v1143_v47, %v1127_v44  ;;  %v686_v8 = vunpack.c.3.s8 %v6160_v52  ;;  %v687_v16 = vunpack.c.2.s8 %v6160_v52 }
 0x19f   : > { %4348 = vmatpush3.bf16.msra.mxu1 %v4620_v42  ;;  %4287 = vmatprep.subr.bf16.mxu0 %v4625_v49  ;;  %v1126_v17 = vsub.bf16 0, %v1110_v51  ;;  %v1142_v1 = vmul.bf16 3192766029, %v1110_v51  ;;  %v1597_v6 = vadd.bf16 %v5909_v15, %v6167_v29  ;;  %vm6178_vm14 = vnez %v630_v53  ;;  %v4662_v30 = vpop.eup %4661  ;;  %v1550_v44 = vpop.permute.xlu1 %1549  ;;  %v4628_v49 = vld [vmem:[%s5808_s26 + $0x4b8] sm:$0xff]  }
 0x1a0   : > { %4349 = vmatprep.subr.bf16.mxu1 %v4622_v46  ;;  %v1193_v31 = vmul.bf16 1069105081, %v1156_v54  ;;  %4673 = vpow.bf16 %v598_v55  ;;  %v563_v32 = vmin.bf16 %v547_v0, %v531_v57  ;;  %v517_v33 = vadd.bf16 %v5935_v59, %v6120_v27  ;;  %v4664_v36 = vpop.eup %4663 }
 0x1a1   : > { %4675 = vpow.bf16 %v607_v2  ;;  %v1129_v37 = vsub.bf16 0, %v1113_v63  ;;  %v1145_v26 = vmul.bf16 3192766029, %v1113_v63  ;;  %v566_v58 = vmin.bf16 %v550_v62, %v534_v56 }
 0x1a2   : > { %3932 = vmatmul.mubr.msk.bf16.gmra.mrb[12].mxu1 %vm701_vm6, %v4662_v30  ;;  %vm705_vm15 = vcmp.ne.s16.totalorder %v6153_v60, 0  ;;  %4288 = vmatpush3.bf16.msra.mxu0 %v4627_v48  ;;  %v1202_v38 = vmul.bf16 1069105081, %v1159_v3  ;;  %v6191_v39 = vpack.c.b16 %v686_v8, %v687_v16  ;;  %v683_v59 = vunpack.c.1.s8 %v6160_v52  ;;  %v4666_v40 = vpop.eup %4665 }
 0x1a3   : > { %3933 = vmatprep.mubr.msk.bf16.mxu1 %vm704_vm7, %v4664_v36  ;;  %v684_v27 = vunpack.c.0.s8 %v6160_v52  ;;  %v1158_v42 = vmin.bf16 %v1142_v1, %v1126_v17  ;;  %v1613_v43 = vsub.bf16 0, %v1597_v6  ;;  %v1629_v18 = vmul.bf16 3192766029, %v1597_v6  ;;  %4350 = vmatpush3.bf16.msra.mxu1 %v4624_v24  ;;  %v4668_v50 = vpop.eup %4667  ;;  %v2048_v24 = vpop.permute.xlu1 %2047 }
 0x1a4   : > { %v6198_v47 = vsel %vm6178_vm14, 16843009, %v5304_v4  ;;  %v604_v51 = vmul.bf16 1069105081, %v563_v32  ;;  %v533_v53 = vsub.bf16 0, %v517_v33  ;;  %v2095_v52 = vadd.bf16 %v5916_v21, %v2043_v61  ;;  %4351 = vmatprep.subr.bf16.mxu1 %v4626_v35 }
 0x1a5   : > { %v549_v46 = vmul.bf16 3192766029, %v517_v33  ;;  %3868 = vmatmul.mubr.msk.bf16.gmra.mrb[16].mxu0 %vm703_vm9, %v4666_v40  ;;  %4677 = vpow.bf16 %v1193_v31  ;;  %v1112_v34 = vadd.bf16 %v5943_v5, %v6148_v41  ;;  %v1161_v54 = vmin.bf16 %v1145_v26, %v1129_v37  ;;  %v1555_v26 = vpop.permute.xlu0 %1554 }
 0x1a6   : > { %v613_v55 = vmul.bf16 1069105081, %v566_v58  ;;  %3869 = vmatprep.mubr.msk.bf16.mxu0 %vm706_vm10, %v4668_v50  ;;  %v4670_v4 = vpop.eup %4669  ;;  %4679 = vpow.bf16 %v1202_v38  ;;  %vm708_vm2 = vcmp.ne.s16.totalorder %v6191_v39, 0  ;;  %v1596_v57 = vadd.bf16 %v5906_v13, %v6167_v29 }
 0x1a7   : > { %v1599_v0 = vadd.bf16 %v5909_v15, %v1550_v44  ;;  %v1199_v2 = vmul.bf16 1069105081, %v1158_v42  ;;  %v1645_v63 = vmin.bf16 %v1629_v18, %v1613_v43  ;;  %v692_v56 = vunpack.c.3.s8 %v6198_v47  ;;  %4352 = vmatpush3.bf16.msra.mxu1 %v4628_v49 }
 0x1a8   : > { %v693_v5 = vunpack.c.2.s8 %v6198_v47  ;;  %4681 = vpow.bf16 %v604_v51  ;;  %v565_v41 = vmin.bf16 %v549_v46, %v533_v53  ;;  %v2111_v62 = vsub.bf16 0, %v2095_v52 }
 0x1a9   : > { %v2127_v48 = vmul.bf16 3192766029, %v2095_v52  ;;  %v4672_v3 = vpop.eup %4671  ;;  %v1128_v8 = vsub.bf16 0, %v1112_v34  ;;  %v1144_v16 = vmul.bf16 3192766029, %v1112_v34  ;;  %4683 = vpow.bf16 %v613_v55  ;;  %v2053_v34 = vpop.permute.xlu1 %2052 }
 0x1aa   : > { %v1208_v17 = vmul.bf16 1069105081, %v1161_v54  ;;  %3934 = vmatmul.mubr.msk.bf16.gmra.mrb[16].mxu1 %vm703_vm9, %v4670_v4  ;;  %v1612_v29 = vsub.bf16 0, %v1596_v57  ;;  %v1628_v1 = vmul.bf16 3192766029, %v1596_v57  ;;  %v1615_v6 = vsub.bf16 0, %v1599_v0 }
 0x1ab   : > { %3935 = vmatprep.mubr.msk.bf16.mxu1 %vm706_vm10, %v4672_v3  ;;  %v1631_v23 = vmul.bf16 3192766029, %v1599_v0  ;;  %v4674_v30 = vpop.eup %4673  ;;  %v1664_v31 = vmul.bf16 1069105081, %v1645_v63  ;;  %v2094_v32 = vadd.bf16 %v5913_v20, %v2043_v61  ;;  %v610_v35 = vmul.bf16 1069105081, %v565_v41 }
 0x1ac   : > { %v4676_v33 = vpop.eup %4675  ;;  %v2143_v36 = vmin.bf16 %v2127_v48, %v2111_v62  ;;  %v2097_v37 = vadd.bf16 %v5916_v21, %v2048_v24  ;;  %4685 = vpow.bf16 %v1199_v2  ;;  %v1160_v58 = vmin.bf16 %v1144_v16, %v1128_v8 }
 0x1ad   : > { %3870 = vmatmul.mubr.msk.bf16.gmra.mrb[20].mxu0 %vm705_vm15, %v4674_v30  ;;  %v6224_v38 = vpack.c.b16 %v683_v59, %v684_v27  ;;  %v6226_v40 = vpack.c.b16 %v692_v56, %v693_v5  ;;  %4687 = vpow.bf16 %v1208_v17  ;;  %v1644_v61 = vmin.bf16 %v1628_v1, %v1612_v29  ;;  %v1560_v48 = vpop.permute.xlu1 %1559 }
 0x1ae   : > { %3871 = vmatprep.mubr.msk.bf16.mxu0 %vm708_vm2, %v4676_v33  ;;  %v1598_v42 = vadd.bf16 %v5906_v13, %v1550_v44  ;;  %v1647_v43 = vmin.bf16 %v1631_v23, %v1615_v6  ;;  %4689 = vpow.bf16 %v1664_v31  ;;  %v2110_v18 = vsub.bf16 0, %v2094_v32 }
 0x1af   : > { %v2126_v49 = vmul.bf16 3192766029, %v2094_v32  ;;  %v1601_v50 = vadd.bf16 %v5909_v15, %v1555_v26  ;;  %4691 = vpow.bf16 %v610_v35  ;;  %v2162_v53 = vmul.bf16 1069105081, %v2143_v36  ;;  %v2058_v36 = vpop.permute.xlu0 %2057 }
 0x1b0   : > { %v4678_v51 = vpop.eup %4677  ;;  %v2113_v46 = vsub.bf16 0, %v2097_v37  ;;  %v2129_v52 = vmul.bf16 3192766029, %v2097_v37  ;;  %v1205_v27 = vmul.bf16 1069105081, %v1160_v58  ;;  %vm707_vm3 = vcmp.ne.s16.totalorder %v6224_v38, 0 }
 0x1b1   : > { %v4680_v59 = vpop.eup %4679  ;;  %v689_v44 = vunpack.c.1.s8 %v6198_v47  ;;  %v690_v54 = vunpack.c.0.s8 %v6198_v47  ;;  %v1661_v55 = vmul.bf16 1069105081, %v1644_v61  ;;  %vm710_vm8 = vcmp.ne.s16.totalorder %v6226_v40, 0 }
 0x1b2   : > { %3936 = vmatmul.mubr.msk.bf16.gmra.mrb[20].mxu1 %vm705_vm15, %v4678_v51  ;;  %v2096_v4 = vadd.bf16 %v5913_v20, %v2048_v24  ;;  %v1670_v0 = vmul.bf16 1069105081, %v1647_v43  ;;  %v2142_v2 = vmin.bf16 %v2126_v49, %v2110_v18  ;;  %v1617_v63 = vsub.bf16 0, %v1601_v50  ;;  %v1565_v51 = vpop.permute.xlu1 %1564 }
 0x1b3   : > { %3937 = vmatprep.mubr.msk.bf16.mxu1 %vm708_vm2, %v4680_v59  ;;  %v4682_v57 = vpop.eup %4681  ;;  %v1633_v56 = vmul.bf16 3192766029, %v1601_v50  ;;  %v1614_v41 = vsub.bf16 0, %v1598_v42  ;;  %v1630_v62 = vmul.bf16 3192766029, %v1598_v42  ;;  %4693 = vpow.bf16 %v2162_v53 }
 0x1b4   : > { %v4684_v5 = vpop.eup %4683  ;;  %v2145_v47 = vmin.bf16 %v2129_v52, %v2113_v46  ;;  %4695 = vpow.bf16 %v1205_v27  ;;  %v2099_v3 = vadd.bf16 %v5916_v21, %v2053_v34  ;;  %v6244_v8 = vpack.c.b16 %v689_v44, %v690_v54 }
 0x1b5   : > { %3872 = vmatmul.mubr.msk.bf16.gmra.mrb[24].mxu0 %vm707_vm3, %v4682_v57  ;;  %4697 = vpow.bf16 %v1661_v55  ;;  %v2112_v16 = vsub.bf16 0, %v2096_v4  ;;  %v2128_v17 = vmul.bf16 3192766029, %v2096_v4  ;;  %v1600_v29 = vadd.bf16 %v5906_v13, %v1555_v26 }
 0x1b6   : > { %3873 = vmatprep.mubr.msk.bf16.mxu0 %vm710_vm8, %v4684_v5  ;;  %4699 = vpow.bf16 %v1670_v0  ;;  %v2159_v1 = vmul.bf16 1069105081, %v2142_v2  ;;  %v1649_v6 = vmin.bf16 %v1633_v56, %v1617_v63  ;;  %v1603_v23 = vadd.bf16 %v5909_v15, %v1560_v48 }
 0x1b7   : > { %v4686_v24 = vpop.eup %4685  ;;  %v1646_v30 = vmin.bf16 %v1630_v62, %v1614_v41  ;;  %v2168_v31 = vmul.bf16 1069105081, %v2145_v47  ;;  %v2115_v33 = vsub.bf16 0, %v2099_v3  ;;  %v2131_v35 = vmul.bf16 3192766029, %v2099_v3 }
 0x1b8   : > { %v4688_v32 = vpop.eup %4687  ;;  %vm709_vm14 = vcmp.ne.s16.totalorder %v6244_v8, 0  ;;  %v2144_v58 = vmin.bf16 %v2128_v17, %v2112_v16  ;;  %v1616_v26 = vsub.bf16 0, %v1600_v29  ;;  %v1632_v61 = vmul.bf16 3192766029, %v1600_v29  ;;  %v2063_v16 = vpop.permute.xlu1 %2062 }
 0x1b9   : > { %v4690_v37 = vpop.eup %4689  ;;  %4701 = vpow.bf16 %v2159_v1  ;;  %v1676_v43 = vmul.bf16 1069105081, %v1649_v6  ;;  %v1619_v18 = vsub.bf16 0, %v1603_v23  ;;  %v1635_v49 = vmul.bf16 3192766029, %v1603_v23 }
 0x1ba   : > { %3938 = vmatmul.mubr.msk.bf16.gmra.mrb[24].mxu1 %vm707_vm3, %v4686_v24  ;;  %v4692_v42 = vpop.eup %4691  ;;  %v1667_v50 = vmul.bf16 1069105081, %v1646_v30  ;;  %4703 = vpow.bf16 %v2168_v31  ;;  %v2101_v53 = vadd.bf16 %v5916_v21, %v2058_v36  ;;  %v2098_v46 = vadd.bf16 %v5913_v20, %v2053_v34  ;;  %v1570_v24 = vpop.permute.xlu0 %1569 }
 0x1bb   : > { %3939 = vmatprep.mubr.msk.bf16.mxu1 %vm710_vm8, %v4688_v32  ;;  %v2147_v52 = vmin.bf16 %v2131_v35, %v2115_v33  ;;  %v1648_v59 = vmin.bf16 %v1632_v61, %v1616_v26  ;;  %v1602_v27 = vadd.bf16 %v5906_v13, %v1560_v48  ;;  %v2165_v54 = vmul.bf16 1069105081, %v2144_v58 }
 0x1bc   : > { %4705 = vpow.bf16 %v1676_v43  ;;  %v1651_v55 = vmin.bf16 %v1635_v49, %v1619_v18  ;;  %v1605_v4 = vadd.bf16 %v5909_v15, %v1565_v51  ;;  %v2117_v0 = vsub.bf16 0, %v2101_v53  ;;  %v2068_v43 = vpop.permute.xlu1 %2067 }
 0x1bd   : > { %3874 = vmatmul.mubr.msk.bf16.gmra.mrb[28].mxu0 %vm709_vm14, %v4692_v42  ;;  %4707 = vpow.bf16 %v1667_v50  ;;  %v2133_v2 = vmul.bf16 3192766029, %v2101_v53  ;;  %v2114_v56 = vsub.bf16 0, %v2098_v46  ;;  %v2130_v34 = vmul.bf16 3192766029, %v2098_v46 }
 0x1be   : > { %3991 = vmatprep.mubr.msk.bf16.mxu0 %vm696_vm11, %v4690_v37  ;;  %v4694_v44 = vpop.eup %4693  ;;  %v2174_v5 = vmul.bf16 1069105081, %v2147_v52  ;;  %v1673_v62 = vmul.bf16 1069105081, %v1648_v59  ;;  %v1618_v47 = vsub.bf16 0, %v1602_v27  ;;  %v2100_v3 = vadd.bf16 %v5913_v20, %v2058_v36 }
 0x1bf   : > { %v4696_v57 = vpop.eup %4695  ;;  %v1634_v48 = vmul.bf16 3192766029, %v1602_v27  ;;  %4709 = vpow.bf16 %v2165_v54  ;;  %v1682_v17 = vmul.bf16 1069105081, %v1651_v55  ;;  %v1621_v29 = vsub.bf16 0, %v1605_v4 }
 0x1c0   : > { %v4698_v63 = vpop.eup %4697  ;;  %v1637_v1 = vmul.bf16 3192766029, %v1605_v4  ;;  %v2149_v6 = vmin.bf16 %v2133_v2, %v2117_v0  ;;  %v2103_v23 = vadd.bf16 %v5916_v21, %v2063_v16  ;;  %v2146_v30 = vmin.bf16 %v2130_v34, %v2114_v56  ;;  %v1575_v55 = vpop.permute.xlu1 %1574 }
 0x1c1   : > { %v4700_v41 = vpop.eup %4699  ;;  %4711 = vpow.bf16 %v2174_v5  ;;  %v1650_v31 = vmin.bf16 %v1634_v48, %v1618_v47  ;;  %v2116_v32 = vsub.bf16 0, %v2100_v3  ;;  %v2132_v36 = vmul.bf16 3192766029, %v2100_v3 }
 0x1c2   : > { %3940 = vmatmul.mubr.msk.bf16.gmra.mrb[28].mxu1 %vm709_vm14, %v4696_v57  ;;  %4713 = vpow.bf16 %v1673_v62  ;;  %v1653_v35 = vmin.bf16 %v1637_v1, %v1621_v29  ;;  %v1607_v37 = vadd.bf16 %v5909_v15, %v1570_v24  ;;  %v1604_v58 = vadd.bf16 %v5906_v13, %v1565_v51 }
 0x1c3   : > { %4057 = vmatprep.mubr.msk.bf16.mxu1 %vm696_vm11, %v4694_v44  ;;  %4715 = vpow.bf16 %v1682_v17  ;;  %v2180_v26 = vmul.bf16 1069105081, %v2149_v6  ;;  %v2119_v61 = vsub.bf16 0, %v2103_v23  ;;  %v2135_v42 = vmul.bf16 3192766029, %v2103_v23 }
 0x1c4   : > { %v4702_v7 = vpop.eup %4701  ;;  %v2171_v18 = vmul.bf16 1069105081, %v2146_v30  ;;  %v1679_v50 = vmul.bf16 1069105081, %v1650_v31  ;;  %v2102_v53 = vadd.bf16 %v5913_v20, %v2063_v16  ;;  %v1688_v52 = vmul.bf16 1069105081, %v1653_v35  ;;  %v2073_v16 = vpop.permute.xlu0 %2072 }
 0x1c5   : > { %3992 = vmatmul.mubr.msk.bf16.vlgmr.msra.gmra.mrb[32].mxu0 %vm695_vm12, %v4698_v63  ;;  %v4704_v33 = vpop.eup %4703  ;;  %v2148_v59 = vmin.bf16 %v2132_v36, %v2116_v32  ;;  %v1623_v27 = vsub.bf16 0, %v1607_v37  ;;  %v1639_v51 = vmul.bf16 3192766029, %v1607_v37  ;;  %v1620_v44 = vsub.bf16 0, %v1604_v58  ;;  %v1580_v11 = vpop.permute.xlu1 %1579 }
 0x1c6   : > { %3993 = vmatprep.mubr.msk.bf16.mxu0 %vm698_vm13, %v4700_v41  ;;  %v1636_v54 = vmul.bf16 3192766029, %v1604_v58  ;;  %4717 = vpow.bf16 %v2180_v26  ;;  %v2151_v9 = vmin.bf16 %v2135_v42, %v2119_v61  ;;  %v2105_v4 = vadd.bf16 %v5916_v21, %v2068_v43 }
 0x1c7   : > { %v4706_v49 = vpop.eup %4705  ;;  %4719 = vpow.bf16 %v2171_v18  ;;  %v2118_v57 = vsub.bf16 0, %v2102_v53  ;;  %v2134_v0 = vmul.bf16 3192766029, %v2102_v53  ;;  %v1606_v2 = vadd.bf16 %v5906_v13, %v1570_v24 }
 0x1c8   : > { %v4708_v46 = vpop.eup %4707  ;;  %4721 = vpow.bf16 %v1679_v50  ;;  %v2177_v63 = vmul.bf16 1069105081, %v2148_v59  ;;  %v1655_v56 = vmin.bf16 %v1639_v51, %v1623_v27  ;;  %v1609_v34 = vadd.bf16 %v5909_v15, %v1575_v55 }
 0x1c9   : > { %4723 = vpow.bf16 %v1688_v52  ;;  %v1652_v41 = vmin.bf16 %v1636_v54, %v1620_v44  ;;  %v2186_v62 = vmul.bf16 1069105081, %v2151_v9  ;;  %v2121_v48 = vsub.bf16 0, %v2105_v4 }
 0x1ca   : > { %4058 = vmatmul.mubr.msk.bf16.vlgmr.msra.gmra.mrb[32].mxu1 %vm695_vm12, %v4702_v7  ;;  %v4710_v10 = vpop.eup %4709  ;;  %v2137_v3 = vmul.bf16 3192766029, %v2105_v4  ;;  %v2150_v29 = vmin.bf16 %v2134_v0, %v2118_v57  ;;  %v1622_v1 = vsub.bf16 0, %v1606_v2  ;;  %v1638_v6 = vmul.bf16 3192766029, %v1606_v2 }
 0x1cb   : > { %4059 = vmatprep.mubr.msk.bf16.mxu1 %vm698_vm13, %v4704_v33  ;;  %4725 = vpow.bf16 %v2177_v63  ;;  %v1694_v23 = vmul.bf16 1069105081, %v1655_v56  ;;  %v1625_v24 = vsub.bf16 0, %v1609_v34  ;;  %v1641_v30 = vmul.bf16 3192766029, %v1609_v34 }
 0x1cc   : > { %v4712_v5 = vpop.eup %4711  ;;  %v1685_v7 = vmul.bf16 1069105081, %v1652_v41  ;;  %4727 = vpow.bf16 %v2186_v62  ;;  %v2107_v31 = vadd.bf16 %v5916_v21, %v2073_v16  ;;  %v2104_v32 = vadd.bf16 %v5913_v20, %v2068_v43 }
 0x1cd   : > { %3994 = vmatmul.mubr.msk.bf16.gmra.mrb[36].mxu0 %vm697_vm0, %v4708_v46  ;;  %v4714_v47 = vpop.eup %4713  ;;  %v2153_v33 = vmin.bf16 %v2137_v3, %v2121_v48  ;;  %v2183_v19 = vmul.bf16 1069105081, %v2150_v29  ;;  %v1654_v35 = vmin.bf16 %v1638_v6, %v1622_v1  ;;  %v1608_v36 = vadd.bf16 %v5906_v13, %v1575_v55  ;;  %v2078_v46 = vpop.permute.xlu1 %2077 }
 0x1ce   : > { %3995 = vmatprep.mubr.msk.bf16.mxu0 %vm700_vm1, %v4706_v49  ;;  %v4716_v17 = vpop.eup %4715  ;;  %4729 = vpow.bf16 %v1694_v23  ;;  %v1657_v58 = vmin.bf16 %v1641_v30, %v1625_v24  ;;  %v1611_v26 = vadd.bf16 %v5909_v15, %v1580_v11  ;;  %v2123_v42 = vsub.bf16 0, %v2107_v31 }
 0x1cf   : > { %4731 = vpow.bf16 %v1685_v7  ;;  %v2139_v18 = vmul.bf16 3192766029, %v2107_v31  ;;  %v2120_v50 = vsub.bf16 0, %v2104_v32  ;;  %v2136_v43 = vmul.bf16 3192766029, %v2104_v32 }
 0x1d0   : > { %v2192_v53 = vmul.bf16 1069105081, %v2153_v33  ;;  %4733 = vpow.bf16 %v2183_v19  ;;  %v1691_v59 = vmul.bf16 1069105081, %v1654_v35  ;;  %v1624_v27 = vsub.bf16 0, %v1608_v36 }
 0x1d1   : > { %v4718_v37 = vpop.eup %4717  ;;  %v1640_v51 = vmul.bf16 3192766029, %v1608_v36  ;;  %v1700_v15 = vmul.bf16 1069105081, %v1657_v58  ;;  %v1627_v44 = vsub.bf16 0, %v1611_v26  ;;  %v2106_v9 = vadd.bf16 %v5913_v20, %v2073_v16 }
 0x1d2   : > { %4060 = vmatmul.mubr.msk.bf16.gmra.mrb[36].mxu1 %vm697_vm0, %v4710_v10  ;;  %v4720_v61 = vpop.eup %4719  ;;  %v1643_v54 = vmul.bf16 3192766029, %v1611_v26  ;;  %v2155_v55 = vmin.bf16 %v2139_v18, %v2123_v42  ;;  %v2109_v22 = vadd.bf16 %v5916_v21, %v2078_v46  ;;  %v2152_v4 = vmin.bf16 %v2136_v43, %v2120_v50  ;;  %v763_v26 = vld [vmem:[#allocation2] sm:$0xff] }
 0x1d3   : > { %4061 = vmatprep.mubr.msk.bf16.mxu1 %vm700_vm1, %v4712_v5  ;;  %v4722_v49 = vpop.eup %4721  ;;  %4735 = vpow.bf16 %v2192_v53  ;;  %v1656_v45 = vmin.bf16 %v1640_v51, %v1624_v27  ;;  %v2122_v2 = vsub.bf16 0, %v2106_v9  ;;  %v2138_v63 = vmul.bf16 3192766029, %v2106_v9  ;;  %v1263_v51 = vld [vmem:[#allocation2 + $0x88] sm:$0xff]  ;;  %v765_v9 = vld [vmem:[#allocation2 + $0x10] sm:$0xff] }
 0x1d4   : > { %v4724_v52 = vpop.eup %4723  ;;  %4737 = vpow.bf16 %v1691_v59  ;;  %v1659_v0 = vmin.bf16 %v1643_v54, %v1627_v44  ;;  %v1610_v56 = vadd.bf16 %v5906_v13, %v1580_v11  ;;  %v2198_v34 = vmul.bf16 1069105081, %v2155_v55 }
 0x1d5   : > { %3996 = vmatmul.mubr.msk.bf16.gmra.mrb[40].mxu0 %vm699_vm4, %v4714_v47  ;;  %4739 = vpow.bf16 %v1700_v15  ;;  %v2125_v5 = vsub.bf16 0, %v2109_v22  ;;  %v2141_v41 = vmul.bf16 3192766029, %v2109_v22  ;;  %v2189_v62 = vmul.bf16 1069105081, %v2152_v4 }
 0x1d6   : > { %3997 = vmatprep.mubr.msk.bf16.mxu0 %vm702_vm5, %v4716_v17  ;;  %v4726_v10 = vpop.eup %4725  ;;  %v1697_v47 = vmul.bf16 1069105081, %v1656_v45  ;;  %v1706_v3 = vmul.bf16 1069105081, %v1659_v0  ;;  %v2154_v16 = vmin.bf16 %v2138_v63, %v2122_v2  ;;  %v2108_v17 = vadd.bf16 %v5913_v20, %v2078_v46  ;;  %v1262_v46 = vld [vmem:[#allocation2 + $0x80] sm:$0xff]  ;;  %v766_v45 = vld [vmem:[#allocation2 + $0x18] sm:$0xff] }
 0x1d7   : > { %v4728_v57 = vpop.eup %4727  ;;  %v1626_v29 = vsub.bf16 0, %v1610_v56  ;;  %v1642_v1 = vmul.bf16 3192766029, %v1610_v56  ;;  %4741 = vpow.bf16 %v2198_v34  ;;  %v2157_v13 = vmin.bf16 %v2141_v41, %v2125_v5  ;;  %v1264_v34 = vld [vmem:[#allocation2 + $0x90] sm:$0xff] }
 0x1d8   : > { %4743 = vpow.bf16 %v2189_v62  ;;  %v2195_v25 = vmul.bf16 1069105081, %v2154_v16  ;;  %v2124_v14 = vsub.bf16 0, %v2108_v17  ;;  %v2140_v23 = vmul.bf16 3192766029, %v2108_v17  ;;  %v767_v17 = vld [vmem:[#allocation2 + $0x20] sm:$0xff] }
 0x1d9   : > { %v4730_v21 = vpop.eup %4729  ;;  %4745 = vpow.bf16 %v1697_v47  ;;  %v1658_v30 = vmin.bf16 %v1642_v1, %v1626_v29  ;;  %v2204_v20 = vmul.bf16 1069105081, %v2157_v13  ;;  %vm988_vm11 = vcmask 138240  }
 0x1da   : > { %4062 = vmatmul.mubr.msk.bf16.gmra.mrb[40].mxu1 %vm699_vm4, %v4720_v61  ;;  %v4732_v48 = vpop.eup %4731  ;;  %4747 = vpow.bf16 %v1706_v3  ;;  %v2156_v31 = vmin.bf16 %v2140_v23, %v2124_v14 }
 0x1db   : > { %4063 = vmatprep.mubr.msk.bf16.mxu1 %vm702_vm5, %v4718_v37  ;;  %v4734_v6 = vpop.eup %4733  ;;  %4749 = vpow.bf16 %v2195_v25  ;;  %v1703_v32 = vmul.bf16 1069105081, %v1658_v30  ;;  %v768_v25 = vld [vmem:[#allocation2 + $0x28] sm:$0xff] }
 0x1dc   : > { %4751 = vpow.bf16 %v2204_v20  ;;  %v2201_v19 = vmul.bf16 1069105081, %v2156_v31 }
 0x1dd   : > { %3998 = vmatmul.mubr.msk.bf16.gmra.mrb[44].mxu0 %vm701_vm6, %v4722_v49  ;;  %4753 = vpow.bf16 %v1703_v32  ;;  %v764_v49 = vld [vmem:[#allocation2 + $0x8] sm:$0xff] }
 0x1de   : > { %3999 = vmatprep.mubr.msk.bf16.mxu0 %vm704_vm7, %v4724_v52  ;;  %v4736_v24 = vpop.eup %4735  ;;  %4755 = vpow.bf16 %v2201_v19  ;;  %v1267_v19 = vld [vmem:[#allocation2 + $0xa8] sm:$0xff] }
 0x1df   : > { %v4738_v7 = vpop.eup %4737 }
 0x1e0   : > { %v4740_v11 = vpop.eup %4739 }
 0x1e2   : > { %4064 = vmatmul.mubr.msk.bf16.gmra.mrb[44].mxu1 %vm701_vm6, %v4726_v10  ;;  %v4742_v33 = vpop.eup %4741 }
 0x1e3   : > { %4065 = vmatprep.mubr.msk.bf16.mxu1 %vm704_vm7, %v4728_v57  ;;  %v4744_v35 = vpop.eup %4743 }
 0x1e4   : > { %v4746_v12 = vpop.eup %4745 }
 0x1e5   : > { %4000 = vmatmul.mubr.msk.bf16.gmra.mrb[48].mxu0 %vm703_vm9, %v4732_v48  ;;  %v4748_v28 = vpop.eup %4747 }
 0x1e6   : > { %4001 = vmatprep.mubr.msk.bf16.mxu0 %vm706_vm10, %v4730_v21  ;;  %v4750_v36 = vpop.eup %4749  ;;  %v1265_v21 = vld [vmem:[#allocation2 + $0x98] sm:$0xff] }
 0x1e7   : > { %v4752_v37 = vpop.eup %4751 }
 0x1e8   : > { %v4754_v60 = vpop.eup %4753 }
 0x1e9   : > { %v4756_v39 = vpop.eup %4755 }
 0x1ea   : > { %4066 = vmatmul.mubr.msk.bf16.gmra.mrb[48].mxu1 %vm703_vm9, %v4734_v6 }
 0x1eb   : > { %4067 = vmatprep.mubr.msk.bf16.mxu1 %vm706_vm10, %v4736_v24 }
 0x1ed   : > { %4002 = vmatmul.mubr.msk.bf16.gmra.mrb[52].mxu0 %vm705_vm15, %v4738_v7  ;;  %v1266_v7 = vld [vmem:[#allocation2 + $0xa0] sm:$0xff] }
 0x1ee   : > { %4003 = vmatprep.mubr.msk.bf16.mxu0 %vm708_vm2, %v4740_v11 }
 0x1f2   : > { %4068 = vmatmul.mubr.msk.bf16.gmra.mrb[52].mxu1 %vm705_vm15, %v4744_v35 }
 0x1f3   : > { %4069 = vmatprep.mubr.msk.bf16.mxu1 %vm708_vm2, %v4742_v33 }
 0x1f5   : > { %4004 = vmatmul.mubr.msk.bf16.gmra.mrb[56].mxu0 %vm707_vm3, %v4746_v12 }
 0x1f6   : > { %4005 = vmatprep.mubr.msk.bf16.mxu0 %vm710_vm8, %v4748_v28 }
 0x1fa   : > { %4070 = vmatmul.mubr.msk.bf16.gmra.mrb[56].mxu1 %vm707_vm3, %v4750_v36  ;;  %v769_v36 = vld [vmem:[#allocation2 + $0x30] sm:$0xff] }
 0x1fb   : > { %4071 = vmatprep.mubr.msk.bf16.mxu1 %vm710_vm8, %v4752_v37 }
 0x1fd   : > { %4006 = vmatmul.mubr.msk.bf16.gmra.mrb[60].mxu0 %vm709_vm14, %v4754_v60 }
 0x202   : > { %4072 = vmatmul.mubr.msk.bf16.gmra.mrb[60].mxu1 %vm709_vm14, %v4756_v39 }
 0x258   : > { %v4161_v58 = vpop.f32.mrb[0].mxu0 }
 0x259   : > { %v4162_v61 = vpop.f32.mrb[1].mxu0 }
 0x25a   : > { %v4163_v42 = vadd.f32 %v4162_v61, %v4161_v58  ;;  %v4164_v18 = vpop.f32.mrb[2].mxu0 }
 0x25b   : > { %v4165_v38 = vpop.f32.mrb[3].mxu0 }
 0x25c   : > { %v972_v50 = vadd.f32 %v4163_v42, %v763_v26  ;;  %v4166_v43 = vadd.f32 %v4165_v38, %v4164_v18  ;;  %v770_v26 = vld [vmem:[#allocation2 + $0x38] sm:$0xff] }
 0x25d   : > { %v4225_v40 = vpop.f32.mrb[0].mxu1 }
 0x25e   : > { %989 = vst.msk [vmem:[#allocation2] sm:$0xff] %vm988_vm11, %v972_v50  ;;  %v973_v53 = vadd.f32 %v4166_v43, %v764_v49  ;;  %v4226_v52 = vpop.f32.mrb[1].mxu1  ;;  %v1268_v50 = vld [vmem:[#allocation2 + $0xb0] sm:$0xff] }
 0x25f   : > { %v4227_v59 = vadd.f32 %v4226_v52, %v4225_v40  ;;  %v4228_v27 = vpop.f32.mrb[2].mxu1  ;;  %v1269_v52 = vld [vmem:[#allocation2 + $0xb8] sm:$0xff] }
 0x260   : > { %990 = vst.msk [vmem:[#allocation2 + $0x8] sm:$0xff] %vm988_vm11, %v973_v53  ;;  %v4167_v8 = vpop.f32.mrb[4].mxu0  ;;  %v4229_v15 = vpop.f32.mrb[3].mxu1 }
 0x261   : > { %v1471_v44 = vadd.f32 %v4227_v59, %v1262_v46  ;;  %v4230_v54 = vadd.f32 %v4229_v15, %v4228_v27  ;;  %v4168_v55 = vpop.f32.mrb[5].mxu0 }
 0x262   : > { %v4169_v22 = vadd.f32 %v4168_v55, %v4167_v8  ;;  %v4170_v4 = vpop.f32.mrb[6].mxu0  ;;  %v772_v55 = vld [vmem:[#allocation2 + $0x48] sm:$0xff] }
 0x263   : > { %1487 = vst.msk [vmem:[#allocation2 + $0x80] sm:$0xff] %vm988_vm11, %v1471_v44  ;;  %v1472_v10 = vadd.f32 %v4230_v54, %v1263_v51  ;;  %v4171_v57 = vpop.f32.mrb[7].mxu0  ;;  %v771_v51 = vld [vmem:[#allocation2 + $0x40] sm:$0xff] }
 0x264   : > { %v974_v0 = vadd.f32 %v4169_v22, %v765_v9  ;;  %v4172_v2 = vadd.f32 %v4171_v57, %v4170_v4 }
 0x265   : > { %1488 = vst.msk [vmem:[#allocation2 + $0x88] sm:$0xff] %vm988_vm11, %v1472_v10  ;;  %v4231_v63 = vpop.f32.mrb[4].mxu1 }
 0x266   : > { %991 = vst.msk [vmem:[#allocation2 + $0x10] sm:$0xff] %vm988_vm11, %v974_v0  ;;  %v975_v56 = vadd.f32 %v4172_v2, %v766_v45  ;;  %v4232_v5 = vpop.f32.mrb[5].mxu1  ;;  %v1270_v0 = vld [vmem:[#allocation2 + $0xc0] sm:$0xff] }
 0x267   : > { %v4233_v41 = vadd.f32 %v4232_v5, %v4231_v63  ;;  %v4234_v62 = vpop.f32.mrb[6].mxu1  ;;  %v1271_v5 = vld [vmem:[#allocation2 + $0xc8] sm:$0xff] }
 0x268   : > { %992 = vst.msk [vmem:[#allocation2 + $0x18] sm:$0xff] %vm988_vm11, %v975_v56  ;;  %v4235_v47 = vpop.f32.mrb[7].mxu1  ;;  %v4173_v48 = vpop.f32.mrb[8].mxu0 }
 0x269   : > { %v1473_v3 = vadd.f32 %v4233_v41, %v1264_v34  ;;  %v4236_v16 = vadd.f32 %v4235_v47, %v4234_v62  ;;  %v4174_v29 = vpop.f32.mrb[9].mxu0  ;;  %v773_v47 = vld [vmem:[#allocation2 + $0x50] sm:$0xff] }
 0x26a   : > { %v4175_v1 = vadd.f32 %v4174_v29, %v4173_v48  ;;  %v4176_v13 = vpop.f32.mrb[10].mxu0  ;;  %v774_v29 = vld [vmem:[#allocation2 + $0x58] sm:$0xff] }
 0x26b   : > { %1489 = vst.msk [vmem:[#allocation2 + $0x90] sm:$0xff] %vm988_vm11, %v1473_v3  ;;  %v1474_v6 = vadd.f32 %v4236_v16, %v1265_v21  ;;  %v4177_v14 = vpop.f32.mrb[11].mxu0 }
 0x26c   : > { %v976_v23 = vadd.f32 %v4175_v1, %v767_v17  ;;  %v4178_v24 = vadd.f32 %v4177_v14, %v4176_v13 }
 0x26d   : > { %1490 = vst.msk [vmem:[#allocation2 + $0x98] sm:$0xff] %vm988_vm11, %v1474_v6  ;;  %v4237_v30 = vpop.f32.mrb[8].mxu1 }
 0x26e   : > { %993 = vst.msk [vmem:[#allocation2 + $0x20] sm:$0xff] %vm988_vm11, %v976_v23  ;;  %v977_v20 = vadd.f32 %v4178_v24, %v768_v25  ;;  %v4238_v11 = vpop.f32.mrb[9].mxu1  ;;  %v1272_v23 = vld [vmem:[#allocation2 + $0xd0] sm:$0xff] }
 0x26f   : > { %v4239_v31 = vadd.f32 %v4238_v11, %v4237_v30  ;;  %v4240_v32 = vpop.f32.mrb[10].mxu1  ;;  %v1273_v11 = vld [vmem:[#allocation2 + $0xd8] sm:$0xff] }
 0x270   : > { %994 = vst.msk [vmem:[#allocation2 + $0x28] sm:$0xff] %vm988_vm11, %v977_v20  ;;  %v4179_v33 = vpop.f32.mrb[12].mxu0  ;;  %v4241_v35 = vpop.f32.mrb[11].mxu1 }
 0x271   : > { %v1475_v12 = vadd.f32 %v4239_v31, %v1266_v7  ;;  %v4242_v28 = vadd.f32 %v4241_v35, %v4240_v32  ;;  %v4180_v37 = vpop.f32.mrb[13].mxu0 }
 0x272   : > { %v4181_v60 = vadd.f32 %v4180_v37, %v4179_v33  ;;  %v4182_v39 = vpop.f32.mrb[14].mxu0  ;;  %v776_v37 = vld [vmem:[#allocation2 + $0x68] sm:$0xff] }
 0x273   : > { %1491 = vst.msk [vmem:[#allocation2 + $0xa0] sm:$0xff] %vm988_vm11, %v1475_v12  ;;  %v1476_v58 = vadd.f32 %v4242_v28, %v1267_v19  ;;  %v4183_v61 = vpop.f32.mrb[15].mxu0  ;;  %v775_v19 = vld [vmem:[#allocation2 + $0x60] sm:$0xff] }
 0x274   : > { %v978_v42 = vadd.f32 %v4181_v60, %v769_v36  ;;  %v4184_v18 = vadd.f32 %v4183_v61, %v4182_v39 }
 0x275   : > { %1492 = vst.msk [vmem:[#allocation2 + $0xa8] sm:$0xff] %vm988_vm11, %v1476_v58  ;;  %v4243_v49 = vpop.f32.mrb[12].mxu1 }
 0x276   : > { %995 = vst.msk [vmem:[#allocation2 + $0x30] sm:$0xff] %vm988_vm11, %v978_v42  ;;  %v979_v38 = vadd.f32 %v4184_v18, %v770_v26  ;;  %v4244_v43 = vpop.f32.mrb[13].mxu1  ;;  %v1274_v42 = vld [vmem:[#allocation2 + $0xe0] sm:$0xff] }
 0x277   : > { %v4245_v40 = vadd.f32 %v4244_v43, %v4243_v49  ;;  %v4246_v53 = vpop.f32.mrb[14].mxu1  ;;  %v1275_v43 = vld [vmem:[#allocation2 + $0xe8] sm:$0xff] }
 0x278   : > { %996 = vst.msk [vmem:[#allocation2 + $0x38] sm:$0xff] %vm988_vm11, %v979_v38  ;;  %v4185_v46 = vpop.f32.mrb[16].mxu0  ;;  %v4247_v59 = vpop.f32.mrb[15].mxu1 }
 0x279   : > { %v1477_v27 = vadd.f32 %v4245_v40, %v1268_v50  ;;  %v4248_v8 = vadd.f32 %v4247_v59, %v4246_v53  ;;  %v4186_v15 = vpop.f32.mrb[17].mxu0 }
 0x27a   : > { %v4187_v44 = vadd.f32 %v4186_v15, %v4185_v46  ;;  %v4188_v54 = vpop.f32.mrb[18].mxu0  ;;  %v778_v15 = vld [vmem:[#allocation2 + $0x78] sm:$0xff] }
 0x27b   : > { %1493 = vst.msk [vmem:[#allocation2 + $0xb0] sm:$0xff] %vm988_vm11, %v1477_v27  ;;  %v1478_v9 = vadd.f32 %v4248_v8, %v1269_v52  ;;  %v4189_v22 = vpop.f32.mrb[19].mxu0  ;;  %v777_v52 = vld [vmem:[#allocation2 + $0x70] sm:$0xff] }
 0x27c   : > { %v980_v4 = vadd.f32 %v4187_v44, %v771_v51  ;;  %v4190_v10 = vadd.f32 %v4189_v22, %v4188_v54 }
 0x27d   : > { %1494 = vst.msk [vmem:[#allocation2 + $0xb8] sm:$0xff] %vm988_vm11, %v1478_v9  ;;  %v4249_v45 = vpop.f32.mrb[16].mxu1 }
 0x27e   : > { %997 = vst.msk [vmem:[#allocation2 + $0x40] sm:$0xff] %vm988_vm11, %v980_v4  ;;  %v981_v57 = vadd.f32 %v4190_v10, %v772_v55  ;;  %v4250_v2 = vpop.f32.mrb[17].mxu1  ;;  %v1276_v4 = vld [vmem:[#allocation2 + $0xf0] sm:$0xff] }
 0x27f   : > { %v4251_v63 = vadd.f32 %v4250_v2, %v4249_v45  ;;  %v4252_v56 = vpop.f32.mrb[18].mxu1 }
 0x280   : > { %998 = vst.msk [vmem:[#allocation2 + $0x48] sm:$0xff] %vm988_vm11, %v981_v57  ;;  %v4191_v34 = vpop.f32.mrb[20].mxu0  ;;  %v4253_v41 = vpop.f32.mrb[19].mxu1 }
 0x281   : > { %v1479_v62 = vadd.f32 %v4251_v63, %v1270_v0  ;;  %v4254_v21 = vadd.f32 %v4253_v41, %v4252_v56  ;;  %v4192_v48 = vpop.f32.mrb[21].mxu0  ;;  %v1277_v0 = vld [vmem:[#allocation2 + $0xf8] sm:$0xff] }
 0x282   : > { %v4193_v3 = vadd.f32 %v4192_v48, %v4191_v34  ;;  %v4194_v16 = vpop.f32.mrb[22].mxu0  ;;  %v1761_v48 = vld [vmem:[#allocation2 + $0x108] sm:$0xff] }
 0x283   : > { %1495 = vst.msk [vmem:[#allocation2 + $0xc0] sm:$0xff] %vm988_vm11, %v1479_v62  ;;  %v1480_v17 = vadd.f32 %v4254_v21, %v1271_v5  ;;  %v4195_v1 = vpop.f32.mrb[23].mxu0  ;;  %v1760_v5 = vld [vmem:[#allocation2 + $0x100] sm:$0xff] }
 0x284   : > { %v982_v13 = vadd.f32 %v4193_v3, %v773_v47  ;;  %v4196_v6 = vadd.f32 %v4195_v1, %v4194_v16 }
 0x285   : > { %1496 = vst.msk [vmem:[#allocation2 + $0xc8] sm:$0xff] %vm988_vm11, %v1480_v17  ;;  %v4255_v25 = vpop.f32.mrb[20].mxu1 }
 0x286   : > { %999 = vst.msk [vmem:[#allocation2 + $0x50] sm:$0xff] %vm988_vm11, %v982_v13  ;;  %v983_v14 = vadd.f32 %v4196_v6, %v774_v29  ;;  %v4256_v24 = vpop.f32.mrb[21].mxu1  ;;  %v2258_v13 = vld [vmem:[#allocation2 + $0x180] sm:$0xff] }
 0x287   : > { %v4257_v30 = vadd.f32 %v4256_v24, %v4255_v25  ;;  %v4258_v20 = vpop.f32.mrb[22].mxu1  ;;  %v2259_v24 = vld [vmem:[#allocation2 + $0x188] sm:$0xff] }
 0x288   : > { %1000 = vst.msk [vmem:[#allocation2 + $0x58] sm:$0xff] %vm988_vm11, %v983_v14  ;;  %v4197_v7 = vpop.f32.mrb[24].mxu0  ;;  %v4259_v31 = vpop.f32.mrb[23].mxu1 }
 0x289   : > { %v1481_v32 = vadd.f32 %v4257_v30, %v1272_v23  ;;  %v4260_v33 = vadd.f32 %v4259_v31, %v4258_v20  ;;  %v4198_v35 = vpop.f32.mrb[25].mxu0 }
 0x28a   : > { %v4199_v12 = vadd.f32 %v4198_v35, %v4197_v7  ;;  %v4200_v28 = vpop.f32.mrb[26].mxu0  ;;  %v1763_v35 = vld [vmem:[#allocation2 + $0x118] sm:$0xff] }
 0x28b   : > { %1497 = vst.msk [vmem:[#allocation2 + $0xd0] sm:$0xff] %vm988_vm11, %v1481_v32  ;;  %v1482_v36 = vadd.f32 %v4260_v33, %v1273_v11  ;;  %v4201_v60 = vpop.f32.mrb[27].mxu0  ;;  %v1762_v11 = vld [vmem:[#allocation2 + $0x110] sm:$0xff] }
 0x28c   : > { %v984_v39 = vadd.f32 %v4199_v12, %v775_v19  ;;  %v4202_v58 = vadd.f32 %v4201_v60, %v4200_v28 }
 0x28d   : > { %1498 = vst.msk [vmem:[#allocation2 + $0xd8] sm:$0xff] %vm988_vm11, %v1482_v36  ;;  %v4261_v26 = vpop.f32.mrb[24].mxu1 }
 0x28e   : > { %1001 = vst.msk [vmem:[#allocation2 + $0x60] sm:$0xff] %vm988_vm11, %v984_v39  ;;  %v985_v61 = vadd.f32 %v4202_v58, %v776_v37  ;;  %v4262_v18 = vpop.f32.mrb[25].mxu1  ;;  %v2260_v39 = vld [vmem:[#allocation2 + $0x190] sm:$0xff] }
 0x28f   : > { %v4263_v49 = vadd.f32 %v4262_v18, %v4261_v26  ;;  %v4264_v38 = vpop.f32.mrb[26].mxu1 }
 0x290   : > { %1002 = vst.msk [vmem:[#allocation2 + $0x68] sm:$0xff] %vm988_vm11, %v985_v61  ;;  %v4203_v50 = vpop.f32.mrb[28].mxu0  ;;  %v4265_v40 = vpop.f32.mrb[27].mxu1 }
 0x291   : > { %v1483_v53 = vadd.f32 %v4263_v49, %v1274_v42  ;;  %v4266_v46 = vadd.f32 %v4265_v40, %v4264_v38  ;;  %v4204_v59 = vpop.f32.mrb[29].mxu0  ;;  %v2261_v42 = vld [vmem:[#allocation2 + $0x198] sm:$0xff] }
 0x292   : > { %v4205_v27 = vadd.f32 %v4204_v59, %v4203_v50  ;;  %v4206_v8 = vpop.f32.mrb[30].mxu0  ;;  %v1765_v59 = vld [vmem:[#allocation2 + $0x128] sm:$0xff] }
 0x293   : > { %1499 = vst.msk [vmem:[#allocation2 + $0xe0] sm:$0xff] %vm988_vm11, %v1483_v53  ;;  %v1484_v51 = vadd.f32 %v4266_v46, %v1275_v43  ;;  %v4207_v44 = vpop.f32.mrb[31].mxu0  ;;  %v1764_v43 = vld [vmem:[#allocation2 + $0x120] sm:$0xff] }
 0x294   : > { %v986_v54 = vadd.f32 %v4205_v27, %v777_v52  ;;  %v4208_v9 = vadd.f32 %v4207_v44, %v4206_v8 }
 0x295   : > { %1500 = vst.msk [vmem:[#allocation2 + $0xe8] sm:$0xff] %vm988_vm11, %v1484_v51  ;;  %v4267_v55 = vpop.f32.mrb[28].mxu1 }
 0x296   : > { %1003 = vst.msk [vmem:[#allocation2 + $0x70] sm:$0xff] %vm988_vm11, %v986_v54  ;;  %v987_v22 = vadd.f32 %v4208_v9, %v778_v15  ;;  %v4268_v10 = vpop.f32.mrb[29].mxu1  ;;  %v2262_v54 = vld [vmem:[#allocation2 + $0x1a0] sm:$0xff] }
 0x297   : > { %v4269_v45 = vadd.f32 %v4268_v10, %v4267_v55  ;;  %v4270_v57 = vpop.f32.mrb[30].mxu1  ;;  %v2263_v10 = vld [vmem:[#allocation2 + $0x1a8] sm:$0xff] }
 0x298   : > { %1004 = vst.msk [vmem:[#allocation2 + $0x78] sm:$0xff] %vm988_vm11, %v987_v22  ;;  %v4271_v2 = vpop.f32.mrb[31].mxu1  ;;  %v4289_v63 = vpop.f32.mrb[32].mxu0 }
 0x299   : > { %v1485_v56 = vadd.f32 %v4269_v45, %v1276_v4  ;;  %v4272_v34 = vadd.f32 %v4271_v2, %v4270_v57  ;;  %v4290_v41 = vpop.f32.mrb[33].mxu0  ;;  %v1766_v2 = vld [vmem:[#allocation2 + $0x130] sm:$0xff] }
 0x29a   : > { %v4291_v62 = vadd.f32 %v4290_v41, %v4289_v63  ;;  %v4292_v21 = vpop.f32.mrb[34].mxu0  ;;  %v1767_v41 = vld [vmem:[#allocation2 + $0x138] sm:$0xff] }
 0x29b   : > { %1501 = vst.msk [vmem:[#allocation2 + $0xf0] sm:$0xff] %vm988_vm11, %v1485_v56  ;;  %v1486_v47 = vadd.f32 %v4272_v34, %v1277_v0  ;;  %v4293_v3 = vpop.f32.mrb[35].mxu0 }
 0x29c   : > { %v1969_v16 = vadd.f32 %v4291_v62, %v1760_v5  ;;  %v4294_v17 = vadd.f32 %v4293_v3, %v4292_v21 }
 0x29d   : > { %1502 = vst.msk [vmem:[#allocation2 + $0xf8] sm:$0xff] %vm988_vm11, %v1486_v47  ;;  %v4353_v29 = vpop.f32.mrb[32].mxu1 }
 0x29e   : > { %1985 = vst.msk [vmem:[#allocation2 + $0x100] sm:$0xff] %vm988_vm11, %v1969_v16  ;;  %v1970_v1 = vadd.f32 %v4294_v17, %v1761_v48  ;;  %v4354_v6 = vpop.f32.mrb[33].mxu1  ;;  %v2264_v16 = vld [vmem:[#allocation2 + $0x1b0] sm:$0xff] }
 0x29f   : > { %v4355_v25 = vadd.f32 %v4354_v6, %v4353_v29  ;;  %v4356_v14 = vpop.f32.mrb[34].mxu1  ;;  %v2265_v6 = vld [vmem:[#allocation2 + $0x1b8] sm:$0xff] }
 0x2a0   : > { %1986 = vst.msk [vmem:[#allocation2 + $0x108] sm:$0xff] %vm988_vm11, %v1970_v1  ;;  %v4295_v23 = vpop.f32.mrb[36].mxu0  ;;  %v4357_v30 = vpop.f32.mrb[35].mxu1 }
 0x2a1   : > { %v2467_v20 = vadd.f32 %v4355_v25, %v2258_v13  ;;  %v4358_v7 = vadd.f32 %v4357_v30, %v4356_v14  ;;  %v4296_v31 = vpop.f32.mrb[37].mxu0 }
 0x2a2   : > { %v4297_v32 = vadd.f32 %v4296_v31, %v4295_v23  ;;  %v4298_v33 = vpop.f32.mrb[38].mxu0  ;;  %v1769_v31 = vld [vmem:[#allocation2 + $0x148] sm:$0xff] }
 0x2a3   : > { %2483 = vst.msk [vmem:[#allocation2 + $0x180] sm:$0xff] %vm988_vm11, %v2467_v20  ;;  %v2468_v19 = vadd.f32 %v4358_v7, %v2259_v24  ;;  %v4299_v12 = vpop.f32.mrb[39].mxu0  ;;  %v1768_v24 = vld [vmem:[#allocation2 + $0x140] sm:$0xff] }
 0x2a4   : > { %v1971_v28 = vadd.f32 %v4297_v32, %v1762_v11  ;;  %v4300_v36 = vadd.f32 %v4299_v12, %v4298_v33 }
 0x2a5   : > { %2484 = vst.msk [vmem:[#allocation2 + $0x188] sm:$0xff] %vm988_vm11, %v2468_v19  ;;  %v4359_v37 = vpop.f32.mrb[36].mxu1 }
 0x2a6   : > { %1987 = vst.msk [vmem:[#allocation2 + $0x110] sm:$0xff] %vm988_vm11, %v1971_v28  ;;  %v1972_v60 = vadd.f32 %v4300_v36, %v1763_v35  ;;  %v4360_v58 = vpop.f32.mrb[37].mxu1  ;;  %v2266_v28 = vld [vmem:[#allocation2 + $0x1c0] sm:$0xff] }
 0x2a7   : > { %v4361_v26 = vadd.f32 %v4360_v58, %v4359_v37  ;;  %v4362_v61 = vpop.f32.mrb[38].mxu1 }
 0x2a8   : > { %1988 = vst.msk [vmem:[#allocation2 + $0x118] sm:$0xff] %vm988_vm11, %v1972_v60  ;;  %v4363_v18 = vpop.f32.mrb[39].mxu1  ;;  %v4301_v49 = vpop.f32.mrb[40].mxu0 }
 0x2a9   : > { %v2469_v38 = vadd.f32 %v4361_v26, %v2260_v39  ;;  %v4364_v50 = vadd.f32 %v4363_v18, %v4362_v61  ;;  %v4302_v40 = vpop.f32.mrb[41].mxu0  ;;  %v2267_v39 = vld [vmem:[#allocation2 + $0x1c8] sm:$0xff]  ;;  %v1770_v18 = vld [vmem:[#allocation2 + $0x150] sm:$0xff] }
 0x2aa   : > { %v4303_v53 = vadd.f32 %v4302_v40, %v4301_v49  ;;  %v4304_v46 = vpop.f32.mrb[42].mxu0  ;;  %v1771_v40 = vld [vmem:[#allocation2 + $0x158] sm:$0xff] }
 0x2ab   : > { %2485 = vst.msk [vmem:[#allocation2 + $0x190] sm:$0xff] %vm988_vm11, %v2469_v38  ;;  %v2470_v52 = vadd.f32 %v4364_v50, %v2261_v42  ;;  %v4305_v27 = vpop.f32.mrb[43].mxu0 }
 0x2ac   : > { %v1973_v8 = vadd.f32 %v4303_v53, %v1764_v43  ;;  %v4306_v51 = vadd.f32 %v4305_v27, %v4304_v46 }
 0x2ad   : > { %2486 = vst.msk [vmem:[#allocation2 + $0x198] sm:$0xff] %vm988_vm11, %v2470_v52  ;;  %v4365_v15 = vpop.f32.mrb[40].mxu1 }
 0x2ae   : > { %1989 = vst.msk [vmem:[#allocation2 + $0x120] sm:$0xff] %vm988_vm11, %v1973_v8  ;;  %v1974_v44 = vadd.f32 %v4306_v51, %v1765_v59  ;;  %v4366_v9 = vpop.f32.mrb[41].mxu1  ;;  %v2268_v8 = vld [vmem:[#allocation2 + $0x1d0] sm:$0xff] }
 0x2af   : > { %v4367_v55 = vadd.f32 %v4366_v9, %v4365_v15  ;;  %v4368_v22 = vpop.f32.mrb[42].mxu1  ;;  %v2269_v9 = vld [vmem:[#allocation2 + $0x1d8] sm:$0xff] }
 0x2b0   : > { %1990 = vst.msk [vmem:[#allocation2 + $0x128] sm:$0xff] %vm988_vm11, %v1974_v44  ;;  %v4307_v4 = vpop.f32.mrb[44].mxu0  ;;  %v4369_v45 = vpop.f32.mrb[43].mxu1 }
 0x2b1   : > { %v2471_v57 = vadd.f32 %v4367_v55, %v2262_v54  ;;  %v4370_v0 = vadd.f32 %v4369_v45, %v4368_v22  ;;  %v4308_v63 = vpop.f32.mrb[45].mxu0 }
 0x2b2   : > { %v4309_v56 = vadd.f32 %v4308_v63, %v4307_v4  ;;  %v4310_v34 = vpop.f32.mrb[46].mxu0  ;;  %v1773_v63 = vld [vmem:[#allocation2 + $0x168] sm:$0xff] }
 0x2b3   : > { %2487 = vst.msk [vmem:[#allocation2 + $0x1a0] sm:$0xff] %vm988_vm11, %v2471_v57  ;;  %v2472_v5 = vadd.f32 %v4370_v0, %v2263_v10  ;;  %v4311_v62 = vpop.f32.mrb[47].mxu0  ;;  %v1772_v10 = vld [vmem:[#allocation2 + $0x160] sm:$0xff] }
 0x2b4   : > { %v1975_v21 = vadd.f32 %v4309_v56, %v1766_v2  ;;  %v4312_v47 = vadd.f32 %v4311_v62, %v4310_v34 }
 0x2b5   : > { %2488 = vst.msk [vmem:[#allocation2 + $0x1a8] sm:$0xff] %vm988_vm11, %v2472_v5  ;;  %v4371_v48 = vpop.f32.mrb[44].mxu1 }
 0x2b6   : > { %1991 = vst.msk [vmem:[#allocation2 + $0x130] sm:$0xff] %vm988_vm11, %v1975_v21  ;;  %v1976_v3 = vadd.f32 %v4312_v47, %v1767_v41  ;;  %v4372_v17 = vpop.f32.mrb[45].mxu1  ;;  %v2270_v21 = vld [vmem:[#allocation2 + $0x1e0] sm:$0xff] }
 0x2b7   : > { %v4373_v29 = vadd.f32 %v4372_v17, %v4371_v48  ;;  %v4374_v1 = vpop.f32.mrb[46].mxu1  ;;  %v2271_v17 = vld [vmem:[#allocation2 + $0x1e8] sm:$0xff] }
 0x2b8   : > { %1992 = vst.msk [vmem:[#allocation2 + $0x138] sm:$0xff] %vm988_vm11, %v1976_v3  ;;  %v4313_v13 = vpop.f32.mrb[48].mxu0  ;;  %v4375_v25 = vpop.f32.mrb[47].mxu1 }
 0x2b9   : > { %v2473_v14 = vadd.f32 %v4373_v29, %v2264_v16  ;;  %v4376_v23 = vadd.f32 %v4375_v25, %v4374_v1  ;;  %v4314_v30 = vpop.f32.mrb[49].mxu0 }
 0x2ba   : > { %v4315_v20 = vadd.f32 %v4314_v30, %v4313_v13  ;;  %v4316_v7 = vpop.f32.mrb[50].mxu0  ;;  %v1775_v30 = vld [vmem:[#allocation2 + $0x178] sm:$0xff] }
 0x2bb   : > { %2489 = vst.msk [vmem:[#allocation2 + $0x1b0] sm:$0xff] %vm988_vm11, %v2473_v14  ;;  %v2474_v11 = vadd.f32 %v4376_v23, %v2265_v6  ;;  %v4317_v32 = vpop.f32.mrb[51].mxu0  ;;  %v1774_v6 = vld [vmem:[#allocation2 + $0x170] sm:$0xff] }
 0x2bc   : > { %v1977_v33 = vadd.f32 %v4315_v20, %v1768_v24  ;;  %v4318_v19 = vadd.f32 %v4317_v32, %v4316_v7 }
 0x2bd   : > { %2490 = vst.msk [vmem:[#allocation2 + $0x1b8] sm:$0xff] %vm988_vm11, %v2474_v11  ;;  %v4377_v35 = vpop.f32.mrb[48].mxu1 }
 0x2be   : > { %1993 = vst.msk [vmem:[#allocation2 + $0x140] sm:$0xff] %vm988_vm11, %v1977_v33  ;;  %v1978_v12 = vadd.f32 %v4318_v19, %v1769_v31  ;;  %v4378_v36 = vpop.f32.mrb[49].mxu1  ;;  %v2272_v33 = vld [vmem:[#allocation2 + $0x1f0] sm:$0xff] }
 0x2bf   : > { %v4379_v37 = vadd.f32 %v4378_v36, %v4377_v35  ;;  %v4380_v60 = vpop.f32.mrb[50].mxu1 }
 0x2c0   : > { %1994 = vst.msk [vmem:[#allocation2 + $0x148] sm:$0xff] %vm988_vm11, %v1978_v12  ;;  %v4381_v58 = vpop.f32.mrb[51].mxu1  ;;  %v4319_v26 = vpop.f32.mrb[52].mxu0 }
 0x2c1   : > { %v2475_v61 = vadd.f32 %v4379_v37, %v2266_v28  ;;  %v4382_v42 = vadd.f32 %v4381_v58, %v4380_v60  ;;  %v4320_v49 = vpop.f32.mrb[53].mxu0  ;;  %v2273_v28 = vld [vmem:[#allocation2 + $0x1f8] sm:$0xff] }
 0x2c2   : > { %v4321_v38 = vadd.f32 %v4320_v49, %v4319_v26  ;;  %v4322_v50 = vpop.f32.mrb[54].mxu0 }
 0x2c3   : > { %2491 = vst.msk [vmem:[#allocation2 + $0x1c0] sm:$0xff] %vm988_vm11, %v2475_v61  ;;  %v2476_v43 = vadd.f32 %v4382_v42, %v2267_v39  ;;  %v4323_v53 = vpop.f32.mrb[55].mxu0 }
 0x2c4   : > { %v1979_v46 = vadd.f32 %v4321_v38, %v1770_v18  ;;  %v4324_v52 = vadd.f32 %v4323_v53, %v4322_v50 }
 0x2c5   : > { %2492 = vst.msk [vmem:[#allocation2 + $0x1c8] sm:$0xff] %vm988_vm11, %v2476_v43  ;;  %v4383_v59 = vpop.f32.mrb[52].mxu1 }
 0x2c6   : > { %1995 = vst.msk [vmem:[#allocation2 + $0x150] sm:$0xff] %vm988_vm11, %v1979_v46  ;;  %v1980_v27 = vadd.f32 %v4324_v52, %v1771_v40  ;;  %v4384_v51 = vpop.f32.mrb[53].mxu1 }
 0x2c7   : > { %v4385_v15 = vadd.f32 %v4384_v51, %v4383_v59  ;;  %v4386_v44 = vpop.f32.mrb[54].mxu1 }
 0x2c8   : > { %1996 = vst.msk [vmem:[#allocation2 + $0x158] sm:$0xff] %vm988_vm11, %v1980_v27  ;;  %v4325_v54 = vpop.f32.mrb[56].mxu0  ;;  %v4387_v55 = vpop.f32.mrb[55].mxu1 }
 0x2c9   : > { %v2477_v22 = vadd.f32 %v4385_v15, %v2268_v8  ;;  %v4388_v4 = vadd.f32 %v4387_v55, %v4386_v44  ;;  %v4326_v45 = vpop.f32.mrb[57].mxu0 }
 0x2ca   : > { %v4327_v57 = vadd.f32 %v4326_v45, %v4325_v54  ;;  %v4328_v0 = vpop.f32.mrb[58].mxu0 }
 0x2cb   : > { %2493 = vst.msk [vmem:[#allocation2 + $0x1d0] sm:$0xff] %vm988_vm11, %v2477_v22  ;;  %v2478_v2 = vadd.f32 %v4388_v4, %v2269_v9  ;;  %v4329_v56 = vpop.f32.mrb[59].mxu0 }
 0x2cc   : > { %v1981_v34 = vadd.f32 %v4327_v57, %v1772_v10  ;;  %v4330_v5 = vadd.f32 %v4329_v56, %v4328_v0 }
 0x2cd   : > { %2494 = vst.msk [vmem:[#allocation2 + $0x1d8] sm:$0xff] %vm988_vm11, %v2478_v2  ;;  %v4389_v41 = vpop.f32.mrb[56].mxu1 }
 0x2ce   : > { %1997 = vst.msk [vmem:[#allocation2 + $0x160] sm:$0xff] %vm988_vm11, %v1981_v34  ;;  %v1982_v62 = vadd.f32 %v4330_v5, %v1773_v63  ;;  %v4390_v47 = vpop.f32.mrb[57].mxu1 }
 0x2cf   : > { %v4391_v48 = vadd.f32 %v4390_v47, %v4389_v41  ;;  %v4392_v3 = vpop.f32.mrb[58].mxu1 }
 0x2d0   : > { %1998 = vst.msk [vmem:[#allocation2 + $0x168] sm:$0xff] %vm988_vm11, %v1982_v62  ;;  %v4331_v16 = vpop.f32.mrb[60].mxu0  ;;  %v4393_v29 = vpop.f32.mrb[59].mxu1 }
 0x2d1   : > { %v2479_v1 = vadd.f32 %v4391_v48, %v2270_v21  ;;  %v4394_v13 = vadd.f32 %v4393_v29, %v4392_v3  ;;  %v4332_v25 = vpop.f32.mrb[61].mxu0 }
 0x2d2   : > { %v4333_v14 = vadd.f32 %v4332_v25, %v4331_v16  ;;  %v4334_v23 = vpop.f32.mrb[62].mxu0 }
 0x2d3   : > { %2495 = vst.msk [vmem:[#allocation2 + $0x1e0] sm:$0xff] %vm988_vm11, %v2479_v1  ;;  %v2480_v24 = vadd.f32 %v4394_v13, %v2271_v17  ;;  %v4335_v20 = vpop.f32.mrb[63].mxu0 }
 0x2d4   : > { %v1983_v7 = vadd.f32 %v4333_v14, %v1774_v6  ;;  %v4336_v11 = vadd.f32 %v4335_v20, %v4334_v23 }
 0x2d5   : > { %2496 = vst.msk [vmem:[#allocation2 + $0x1e8] sm:$0xff] %vm988_vm11, %v2480_v24  ;;  %v4395_v31 = vpop.f32.mrb[60].mxu1 }
 0x2d6   : > { %1999 = vst.msk [vmem:[#allocation2 + $0x170] sm:$0xff] %vm988_vm11, %v1983_v7  ;;  %v1984_v32 = vadd.f32 %v4336_v11, %v1775_v30  ;;  %v4396_v19 = vpop.f32.mrb[61].mxu1 }
 0x2d7   : > { %v4397_v35 = vadd.f32 %v4396_v19, %v4395_v31  ;;  %v4398_v12 = vpop.f32.mrb[62].mxu1 }
 0x2d8   : > { %2000 = vst.msk [vmem:[#allocation2 + $0x178] sm:$0xff] %vm988_vm11, %v1984_v32  ;;  %v4399_v36 = vpop.f32.mrb[63].mxu1 }
 0x2d9   : > { %v2481_v37 = vadd.f32 %v4397_v35, %v2272_v33  ;;  %v4400_v60 = vadd.f32 %v4399_v36, %v4398_v12 }
 0x2db   : > { %2497 = vst.msk [vmem:[#allocation2 + $0x1f0] sm:$0xff] %vm988_vm11, %v2481_v37  ;;  %v2482_v39 = vadd.f32 %v4400_v60, %v2273_v28 }
 0x2dd   : > { %2498 = vst.msk [vmem:[#allocation2 + $0x1f8] sm:$0xff] %vm988_vm11, %v2482_v39 }
 0x2de PF: > { %p4073_p7 = scmp.ne.s32.totalorder %s5273_s8, 2 }
 0x2e0   : > { %2502 = sbr.rel (%p4073_p7) target bundleno = 1147 (0x47b), region = 64 }
 0x2e7   : > { %v2505_v58 = vld [vmem:[#allocation2 + $0x10] sm:$0xff]  ;;  %v2503_v26 = vld [vmem:[#allocation2] sm:$0xff]  ;;  %v2506_v61 = vld [vmem:[#allocation2 + $0x18] sm:$0xff]  ;;  %v5308_v42 = vmov 16   ;;  %s5309_s8 = smov 16   ;;  %s5310_s14 = smov 32  }
 0x2e8   : > { %4758 = vset.pattern.permute.xlu1 %v5308_v42  ;;  %4757 = vset.pattern.permute.xlu0 %v5308_v42  ;;  %v2521_v18 = vmax.f32 %v2505_v58, 1e-30  ;;  %v2519_v49 = vmax.f32 %v2503_v26, 1e-30  ;;  %v2504_v38 = vld [vmem:[#allocation2 + $0x8] sm:$0xff]  ;;  %v2507_v53 = vld [vmem:[#allocation2 + $0x20] sm:$0xff] }
 0x2e9   : > { %v2522_v50 = vmax.f32 %v2506_v61, 1e-30  ;;  %v2520_v43 = vmax.f32 %v2504_v38, 1e-30  ;;  %v2508_v40 = vld [vmem:[#allocation2 + $0x28] sm:$0xff]  ;;  %v2510_v59 = vld [vmem:[#allocation2 + $0x38] sm:$0xff] }
 0x2ea   : > { %2547 = vperm.xlu1 %4758, %v2521_v18   ;;  %2537 = vperm.xlu0 %4757, %v2519_v49   ;;  %v2524_v46 = vmax.f32 %v2508_v40, 1e-30  ;;  %v2523_v52 = vmax.f32 %v2507_v53, 1e-30  ;;  %v2509_v27 = vld [vmem:[#allocation2 + $0x30] sm:$0xff]  ;;  %v2512_v15 = vld [vmem:[#allocation2 + $0x48] sm:$0xff] }
 0x2eb   : > { %v2526_v8 = vmax.f32 %v2510_v59, 1e-30  ;;  %v2525_v51 = vmax.f32 %v2509_v27, 1e-30  ;;  %v2511_v44 = vld [vmem:[#allocation2 + $0x40] sm:$0xff]  ;;  %v2514_v55 = vld [vmem:[#allocation2 + $0x58] sm:$0xff] }
 0x2ec   : > { %v2528_v54 = vmax.f32 %v2512_v15, 1e-30  ;;  %v2527_v9 = vmax.f32 %v2511_v44, 1e-30  ;;  %v2513_v22 = vld [vmem:[#allocation2 + $0x50] sm:$0xff]  ;;  %v2516_v45 = vld [vmem:[#allocation2 + $0x68] sm:$0xff] }
 0x2ed   : > { %v2530_v4 = vmax.f32 %v2514_v55, 1e-30  ;;  %v2529_v10 = vmax.f32 %v2513_v22, 1e-30  ;;  %v2515_v57 = vld [vmem:[#allocation2 + $0x60] sm:$0xff]  ;;  %v2518_v63 = vld [vmem:[#allocation2 + $0x78] sm:$0xff] }
 0x2ee   : > { %2552 = vperm.xlu1 %4758, %v2522_v50   ;;  %2542 = vperm.xlu0 %4757, %v2520_v43   ;;  %v2532_v0 = vmax.f32 %v2516_v45, 1e-30  ;;  %v2531_v2 = vmax.f32 %v2515_v57, 1e-30  ;;  %v2517_v56 = vld [vmem:[#allocation2 + $0x70] sm:$0xff]  ;;  %v6406_v41 = vld [vmem:[#allocation2 + $0x88] sm:$0xff] }
 0x2ef   : > { %v2534_v34 = vmax.f32 %v2518_v63, 1e-30  ;;  %v2533_v5 = vmax.f32 %v2517_v56, 1e-30  ;;  %v6408_v62 = vld [vmem:[#allocation2 + $0x80] sm:$0xff]  ;;  %v6412_v48 = vld [vmem:[#allocation2 + $0x98] sm:$0xff] }
 0x2f0   : > { %v2745_v21 = vmax.f32 %v6406_v41, 1e-30  ;;  %v2744_v47 = vmax.f32 %v6408_v62, 1e-30  ;;  %v6414_v3 = vld [vmem:[#allocation2 + $0x90] sm:$0xff]  ;;  %v6418_v29 = vld [vmem:[#allocation2 + $0xa8] sm:$0xff] }
 0x2f1   : > { %v2747_v16 = vmax.f32 %v6412_v48, 1e-30  ;;  %v2746_v17 = vmax.f32 %v6414_v3, 1e-30  ;;  %v6420_v1 = vld [vmem:[#allocation2 + $0xa0] sm:$0xff]  ;;  %v6424_v25 = vld [vmem:[#allocation2 + $0xb8] sm:$0xff] }
 0x2f2   : > { %2562 = vperm.xlu1 %4758, %v2524_v46   ;;  %2557 = vperm.xlu0 %4757, %v2523_v52   ;;  %v2749_v13 = vmax.f32 %v6418_v29, 1e-30  ;;  %v2748_v6 = vmax.f32 %v6420_v1, 1e-30  ;;  %v6426_v14 = vld [vmem:[#allocation2 + $0xb0] sm:$0xff]  ;;  %v6430_v30 = vld [vmem:[#allocation2 + $0xc8] sm:$0xff] }
 0x2f3   : > { %v2751_v23 = vmax.f32 %v6424_v25, 1e-30  ;;  %v2750_v24 = vmax.f32 %v6426_v14, 1e-30  ;;  %v6432_v20 = vld [vmem:[#allocation2 + $0xc0] sm:$0xff]  ;;  %v6436_v31 = vld [vmem:[#allocation2 + $0xd8] sm:$0xff] }
 0x2f4   : > { %v2753_v7 = vmax.f32 %v6430_v30, 1e-30  ;;  %v2752_v11 = vmax.f32 %v6432_v20, 1e-30  ;;  %v6438_v32 = vld [vmem:[#allocation2 + $0xd0] sm:$0xff]  ;;  %v6442_v35 = vld [vmem:[#allocation2 + $0xe8] sm:$0xff] }
 0x2f5   : > { %v2755_v33 = vmax.f32 %v6436_v31, 1e-30  ;;  %v2754_v19 = vmax.f32 %v6438_v32, 1e-30  ;;  %v6444_v12 = vld [vmem:[#allocation2 + $0xe0] sm:$0xff]  ;;  %v6448_v37 = vld [vmem:[#allocation2 + $0xf8] sm:$0xff] }
 0x2f6   : > { %2572 = vperm.xlu1 %4758, %v2526_v8   ;;  %2567 = vperm.xlu0 %4757, %v2525_v51   ;;  %v2757_v28 = vmax.f32 %v6442_v35, 1e-30  ;;  %v2756_v36 = vmax.f32 %v6444_v12, 1e-30  ;;  %v6450_v60 = vld [vmem:[#allocation2 + $0xf0] sm:$0xff]  ;;  %v6454_v26 = vld [vmem:[#allocation2 + $0x108] sm:$0xff] }
 0x2f7   : > { %v2759_v39 = vmax.f32 %v6448_v37, 1e-30  ;;  %v2758_v58 = vmax.f32 %v6450_v60, 1e-30  ;;  %v6456_v61 = vld [vmem:[#allocation2 + $0x100] sm:$0xff]  ;;  %v6460_v49 = vld [vmem:[#allocation2 + $0x118] sm:$0xff] }
 0x2f8   : > { %v2970_v42 = vmax.f32 %v6454_v26, 1e-30  ;;  %v2969_v18 = vmax.f32 %v6456_v61, 1e-30  ;;  %v6462_v38 = vld [vmem:[#allocation2 + $0x110] sm:$0xff]  ;;  %v6466_v40 = vld [vmem:[#allocation2 + $0x128] sm:$0xff] }
 0x2f9   : > { %v2972_v50 = vmax.f32 %v6460_v49, 1e-30  ;;  %v2971_v43 = vmax.f32 %v6462_v38, 1e-30  ;;  %v6468_v53 = vld [vmem:[#allocation2 + $0x120] sm:$0xff]  ;;  %v6472_v59 = vld [vmem:[#allocation2 + $0x138] sm:$0xff] }
 0x2fa   : > { %2582 = vperm.xlu1 %4758, %v2528_v54   ;;  %2577 = vperm.xlu0 %4757, %v2527_v9   ;;  %v2974_v46 = vmax.f32 %v6466_v40, 1e-30  ;;  %v2973_v52 = vmax.f32 %v6468_v53, 1e-30  ;;  %v6474_v27 = vld [vmem:[#allocation2 + $0x130] sm:$0xff]  ;;  %v6478_v15 = vld [vmem:[#allocation2 + $0x148] sm:$0xff] }
 0x2fb   : > { %v2976_v8 = vmax.f32 %v6472_v59, 1e-30  ;;  %v2975_v51 = vmax.f32 %v6474_v27, 1e-30  ;;  %v6480_v44 = vld [vmem:[#allocation2 + $0x140] sm:$0xff]  ;;  %v6484_v55 = vld [vmem:[#allocation2 + $0x158] sm:$0xff] }
 0x2fc   : > { %v2978_v54 = vmax.f32 %v6478_v15, 1e-30  ;;  %v2977_v9 = vmax.f32 %v6480_v44, 1e-30  ;;  %v6486_v22 = vld [vmem:[#allocation2 + $0x150] sm:$0xff]  ;;  %v6490_v45 = vld [vmem:[#allocation2 + $0x168] sm:$0xff] }
 0x2fd   : > { %v6492_v57 = vld [vmem:[#allocation2 + $0x160] sm:$0xff]  ;;  %v6496_v63 = vld [vmem:[#allocation2 + $0x178] sm:$0xff]  ;;  %v6498_v56 = vld [vmem:[#allocation2 + $0x170] sm:$0xff]  ;;  %s5311_s24 = smov 48  }
 0x2fe   : > { %2592 = vperm.xlu1 %4758, %v2530_v4   ;;  %2587 = vperm.xlu0 %4757, %v2529_v10   ;;  %v2980_v4 = vmax.f32 %v6484_v55, 1e-30  ;;  %v2979_v10 = vmax.f32 %v6486_v22, 1e-30 }
 0x302   : > { %2602 = vperm.xlu1 %4758, %v2532_v0   ;;  %2597 = vperm.xlu0 %4757, %v2531_v2   ;;  %v2982_v0 = vmax.f32 %v6490_v45, 1e-30  ;;  %v2981_v2 = vmax.f32 %v6492_v57, 1e-30 }
 0x306   : > { %2612 = vperm.xlu1 %4758, %v2534_v34   ;;  %2607 = vperm.xlu0 %4757, %v2533_v5   ;;  %v2984_v34 = vmax.f32 %v6496_v63, 1e-30  ;;  %v2983_v5 = vmax.f32 %v6498_v56, 1e-30 }
 0x30a   : > { %2767 = vperm.xlu1 %4758, %v2745_v21   ;;  %2762 = vperm.xlu0 %4757, %v2744_v47   ;;  %v6502_v21 = vld [vmem:[#allocation2 + $0x188] sm:$0xff]  ;;  %v6504_v47 = vld [vmem:[#allocation2 + $0x180] sm:$0xff] }
 0x30e   : > { %2777 = vperm.xlu1 %4758, %v2747_v16   ;;  %2772 = vperm.xlu0 %4757, %v2746_v17   ;;  %v3195_v16 = vmax.f32 %v6502_v21, 1e-30  ;;  %v3194_v17 = vmax.f32 %v6504_v47, 1e-30 }
 0x312   : > { %2787 = vperm.xlu1 %4758, %v2749_v13   ;;  %2782 = vperm.xlu0 %4757, %v2748_v6   ;;  %v6508_v13 = vld [vmem:[#allocation2 + $0x198] sm:$0xff]  ;;  %v6510_v6 = vld [vmem:[#allocation2 + $0x190] sm:$0xff] }
 0x316   : > { %2797 = vperm.xlu1 %4758, %v2751_v23   ;;  %2792 = vperm.xlu0 %4757, %v2750_v24   ;;  %v3197_v23 = vmax.f32 %v6508_v13, 1e-30  ;;  %v3196_v24 = vmax.f32 %v6510_v6, 1e-30 }
 0x31a   : > { %2807 = vperm.xlu1 %4758, %v2753_v7   ;;  %2802 = vperm.xlu0 %4757, %v2752_v11   ;;  %v6514_v7 = vld [vmem:[#allocation2 + $0x1a8] sm:$0xff]  ;;  %v6516_v11 = vld [vmem:[#allocation2 + $0x1a0] sm:$0xff] }
 0x31e   : > { %2817 = vperm.xlu1 %4758, %v2755_v33   ;;  %2812 = vperm.xlu0 %4757, %v2754_v19   ;;  %v3199_v33 = vmax.f32 %v6514_v7, 1e-30  ;;  %v3198_v19 = vmax.f32 %v6516_v11, 1e-30 }
 0x322   : > { %2827 = vperm.xlu1 %4758, %v2757_v28   ;;  %2822 = vperm.xlu0 %4757, %v2756_v36   ;;  %v6520_v28 = vld [vmem:[#allocation2 + $0x1b8] sm:$0xff]  ;;  %v6522_v36 = vld [vmem:[#allocation2 + $0x1b0] sm:$0xff] }
 0x326   : > { %2837 = vperm.xlu1 %4758, %v2759_v39   ;;  %2832 = vperm.xlu0 %4757, %v2758_v58   ;;  %v3201_v39 = vmax.f32 %v6520_v28, 1e-30  ;;  %v3200_v58 = vmax.f32 %v6522_v36, 1e-30 }
 0x32a   : > { %2992 = vperm.xlu1 %4758, %v2970_v42   ;;  %2987 = vperm.xlu0 %4757, %v2969_v18   ;;  %v6526_v42 = vld [vmem:[#allocation2 + $0x1c8] sm:$0xff]  ;;  %v6528_v18 = vld [vmem:[#allocation2 + $0x1c0] sm:$0xff] }
 0x32e   : > { %3002 = vperm.xlu1 %4758, %v2972_v50   ;;  %2997 = vperm.xlu0 %4757, %v2971_v43   ;;  %v3203_v50 = vmax.f32 %v6526_v42, 1e-30  ;;  %v3202_v43 = vmax.f32 %v6528_v18, 1e-30 }
 0x332   : > { %3012 = vperm.xlu1 %4758, %v2974_v46   ;;  %3007 = vperm.xlu0 %4757, %v2973_v52   ;;  %v6532_v46 = vld [vmem:[#allocation2 + $0x1d8] sm:$0xff]  ;;  %v6534_v52 = vld [vmem:[#allocation2 + $0x1d0] sm:$0xff] }
 0x336   : > { %3022 = vperm.xlu1 %4758, %v2976_v8   ;;  %3017 = vperm.xlu0 %4757, %v2975_v51   ;;  %v3205_v8 = vmax.f32 %v6532_v46, 1e-30  ;;  %v3204_v51 = vmax.f32 %v6534_v52, 1e-30 }
 0x33a   : > { %3032 = vperm.xlu1 %4758, %v2978_v54   ;;  %3027 = vperm.xlu0 %4757, %v2977_v9   ;;  %v6538_v54 = vld [vmem:[#allocation2 + $0x1e8] sm:$0xff]  ;;  %v6540_v9 = vld [vmem:[#allocation2 + $0x1e0] sm:$0xff] }
 0x33e   : > { %3042 = vperm.xlu1 %4758, %v2980_v4   ;;  %3037 = vperm.xlu0 %4757, %v2979_v10   ;;  %v3207_v4 = vmax.f32 %v6538_v54, 1e-30  ;;  %v3206_v10 = vmax.f32 %v6540_v9, 1e-30 }
 0x342   : > { %3052 = vperm.xlu1 %4758, %v2982_v0   ;;  %3047 = vperm.xlu0 %4757, %v2981_v2   ;;  %v6544_v0 = vld [vmem:[#allocation2 + $0x1f8] sm:$0xff]  ;;  %v6546_v2 = vld [vmem:[#allocation2 + $0x1f0] sm:$0xff] }
 0x346   : > { %3062 = vperm.xlu1 %4758, %v2984_v34   ;;  %3057 = vperm.xlu0 %4757, %v2983_v5   ;;  %v3209_v34 = vmax.f32 %v6544_v0, 1e-30  ;;  %v3208_v5 = vmax.f32 %v6546_v2, 1e-30 }
 0x34a   : > { %3217 = vperm.xlu1 %4758, %v3195_v16   ;;  %3212 = vperm.xlu0 %4757, %v3194_v17  }
 0x34e   : > { %3227 = vperm.xlu1 %4758, %v3197_v23   ;;  %3222 = vperm.xlu0 %4757, %v3196_v24  }
 0x352   : > { %3237 = vperm.xlu1 %4758, %v3199_v33   ;;  %3232 = vperm.xlu0 %4757, %v3198_v19  }
 0x356   : > { %3247 = vperm.xlu1 %4758, %v3201_v39   ;;  %3242 = vperm.xlu0 %4757, %v3200_v58  }
 0x35a   : > { %3257 = vperm.xlu1 %4758, %v3203_v50   ;;  %3252 = vperm.xlu0 %4757, %v3202_v43  }
 0x35e   : > { %3267 = vperm.xlu1 %4758, %v3205_v8   ;;  %3262 = vperm.xlu0 %4757, %v3204_v51  }
 0x362   : > { %3277 = vperm.xlu1 %4758, %v3207_v4   ;;  %3272 = vperm.xlu0 %4757, %v3206_v10  }
 0x366   : > { %3287 = vperm.xlu1 %4758, %v3209_v34   ;;  %3282 = vperm.xlu0 %4757, %v3208_v5  }
 0x369   : > { %v6550_v16 = vpop.permute.xlu1 %2547  ;;  %v6552_v17 = vpop.permute.xlu0 %2537 }
 0x36a   : > { %7304 = vst [vmem:[#allocation25_spill] sm:$0xff] %v6550_v16  ;;  %7305 = vst [vmem:[#allocation26_spill] sm:$0xff] %v6552_v17 }
 0x36d   : > { %v6554_v23 = vpop.permute.xlu1 %2552  ;;  %v6556_v24 = vpop.permute.xlu0 %2542 }
 0x36e   : > { %7306 = vst [vmem:[#allocation27_spill] sm:$0xff] %v6554_v23  ;;  %7307 = vst [vmem:[#allocation28_spill] sm:$0xff] %v6556_v24 }
 0x371   : > { %v6558_v33 = vpop.permute.xlu1 %2562  ;;  %v6560_v19 = vpop.permute.xlu0 %2557 }
 0x372   : > { %7308 = vst [vmem:[#allocation29_spill] sm:$0xff] %v6558_v33  ;;  %7309 = vst [vmem:[#allocation30_spill] sm:$0xff] %v6560_v19 }
 0x375   : > { %v6562_v39 = vpop.permute.xlu1 %2572  ;;  %v6564_v58 = vpop.permute.xlu0 %2567 }
 0x376   : > { %7310 = vst [vmem:[#allocation31_spill] sm:$0xff] %v6562_v39  ;;  %7311 = vst [vmem:[#allocation32_spill] sm:$0xff] %v6564_v58 }
 0x379   : > { %v6566_v50 = vpop.permute.xlu1 %2582  ;;  %v6568_v43 = vpop.permute.xlu0 %2577 }
 0x37a   : > { %7312 = vst [vmem:[#allocation33_spill] sm:$0xff] %v6566_v50  ;;  %7313 = vst [vmem:[#allocation34_spill] sm:$0xff] %v6568_v43 }
 0x37d   : > { %v6570_v8 = vpop.permute.xlu1 %2592  ;;  %v6572_v51 = vpop.permute.xlu0 %2587 }
 0x37e   : > { %7314 = vst [vmem:[#allocation35_spill] sm:$0xff] %v6570_v8  ;;  %7315 = vst [vmem:[#allocation36_spill] sm:$0xff] %v6572_v51 }
 0x381   : > { %v6574_v4 = vpop.permute.xlu1 %2602  ;;  %v6576_v10 = vpop.permute.xlu0 %2597 }
 0x382   : > { %7316 = vst [vmem:[#allocation37_spill] sm:$0xff] %v6574_v4  ;;  %7317 = vst [vmem:[#allocation38_spill] sm:$0xff] %v6576_v10 }
 0x385   : > { %v6578_v34 = vpop.permute.xlu1 %2612  ;;  %v6580_v5 = vpop.permute.xlu0 %2607 }
 0x386   : > { %7318 = vst [vmem:[#allocation39_spill] sm:$0xff] %v6578_v34  ;;  %7319 = vst [vmem:[#allocation40_spill] sm:$0xff] %v6580_v5 }
 0x389   : > { %v2768_v19 = vpop.permute.xlu1 %2767  ;;  %v2763_v39 = vpop.permute.xlu0 %2762 }
 0x38a   : > { %4759 = vrcp.f32 %v2768_v19 }
 0x38b   : > { %4761 = vrcp.f32 %v2763_v39 }
 0x38d   : > { %v2778_v58 = vpop.permute.xlu1 %2777  ;;  %v2773_v50 = vpop.permute.xlu0 %2772 }
 0x38e   : > { %4763 = vrcp.f32 %v2778_v58 }
 0x38f   : > { %4765 = vrcp.f32 %v2773_v50 }
 0x391   : > { %v2788_v43 = vpop.permute.xlu1 %2787  ;;  %v2783_v8 = vpop.permute.xlu0 %2782 }
 0x392   : > { %4767 = vrcp.f32 %v2788_v43 }
 0x393   : > { %4769 = vrcp.f32 %v2783_v8 }
 0x394   : > { %v4760_v51 = vpop.eup %4759 }
 0x395   : > { %v4762_v4 = vpop.eup %4761  ;;  %v2798_v33 = vpop.permute.xlu1 %2797  ;;  %v2843_v34 = vmul.f32 %v4760_v51, %v6406_v41 }
 0x396   : > { %v2793_v10 = vpop.permute.xlu0 %2792  ;;  %4771 = vrcp.f32 %v2798_v33  ;;  %v6584_v5 = vmul.f32 %v4762_v4, %v6408_v62 }
 0x397   : > { %4773 = vrcp.f32 %v2793_v10  ;;  %v2890_v19 = vmul.f32 1.442695, %v2843_v34  ;;  %vm2873_vm12 = vcmp.gt.f32.partialorder %v2843_v34, 0.0 }
 0x398   : > { %v4764_v39 = vpop.eup %4763  ;;  %v2888_v58 = vmul.f32 1.442695, %v6584_v5  ;;  %vm2872_vm13 = vcmp.gt.f32.partialorder %v6584_v5, 0.0 }
 0x399   : > { %v4766_v50 = vpop.eup %4765  ;;  %v2808_v16 = vpop.permute.xlu1 %2807  ;;  %4775 = vpow2.f32 %v2890_v19  ;;  %v6588_v43 = vmul.f32 %v4764_v39, %v6412_v48 }
 0x39a   : > { %v2803_v23 = vpop.permute.xlu0 %2802  ;;  %4777 = vrcp.f32 %v2808_v16  ;;  %v6591_v8 = vmul.f32 %v4766_v50, %v6414_v3 }
 0x39b   : > { %4779 = vrcp.f32 %v2803_v23  ;;  %v2894_v41 = vmul.f32 1.442695, %v6588_v43  ;;  %vm2875_vm0 = vcmp.gt.f32.partialorder %v6588_v43, 0.0 }
 0x39c   : > { %v4768_v62 = vpop.eup %4767  ;;  %4781 = vpow2.f32 %v2888_v58  ;;  %v2892_v33 = vmul.f32 1.442695, %v6591_v8  ;;  %vm2874_vm1 = vcmp.gt.f32.partialorder %v6591_v8, 0.0 }
 0x39d   : > { %v4770_v51 = vpop.eup %4769  ;;  %v2818_v4 = vpop.permute.xlu1 %2817  ;;  %4783 = vpow2.f32 %v2894_v41  ;;  %v6596_v19 = vmul.f32 %v4768_v62, %v6418_v29 }
 0x39e   : > { %v2813_v10 = vpop.permute.xlu0 %2812  ;;  %4785 = vrcp.f32 %v2818_v4  ;;  %v6599_v48 = vmul.f32 %v4770_v51, %v6420_v1 }
 0x39f   : > { %4787 = vrcp.f32 %v2813_v10  ;;  %v2898_v3 = vmul.f32 1.442695, %v6596_v19  ;;  %vm2877_vm4 = vcmp.gt.f32.partialorder %v6596_v19, 0.0 }
 0x3a0   : > { %v4772_v16 = vpop.eup %4771  ;;  %4789 = vpow2.f32 %v2892_v33  ;;  %v2896_v23 = vmul.f32 1.442695, %v6599_v48  ;;  %vm2876_vm5 = vcmp.gt.f32.partialorder %v6599_v48, 0.0 }
 0x3a1   : > { %v4774_v39 = vpop.eup %4773  ;;  %v2828_v58 = vpop.permute.xlu1 %2827  ;;  %4791 = vpow2.f32 %v2898_v3  ;;  %v6604_v41 = vmul.f32 %v4772_v16, %v6424_v25 }
 0x3a2   : > { %v2823_v50 = vpop.permute.xlu0 %2822  ;;  %4793 = vrcp.f32 %v2828_v58  ;;  %v6607_v29 = vmul.f32 %v4774_v39, %v6426_v14 }
 0x3a3   : > { %v4776_v1 = vpop.eup %4775  ;;  %4795 = vrcp.f32 %v2823_v50  ;;  %v2902_v62 = vmul.f32 1.442695, %v6604_v41  ;;  %vm2879_vm6 = vcmp.gt.f32.partialorder %v6604_v41, 0.0 }
 0x3a4   : > { %v4778_v51 = vpop.eup %4777  ;;  %v4091_v4 = vadd.f32 -1.0, %v4776_v1  ;;  %4797 = vpow2.f32 %v2896_v23  ;;  %v2900_v33 = vmul.f32 1.442695, %v6607_v29  ;;  %vm2878_vm7 = vcmp.gt.f32.partialorder %v6607_v29, 0.0 }
 0x3a5   : > { %v4780_v10 = vpop.eup %4779  ;;  %v2838_v17 = vpop.permute.xlu1 %2837  ;;  %4799 = vpow2.f32 %v2902_v62  ;;  %v6612_v25 = vmul.f32 %v4778_v51, %v6430_v30 }
 0x3a6   : > { %v2833_v24 = vpop.permute.xlu0 %2832  ;;  %v4782_v3 = vpop.eup %4781  ;;  %4801 = vrcp.f32 %v2838_v17  ;;  %v2937_v14 = vsel %vm2873_vm12, %v2843_v34, %v4091_v4  ;;  %v6615_v16 = vmul.f32 %v4780_v10, %v6432_v20 }
 0x3a7   : > { %v4784_v39 = vpop.eup %4783  ;;  %4803 = vrcp.f32 %v2833_v24  ;;  %3420 = vrot.lane.b32.xlu1 %v2937_v14, %s5309_s8  ;;  %v4090_v23 = vadd.f32 -1.0, %v4782_v3  ;;  %v2906_v58 = vmul.f32 1.442695, %v6612_v25  ;;  %vm2881_vm9 = vcmp.gt.f32.partialorder %v6612_v25, 0.0 }
 0x3a8   : > { %v4786_v50 = vpop.eup %4785  ;;  %v4093_v1 = vadd.f32 -1.0, %v4784_v39  ;;  %4805 = vpow2.f32 %v2900_v33  ;;  %v2904_v30 = vmul.f32 1.442695, %v6615_v16  ;;  %vm2880_vm10 = vcmp.gt.f32.partialorder %v6615_v16, 0.0 }
 0x3a9   : > { %v4788_v17 = vpop.eup %4787  ;;  %v2936_v34 = vsel %vm2872_vm13, %v6584_v5, %v4090_v23  ;;  %v2993_v20 = vpop.permute.xlu1 %2992  ;;  %4807 = vpow2.f32 %v2906_v58  ;;  %v6624_v24 = vmul.f32 %v4786_v50, %v6436_v31 }
 0x3aa   : > { %v2988_v62 = vpop.permute.xlu0 %2987  ;;  %v4790_v51 = vpop.eup %4789  ;;  %3418 = vrot.lane.b32.xlu0 %v2936_v34, %s5309_s8  ;;  %4809 = vrcp.f32 %v2993_v20  ;;  %v2939_v4 = vsel %vm2875_vm0, %v6588_v43, %v4093_v1  ;;  %v6629_v33 = vmul.f32 %v4788_v17, %v6438_v32 }
 0x3ab   : > { %v4792_v10 = vpop.eup %4791  ;;  %4811 = vrcp.f32 %v2988_v62  ;;  %3424 = vrot.lane.b32.xlu1 %v2939_v4, %s5309_s8  ;;  %v4092_v5 = vadd.f32 -1.0, %v4790_v51  ;;  %v2910_v3 = vmul.f32 1.442695, %v6624_v24  ;;  %vm2883_vm15 = vcmp.gt.f32.partialorder %v6624_v24, 0.0 }
 0x3ac   : > { %v4794_v14 = vpop.eup %4793  ;;  %v4095_v31 = vadd.f32 -1.0, %v4792_v10  ;;  %4813 = vpow2.f32 %v2904_v30  ;;  %v2908_v39 = vmul.f32 1.442695, %v6629_v33  ;;  %vm2882_vm2 = vcmp.gt.f32.partialorder %v6629_v33, 0.0 }
 0x3ad   : > { %v4796_v23 = vpop.eup %4795  ;;  %v2938_v43 = vsel %vm2874_vm1, %v6591_v8, %v4092_v5  ;;  %v3003_v58 = vpop.permute.xlu1 %3002  ;;  %4815 = vpow2.f32 %v2910_v3  ;;  %v6638_v50 = vmul.f32 %v4794_v14, %v6442_v35 }
 0x3ae   : > { %v2998_v32 = vpop.permute.xlu0 %2997  ;;  %v4798_v1 = vpop.eup %4797  ;;  %3422 = vrot.lane.b32.xlu0 %v2938_v43, %s5309_s8  ;;  %4817 = vrcp.f32 %v3003_v58  ;;  %v2941_v17 = vsel %vm2877_vm4, %v6596_v19, %v4095_v31  ;;  %v6643_v30 = vmul.f32 %v4796_v23, %v6444_v12 }
 0x3af   : > { %v4800_v34 = vpop.eup %4799  ;;  %4819 = vrcp.f32 %v2998_v32  ;;  %3428 = vrot.lane.b32.xlu1 %v2941_v17, %s5309_s8  ;;  %v4094_v8 = vadd.f32 -1.0, %v4798_v1  ;;  %v2914_v20 = vmul.f32 1.442695, %v6638_v50  ;;  %vm2885_vm3 = vcmp.gt.f32.partialorder %v6638_v50, 0.0 }
 0x3b0   : > { %v4802_v62 = vpop.eup %4801  ;;  %v4097_v35 = vadd.f32 -1.0, %v4800_v34  ;;  %4821 = vpow2.f32 %v2908_v39  ;;  %v2912_v51 = vmul.f32 1.442695, %v6643_v30  ;;  %vm2884_vm8 = vcmp.gt.f32.partialorder %v6643_v30, 0.0 }
 0x3b1   : > { %v4804_v4 = vpop.eup %4803  ;;  %v2940_v19 = vsel %vm2876_vm5, %v6599_v48, %v4094_v8  ;;  %v3013_v10 = vpop.permute.xlu1 %3012  ;;  %4823 = vpow2.f32 %v2914_v20  ;;  %v6652_v5 = vmul.f32 %v4802_v62, %v6448_v37 }
 0x3b2   : > { %v3008_v12 = vpop.permute.xlu0 %3007  ;;  %v4806_v3 = vpop.eup %4805  ;;  %3426 = vrot.lane.b32.xlu0 %v2940_v19, %s5309_s8  ;;  %4825 = vrcp.f32 %v3013_v10  ;;  %v2943_v14 = vsel %vm2879_vm6, %v6604_v41, %v4097_v35  ;;  %v6657_v31 = vmul.f32 %v4804_v4, %v6450_v60 }
 0x3b3   : > { %v4808_v39 = vpop.eup %4807  ;;  %4827 = vrcp.f32 %v3008_v12  ;;  %3432 = vrot.lane.b32.xlu1 %v2943_v14, %s5309_s8  ;;  %v4096_v48 = vadd.f32 -1.0, %v4806_v3  ;;  %v2918_v23 = vmul.f32 1.442695, %v6652_v5  ;;  %vm2887_vm14 = vcmp.gt.f32.partialorder %v6652_v5, 0.0 }
 0x3b4   : > { %v4810_v43 = vpop.eup %4809  ;;  %v4099_v37 = vadd.f32 -1.0, %v4808_v39  ;;  %4829 = vpow2.f32 %v2912_v51  ;;  %v2916_v58 = vmul.f32 1.442695, %v6657_v31  ;;  %vm2886_vm11 = vcmp.gt.f32.partialorder %v6657_v31, 0.0 }
 0x3b5   : > { %v4812_v32 = vpop.eup %4811  ;;  %v2942_v41 = vsel %vm2878_vm7, %v6607_v29, %v4096_v48  ;;  %v3023_v1 = vpop.permute.xlu1 %3022  ;;  %4831 = vpow2.f32 %v2918_v23  ;;  %v6666_v17 = vmul.f32 %v4810_v43, %v6454_v26 }
 0x3b6   : > { %v3018_v60 = vpop.permute.xlu0 %3017  ;;  %v4814_v34 = vpop.eup %4813  ;;  %3430 = vrot.lane.b32.xlu0 %v2942_v41, %s5309_s8  ;;  %4833 = vrcp.f32 %v3023_v1  ;;  %v2945_v8 = vsel %vm2881_vm9, %v6612_v25, %v4099_v37  ;;  %v6671_v20 = vmul.f32 %v4812_v32, %v6456_v61 }
 0x3b7   : > { %v4816_v62 = vpop.eup %4815  ;;  %4835 = vrcp.f32 %v3018_v60  ;;  %3436 = vrot.lane.b32.xlu1 %v2945_v8, %s5309_s8  ;;  %v4098_v29 = vadd.f32 -1.0, %v4814_v34  ;;  %v3115_v35 = vmul.f32 1.442695, %v6666_v17  ;;  %vm3098_vm12 = vcmp.gt.f32.partialorder %v6666_v17, 0.0 }
 0x3b8   : > { %v4818_v51 = vpop.eup %4817  ;;  %v4101_v26 = vadd.f32 -1.0, %v4816_v62  ;;  %4837 = vpow2.f32 %v2916_v58  ;;  %v3113_v4 = vmul.f32 1.442695, %v6671_v20  ;;  %vm3097_vm13 = vcmp.gt.f32.partialorder %v6671_v20, 0.0 }
 0x3b9   : > { %v4820_v19 = vpop.eup %4819  ;;  %v2944_v25 = vsel %vm2880_vm10, %v6615_v16, %v4098_v29  ;;  %v3033_v10 = vpop.permute.xlu1 %3032  ;;  %4839 = vpow2.f32 %v3115_v35  ;;  %v6680_v12 = vmul.f32 %v4818_v51, %v6460_v49 }
 0x3ba   : > { %v3028_v61 = vpop.permute.xlu0 %3027  ;;  %v4822_v3 = vpop.eup %4821  ;;  %3434 = vrot.lane.b32.xlu0 %v2944_v25, %s5309_s8  ;;  %4841 = vrcp.f32 %v3033_v10  ;;  %v2947_v14 = vsel %vm2883_vm15, %v6624_v24, %v4101_v26  ;;  %v6685_v39 = vmul.f32 %v4820_v19, %v6462_v38 }
 0x3bb   : > { %v4824_v48 = vpop.eup %4823  ;;  %4843 = vrcp.f32 %v3028_v61  ;;  %3440 = vrot.lane.b32.xlu1 %v2947_v14, %s5309_s8  ;;  %v4100_v16 = vadd.f32 -1.0, %v4822_v3  ;;  %v3119_v23 = vmul.f32 1.442695, %v6680_v12  ;;  %vm3100_vm0 = vcmp.gt.f32.partialorder %v6680_v12, 0.0 }
 0x3bc   : > { %v4826_v43 = vpop.eup %4825  ;;  %v4103_v49 = vadd.f32 -1.0, %v4824_v48  ;;  %4845 = vpow2.f32 %v3113_v4  ;;  %v3117_v37 = vmul.f32 1.442695, %v6685_v39  ;;  %vm3099_vm1 = vcmp.gt.f32.partialorder %v6685_v39, 0.0 }
 0x3bd   : > { %v4828_v58 = vpop.eup %4827  ;;  %v2946_v24 = vsel %vm2882_vm2, %v6629_v33, %v4100_v16  ;;  %v3043_v32 = vpop.permute.xlu1 %3042  ;;  %4847 = vpow2.f32 %v3119_v23  ;;  %v6694_v41 = vmul.f32 %v4826_v43, %v6466_v40 }
 0x3be   : > { %v3038_v38 = vpop.permute.xlu0 %3037  ;;  %v4830_v1 = vpop.eup %4829  ;;  %3438 = vrot.lane.b32.xlu0 %v2946_v24, %s5309_s8  ;;  %4849 = vrcp.f32 %v3043_v32  ;;  %v2949_v60 = vsel %vm2885_vm3, %v6638_v50, %v4103_v49  ;;  %v6699_v34 = vmul.f32 %v4828_v58, %v6468_v53 }
 0x3bf   : > { %v4832_v8 = vpop.eup %4831  ;;  %4851 = vrcp.f32 %v3038_v38  ;;  %3444 = vrot.lane.b32.xlu1 %v2949_v60, %s5309_s8  ;;  %v4102_v33 = vadd.f32 -1.0, %v4830_v1  ;;  %v3123_v62 = vmul.f32 1.442695, %v6694_v41  ;;  %vm3102_vm4 = vcmp.gt.f32.partialorder %v6694_v41, 0.0 }
 0x3c0   : > { %v4834_v29 = vpop.eup %4833  ;;  %v4105_v40 = vadd.f32 -1.0, %v4832_v8  ;;  %4853 = vpow2.f32 %v3117_v37  ;;  %v3121_v35 = vmul.f32 1.442695, %v6699_v34  ;;  %vm3101_vm5 = vcmp.gt.f32.partialorder %v6699_v34, 0.0 }
 0x3c1   : > { %v4836_v51 = vpop.eup %4835  ;;  %v2948_v50 = vsel %vm2884_vm8, %v6643_v30, %v4102_v33  ;;  %v3053_v26 = vpop.permute.xlu1 %3052  ;;  %4855 = vpow2.f32 %v3123_v62  ;;  %v6708_v4 = vmul.f32 %v4834_v29, %v6472_v59 }
 0x3c2   : > { %v3048_v53 = vpop.permute.xlu0 %3047  ;;  %v4838_v19 = vpop.eup %4837  ;;  %3442 = vrot.lane.b32.xlu0 %v2948_v50, %s5309_s8  ;;  %4857 = vrcp.f32 %v3053_v26  ;;  %v2951_v25 = vsel %vm2887_vm14, %v6652_v5, %v4105_v40  ;;  %v6713_v10 = vmul.f32 %v4836_v51, %v6474_v27 }
 0x3c3   : > { %v4840_v61 = vpop.eup %4839  ;;  %4859 = vrcp.f32 %v3048_v53  ;;  %3448 = vrot.lane.b32.xlu1 %v2951_v25, %s5309_s8  ;;  %v4104_v30 = vadd.f32 -1.0, %v4838_v19  ;;  %v3127_v3 = vmul.f32 1.442695, %v6708_v4  ;;  %vm3104_vm6 = vcmp.gt.f32.partialorder %v6708_v4, 0.0 }
 0x3c4   : > { %v4842_v14 = vpop.eup %4841  ;;  %v4107_v59 = vadd.f32 -1.0, %v4840_v61  ;;  %4861 = vpow2.f32 %v3121_v35  ;;  %v3125_v48 = vmul.f32 1.442695, %v6713_v10  ;;  %vm3103_vm7 = vcmp.gt.f32.partialorder %v6713_v10, 0.0 }
 0x3c5   : > { %v4844_v16 = vpop.eup %4843  ;;  %v2950_v5 = vsel %vm2886_vm11, %v6657_v31, %v4104_v30  ;;  %v3063_v23 = vpop.permute.xlu1 %3062  ;;  %4863 = vpow2.f32 %v3127_v3  ;;  %v6722_v43 = vmul.f32 %v4842_v14, %v6478_v15 }
 0x3c6   : > { %v3058_v27 = vpop.permute.xlu0 %3057  ;;  %v4846_v49 = vpop.eup %4845  ;;  %3446 = vrot.lane.b32.xlu0 %v2950_v5, %s5309_s8  ;;  %4865 = vrcp.f32 %v3063_v23  ;;  %v3162_v37 = vsel %vm3098_vm12, %v6666_v17, %v4107_v59  ;;  %v6727_v58 = vmul.f32 %v4844_v16, %v6480_v44 }
 0x3c7   : > { %v4848_v24 = vpop.eup %4847  ;;  %4867 = vrcp.f32 %v3058_v27  ;;  %3484 = vrot.lane.b32.xlu1 %v3162_v37, %s5310_s14  ;;  %v4106_v31 = vadd.f32 -1.0, %v4846_v49  ;;  %v3131_v32 = vmul.f32 1.442695, %v6722_v43  ;;  %vm3106_vm9 = vcmp.gt.f32.partialorder %v6722_v43, 0.0 }
 0x3c8   : > { %v4850_v38 = vpop.eup %4849  ;;  %v4109_v15 = vadd.f32 -1.0, %v4848_v24  ;;  %4869 = vpow2.f32 %v3125_v48  ;;  %v3129_v1 = vmul.f32 1.442695, %v6727_v58  ;;  %vm3105_vm10 = vcmp.gt.f32.partialorder %v6727_v58, 0.0 }
 0x3c9   : > { %v4852_v60 = vpop.eup %4851  ;;  %v3161_v17 = vsel %vm3097_vm13, %v6671_v20, %v4106_v31  ;;  %v3218_v44 = vpop.permute.xlu1 %3217  ;;  %4871 = vpow2.f32 %v3131_v32  ;;  %v6736_v33 = vmul.f32 %v4850_v38, %v6484_v55 }
 0x3ca   : > { %v3213_v8 = vpop.permute.xlu0 %3212  ;;  %v4854_v62 = vpop.eup %4853  ;;  %3482 = vrot.lane.b32.xlu0 %v3161_v17, %s5310_s14  ;;  %4873 = vrcp.f32 %v3218_v44  ;;  %v3164_v29 = vsel %vm3100_vm0, %v6680_v12, %v4109_v15  ;;  %v6741_v40 = vmul.f32 %v4852_v60, %v6486_v22 }
 0x3cb   : > { %v4856_v35 = vpop.eup %4855  ;;  %4875 = vrcp.f32 %v3213_v8  ;;  %3488 = vrot.lane.b32.xlu1 %v3164_v29, %s5310_s14  ;;  %v4108_v20 = vadd.f32 -1.0, %v4854_v62  ;;  %v3135_v51 = vmul.f32 1.442695, %v6736_v33  ;;  %vm3108_vm15 = vcmp.gt.f32.partialorder %v6736_v33, 0.0 }
 0x3cc   : > { %v4858_v50 = vpop.eup %4857  ;;  %v4111_v55 = vadd.f32 -1.0, %v4856_v35  ;;  %4877 = vpow2.f32 %v3129_v1  ;;  %v3133_v26 = vmul.f32 1.442695, %v6741_v40  ;;  %vm3107_vm2 = vcmp.gt.f32.partialorder %v6741_v40, 0.0 }
 0x3cd   : > { %v4860_v53 = vpop.eup %4859  ;;  %v3163_v12 = vsel %vm3099_vm1, %v6685_v39, %v4108_v20  ;;  %v3228_v19 = vpop.permute.xlu1 %3227  ;;  %4879 = vpow2.f32 %v3135_v51  ;;  %v6750_v25 = vmul.f32 %v4858_v50, %v6490_v45 }
 0x3ce   : > { %v3223_v22 = vpop.permute.xlu0 %3222  ;;  %v4862_v61 = vpop.eup %4861  ;;  %3486 = vrot.lane.b32.xlu0 %v3163_v12, %s5310_s14  ;;  %4881 = vrcp.f32 %v3228_v19  ;;  %v3166_v30 = vsel %vm3102_vm4, %v6694_v41, %v4111_v55  ;;  %v6755_v3 = vmul.f32 %v4860_v53, %v6492_v57 }
 0x3cf   : > { %v4864_v14 = vpop.eup %4863  ;;  %4883 = vrcp.f32 %v3223_v22  ;;  %3492 = vrot.lane.b32.xlu1 %v3166_v30, %s5310_s14  ;;  %v4110_v39 = vadd.f32 -1.0, %v4862_v61  ;;  %v3139_v59 = vmul.f32 1.442695, %v6750_v25  ;;  %vm3110_vm3 = vcmp.gt.f32.partialorder %v6750_v25, 0.0 }
 0x3d0   : > { %v4866_v48 = vpop.eup %4865  ;;  %v4113_v45 = vadd.f32 -1.0, %v4864_v14  ;;  %4885 = vpow2.f32 %v3133_v26  ;;  %v3137_v16 = vmul.f32 1.442695, %v6755_v3  ;;  %vm3109_vm8 = vcmp.gt.f32.partialorder %v6755_v3, 0.0 }
 0x3d1   : > { %v4868_v5 = vpop.eup %4867  ;;  %v3165_v41 = vsel %vm3101_vm5, %v6699_v34, %v4110_v39  ;;  %v3238_v23 = vpop.permute.xlu1 %3237  ;;  %4887 = vpow2.f32 %v3139_v59  ;;  %v6764_v27 = vmul.f32 %v4866_v48, %v6496_v63 }
 0x3d2   : > { %v3233_v57 = vpop.permute.xlu0 %3232  ;;  %v4870_v49 = vpop.eup %4869  ;;  %3490 = vrot.lane.b32.xlu0 %v3165_v41, %s5310_s14  ;;  %4889 = vrcp.f32 %v3238_v23  ;;  %v3168_v37 = vsel %vm3104_vm6, %v6708_v4, %v4113_v45  ;;  %v6769_v24 = vmul.f32 %v4868_v5, %v6498_v56 }
 0x3d3   : > { %v4872_v31 = vpop.eup %4871  ;;  %4891 = vrcp.f32 %v3233_v57  ;;  %3496 = vrot.lane.b32.xlu1 %v3168_v37, %s5310_s14  ;;  %v4112_v34 = vadd.f32 -1.0, %v4870_v49  ;;  %v3143_v32 = vmul.f32 1.442695, %v6764_v27  ;;  %vm3112_vm14 = vcmp.gt.f32.partialorder %v6764_v27, 0.0 }
 0x3d4   : > { %v4874_v38 = vpop.eup %4873  ;;  %v4115_v63 = vadd.f32 -1.0, %v4872_v31  ;;  %4893 = vpow2.f32 %v3137_v16  ;;  %v3141_v15 = vmul.f32 1.442695, %v6769_v24  ;;  %vm3111_vm11 = vcmp.gt.f32.partialorder %v6769_v24, 0.0 }
 0x3d5   : > { %v4876_v1 = vpop.eup %4875  ;;  %v3167_v4 = vsel %vm3103_vm7, %v6713_v10, %v4112_v34  ;;  %v3248_v60 = vpop.permute.xlu1 %3247  ;;  %4895 = vpow2.f32 %v3143_v32  ;;  %v6778_v17 = vmul.f32 %v4874_v38, %v6502_v21 }
 0x3d6   : > { %v3243_v56 = vpop.permute.xlu0 %3242  ;;  %v4878_v44 = vpop.eup %4877  ;;  %3494 = vrot.lane.b32.xlu0 %v3167_v4, %s5310_s14  ;;  %4897 = vrcp.f32 %v3248_v60  ;;  %v3170_v8 = vsel %vm3106_vm9, %v6722_v43, %v4115_v63  ;;  %v6783_v62 = vmul.f32 %v4876_v1, %v6504_v47 }
 0x3d7   : > { %v4880_v29 = vpop.eup %4879  ;;  %4899 = vrcp.f32 %v3243_v56  ;;  %3500 = vrot.lane.b32.xlu1 %v3170_v8, %s5310_s14  ;;  %v4114_v10 = vadd.f32 -1.0, %v4878_v44  ;;  %v3340_v35 = vmul.f32 1.442695, %v6778_v17  ;;  %vm3323_vm12 = vcmp.gt.f32.partialorder %v6778_v17, 0.0 }
 0x3d8   : > { %v4882_v20 = vpop.eup %4881  ;;  %v4117_v21 = vadd.f32 -1.0, %v4880_v29  ;;  %4901 = vpow2.f32 %v3141_v15  ;;  %v3338_v51 = vmul.f32 1.442695, %v6783_v62  ;;  %vm3322_vm13 = vcmp.gt.f32.partialorder %v6783_v62, 0.0 }
 0x3d9   : > { %v4884_v50 = vpop.eup %4883  ;;  %v3169_v43 = vsel %vm3105_vm10, %v6727_v58, %v4114_v10  ;;  %v3258_v55 = vpop.permute.xlu1 %3257  ;;  %4903 = vpow2.f32 %v3340_v35  ;;  %v6792_v26 = vmul.f32 %v4882_v20, %v6508_v13 }
 0x3da   : > { %v3253_v47 = vpop.permute.xlu0 %3252  ;;  %v4886_v53 = vpop.eup %4885  ;;  %3498 = vrot.lane.b32.xlu0 %v3169_v43, %s5310_s14  ;;  %4905 = vrcp.f32 %v3258_v55  ;;  %v3172_v12 = vsel %vm3108_vm15, %v6736_v33, %v4117_v21  ;;  %v6797_v19 = vmul.f32 %v4884_v50, %v6510_v6 }
 0x3db   : > { %v4888_v22 = vpop.eup %4887  ;;  %4907 = vrcp.f32 %v3253_v47  ;;  %3504 = vrot.lane.b32.xlu1 %v3172_v12, %s5310_s14  ;;  %v4116_v58 = vadd.f32 -1.0, %v4886_v53  ;;  %v3344_v61 = vmul.f32 1.442695, %v6792_v26  ;;  %vm3325_vm0 = vcmp.gt.f32.partialorder %v6792_v26, 0.0 }
 0x3dc   : > { %v4890_v30 = vpop.eup %4889  ;;  %v4119_v13 = vadd.f32 -1.0, %v4888_v22  ;;  %4909 = vpow2.f32 %v3338_v51  ;;  %v3342_v14 = vmul.f32 1.442695, %v6797_v19  ;;  %vm3324_vm1 = vcmp.gt.f32.partialorder %v6797_v19, 0.0 }
 0x3dd   : > { %v4892_v39 = vpop.eup %4891  ;;  %v3171_v33 = vsel %vm3107_vm2, %v6741_v40, %v4116_v58  ;;  %v3268_v59 = vpop.permute.xlu1 %3267  ;;  %4911 = vpow2.f32 %v3344_v61  ;;  %v6806_v48 = vmul.f32 %v4890_v30, %v6514_v7 }
 0x3de   : > { %v3263_v6 = vpop.permute.xlu0 %3262  ;;  %v4894_v45 = vpop.eup %4893  ;;  %3502 = vrot.lane.b32.xlu0 %v3171_v33, %s5310_s14  ;;  %4913 = vrcp.f32 %v3268_v59  ;;  %v3174_v16 = vsel %vm3110_vm3, %v6750_v25, %v4119_v13  ;;  %v6811_v5 = vmul.f32 %v4892_v39, %v6516_v11 }
 0x3df   : > { %v4896_v41 = vpop.eup %4895  ;;  %4915 = vrcp.f32 %v3263_v6  ;;  %3508 = vrot.lane.b32.xlu1 %v3174_v16, %s5310_s14  ;;  %v4118_v40 = vadd.f32 -1.0, %v4894_v45  ;;  %v3348_v23 = vmul.f32 1.442695, %v6806_v48  ;;  %vm3327_vm4 = vcmp.gt.f32.partialorder %v6806_v48, 0.0 }
 0x3e0   : > { %v4898_v57 = vpop.eup %4897  ;;  %v4121_v7 = vadd.f32 -1.0, %v4896_v41  ;;  %4917 = vpow2.f32 %v3342_v14  ;;  %v3346_v49 = vmul.f32 1.442695, %v6811_v5  ;;  %vm3326_vm5 = vcmp.gt.f32.partialorder %v6811_v5, 0.0 }
 0x3e1   : > { %v4900_v37 = vpop.eup %4899  ;;  %v3173_v25 = vsel %vm3109_vm8, %v6755_v3, %v4118_v40  ;;  %v3278_v31 = vpop.permute.xlu1 %3277  ;;  %4919 = vpow2.f32 %v3348_v23  ;;  %v6820_v34 = vmul.f32 %v4898_v57, %v6520_v28 }
 0x3e2   : > { %v3273_v11 = vpop.permute.xlu0 %3272  ;;  %v4902_v32 = vpop.eup %4901  ;;  %3506 = vrot.lane.b32.xlu0 %v3173_v25, %s5310_s14  ;;  %4921 = vrcp.f32 %v3278_v31  ;;  %v3176_v38 = vsel %vm3112_vm14, %v6764_v27, %v4121_v7  ;;  %v6825_v63 = vmul.f32 %v4900_v37, %v6522_v36 }
 0x3e3   : > { %v4904_v15 = vpop.eup %4903  ;;  %4923 = vrcp.f32 %v3273_v11  ;;  %3512 = vrot.lane.b32.xlu1 %v3176_v38, %s5310_s14  ;;  %v4120_v3 = vadd.f32 -1.0, %v4902_v32  ;;  %v3352_v1 = vmul.f32 1.442695, %v6820_v34  ;;  %vm3329_vm6 = vcmp.gt.f32.partialorder %v6820_v34, 0.0 }
 0x3e4   : > { %v4906_v4 = vpop.eup %4905  ;;  %v4123_v28 = vadd.f32 -1.0, %v4904_v15  ;;  %4925 = vpow2.f32 %v3346_v49  ;;  %v3350_v60 = vmul.f32 1.442695, %v6825_v63  ;;  %vm3328_vm7 = vcmp.gt.f32.partialorder %v6825_v63, 0.0 }
 0x3e5   : > { %v4908_v56 = vpop.eup %4907  ;;  %v3175_v27 = vsel %vm3111_vm11, %v6769_v24, %v4120_v3  ;;  %v3288_v44 = vpop.permute.xlu1 %3287  ;;  %4927 = vpow2.f32 %v3352_v1  ;;  %v6834_v8 = vmul.f32 %v4906_v4, %v6526_v42 }
 0x3e6   : > { %v3283_v36 = vpop.permute.xlu0 %3282  ;;  %v4910_v29 = vpop.eup %4909  ;;  %3510 = vrot.lane.b32.xlu0 %v3175_v27, %s5310_s14  ;;  %4929 = vrcp.f32 %v3288_v44  ;;  %v3387_v10 = vsel %vm3323_vm12, %v6778_v17, %v4123_v28  ;;  %v6839_v35 = vmul.f32 %v4908_v56, %v6528_v18 }
 0x3e7   : > { %v4912_v20 = vpop.eup %4911  ;;  %4931 = vrcp.f32 %v3283_v36  ;;  %3548 = vrot.lane.b32.xlu1 %v3387_v10, %s5311_s24  ;;  %v4122_v24 = vadd.f32 -1.0, %v4910_v29  ;;  %v3356_v21 = vmul.f32 1.442695, %v6834_v8  ;;  %vm3331_vm9 = vcmp.gt.f32.partialorder %v6834_v8, 0.0 }
 0x3e8   : > { %v4914_v51 = vpop.eup %4913  ;;  %v4125_v42 = vadd.f32 -1.0, %v4912_v20  ;;  %4933 = vpow2.f32 %v3350_v60  ;;  %v3354_v50 = vmul.f32 1.442695, %v6839_v35  ;;  %vm3330_vm10 = vcmp.gt.f32.partialorder %v6839_v35, 0.0 }
 0x3e9   : > { %v4916_v43 = vpop.eup %4915  ;;  %v3386_v17 = vsel %vm3322_vm13, %v6783_v62, %v4122_v24  ;;  %4935 = vpow2.f32 %v3356_v21  ;;  %v6848_v18 = vmul.f32 %v4914_v51, %v6532_v46 }
 0x3ea   : > { %v4918_v55 = vpop.eup %4917  ;;  %3546 = vrot.lane.b32.xlu0 %v3386_v17, %s5311_s24  ;;  %v3389_v47 = vsel %vm3325_vm0, %v6792_v26, %v4125_v42  ;;  %4937 = vpow2.f32 %v3354_v50  ;;  %v6853_v53 = vmul.f32 %v4916_v43, %v6534_v52 }
 0x3eb   : > { %v4920_v12 = vpop.eup %4919  ;;  %3552 = vrot.lane.b32.xlu1 %v3389_v47, %s5311_s24  ;;  %v4124_v22 = vadd.f32 -1.0, %v4918_v55  ;;  %v3360_v62 = vmul.f32 1.442695, %v6848_v18  ;;  %vm3333_vm15 = vcmp.gt.f32.partialorder %v6848_v18, 0.0 }
 0x3ec   : > { %v4922_v58 = vpop.eup %4921  ;;  %v4127_v46 = vadd.f32 -1.0, %v4920_v12  ;;  %v3358_v61 = vmul.f32 1.442695, %v6853_v53  ;;  %vm3332_vm2 = vcmp.gt.f32.partialorder %v6853_v53, 0.0  ;;  %v7320_v12 = vld [vmem:[#allocation28_spill] sm:$0xff] }
 0x3ed   : > { %v4924_v30 = vpop.eup %4923  ;;  %v3388_v13 = vsel %vm3324_vm1, %v6797_v19, %v4124_v22  ;;  %4939 = vpow2.f32 %v3360_v62  ;;  %v3317_v52 = vmul.f32 %v4922_v58, %v6538_v54  ;;  %v7321_v62 = vld [vmem:[#allocation26_spill] sm:$0xff]  ;;  %vm3594_vm1 = vcmask 130048  }
 0x3ee   : > { %v4926_v26 = vpop.eup %4925  ;;  %3550 = vrot.lane.b32.xlu0 %v3388_v13, %s5311_s24  ;;  %v3391_v14 = vsel %vm3327_vm4, %v6806_v48, %v4127_v46  ;;  %4941 = vpow2.f32 %v3358_v61  ;;  %v3315_v39 = vmul.f32 %v4924_v30, %v6540_v9  ;;  %v7322_v46 = vld [vmem:[#allocation27_spill] sm:$0xff]  ;;  %v7323_v30 = vld [vmem:[#allocation25_spill] sm:$0xff]  ;;  %vm3611_vm4 = vcmask 261120  }
 0x3ef   : > { %v4928_v33 = vpop.eup %4927  ;;  %3556 = vrot.lane.b32.xlu1 %v3391_v14, %s5311_s24  ;;  %v4126_v59 = vadd.f32 -1.0, %v4926_v26  ;;  %v3364_v6 = vmul.f32 1.442695, %v3317_v52  ;;  %vm3335_vm3 = vcmp.gt.f32.partialorder %v3317_v52, 0.0 }
 0x3f0   : > { %v4930_v45 = vpop.eup %4929  ;;  %v4129_v19 = vadd.f32 -1.0, %v4928_v33  ;;  %v3362_v16 = vmul.f32 1.442695, %v3315_v39  ;;  %vm3334_vm8 = vcmp.gt.f32.partialorder %v3315_v39, 0.0 }
 0x3f1   : > { %v4932_v41 = vpop.eup %4931  ;;  %v3390_v54 = vsel %vm3326_vm5, %v6811_v5, %v4126_v59  ;;  %4943 = vpow2.f32 %v3364_v6  ;;  %v3321_v48 = vmul.f32 %v4930_v45, %v6544_v0  ;;  %v7326_v6 = vld [vmem:[#allocation31_spill] sm:$0xff] }
 0x3f2   : > { %v4934_v40 = vpop.eup %4933  ;;  %3554 = vrot.lane.b32.xlu0 %v3390_v54, %s5311_s24  ;;  %v3393_v9 = vsel %vm3329_vm6, %v6820_v34, %v4129_v19  ;;  %4945 = vpow2.f32 %v3362_v16  ;;  %v3319_v23 = vmul.f32 %v4932_v41, %v6546_v2  ;;  %v5015_v19 = vld [vmem:[#allocation2 + $0x8] sm:$0xff]  ;;  %vm3628_vm6 = vcmask 392192  }
 0x3f3   : > { %v4936_v57 = vpop.eup %4935  ;;  %3560 = vrot.lane.b32.xlu1 %v3393_v9, %s5311_s24  ;;  %v4128_v7 = vadd.f32 -1.0, %v4934_v40  ;;  %v3368_v49 = vmul.f32 1.442695, %v3321_v48  ;;  %vm3337_vm14 = vcmp.gt.f32.partialorder %v3321_v48, 0.0  ;;  %v5016_v40 = vld [vmem:[#allocation2] sm:$0xff] }
 0x3f4   : > { %v4938_v37 = vpop.eup %4937  ;;  %v4131_v5 = vadd.f32 -1.0, %v4936_v57  ;;  %v3366_v25 = vmul.f32 1.442695, %v3319_v23  ;;  %vm3336_vm11 = vcmp.gt.f32.partialorder %v3319_v23, 0.0  ;;  %v7328_v57 = vld [vmem:[#allocation33_spill] sm:$0xff] }
 0x3f5   : > { %v3392_v0 = vsel %vm3328_vm7, %v6825_v63, %v4128_v7  ;;  %v4130_v31 = vadd.f32 -1.0, %v4938_v37  ;;  %4947 = vpow2.f32 %v3368_v49  ;;  %v5017_v37 = vld [vmem:[#allocation2 + $0x18] sm:$0xff]  ;;  %vm3645_vm7 = vcmask 523264  }
 0x3f6   : > { %3558 = vrot.lane.b32.xlu0 %v3392_v0, %s5311_s24  ;;  %v3395_v2 = vsel %vm3331_vm9, %v6834_v8, %v4131_v5  ;;  %4949 = vpow2.f32 %v3366_v25  ;;  %v5018_v0 = vld [vmem:[#allocation2 + $0x10] sm:$0xff] }
 0x3f7   : > { %v4940_v11 = vpop.eup %4939  ;;  %3564 = vrot.lane.b32.xlu1 %v3395_v2, %s5311_s24  ;;  %v3394_v34 = vsel %vm3330_vm10, %v6839_v35, %v4130_v31  ;;  %4951 = vrcp.f32 %v7320_v12  ;;  %v7329_v2 = vld [vmem:[#allocation34_spill] sm:$0xff] }
 0x3f8   : > { %v4942_v32 = vpop.eup %4941  ;;  %v4133_v38 = vadd.f32 -1.0, %v4940_v11  ;;  %4953 = vrcp.f32 %v7321_v62 }
 0x3f9   : > { %v4132_v63 = vadd.f32 -1.0, %v4942_v32  ;;  %4955 = vrcp.f32 %v7322_v46  ;;  %v7330_v32 = vld [vmem:[#allocation35_spill] sm:$0xff]  ;;  %v7333_v46 = vld [vmem:[#allocation38_spill] sm:$0xff] }
 0x3fa   : > { %3562 = vrot.lane.b32.xlu0 %v3394_v34, %s5311_s24  ;;  %v3397_v15 = vsel %vm3333_vm15, %v6848_v18, %v4133_v38  ;;  %4957 = vrcp.f32 %v7323_v30 }
 0x3fb   : > { %v4944_v3 = vpop.eup %4943  ;;  %3568 = vrot.lane.b32.xlu1 %v3397_v15, %s5311_s24  ;;  %v3396_v1 = vsel %vm3332_vm2, %v6853_v53, %v4132_v63 }
 0x3fc   : > { %v4946_v4 = vpop.eup %4945  ;;  %v4135_v28 = vadd.f32 -1.0, %v4944_v3  ;;  %v5019_v3 = vld [vmem:[#allocation2 + $0x28] sm:$0xff] }
 0x3fd   : > { %v4134_v60 = vadd.f32 -1.0, %v4946_v4 }
 0x3fe   : > { %3566 = vrot.lane.b32.xlu0 %v3396_v1, %s5311_s24  ;;  %v3399_v56 = vsel %vm3335_vm3, %v3317_v52, %v4135_v28  ;;  %v7324_v52 = vld [vmem:[#allocation29_spill] sm:$0xff]  ;;  %v7331_v28 = vld [vmem:[#allocation36_spill] sm:$0xff] }
 0x3ff   : > { %v4948_v27 = vpop.eup %4947  ;;  %3572 = vrot.lane.b32.xlu1 %v3399_v56, %s5311_s24  ;;  %v3398_v44 = vsel %vm3334_vm8, %v3315_v39, %v4134_v60  ;;  %4959 = vrcp.f32 %v7324_v52  ;;  %v7325_v39 = vld [vmem:[#allocation30_spill] sm:$0xff]  ;;  %v7334_v52 = vld [vmem:[#allocation39_spill] sm:$0xff] }
 0x400   : > { %v4950_v36 = vpop.eup %4949  ;;  %v4137_v8 = vadd.f32 -1.0, %v4948_v27  ;;  %4961 = vrcp.f32 %v7325_v39  ;;  %v7332_v27 = vld [vmem:[#allocation37_spill] sm:$0xff]  ;;  %v5022_v39 = vld [vmem:[#allocation2 + $0x30] sm:$0xff] }
 0x401   : > { %v4136_v29 = vadd.f32 -1.0, %v4950_v36  ;;  %v4952_v14 = vpop.eup %4951  ;;  %4963 = vrcp.f32 %v7326_v6 }
 0x402   : > { %3570 = vrot.lane.b32.xlu0 %v3398_v44, %s5311_s24  ;;  %v3401_v10 = vsel %vm3337_vm14, %v3321_v48, %v4137_v8  ;;  %v4954_v59 = vpop.eup %4953  ;;  %v6938_v16 = vmul.f32 %v5015_v19, %v4952_v14  ;;  %v7327_v48 = vld [vmem:[#allocation32_spill] sm:$0xff]  ;;  %v5020_v44 = vld [vmem:[#allocation2 + $0x20] sm:$0xff] }
 0x403   : > { %3576 = vrot.lane.b32.xlu1 %v3401_v10, %s5311_s24  ;;  %v3400_v35 = vsel %vm3336_vm11, %v3319_v23, %v4136_v29  ;;  %v4956_v41 = vpop.eup %4955  ;;  %4965 = vrcp.f32 %v7327_v48  ;;  %v6941_v9 = vmul.f32 %v5016_v40, %v4954_v59 }
 0x404   : > { %v4958_v54 = vpop.eup %4957  ;;  %4967 = vrcp.f32 %v7328_v57  ;;  %v2665_v49 = vmul.f32 1.442695, %v6938_v16  ;;  %v6949_v5 = vmul.f32 %v5017_v37, %v4956_v41  ;;  %vm2648_vm12 = vcmp.gt.f32.partialorder %v6938_v16, 0.0 }
 0x405   : > { %v6951_v31 = vmul.f32 %v5018_v0, %v4958_v54  ;;  %4969 = vrcp.f32 %v7329_v2  ;;  %v2663_v11 = vmul.f32 1.442695, %v6941_v9  ;;  %v5023_v54 = vld [vmem:[#allocation2 + $0x48] sm:$0xff]  ;;  %v5024_v2 = vld [vmem:[#allocation2 + $0x40] sm:$0xff]  ;;  %vm2647_vm13 = vcmp.gt.f32.partialorder %v6941_v9, 0.0 }
 0x406   : > { %3574 = vrot.lane.b32.xlu0 %v3400_v35, %s5311_s24  ;;  %4971 = vrcp.f32 %v7330_v32  ;;  %v2669_v15 = vmul.f32 1.442695, %v6949_v5  ;;  %v5021_v35 = vld [vmem:[#allocation2 + $0x38] sm:$0xff]  ;;  %vm2650_vm5 = vcmp.gt.f32.partialorder %v6949_v5, 0.0 }
 0x407   : > { %4973 = vpow2.f32 %v2665_v49  ;;  %v2667_v60 = vmul.f32 1.442695, %v6951_v31  ;;  %v7335_v49 = vld [vmem:[#allocation40_spill] sm:$0xff]  ;;  %vm2649_vm0 = vcmp.gt.f32.partialorder %v6951_v31, 0.0 }
 0x408   : > { %4975 = vrcp.f32 %v7331_v28 }
 0x409   : > { %v4960_v25 = vpop.eup %4959  ;;  %4977 = vpow2.f32 %v2663_v11 }
 0x40a   : > { %v4962_v63 = vpop.eup %4961  ;;  %v6961_v1 = vmul.f32 %v5019_v3, %v4960_v25  ;;  %4979 = vrcp.f32 %v7332_v27  ;;  %v5025_v3 = vld [vmem:[#allocation2 + $0x58] sm:$0xff] }
 0x40b   : > { %v4964_v4 = vpop.eup %4963  ;;  %v6968_v36 = vmul.f32 %v5020_v44, %v4962_v63  ;;  %4981 = vpow2.f32 %v2669_v15  ;;  %v5026_v44 = vld [vmem:[#allocation2 + $0x50] sm:$0xff] }
 0x40c   : > { %v2673_v10 = vmul.f32 1.442695, %v6961_v1  ;;  %v6973_v12 = vmul.f32 %v5021_v35, %v4964_v4  ;;  %4983 = vpow2.f32 %v2667_v60  ;;  %vm2652_vm9 = vcmp.gt.f32.partialorder %v6961_v1, 0.0 }
 0x40d   : > { %v4966_v29 = vpop.eup %4965  ;;  %4985 = vrcp.f32 %v7333_v46  ;;  %v2671_v14 = vmul.f32 1.442695, %v6968_v36  ;;  %vm2651_vm10 = vcmp.gt.f32.partialorder %v6968_v36, 0.0 }
 0x40e   : > { %v4968_v62 = vpop.eup %4967  ;;  %4987 = vrcp.f32 %v7334_v52  ;;  %v6980_v59 = vmul.f32 %v5022_v39, %v4966_v29  ;;  %v2677_v41 = vmul.f32 1.442695, %v6973_v12  ;;  %vm2654_vm15 = vcmp.gt.f32.partialorder %v6973_v12, 0.0 }
 0x40f   : > { %v4970_v19 = vpop.eup %4969  ;;  %4989 = vpow2.f32 %v2673_v10  ;;  %v6985_v48 = vmul.f32 %v5023_v54, %v4968_v62 }
 0x410   : > { %v4972_v40 = vpop.eup %4971  ;;  %4991 = vrcp.f32 %v7335_v49  ;;  %v2675_v0 = vmul.f32 1.442695, %v6980_v59  ;;  %v6991_v11 = vmul.f32 %v5024_v2, %v4970_v19  ;;  %v5027_v19 = vld [vmem:[#allocation2 + $0x68] sm:$0xff]  ;;  %vm2653_vm2 = vcmp.gt.f32.partialorder %v6980_v59, 0.0 }
 0x411   : > { %v4974_v57 = vpop.eup %4973  ;;  %4993 = vpow2.f32 %v2671_v14  ;;  %v2681_v15 = vmul.f32 1.442695, %v6985_v48  ;;  %v6996_v4 = vmul.f32 %v5025_v3, %v4972_v40  ;;  %vm2656_vm3 = vcmp.gt.f32.partialorder %v6985_v48, 0.0 }
 0x412   : > { %v4976_v25 = vpop.eup %4975  ;;  %4995 = vpow2.f32 %v2677_v41  ;;  %v4075_v60 = vadd.f32 -1.0, %v4974_v57  ;;  %v2679_v46 = vmul.f32 1.442695, %v6991_v11  ;;  %vm2655_vm8 = vcmp.gt.f32.partialorder %v6991_v11, 0.0 }
 0x413   : > { %v4978_v63 = vpop.eup %4977  ;;  %v7001_v29 = vmul.f32 %v5026_v44, %v4976_v25  ;;  %4997 = vpow2.f32 %v2675_v0  ;;  %v2685_v39 = vmul.f32 1.442695, %v6996_v4  ;;  %v5029_v44 = vld [vmem:[#allocation2 + $0x78] sm:$0xff]  ;;  %vm2658_vm14 = vcmp.gt.f32.partialorder %v6996_v4, 0.0 }
 0x414   : > { %v4980_v28 = vpop.eup %4979  ;;  %v4074_v62 = vadd.f32 -1.0, %v4978_v63  ;;  %4999 = vpow2.f32 %v2681_v15  ;;  %v2712_v40 = vsel %vm2648_vm12, %v6938_v16, %v4075_v60  ;;  %v5028_v16 = vld [vmem:[#allocation2 + $0x60] sm:$0xff] }
 0x415   : > { %v4982_v27 = vpop.eup %4981  ;;  %v7009_v41 = vmul.f32 %v5027_v19, %v4980_v28  ;;  %v2683_v2 = vmul.f32 1.442695, %v7001_v29  ;;  %5001 = vpow2.f32 %v2679_v46  ;;  %vm2657_vm11 = vcmp.gt.f32.partialorder %v7001_v29, 0.0 }
 0x416   : > { %v4984_v35 = vpop.eup %4983  ;;  %v4077_v57 = vadd.f32 -1.0, %v4982_v27  ;;  %v2711_v15 = vsel %vm2647_vm13, %v6941_v9, %v4074_v62  ;;  %5003 = vpow2.f32 %v2685_v39 }
 0x417   : > { %v4986_v14 = vpop.eup %4985  ;;  %v4076_v0 = vadd.f32 -1.0, %v4984_v35  ;;  %v2689_v27 = vmul.f32 1.442695, %v7009_v41  ;;  %5005 = vpow2.f32 %v2683_v2  ;;  %vm2660_vm12 = vcmp.gt.f32.partialorder %v7009_v41, 0.0 }
 0x418   : > { %v4988_v54 = vpop.eup %4987  ;;  %v7023_v3 = vmul.f32 %v5028_v16, %v4986_v14  ;;  %v2714_v62 = vsel %vm2650_vm5, %v6949_v5, %v4077_v57  ;;  %v5030_v57 = vld [vmem:[#allocation2 + $0x70] sm:$0xff] }
 0x419   : > { %v6893_v20 = vpop.permute.xlu1 %3420  ;;  %v4990_v49 = vpop.eup %4989  ;;  %v7028_v35 = vmul.f32 %v5029_v44, %v4988_v54  ;;  %v2713_v39 = vsel %vm2649_vm0, %v6951_v31, %v4076_v0  ;;  %5007 = vpow2.f32 %v2689_v27 }
 0x41a   : > { %v3596_v25 = vsel %vm3594_vm1, %v2712_v40, %v6893_v20  ;;  %v4992_v20 = vpop.eup %4991  ;;  %v2687_v5 = vmul.f32 1.442695, %v7023_v3  ;;  %vm2659_vm13 = vcmp.gt.f32.partialorder %v7023_v3, 0.0 }
 0x41b   : > { %v4994_v40 = vpop.eup %4993  ;;  %v2693_v31 = vmul.f32 1.442695, %v7028_v35  ;;  %vm2662_vm0 = vcmp.gt.f32.partialorder %v7028_v35, 0.0 }
 0x41c   : > { %v6895_v24 = vpop.permute.xlu0 %3418  ;;  %v4996_v46 = vpop.eup %4995  ;;  %v4078_v16 = vadd.f32 -1.0, %v4994_v40  ;;  %5009 = vpow2.f32 %v2687_v5 }
 0x41d   : > { %v6897_v21 = vpop.permute.xlu1 %3424  ;;  %v3595_v9 = vsel %vm3594_vm1, %v2711_v15, %v6895_v24  ;;  %v4998_v0 = vpop.eup %4997  ;;  %5011 = vpow2.f32 %v2693_v31 }
 0x41e   : > { %v3598_v14 = vsel %vm3594_vm1, %v2714_v62, %v6897_v21 }
 0x420   : > { %v6899_v51 = vpop.permute.xlu0 %3422 }
 0x421   : > { %v6901_v42 = vpop.permute.xlu1 %3428  ;;  %v3597_v2 = vsel %vm3594_vm1, %v2713_v39, %v6899_v51 }
 0x424   : > { %v6903_v50 = vpop.permute.xlu0 %3426 }
 0x425   : > { %v6905_v43 = vpop.permute.xlu1 %3432 }
 0x428   : > { %v6907_v17 = vpop.permute.xlu0 %3430 }
 0x429   : > { %v6909_v18 = vpop.permute.xlu1 %3436 }
 0x42c   : > { %v6911_v55 = vpop.permute.xlu0 %3434 }
 0x42d   : > { %v6913_v47 = vpop.permute.xlu1 %3440 }
 0x430   : > { %v6915_v53 = vpop.permute.xlu0 %3438 }
 0x431   : > { %v6918_v22 = vpop.permute.xlu1 %3444 }
 0x434   : > { %v6921_v58 = vpop.permute.xlu0 %3442 }
 0x435   : > { %v6924_v61 = vpop.permute.xlu1 %3448 }
 0x438   : > { %v6927_v13 = vpop.permute.xlu0 %3446 }
 0x439   : > { %v6930_v26 = vpop.permute.xlu1 %3484 }
 0x43a   : > { %v3613_v28 = vsel %vm3611_vm4, %v3596_v25, %v6930_v26  ;;  %v4079_v26 = vadd.f32 -1.0, %v4990_v49  ;;  %v7047_v49 = vmul.f32 %v5030_v57, %v4992_v20 }
 0x43c   : > { %v6933_v33 = vpop.permute.xlu0 %3482  ;;  %vm2661_vm5 = vcmp.gt.f32.partialorder %v7047_v49, 0.0 }
 0x43d   : > { %v6936_v45 = vpop.permute.xlu1 %3488  ;;  %v3612_v24 = vsel %vm3611_vm4, %v3595_v9, %v6933_v33  ;;  %v4080_v9 = vadd.f32 -1.0, %v4998_v0 }
 0x43e   : > { %v3615_v25 = vsel %vm3611_vm4, %v3598_v14, %v6936_v45  ;;  %v4081_v45 = vadd.f32 -1.0, %v4996_v46 }
 0x43f   : > { %v2717_v57 = vsel %vm2653_vm2, %v6980_v59, %v4080_v9 }
 0x440   : > { %v6943_v23 = vpop.permute.xlu0 %3486  ;;  %v2718_v46 = vsel %vm2654_vm15, %v6973_v12, %v4081_v45 }
 0x441   : > { %v6946_v7 = vpop.permute.xlu1 %3492  ;;  %v3614_v27 = vsel %vm3611_vm4, %v3597_v2, %v6943_v23 }
 0x444   : > { %v6955_v34 = vpop.permute.xlu0 %3490 }
 0x445   : > { %v6958_v38 = vpop.permute.xlu1 %3496 }
 0x448   : > { %v6965_v56 = vpop.permute.xlu0 %3494 }
 0x449   : > { %v6970_v8 = vpop.permute.xlu1 %3500 }
 0x44c   : > { %v6976_v30 = vpop.permute.xlu0 %3498 }
 0x44d   : > { %v6982_v6 = vpop.permute.xlu1 %3504 }
 0x450   : > { %v6988_v37 = vpop.permute.xlu0 %3502 }
 0x451   : > { %v6993_v32 = vpop.permute.xlu1 %3508 }
 0x454   : > { %v7003_v10 = vpop.permute.xlu0 %3506 }
 0x455   : > { %v7006_v52 = vpop.permute.xlu1 %3512 }
 0x458   : > { %v7018_v63 = vpop.permute.xlu0 %3510 }
 0x459   : > { %v3549_v60 = vpop.permute.xlu1 %3548 }
 0x45a   : > { %v3630_v19 = vsel %vm3628_vm6, %v3613_v28, %v3549_v60  ;;  %v2716_v28 = vsel %vm2652_vm9, %v6961_v1, %v4079_v26  ;;  %v5000_v60 = vpop.eup %4999  ;;  %v2691_v1 = vmul.f32 1.442695, %v7047_v49 }
 0x45b   : > { %3647 = vst.msk [vmem:[%s5658_s17 + $0x8] sm:$0xff] %vm3645_vm7, %v3630_v19  ;;  %v3600_v20 = vsel %vm3594_vm1, %v2716_v28, %v6901_v42  ;;  %v2715_v42 = vsel %vm2651_vm10, %v6968_v36, %v4078_v16  ;;  %v5002_v23 = vpop.eup %5001  ;;  %v4083_v14 = vadd.f32 -1.0, %v5000_v60  ;;  %v3602_v36 = vsel %vm3594_vm1, %v2718_v46, %v6905_v43 }
 0x45c   : > { %v3547_v54 = vpop.permute.xlu0 %3546  ;;  %v3617_v44 = vsel %vm3611_vm4, %v3600_v20, %v6946_v7  ;;  %v3599_v26 = vsel %vm3594_vm1, %v2715_v42, %v6903_v50  ;;  %v5004_v7 = vpop.eup %5003  ;;  %5013 = vpow2.f32 %v2691_v1  ;;  %v3619_v50 = vsel %vm3611_vm4, %v3602_v36, %v6958_v38 }
 0x45d   : > { %v3629_v21 = vsel %vm3628_vm6, %v3612_v24, %v3547_v54  ;;  %v3553_v15 = vpop.permute.xlu1 %3552  ;;  %v3616_v39 = vsel %vm3611_vm4, %v3599_v26, %v6955_v34  ;;  %v5006_v5 = vpop.eup %5005  ;;  %v4082_v43 = vadd.f32 -1.0, %v5002_v23  ;;  %v4085_v38 = vadd.f32 -1.0, %v5004_v7 }
 0x45e   : > { %3646 = vst.msk [vmem:[%s5658_s17] sm:$0xff] %vm3645_vm7, %v3629_v21  ;;  %v3632_v33 = vsel %vm3628_vm6, %v3615_v25, %v3553_v15  ;;  %v3601_v25 = vsel %vm3594_vm1, %v2717_v57, %v6907_v17  ;;  %v2720_v21 = vsel %vm2656_vm3, %v6985_v48, %v4083_v14  ;;  %v5008_v15 = vpop.eup %5007  ;;  %v4084_v2 = vadd.f32 -1.0, %v5006_v5 }
 0x45f   : > { %3649 = vst.msk [vmem:[%s5658_s17 + $0x18] sm:$0xff] %vm3645_vm7, %v3632_v33  ;;  %v3604_v59 = vsel %vm3594_vm1, %v2720_v21, %v6909_v18  ;;  %v3618_v16 = vsel %vm3611_vm4, %v3601_v25, %v6965_v56  ;;  %v2719_v0 = vsel %vm2655_vm8, %v6991_v11, %v4082_v43  ;;  %v5010_v28 = vpop.eup %5009  ;;  %v2722_v45 = vsel %vm2658_vm14, %v6996_v4, %v4085_v38 }
 0x460   : > { %v3551_v51 = vpop.permute.xlu0 %3550  ;;  %v3621_v33 = vsel %vm3611_vm4, %v3604_v59, %v6970_v8  ;;  %v3603_v56 = vsel %vm3594_vm1, %v2719_v0, %v6911_v55  ;;  %v4087_v8 = vadd.f32 -1.0, %v5008_v15  ;;  %v5012_v60 = vpop.eup %5011  ;;  %v3606_v11 = vsel %vm3594_vm1, %v2722_v45, %v6913_v47 }
 0x461   : > { %v3631_v19 = vsel %vm3628_vm6, %v3614_v27, %v3551_v51  ;;  %v3557_v40 = vpop.permute.xlu1 %3556  ;;  %v3620_v20 = vsel %vm3611_vm4, %v3603_v56, %v6976_v30  ;;  %v3623_v51 = vsel %vm3611_vm4, %v3606_v11, %v6982_v6  ;;  %v2721_v1 = vsel %vm2657_vm11, %v7001_v29, %v4084_v2 }
 0x462   : > { %3648 = vst.msk [vmem:[%s5658_s17 + $0x10] sm:$0xff] %vm3645_vm7, %v3631_v19  ;;  %v3634_v62 = vsel %vm3628_vm6, %v3617_v44, %v3557_v40  ;;  %v4086_v44 = vadd.f32 -1.0, %v5010_v28  ;;  %v3605_v19 = vsel %vm3594_vm1, %v2721_v1, %v6915_v53  ;;  %v2724_v40 = vsel %vm2660_vm12, %v7009_v41, %v4087_v8 }
 0x463   : > { %3651 = vst.msk [vmem:[%s5658_s17 + $0x28] sm:$0xff] %vm3645_vm7, %v3634_v62  ;;  %v4089_v6 = vadd.f32 -1.0, %v5012_v60  ;;  %v3608_v29 = vsel %vm3594_vm1, %v2724_v40, %v6918_v22  ;;  %v3622_v42 = vsel %vm3611_vm4, %v3605_v19, %v6988_v37 }
 0x464   : > { %v3555_v24 = vpop.permute.xlu0 %3554  ;;  %v3625_v62 = vsel %vm3611_vm4, %v3608_v29, %v6993_v32  ;;  %v2723_v41 = vsel %vm2659_vm13, %v7023_v3, %v4086_v44 }
 0x465   : > { %v3633_v12 = vsel %vm3628_vm6, %v3616_v39, %v3555_v24  ;;  %v3561_v54 = vpop.permute.xlu1 %3560  ;;  %v3607_v37 = vsel %vm3594_vm1, %v2723_v41, %v6921_v58  ;;  %v2726_v46 = vsel %vm2662_vm0, %v7028_v35, %v4089_v6 }
 0x466   : > { %3650 = vst.msk [vmem:[%s5658_s17 + $0x20] sm:$0xff] %vm3645_vm7, %v3633_v12  ;;  %v3636_v34 = vsel %vm3628_vm6, %v3619_v50, %v3561_v54  ;;  %v5014_v30 = vpop.eup %5013  ;;  %v3610_v32 = vsel %vm3594_vm1, %v2726_v46, %v6924_v61  ;;  %v3624_v3 = vsel %vm3611_vm4, %v3607_v37, %v7003_v10 }
 0x467   : > { %3653 = vst.msk [vmem:[%s5658_s17 + $0x38] sm:$0xff] %vm3645_vm7, %v3636_v34  ;;  %v4088_v26 = vadd.f32 -1.0, %v5014_v30  ;;  %v3627_v7 = vsel %vm3611_vm4, %v3610_v32, %v7006_v52 }
 0x468   : > { %v3559_v31 = vpop.permute.xlu0 %3558 }
 0x469   : > { %v3635_v17 = vsel %vm3628_vm6, %v3618_v16, %v3559_v31  ;;  %v3565_v48 = vpop.permute.xlu1 %3564  ;;  %v2725_v35 = vsel %vm2661_vm5, %v7047_v49, %v4088_v26 }
 0x46a   : > { %3652 = vst.msk [vmem:[%s5658_s17 + $0x30] sm:$0xff] %vm3645_vm7, %v3635_v17  ;;  %v3638_v18 = vsel %vm3628_vm6, %v3621_v33, %v3565_v48  ;;  %v3609_v61 = vsel %vm3594_vm1, %v2725_v35, %v6927_v13 }
 0x46b   : > { %3655 = vst.msk [vmem:[%s5658_s17 + $0x48] sm:$0xff] %vm3645_vm7, %v3638_v18  ;;  %v3626_v10 = vsel %vm3611_vm4, %v3609_v61, %v7018_v63 }
 0x46c   : > { %v3563_v27 = vpop.permute.xlu0 %3562 }
 0x46d   : > { %v3637_v55 = vsel %vm3628_vm6, %v3620_v20, %v3563_v27  ;;  %v3569_v4 = vpop.permute.xlu1 %3568 }
 0x46e   : > { %3654 = vst.msk [vmem:[%s5658_s17 + $0x40] sm:$0xff] %vm3645_vm7, %v3637_v55  ;;  %v3640_v47 = vsel %vm3628_vm6, %v3623_v51, %v3569_v4 }
 0x46f   : > { %3657 = vst.msk [vmem:[%s5658_s17 + $0x58] sm:$0xff] %vm3645_vm7, %v3640_v47 }
 0x470   : > { %v3567_v9 = vpop.permute.xlu0 %3566 }
 0x471   : > { %v3639_v53 = vsel %vm3628_vm6, %v3622_v42, %v3567_v9  ;;  %v3573_v23 = vpop.permute.xlu1 %3572 }
 0x472   : > { %3656 = vst.msk [vmem:[%s5658_s17 + $0x50] sm:$0xff] %vm3645_vm7, %v3639_v53  ;;  %v3642_v22 = vsel %vm3628_vm6, %v3625_v62, %v3573_v23 }
 0x473   : > { %3659 = vst.msk [vmem:[%s5658_s17 + $0x68] sm:$0xff] %vm3645_vm7, %v3642_v22 }
 0x474   : > { %v3571_v14 = vpop.permute.xlu0 %3570 }
 0x475   : > { %v3641_v36 = vsel %vm3628_vm6, %v3624_v3, %v3571_v14  ;;  %v3577_v58 = vpop.permute.xlu1 %3576 }
 0x476   : > { %3658 = vst.msk [vmem:[%s5658_s17 + $0x60] sm:$0xff] %vm3645_vm7, %v3641_v36  ;;  %v3644_v39 = vsel %vm3628_vm6, %v3627_v7, %v3577_v58 }
 0x477   : > { %3661 = vst.msk [vmem:[%s5658_s17 + $0x78] sm:$0xff] %vm3645_vm7, %v3644_v39 }
 0x478   : > { %v3575_v24 = vpop.permute.xlu0 %3574 }
 0x479   : > { %v3643_v52 = vsel %vm3628_vm6, %v3626_v10, %v3575_v24 }
 0x47a   : > { %3660 = vst.msk [vmem:[%s5658_s17 + $0x70] sm:$0xff] %vm3645_vm7, %v3643_v52 }
 0x47b PF: > { %s7336_s21 = sld [smem:[#allocation20_spill]]  ;;  %s7338_s15 = sld [smem:[#allocation44_spill]] }
 0x47c   : > { %s3676_s1 = sshll.u32 %s5658_s17, 4  ;;  %s3663_s19 = scalar_lea.sflag [#allocation7], %s5637_s9  ;;  %s7182_s1 = int_to_ptr.vmem [resolvable:$true] %s3676_s1 }
 0x47d   : > { %s5157_s28 = scalar_lea.vmem %s7182_s1, 2048  ;;  %s5312_s16 = smov [#allocation13]  }
 0x47e   : > { %p5158_p6 = scmp.ne.s32.totalorder %s7182_s1, %s5157_s28  ;;  %s5161_s27 = sshll.u32 %s5312_s16, 4  ;;  %s5162_s27 = int_to_ptr.vmem [resolvable:$false] %s5161_s27 }
 0x47f   : > { %s5163_s26 = scalar_lea.vmem %s5162_s27, 4096  ;;  %p5164_p11 = scmp.lt.s32.totalorder %s7182_s1, %s5162_s27 }
 0x480   : > { %p5159_p5 = pnand %p5158_p6, %p5513_p9  ;;  %p5165_p4 = scmp.lt.s32.totalorder %s5163_s26, %s5157_s28 }
 0x481   : > { %s4144_s23 = sshll.u32 %s7336_s21, 11 }
 0x482   : > { %s7179_s18 = scalar_lea.hbm %s7338_s15, %s4144_s23  ;;  %p5160_p12 = pneg %p5159_p5 }
 0x483   : > { %p5166_p2 = por %p5165_p4, %p5164_p11 }
 0x485   : > { %p5167_p10 = pnand %p5166_p2, %p5160_p12 }
 0x487   : > { %5170 = shalt.err (!%p5167_p10)
}
 0x488   : > { %s5171_s17 = scalar_lea.hbm %s7179_s18, 2048  ;;  %s5175_s5 = scalar_lea.hbm %s7338_s15, 12288 }
 0x489   : > { %p5172_p0 = scmp.ne.s32.totalorder %s7179_s18, %s5171_s17  ;;  %p5176_p1 = scmp.lt.u32.totalorder %s7179_s18, %s7338_s15 }
 0x48a   : > { %p5177_p3 = scmp.lt.u32.totalorder %s5175_s5, %s5171_s17  ;;  %p5179_p6 = scmp.lt.u32.totalorder %s5171_s17, %s7179_s18 }
 0x48b   : > { %p5173_p13 = pnand %p5172_p0, %p5513_p9 }
 0x48c   : > { %p5178_p7 = por %p5177_p3, %p5176_p1 }
 0x48d   : > { %p5174_p8 = pneg %p5173_p13 }
 0x48e   : > { %p5180_p5 = por %p5179_p6, %p5178_p7 }
 0x490   : > { %p5181_p12 = pnand %p5180_p5, %p5174_p8 }
 0x492   : > { %5184 = shalt.err (!%p5181_p12)
}
 0x493   : > { %s5313_s24 = smov 128   ;;  %s5314_s21 = smov 8  }
 0x494   : > { %4414 = dma.vmem_to_hbm [thread:$0]  (%p5513_p9), %s7182_s1, 2048, %s7179_s18, %s3663_s19, %s5313_s24, %s5313_s24, %s5314_s21  }
 0x495 PF: > { %s7339_s23 = sld [smem:[#allocation19_spill]]  ;;  %s7340_s25 = sld [smem:[#allocation22_spill]] }
 0x496   : > { %p4439_p11 = scmp.ge.s32.totalorder %s5289_s12, 2 }
 0x49b   : > { %s3691_s3 = sand.u32 1, %s7339_s23   ;;  %p7341_p4 = scmp.ne.s32.totalorder %s7340_s25, 0 }
 0x49c   : > { %s3692_s28 = scalar_lea.sflag [#allocation7], %s3691_s3 }
 0x49d   : > { %p4431_p2 = pnand %p4439_p11, %p7341_p4 }
 0x49f   : > { %5244 = dma.done.wait (!%p4431_p2), %s3692_s28, 2048  }
 0x4a0   : > { %5246 = vsyncadd (!%p4431_p2), %s3692_s28, 4294965248  ;;  %s29_s12 = sadd.s32 1, %s5289_s12   ;;  %s7342_s8 = sld [smem:[#allocation21_spill]] }
 0x4a1   : > { %p26_p10 = scmp.ge.s32.totalorder %s29_s12, 20   ;;  %s7343_s20 = sld [smem:[#allocation24_spill]] }
 0x4a2   : > { %s7344_s28 = smov %s5253_s29  ;;  %s7345_s29 = smov %s5257_s30 }
 0x4a3   : > { %s7346_s30 = smov %s5594_s6  ;;  %s7347_s6 = smov %s5265_s7 }
 0x4a4   : > { %s7348_s7 = smov %s5269_s0  ;;  %s7349_s0 = smov %s5591_s10 }
 0x4a5   : > { %s7350_s9 = smov %s5285_s11  ;;  %s7352_s11 = smov %s7358_s13 }
 0x4a6   :  { %28 = sbr.rel (!%p26_p10) target bundleno = 25 (0x19), region = 128 }
 0x4a7   : > { %s7351_s10 = smov %s7343_s20 }
 0x4ad   :  { %3697 = vsyncpa [#allocation6], 1 }
 0x4ae   :  { %3699 = vsyncpa [#allocation6 + $0x1], 1 }
 0x4af   :  { %3700 = vsyncpa [#allocation9], 1 }
 0x4b0   :  { %3701 = vsyncpa [#allocation12], 1 }
 0x4b1   :  { %3703 = vsyncpa [#allocation12 + $0x1], 1 }
 0x4b2   :  { %3704 = vsyncpa [#allocation7], 1 }
 0x4b3   :  { %3706 = vsyncpa [#allocation7 + $0x1], 1 }

</bundles_post_ra>
